<compile_context>
chip_gen: v5e
topology: v5e:2x2
jax: 0.10.0
libtpu: 0.0.40
codegen_flags: <defaults>
</compile_context>

<pallas_src>
import jax
import jax.numpy as jnp
from jax import lax
from jax.experimental import pallas as pl
from jax.experimental.pallas import tpu as pltpu


# ---------------------------------------------------------------------------
# Fused kernel
# ---------------------------------------------------------------------------
def _net_kernel(x_ref, w1_ref, b1_ref, w2_ref, b2_ref, fw1_ref, fb1_ref,
                fw2_ref, fb2_ref, o_ref, xr_ref, a2_ref):
    f32 = jnp.float32
    tb = x_ref.shape[1]                        # batch tile (sublane dim)

    # ---- conv1 as one banded matmul ---------------------------------------
    # Row-im2col: xr[h*tb + b, di*28 + w'] = x[b, h+di, w'],  h in [0,24).
    for di in range(5):                        # 5 unrolled lane-offset stores
        xr_ref[:, di * 28:(di + 1) * 28] = (
            x_ref[di:di + 24, :, :].reshape(24 * tb, 28))
    # w1_ref emits even-w outputs in lanes [0:240) and odd-w in [256:496),
    # each laid out as wp*20 + c;  K = 140.
    y1 = jnp.dot(xr_ref[...], w1_ref[...], preferred_element_type=f32)  # (24tb,512)

    # ---- 2x2 max-pool + bias + relu (elementwise / aligned slices only) ----
    yw = jnp.maximum(y1[:, 0:240], y1[:, 256:496])          # pool over W
    z = yw.reshape(12, 2, tb, 240)                           # rows: (hp, r, b)
    p1 = jnp.maximum(jnp.maximum(z[:, 0], z[:, 1]) + b1_ref[...], 0.0)
    # p1: (12, tb, 240) with lanes = wq*20 + c   (pooled 12x12x20 map)

    # ---- conv2 as one banded matmul ----------------------------------------
    # Row-im2col over the pooled map: a2[h*tb + b, di*240 + w'*20 + c].
    for di in range(5):
        a2_ref[:, di * 240:(di + 1) * 240] = p1[di:di + 8].reshape(8 * tb, 240)
    y2 = jnp.dot(a2_ref[...], w2_ref[...], preferred_element_type=f32)   # (8tb,512)

    yw2 = jnp.maximum(y2[:, 0:200], y2[:, 256:456])          # pool over W
    z2 = yw2.reshape(4, 2, tb, 200)
    p2 = jnp.maximum(jnp.maximum(z2[:, 0], z2[:, 1]) + b2_ref[...], 0.0)
    # p2: (4, tb, 200) with lanes = wp*50 + c2   (pooled 4x4x50 map)

    # ---- fc1 + relu: 4 accumulating K=200 MXU matmuls ----------------------
    acc = jnp.dot(p2[0], fw1_ref[0], preferred_element_type=f32)
    for hp in range(1, 4):
        acc = acc + jnp.dot(p2[hp], fw1_ref[hp], preferred_element_type=f32)
    hfc = jnp.maximum(acc + fb1_ref[...], 0.0)               # (tb, 500)

    # ---- fc2 + log_softmax --------------------------------------------------
    logits = jnp.dot(hfc, fw2_ref[...], preferred_element_type=f32) + fb2_ref[...]
    m = jnp.max(logits, axis=-1, keepdims=True)
    s = logits - m
    lse = jnp.log(jnp.sum(jnp.exp(s), axis=-1, keepdims=True))
    o_ref[...] = s - lse


# ---------------------------------------------------------------------------
# One-time parameter prep (hoisted out of the forward path)
# ---------------------------------------------------------------------------
def prep_params(params):
    w1, b1, w2, b2, fw1, fb1, fw2, fb2 = params
    f32 = jnp.float32

    # conv1 banded weight: rows di*28 + w'; cols [0:240) even output w (w=2wp),
    # [256:496) odd output w (w=2wp+1), both laid out as wp*20 + c.
    wt1 = jnp.transpose(w1[:, 0], (1, 2, 0)).astype(f32)      # (5,5,20) [di,dj,c]
    e1 = jnp.zeros((5, 28, 12, 20), f32)
    o1 = jnp.zeros((5, 28, 12, 20), f32)
    for wp in range(12):
        for dj in range(5):
            e1 = e1.at[:, 2 * wp + dj, wp, :].set(wt1[:, dj, :])
            o1 = o1.at[:, 2 * wp + 1 + dj, wp, :].set(wt1[:, dj, :])
    w1m = jnp.zeros((5, 28, 512), f32)
    w1m = w1m.at[:, :, 0:240].set(e1.reshape(5, 28, 240))
    w1m = w1m.at[:, :, 256:496].set(o1.reshape(5, 28, 240))
    w1m = w1m.reshape(140, 512)
    b1t = jnp.tile(b1, 12).reshape(1, 240).astype(f32)

    # conv2 banded weight: rows di*240 + w'*20 + c; cols [0:200) even w,
    # [256:456) odd w, laid out as wp*50 + c2.
    wt2 = jnp.transpose(w2, (2, 3, 1, 0)).astype(f32)         # (5,5,20,50) [di,dj,c,c2]
    e2 = jnp.zeros((5, 12, 20, 4, 50), f32)
    o2 = jnp.zeros((5, 12, 20, 4, 50), f32)
    for wp in range(4):
        for dj in range(5):
            e2 = e2.at[:, 2 * wp + dj, :, wp, :].set(wt2[:, dj, :, :])
            o2 = o2.at[:, 2 * wp + 1 + dj, :, wp, :].set(wt2[:, dj, :, :])
    w2m = jnp.zeros((5, 12, 20, 512), f32)
    w2m = w2m.at[..., 0:200].set(e2.reshape(5, 12, 20, 200))
    w2m = w2m.at[..., 256:456].set(o2.reshape(5, 12, 20, 200))
    w2m = w2m.reshape(1200, 512)
    b2t = jnp.tile(b2, 4).reshape(1, 200).astype(f32)

    # fc1 weight -> [hp, wp*50 + c2, n]: keeps PyTorch's NCHW flatten order.
    fw1h = jnp.transpose(fw1.reshape(500, 50, 4, 4),
                         (2, 3, 1, 0)).reshape(4, 200, 500).astype(f32)
    fw2t = fw2.T.astype(f32)                                  # (500, 10)
    return (w1m, b1t, w2m, b2t, fw1h,
            fb1.reshape(1, 500).astype(f32), fw2t, fb2.reshape(1, 10).astype(f32))


# ---------------------------------------------------------------------------
# Forward pass: one fused pallas_call gridded over batch tiles
# ---------------------------------------------------------------------------
def net_forward(x_nchw, pp):
    w1m, b1t, w2m, b2t, fw1h, fb1r, fw2t, fb2r = pp
    B = x_nchw.shape[0]
    x = x_nchw.reshape(B, 28, 28)              # C == 1: drop singleton channel
    tb = min(64, ((B + 7) // 8) * 8)           # batch tile (sublane aligned)
    bp = ((B + tb - 1) // tb) * tb
    if bp != B:
        x = jnp.pad(x, ((0, bp - B), (0, 0), (0, 0)))
    xt = jnp.transpose(x, (1, 0, 2))           # (28, Bp, 28): rows=(h,b), lanes=w

    out = pl.pallas_call(
        _net_kernel,
        out_shape=jax.ShapeDtypeStruct((bp, 10), jnp.float32),
        grid_spec=pltpu.PrefetchScalarGridSpec(
            num_scalar_prefetch=0,
            grid=(bp // tb,),
            in_specs=[
                pl.BlockSpec((28, tb, 28), lambda i: (0, i, 0)),    # input rows
                pl.BlockSpec((140, 512), lambda i: (0, 0)),         # conv1 banded w
                pl.BlockSpec((1, 240), lambda i: (0, 0)),           # conv1 bias (tiled)
                pl.BlockSpec((1200, 512), lambda i: (0, 0)),        # conv2 banded w
                pl.BlockSpec((1, 200), lambda i: (0, 0)),           # conv2 bias (tiled)
                pl.BlockSpec((4, 200, 500), lambda i: (0, 0, 0)),   # fc1 w per pooled row
                pl.BlockSpec((1, 500), lambda i: (0, 0)),           # fc1 b
                pl.BlockSpec((500, 10), lambda i: (0, 0)),          # fc2 w
                pl.BlockSpec((1, 10), lambda i: (0, 0)),            # fc2 b
            ],
            out_specs=pl.BlockSpec((tb, 10), lambda i: (i, 0)),
            scratch_shapes=[
                pltpu.VMEM((24 * tb, 140), jnp.float32),   # conv1 row-im2col
                pltpu.VMEM((8 * tb, 1200), jnp.float32),   # conv2 row-im2col
            ],
        ),
        compiler_params=pltpu.CompilerParams(
            dimension_semantics=("parallel",),
            vmem_limit_bytes=48 * 1024 * 1024,
        ),
    )(xt, w1m, b1t, w2m, b2t, fw1h, fb1r, fw2t, fb2r)
    return out[:B]


# ---------------------------------------------------------------------------
# Params + pure-JAX reference (for the correctness check)
# ---------------------------------------------------------------------------
def init_params(key):
    ks = jax.random.split(key, 8)
    scale = 0.05
    w1 = scale * jax.random.normal(ks[0], (20, 1, 5, 5), jnp.float32)
    b1 = scale * jax.random.normal(ks[1], (20,), jnp.float32)
    w2 = scale * jax.random.normal(ks[2], (50, 20, 5, 5), jnp.float32)
    b2 = scale * jax.random.normal(ks[3], (50,), jnp.float32)
    fw1 = scale * jax.random.normal(ks[4], (500, 4 * 4 * 50), jnp.float32)
    fb1 = scale * jax.random.normal(ks[5], (500,), jnp.float32)
    fw2 = scale * jax.random.normal(ks[6], (10, 500), jnp.float32)
    fb2 = scale * jax.random.normal(ks[7], (10,), jnp.float32)
    return (w1, b1, w2, b2, fw1, fb1, fw2, fb2)


def reference_forward(x, params):
    w1, b1, w2, b2, fw1, fb1, fw2, fb2 = params
    dn = ("NCHW", "OIHW", "NCHW")
    hi = lax.Precision.HIGHEST
    y = lax.conv_general_dilated(x, w1, (1, 1), "VALID",
                                 dimension_numbers=dn, precision=hi)
    y = jax.nn.relu(y + b1[None, :, None, None])
    y = lax.reduce_window(y, -jnp.inf, lax.max, (1, 1, 2, 2), (1, 1, 2, 2), "VALID")
    y = lax.conv_general_dilated(y, w2, (1, 1), "VALID",
                                 dimension_numbers=dn, precision=hi)
    y = jax.nn.relu(y + b2[None, :, None, None])
    y = lax.reduce_window(y, -jnp.inf, lax.max, (1, 1, 2, 2), (1, 1, 2, 2), "VALID")
    y = y.reshape(y.shape[0], -1)                            # NCHW flatten order
    y = jax.nn.relu(jnp.dot(y, fw1.T, precision=hi) + fb1)
    y = jnp.dot(y, fw2.T, precision=hi) + fb2
    return jax.nn.log_softmax(y, axis=-1)


if __name__ == "__main__":
    key = jax.random.PRNGKey(0)
    k_x, k_p = jax.random.split(key)
    # 28x28x1 input is what fc1 = 4*4*50 implies; small batch for the check.
    x = jax.random.normal(k_x, (2, 1, 28, 28), jnp.float32)
    params = init_params(k_p)
    pp = prep_params(params)

    fwd = jax.jit(net_forward)
    out = jax.block_until_ready(fwd(x, pp))

    assert out.shape == (2, 10)
    # log_softmax rows must sum to 1 in probability space
    assert jnp.allclose(jnp.sum(jnp.exp(out), axis=1), 1.0, atol=1e-4)
    # check against a pure-JAX reference of the PyTorch module.  1e-2 leaves
    # margin for MXU f32 pass precision while remaining far below the O(0.1)
    # error any layout/permutation bug would introduce.
    ref = reference_forward(x, params)
    max_err = float(jnp.max(jnp.abs(out - ref)))
    assert max_err < 1e-2, f"mismatch vs reference: max abs err {max_err}"
    print("KERNEL_OK")
</pallas_src>

<mosaic_0001>
module attributes {stable_mosaic.version = 11 : i64} {
  func.func @_net_kernel(%arg0: i32, %arg1: memref<28x8x28xf32, #tpu.memory_space<vmem>>, %arg2: memref<140x512xf32, #tpu.memory_space<vmem>>, %arg3: memref<1x240xf32, #tpu.memory_space<vmem>>, %arg4: memref<1200x512xf32, #tpu.memory_space<vmem>>, %arg5: memref<1x200xf32, #tpu.memory_space<vmem>>, %arg6: memref<4x200x500xf32, #tpu.memory_space<vmem>>, %arg7: memref<1x500xf32, #tpu.memory_space<vmem>>, %arg8: memref<500x10xf32, #tpu.memory_space<vmem>>, %arg9: memref<1x10xf32, #tpu.memory_space<vmem>>, %arg10: memref<8x10xf32, #tpu.memory_space<vmem>>, %arg11: memref<192x140xf32, #tpu.memory_space<vmem>>, %arg12: memref<64x1200xf32, #tpu.memory_space<vmem>>) attributes {dimension_semantics = [#tpu.dimension_semantics<parallel>], iteration_bounds = array<i64: 1>, scalar_prefetch = 0 : i64, scratch_operands = 2 : i64, tpu.core_type = #tpu.core_type<tc>, window_params = [{transform_indices = @transform_0, window_bounds = array<i64: 28, 8, 28>}, {pipeline_mode = #tpu.pipeline_mode<synchronous>, transform_indices = @transform_1, window_bounds = array<i64: 140, 512>}, {pipeline_mode = #tpu.pipeline_mode<synchronous>, transform_indices = @transform_2, window_bounds = array<i64: 1, 240>}, {pipeline_mode = #tpu.pipeline_mode<synchronous>, transform_indices = @transform_3, window_bounds = array<i64: 1200, 512>}, {pipeline_mode = #tpu.pipeline_mode<synchronous>, transform_indices = @transform_4, window_bounds = array<i64: 1, 200>}, {pipeline_mode = #tpu.pipeline_mode<synchronous>, transform_indices = @transform_5, window_bounds = array<i64: 4, 200, 500>}, {pipeline_mode = #tpu.pipeline_mode<synchronous>, transform_indices = @transform_6, window_bounds = array<i64: 1, 500>}, {pipeline_mode = #tpu.pipeline_mode<synchronous>, transform_indices = @transform_7, window_bounds = array<i64: 500, 10>}, {pipeline_mode = #tpu.pipeline_mode<synchronous>, transform_indices = @transform_8, window_bounds = array<i64: 1, 10>}, {transform_indices = @transform_9, window_bounds = array<i64: 8, 10>}]} {
    %c0 = arith.constant 0 : index
    %c0_0 = arith.constant 0 : index
    %c0_1 = arith.constant 0 : index
    %0 = vector.load %arg1[%c0, %c0_0, %c0_1] : memref<28x8x28xf32, #tpu.memory_space<vmem>>, vector<24x8x28xf32>
    %1 = vector.shape_cast %0 : vector<24x8x28xf32> to vector<192x28xf32>
    %c0_2 = arith.constant 0 : index
    %c0_3 = arith.constant 0 : index
    %2 = vector.load %arg11[%c0_2, %c0_3] : memref<192x140xf32, #tpu.memory_space<vmem>>, vector<192x28xf32>
    tpu.vector_store %arg11[%c0_2, %c0_3], %1 {strides = array<i32>} : memref<192x140xf32, #tpu.memory_space<vmem>>, vector<192x28xf32>,
    %c1 = arith.constant 1 : index
    %c0_4 = arith.constant 0 : index
    %c0_5 = arith.constant 0 : index
    %3 = vector.load %arg1[%c1, %c0_4, %c0_5] : memref<28x8x28xf32, #tpu.memory_space<vmem>>, vector<24x8x28xf32>
    %4 = vector.shape_cast %3 : vector<24x8x28xf32> to vector<192x28xf32>
    %c0_6 = arith.constant 0 : index
    %c28 = arith.constant 28 : index
    %5 = vector.load %arg11[%c0_6, %c28] : memref<192x140xf32, #tpu.memory_space<vmem>>, vector<192x28xf32>
    tpu.vector_store %arg11[%c0_6, %c28], %4 {strides = array<i32>} : memref<192x140xf32, #tpu.memory_space<vmem>>, vector<192x28xf32>,
    %c2 = arith.constant 2 : index
    %c0_7 = arith.constant 0 : index
    %c0_8 = arith.constant 0 : index
    %6 = vector.load %arg1[%c2, %c0_7, %c0_8] : memref<28x8x28xf32, #tpu.memory_space<vmem>>, vector<24x8x28xf32>
    %7 = vector.shape_cast %6 : vector<24x8x28xf32> to vector<192x28xf32>
    %c0_9 = arith.constant 0 : index
    %c56 = arith.constant 56 : index
    %8 = vector.load %arg11[%c0_9, %c56] : memref<192x140xf32, #tpu.memory_space<vmem>>, vector<192x28xf32>
    tpu.vector_store %arg11[%c0_9, %c56], %7 {strides = array<i32>} : memref<192x140xf32, #tpu.memory_space<vmem>>, vector<192x28xf32>,
    %c3 = arith.constant 3 : index
    %c0_10 = arith.constant 0 : index
    %c0_11 = arith.constant 0 : index
    %9 = vector.load %arg1[%c3, %c0_10, %c0_11] : memref<28x8x28xf32, #tpu.memory_space<vmem>>, vector<24x8x28xf32>
    %10 = vector.shape_cast %9 : vector<24x8x28xf32> to vector<192x28xf32>
    %c0_12 = arith.constant 0 : index
    %c84 = arith.constant 84 : index
    %11 = vector.load %arg11[%c0_12, %c84] : memref<192x140xf32, #tpu.memory_space<vmem>>, vector<192x28xf32>
    tpu.vector_store %arg11[%c0_12, %c84], %10 {strides = array<i32>} : memref<192x140xf32, #tpu.memory_space<vmem>>, vector<192x28xf32>,
    %c4 = arith.constant 4 : index
    %c0_13 = arith.constant 0 : index
    %c0_14 = arith.constant 0 : index
    %12 = vector.load %arg1[%c4, %c0_13, %c0_14] : memref<28x8x28xf32, #tpu.memory_space<vmem>>, vector<24x8x28xf32>
    %13 = vector.shape_cast %12 : vector<24x8x28xf32> to vector<192x28xf32>
    %c0_15 = arith.constant 0 : index
    %c112 = arith.constant 112 : index
    %14 = vector.load %arg11[%c0_15, %c112] : memref<192x140xf32, #tpu.memory_space<vmem>>, vector<192x28xf32>
    tpu.vector_store %arg11[%c0_15, %c112], %13 {strides = array<i32>} : memref<192x140xf32, #tpu.memory_space<vmem>>, vector<192x28xf32>,
    %c0_16 = arith.constant 0 : index
    %c0_17 = arith.constant 0 : index
    %15 = vector.load %arg11[%c0_16, %c0_17] : memref<192x140xf32, #tpu.memory_space<vmem>>, vector<192x140xf32>
    %c0_18 = arith.constant 0 : index
    %c0_19 = arith.constant 0 : index
    %16 = vector.load %arg2[%c0_18, %c0_19] : memref<140x512xf32, #tpu.memory_space<vmem>>, vector<140x512xf32>
    %cst = arith.constant dense<0.000000e+00> : vector<192x512xf32>
    %17 = tpu.matmul %15, %16, %cst {dimension_numbers = #tpu.dot_dimension_numbers<[1], [0], [0], [1], [0, 0, 1, 1], [], []>} : vector<192x140xf32>, vector<140x512xf32>, vector<192x512xf32> -> vector<192x512xf32>
    %18 = vector.extract_strided_slice %17 {offsets = [0, 0], sizes = [192, 240], strides = [1, 1]} : vector<192x512xf32> to vector<192x240xf32>
    %19 = vector.extract_strided_slice %17 {offsets = [0, 256], sizes = [192, 240], strides = [1, 1]} : vector<192x512xf32> to vector<192x240xf32>
    %20 = arith.maximumf %18, %19 : vector<192x240xf32>
    %21 = vector.shape_cast %20 : vector<192x240xf32> to vector<12x2x8x240xf32>
    %22 = vector.extract_strided_slice %21 {offsets = [0, 0, 0, 0], sizes = [12, 1, 8, 240], strides = [1, 1, 1, 1]} : vector<12x2x8x240xf32> to vector<12x1x8x240xf32>
    %23 = vector.shape_cast %22 : vector<12x1x8x240xf32> to vector<12x8x240xf32>
    %24 = vector.extract_strided_slice %21 {offsets = [0, 1, 0, 0], sizes = [12, 1, 8, 240], strides = [1, 1, 1, 1]} : vector<12x2x8x240xf32> to vector<12x1x8x240xf32>
    %25 = vector.shape_cast %24 : vector<12x1x8x240xf32> to vector<12x8x240xf32>
    %26 = arith.maximumf %23, %25 : vector<12x8x240xf32>
    %c0_20 = arith.constant 0 : index
    %c0_21 = arith.constant 0 : index
    %27 = vector.load %arg3[%c0_20, %c0_21] : memref<1x240xf32, #tpu.memory_space<vmem>>, vector<1x240xf32>
    %28 = vector.shape_cast %27 : vector<1x240xf32> to vector<1x1x240xf32>
    %29 = vector.broadcast %28 : vector<1x1x240xf32> to vector<12x8x240xf32>
    %30 = arith.addf %26, %29 : vector<12x8x240xf32>
    %cst_22 = arith.constant 0.000000e+00 : f32
    %31 = vector.broadcast %cst_22 : f32 to vector<12x8x240xf32>
    %32 = arith.maximumf %30, %31 : vector<12x8x240xf32>
    %33 = vector.extract_strided_slice %32 {offsets = [0, 0, 0], sizes = [8, 8, 240], strides = [1, 1, 1]} : vector<12x8x240xf32> to vector<8x8x240xf32>
    %34 = vector.shape_cast %33 : vector<8x8x240xf32> to vector<64x240xf32>
    %c0_23 = arith.constant 0 : index
    %c0_24 = arith.constant 0 : index
    %35 = vector.load %arg12[%c0_23, %c0_24] : memref<64x1200xf32, #tpu.memory_space<vmem>>, vector<64x240xf32>
    tpu.vector_store %arg12[%c0_23, %c0_24], %34 {strides = array<i32>} : memref<64x1200xf32, #tpu.memory_space<vmem>>, vector<64x240xf32>,
    %36 = vector.extract_strided_slice %32 {offsets = [1, 0, 0], sizes = [8, 8, 240], strides = [1, 1, 1]} : vector<12x8x240xf32> to vector<8x8x240xf32>
    %37 = vector.shape_cast %36 : vector<8x8x240xf32> to vector<64x240xf32>
    %c0_25 = arith.constant 0 : index
    %c240 = arith.constant 240 : index
    %38 = vector.load %arg12[%c0_25, %c240] : memref<64x1200xf32, #tpu.memory_space<vmem>>, vector<64x240xf32>
    tpu.vector_store %arg12[%c0_25, %c240], %37 {strides = array<i32>} : memref<64x1200xf32, #tpu.memory_space<vmem>>, vector<64x240xf32>,
    %39 = vector.extract_strided_slice %32 {offsets = [2, 0, 0], sizes = [8, 8, 240], strides = [1, 1, 1]} : vector<12x8x240xf32> to vector<8x8x240xf32>
    %40 = vector.shape_cast %39 : vector<8x8x240xf32> to vector<64x240xf32>
    %c0_26 = arith.constant 0 : index
    %c480 = arith.constant 480 : index
    %41 = vector.load %arg12[%c0_26, %c480] : memref<64x1200xf32, #tpu.memory_space<vmem>>, vector<64x240xf32>
    tpu.vector_store %arg12[%c0_26, %c480], %40 {strides = array<i32>} : memref<64x1200xf32, #tpu.memory_space<vmem>>, vector<64x240xf32>,
    %42 = vector.extract_strided_slice %32 {offsets = [3, 0, 0], sizes = [8, 8, 240], strides = [1, 1, 1]} : vector<12x8x240xf32> to vector<8x8x240xf32>
    %43 = vector.shape_cast %42 : vector<8x8x240xf32> to vector<64x240xf32>
    %c0_27 = arith.constant 0 : index
    %c720 = arith.constant 720 : index
    %44 = vector.load %arg12[%c0_27, %c720] : memref<64x1200xf32, #tpu.memory_space<vmem>>, vector<64x240xf32>
    tpu.vector_store %arg12[%c0_27, %c720], %43 {strides = array<i32>} : memref<64x1200xf32, #tpu.memory_space<vmem>>, vector<64x240xf32>,
    %45 = vector.extract_strided_slice %32 {offsets = [4, 0, 0], sizes = [8, 8, 240], strides = [1, 1, 1]} : vector<12x8x240xf32> to vector<8x8x240xf32>
    %46 = vector.shape_cast %45 : vector<8x8x240xf32> to vector<64x240xf32>
    %c0_28 = arith.constant 0 : index
    %c960 = arith.constant 960 : index
    %47 = vector.load %arg12[%c0_28, %c960] : memref<64x1200xf32, #tpu.memory_space<vmem>>, vector<64x240xf32>
    tpu.vector_store %arg12[%c0_28, %c960], %46 {strides = array<i32>} : memref<64x1200xf32, #tpu.memory_space<vmem>>, vector<64x240xf32>,
    %c0_29 = arith.constant 0 : index
    %c0_30 = arith.constant 0 : index
    %48 = vector.load %arg12[%c0_29, %c0_30] : memref<64x1200xf32, #tpu.memory_space<vmem>>, vector<64x1200xf32>
    %c0_31 = arith.constant 0 : index
    %c0_32 = arith.constant 0 : index
    %49 = vector.load %arg4[%c0_31, %c0_32] : memref<1200x512xf32, #tpu.memory_space<vmem>>, vector<1200x512xf32>
    %cst_33 = arith.constant dense<0.000000e+00> : vector<64x512xf32>
    %50 = tpu.matmul %48, %49, %cst_33 {dimension_numbers = #tpu.dot_dimension_numbers<[1], [0], [0], [1], [0, 0, 1, 1], [], []>} : vector<64x1200xf32>, vector<1200x512xf32>, vector<64x512xf32> -> vector<64x512xf32>
    %51 = vector.extract_strided_slice %50 {offsets = [0, 0], sizes = [64, 200], strides = [1, 1]} : vector<64x512xf32> to vector<64x200xf32>
    %52 = vector.extract_strided_slice %50 {offsets = [0, 256], sizes = [64, 200], strides = [1, 1]} : vector<64x512xf32> to vector<64x200xf32>
    %53 = arith.maximumf %51, %52 : vector<64x200xf32>
    %54 = vector.shape_cast %53 : vector<64x200xf32> to vector<4x2x8x200xf32>
    %55 = vector.extract_strided_slice %54 {offsets = [0, 0, 0, 0], sizes = [4, 1, 8, 200], strides = [1, 1, 1, 1]} : vector<4x2x8x200xf32> to vector<4x1x8x200xf32>
    %56 = vector.shape_cast %55 : vector<4x1x8x200xf32> to vector<4x8x200xf32>
    %57 = vector.extract_strided_slice %54 {offsets = [0, 1, 0, 0], sizes = [4, 1, 8, 200], strides = [1, 1, 1, 1]} : vector<4x2x8x200xf32> to vector<4x1x8x200xf32>
    %58 = vector.shape_cast %57 : vector<4x1x8x200xf32> to vector<4x8x200xf32>
    %59 = arith.maximumf %56, %58 : vector<4x8x200xf32>
    %c0_34 = arith.constant 0 : index
    %c0_35 = arith.constant 0 : index
    %60 = vector.load %arg5[%c0_34, %c0_35] : memref<1x200xf32, #tpu.memory_space<vmem>>, vector<1x200xf32>
    %61 = vector.shape_cast %60 : vector<1x200xf32> to vector<1x1x200xf32>
    %62 = vector.broadcast %61 : vector<1x1x200xf32> to vector<4x8x200xf32>
    %63 = arith.addf %59, %62 : vector<4x8x200xf32>
    %cst_36 = arith.constant 0.000000e+00 : f32
    %64 = vector.broadcast %cst_36 : f32 to vector<4x8x200xf32>
    %65 = arith.maximumf %63, %64 : vector<4x8x200xf32>
    %66 = vector.extract_strided_slice %65 {offsets = [0, 0, 0], sizes = [1, 8, 200], strides = [1, 1, 1]} : vector<4x8x200xf32> to vector<1x8x200xf32>
    %67 = vector.shape_cast %66 : vector<1x8x200xf32> to vector<8x200xf32>
    %c0_37 = arith.constant 0 : index
    %c0_38 = arith.constant 0 : index
    %c0_39 = arith.constant 0 : index
    %68 = vector.load %arg6[%c0_37, %c0_38, %c0_39] : memref<4x200x500xf32, #tpu.memory_space<vmem>>, vector<1x200x500xf32>
    %69 = vector.shape_cast %68 : vector<1x200x500xf32> to vector<200x500xf32>
    %cst_40 = arith.constant dense<0.000000e+00> : vector<8x500xf32>
    %70 = tpu.matmul %67, %69, %cst_40 {dimension_numbers = #tpu.dot_dimension_numbers<[1], [0], [0], [1], [0, 0, 1, 1], [], []>} : vector<8x200xf32>, vector<200x500xf32>, vector<8x500xf32> -> vector<8x500xf32>
    %71 = vector.extract_strided_slice %65 {offsets = [1, 0, 0], sizes = [1, 8, 200], strides = [1, 1, 1]} : vector<4x8x200xf32> to vector<1x8x200xf32>
    %72 = vector.shape_cast %71 : vector<1x8x200xf32> to vector<8x200xf32>
    %c1_41 = arith.constant 1 : index
    %c0_42 = arith.constant 0 : index
    %c0_43 = arith.constant 0 : index
    %73 = vector.load %arg6[%c1_41, %c0_42, %c0_43] : memref<4x200x500xf32, #tpu.memory_space<vmem>>, vector<1x200x500xf32>
    %74 = vector.shape_cast %73 : vector<1x200x500xf32> to vector<200x500xf32>
    %cst_44 = arith.constant dense<0.000000e+00> : vector<8x500xf32>
    %75 = tpu.matmul %72, %74, %cst_44 {dimension_numbers = #tpu.dot_dimension_numbers<[1], [0], [0], [1], [0, 0, 1, 1], [], []>} : vector<8x200xf32>, vector<200x500xf32>, vector<8x500xf32> -> vector<8x500xf32>
    %76 = arith.addf %70, %75 : vector<8x500xf32>
    %77 = vector.extract_strided_slice %65 {offsets = [2, 0, 0], sizes = [1, 8, 200], strides = [1, 1, 1]} : vector<4x8x200xf32> to vector<1x8x200xf32>
    %78 = vector.shape_cast %77 : vector<1x8x200xf32> to vector<8x200xf32>
    %c2_45 = arith.constant 2 : index
    %c0_46 = arith.constant 0 : index
    %c0_47 = arith.constant 0 : index
    %79 = vector.load %arg6[%c2_45, %c0_46, %c0_47] : memref<4x200x500xf32, #tpu.memory_space<vmem>>, vector<1x200x500xf32>
    %80 = vector.shape_cast %79 : vector<1x200x500xf32> to vector<200x500xf32>
    %cst_48 = arith.constant dense<0.000000e+00> : vector<8x500xf32>
    %81 = tpu.matmul %78, %80, %cst_48 {dimension_numbers = #tpu.dot_dimension_numbers<[1], [0], [0], [1], [0, 0, 1, 1], [], []>} : vector<8x200xf32>, vector<200x500xf32>, vector<8x500xf32> -> vector<8x500xf32>
    %82 = arith.addf %76, %81 : vector<8x500xf32>
    %83 = vector.extract_strided_slice %65 {offsets = [3, 0, 0], sizes = [1, 8, 200], strides = [1, 1, 1]} : vector<4x8x200xf32> to vector<1x8x200xf32>
    %84 = vector.shape_cast %83 : vector<1x8x200xf32> to vector<8x200xf32>
    %c3_49 = arith.constant 3 : index
    %c0_50 = arith.constant 0 : index
    %c0_51 = arith.constant 0 : index
    %85 = vector.load %arg6[%c3_49, %c0_50, %c0_51] : memref<4x200x500xf32, #tpu.memory_space<vmem>>, vector<1x200x500xf32>
    %86 = vector.shape_cast %85 : vector<1x200x500xf32> to vector<200x500xf32>
    %cst_52 = arith.constant dense<0.000000e+00> : vector<8x500xf32>
    %87 = tpu.matmul %84, %86, %cst_52 {dimension_numbers = #tpu.dot_dimension_numbers<[1], [0], [0], [1], [0, 0, 1, 1], [], []>} : vector<8x200xf32>, vector<200x500xf32>, vector<8x500xf32> -> vector<8x500xf32>
    %88 = arith.addf %82, %87 : vector<8x500xf32>
    %c0_53 = arith.constant 0 : index
    %c0_54 = arith.constant 0 : index
    %89 = vector.load %arg7[%c0_53, %c0_54] : memref<1x500xf32, #tpu.memory_space<vmem>>, vector<1x500xf32>
    %90 = vector.broadcast %89 : vector<1x500xf32> to vector<8x500xf32>
    %91 = arith.addf %88, %90 : vector<8x500xf32>
    %cst_55 = arith.constant 0.000000e+00 : f32
    %92 = vector.broadcast %cst_55 : f32 to vector<8x500xf32>
    %93 = arith.maximumf %91, %92 : vector<8x500xf32>
    %c0_56 = arith.constant 0 : index
    %c0_57 = arith.constant 0 : index
    %94 = vector.load %arg8[%c0_56, %c0_57] : memref<500x10xf32, #tpu.memory_space<vmem>>, vector<500x10xf32>
    %cst_58 = arith.constant dense<0.000000e+00> : vector<8x10xf32>
    %95 = tpu.matmul %93, %94, %cst_58 {dimension_numbers = #tpu.dot_dimension_numbers<[1], [0], [0], [1], [0, 0, 1, 1], [], []>} : vector<8x500xf32>, vector<500x10xf32>, vector<8x10xf32> -> vector<8x10xf32>
    %c0_59 = arith.constant 0 : index
    %c0_60 = arith.constant 0 : index
    %96 = vector.load %arg9[%c0_59, %c0_60] : memref<1x10xf32, #tpu.memory_space<vmem>>, vector<1x10xf32>
    %97 = vector.broadcast %96 : vector<1x10xf32> to vector<8x10xf32>
    %98 = arith.addf %95, %97 : vector<8x10xf32>
    %cst_61 = arith.constant dense<0xFF800000> : vector<8xf32>
    %99 = vector.multi_reduction <maximumf>, %98, %cst_61 [1] : vector<8x10xf32> to vector<8xf32>
    %100 = vector.shape_cast %99 : vector<8xf32> to vector<8x1xf32>
    %101 = vector.broadcast %100 : vector<8x1xf32> to vector<8x10xf32>
    %102 = arith.subf %98, %101 : vector<8x10xf32>
    %103 = math.exp %102 : vector<8x10xf32>
    %cst_62 = arith.constant dense<0.000000e+00> : vector<8xf32>
    %104 = vector.multi_reduction <add>, %103, %cst_62 [1] : vector<8x10xf32> to vector<8xf32>
    %105 = vector.shape_cast %104 : vector<8xf32> to vector<8x1xf32>
    %106 = math.log %105 : vector<8x1xf32>
    %107 = vector.broadcast %106 : vector<8x1xf32> to vector<8x10xf32>
    %108 = arith.subf %102, %107 : vector<8x10xf32>
    %c0_63 = arith.constant 0 : index
    %c0_64 = arith.constant 0 : index
    %109 = vector.load %arg10[%c0_63, %c0_64] : memref<8x10xf32, #tpu.memory_space<vmem>>, vector<8x10xf32>
    tpu.vector_store %arg10[%c0_63, %c0_64], %108 {strides = array<i32>} : memref<8x10xf32, #tpu.memory_space<vmem>>, vector<8x10xf32>,
    return
  }
  func.func @transform_0(%arg0: i32) -> (i32, i32, i32) {
    %c0_i32 = arith.constant 0 : i32
    %c0_i32_0 = arith.constant 0 : i32
    %c0_i32_1 = arith.constant 0 : i32
    return %c0_i32, %arg0, %c0_i32_0 : i32, i32, i32
  }
  func.func @transform_1(%arg0: i32) -> (i32, i32) {
    %c0_i32 = arith.constant 0 : i32
    %c0_i32_0 = arith.constant 0 : i32
    %c0_i32_1 = arith.constant 0 : i32
    return %c0_i32, %c0_i32_0 : i32, i32
  }
  func.func @transform_2(%arg0: i32) -> (i32, i32) {
    %c0_i32 = arith.constant 0 : i32
    %c0_i32_0 = arith.constant 0 : i32
    %c0_i32_1 = arith.constant 0 : i32
    return %c0_i32, %c0_i32_0 : i32, i32
  }
  func.func @transform_3(%arg0: i32) -> (i32, i32) {
    %c0_i32 = arith.constant 0 : i32
    %c0_i32_0 = arith.constant 0 : i32
    %c0_i32_1 = arith.constant 0 : i32
    return %c0_i32, %c0_i32_0 : i32, i32
  }
  func.func @transform_4(%arg0: i32) -> (i32, i32) {
    %c0_i32 = arith.constant 0 : i32
    %c0_i32_0 = arith.constant 0 : i32
    %c0_i32_1 = arith.constant 0 : i32
    return %c0_i32, %c0_i32_0 : i32, i32
  }
  func.func @transform_5(%arg0: i32) -> (i32, i32, i32) {
    %c0_i32 = arith.constant 0 : i32
    %c0_i32_0 = arith.constant 0 : i32
    %c0_i32_1 = arith.constant 0 : i32
    %c0_i32_2 = arith.constant 0 : i32
    return %c0_i32, %c0_i32_0, %c0_i32_1 : i32, i32, i32
  }
  func.func @transform_6(%arg0: i32) -> (i32, i32) {
    %c0_i32 = arith.constant 0 : i32
    %c0_i32_0 = arith.constant 0 : i32
    %c0_i32_1 = arith.constant 0 : i32
    return %c0_i32, %c0_i32_0 : i32, i32
  }
  func.func @transform_7(%arg0: i32) -> (i32, i32) {
    %c0_i32 = arith.constant 0 : i32
    %c0_i32_0 = arith.constant 0 : i32
    %c0_i32_1 = arith.constant 0 : i32
    return %c0_i32, %c0_i32_0 : i32, i32
  }
  func.func @transform_8(%arg0: i32) -> (i32, i32) {
    %c0_i32 = arith.constant 0 : i32
    %c0_i32_0 = arith.constant 0 : i32
    %c0_i32_1 = arith.constant 0 : i32
    return %c0_i32, %c0_i32_0 : i32, i32
  }
  func.func @transform_9(%arg0: i32) -> (i32, i32) {
    %c0_i32 = arith.constant 0 : i32
    %c0_i32_0 = arith.constant 0 : i32
    return %arg0, %c0_i32 : i32, i32
  }
}

</mosaic_0001>

<bundles_post_ra>
// kernel: net_forward.1
= control target key start
LH: loop header
LB: loop body
LE: loop exit
PB: predicated region body
PF: predicated region fallthrough
CT: control target
= control target key end

     0   :  { %14 = vsyncpa [#allocation5], 0  ;;  %s9507_s0 = inlined_call_operand.vmem [shape: f32[28,8,28], index: 0, kind: input, shape index: {}]   ;;  %s9508_s1 = inlined_call_operand.hbm [shape: f32[140,512], index: 1, kind: input, shape index: {}]   ;;  %s9509_s2 = inlined_call_operand.hbm [shape: f32[1,240], index: 2, kind: input, shape index: {}]   ;;  %s9510_s3 = inlined_call_operand.hbm [shape: f32[1200,512], index: 3, kind: input, shape index: {}]   ;;  %s9511_s4 = inlined_call_operand.hbm [shape: f32[1,200], index: 4, kind: input, shape index: {}]   ;;  %s9512_s5 = inlined_call_operand.hbm [shape: f32[4,200,500], index: 5, kind: input, shape index: {}]   ;;  %s9513_s6 = inlined_call_operand.hbm [shape: f32[1,500], index: 6, kind: input, shape index: {}]   ;;  %s9514_s7 = inlined_call_operand.vmem [shape: f32[500,10], index: 7, kind: input, shape index: {}]   ;;  %s9515_s8 = inlined_call_operand.hbm [shape: f32[1,10], index: 8, kind: input, shape index: {}]   ;;  %s9516_s9 = inlined_call_operand.vmem [shape: f32[8,10], index: 9, kind: output, shape index: {}]  }
   0x1   :  { %15 = vsyncpa [#allocation7], 0 }
   0x2   :  { %16 = vsyncpa [#allocation10], 0  ;;  %s38_s11 = sshll.u32 %s9509_s2, 4  ;;  %s39_s11 = int_to_ptr.hbm [resolvable:$true] %s38_s11 }
   0x3   :  { %17 = vsyncpa [#allocation13], 0  ;;  %s6464_s12 = smov [#allocation6]   ;;  %s62_s16 = sshll.u32 %s9511_s4, 4  ;;  %s63_s16 = int_to_ptr.hbm [resolvable:$true] %s62_s16 }
   0x4   :  { %s40_s13 = sshll.u32 %s6464_s12, 4  ;;  %s6465_s17 = smov [#allocation9]   ;;  %s41_s13 = int_to_ptr.vmem [resolvable:$true] %s40_s13 }
   0x5   :  { %43 = dma.hbm_to_vmem [thread:$0]  %s39_s11, 32, %s41_s13, [#allocation7]  }
   0x6   :  { %s64_s18 = sshll.u32 %s6465_s17, 4  ;;  %s86_s21 = sshll.u32 %s9513_s6, 4  ;;  %s65_s18 = int_to_ptr.vmem [resolvable:$true] %s64_s18  ;;  %s87_s21 = int_to_ptr.hbm [resolvable:$true] %s86_s21 }
   0x7   :  { %67 = dma.hbm_to_vmem [thread:$0]  %s63_s16, 32, %s65_s18, [#allocation10]  }
   0x8   :  { %s24_s23 = sshll.u32 %s9508_s1, 4  ;;  %s6466_s24 = smov [#allocation12]   ;;  %s25_s23 = int_to_ptr.hbm [resolvable:$true] %s24_s23 }
   0x9   :  { %s88_s25 = sshll.u32 %s6466_s24, 4  ;;  %s6467_s4 = smov [#allocation4]   ;;  %s89_s25 = int_to_ptr.vmem [resolvable:$true] %s88_s25 }
   0xa   :  { %91 = dma.hbm_to_vmem [thread:$0]  %s87_s21, 64, %s89_s25, [#allocation13]  }
   0xb   :  { %s26_s26 = sshll.u32 %s6467_s4, 4  ;;  %s6468_s27 = smov 512   ;;  %s27_s26 = int_to_ptr.vmem [resolvable:$true] %s26_s26 }
   0xc   :  { %s6469_s28 = smov 32   ;;  %s48_s30 = sshll.u32 %s9510_s3, 4  ;;  %s49_s30 = int_to_ptr.hbm [resolvable:$true] %s48_s30 }
   0xd   :  { %32 = dma.hbm_to_vmem [thread:$0]  %s25_s23, 9216, %s27_s26, [#allocation5], %s6468_s27, %s6468_s27, %s6469_s28  }
   0xe   :  { %s6470_s10 = smov [#allocation8]   ;;  %s72_s13 = sshll.u32 %s9512_s5, 4  ;;  %s73_s13 = int_to_ptr.hbm [resolvable:$true] %s72_s13 }
   0xf   :  { %s50_s11 = sshll.u32 %s6470_s10, 4  ;;  %s6471_s14 = smov [#allocation11]   ;;  %s51_s11 = int_to_ptr.vmem [resolvable:$true] %s50_s11 }
  0x10   :  { %56 = dma.hbm_to_vmem [thread:$0]  %s49_s30, 76800, %s51_s11, [#allocation7], %s6468_s27, %s6468_s27, %s6469_s28  }
  0x11   :  { %s74_s15 = sshll.u32 %s6471_s14, 4  ;;  %s99_s18 = sshll.u32 %s9515_s8, 4  ;;  %s75_s15 = int_to_ptr.vmem [resolvable:$true] %s74_s15  ;;  %s100_s18 = int_to_ptr.hbm [resolvable:$true] %s99_s18 }
  0x12   :  { %80 = dma.hbm_to_vmem [thread:$0]  %s73_s13, 51200, %s75_s15, [#allocation10], %s6468_s27, %s6468_s27, %s6469_s28  }
  0x13   :  { %s6472_s3 = smov [#allocation14]  }
  0x14   :  { %s101_s19 = sshll.u32 %s6472_s3, 4  ;;  %s102_s19 = int_to_ptr.vmem [resolvable:$true] %s101_s19 }
  0x15   :  { %104 = dma.hbm_to_vmem [thread:$0]  %s100_s18, 16, %s102_s19, [#allocation13]  }
  0x16   :  { %6456 = dma.done.wait [#allocation5], 9216  }
  0x17   :  { %6457 = vsyncadd [#allocation5], 4294958080 }
  0x18   :  { %6458 = dma.done.wait [#allocation7], 76832  }
  0x19   :  { %6459 = vsyncadd [#allocation7], 4294890464 }
  0x1a   :  { %6460 = dma.done.wait [#allocation10], 51232  }
  0x1b   :  { %6461 = vsyncadd [#allocation10], 4294916064 }
  0x1c   :  { %6462 = dma.done.wait [#allocation13], 80  }
  0x1d   :  { %6463 = vsyncadd [#allocation13], 4294967216  ;;  %v6554_v0 = vld [vmem:[%s9507_s0 + $0x20] sm:$0xff]  ;;  %v6559_v1 = vld [vmem:[%s9507_s0 + $0x8] sm:$0xff]  ;;  %s6473_s2 = smov 112   ;;  %s6474_s22 = smov 28  }
  0x1e   :  { %669 = vrot.lane.b32.xlu0 %v6554_v0, %s6473_s2  ;;  %231 = vrot.lane.b32.xlu1 %v6559_v1, %s6474_s22  ;;  %v6568_v2 = vld [vmem:[%s9507_s0 + $0x18] sm:$0xff]  ;;  %s6475_s25 = smov 84   ;;  %v6575_v3 = vld [vmem:[%s9507_s0 + $0x28] sm:$0xff]  ;;  %s6476_s30 = smov 56   ;;  %v899_v11 = vld [vmem:[#allocation4 + $0x1e0] sm:$0xff]  ;;  %vm157_vm0 = vcmask 228352  }
  0x1f   :  { %523 = vrot.lane.b32.xlu2 %v6568_v2, %s6475_s25  ;;  %v6580_v4 = vld [vmem:[%s9507_s0 + $0x10] sm:$0xff]  ;;  %v6602_v6 = vld [vmem:[%s9507_s0 + $0x38] sm:$0xff]  ;;  %v6613_v7 = vld [vmem:[%s9507_s0 + $0x40] sm:$0xff]  ;;  %996 = vmatpush.msra.mxu0 %v899_v11  ;;  %vm983_vm1 = vcmask 1043456   ;;  %159 = vst.msk [vmem:[#allocation2 + $0x10] sm:$0xff] %vm157_vm0, %v6559_v1  ;;  %vm743_vm2 = vcmask 97280  }
  0x20   :  { %v6585_v5 = vld [vmem:[%s9507_s0 + $0x30] sm:$0xff]  ;;  %v6624_v8 = vld [vmem:[%s9507_s0 + $0x48] sm:$0xff]  ;;  %v6652_v10 = vld [vmem:[%s9507_s0 + $0x58] sm:$0xff]  ;;  %160 = vst.msk [vmem:[#allocation2 + $0x20] sm:$0xff] %vm157_vm0, %v6580_v4  ;;  %vm303_vm3 = vcmask 457952   ;;  %vm449_vm4 = vcmask 687552  }
  0x21   :  { %v6641_v9 = vld [vmem:[%s9507_s0 + $0x50] sm:$0xff]  ;;  %v900_v12 = vld [vmem:[#allocation4 + $0x1e8] sm:$0xff]  ;;  %v895_v13 = vld [vmem:[#allocation4 + $0x1c0] sm:$0xff]  ;;  %161 = vst.msk [vmem:[#allocation2 + $0x30] sm:$0xff] %vm157_vm0, %v6568_v2  ;;  %vm595_vm5 = vcmask 917152   ;;  %vm741_vm6 = vcmask 1048448  }
  0x22   :  { %v896_v14 = vld [vmem:[#allocation4 + $0x1c8] sm:$0xff]  ;;  %1174 = vmatpush.msra.mxu2 %v900_v12  ;;  %997 = vmatpush.msra.mxu0 %v895_v13  ;;  %v6663_v15 = vld [vmem:[%s9507_s0 + $0x60] sm:$0xff]  ;;  %162 = vst.msk [vmem:[#allocation2 + $0x40] sm:$0xff] %vm157_vm0, %v6554_v0  ;;  %v6717_v43 = vld [vmem:[%s9507_s0 + $0x70] sm:$0xff]  ;;  %vm1835_vm7 = vcmask 916480   ;;  %vm1933_vm8 = vcmask 785408  }
  0x23   :  { %v891_v16 = vld [vmem:[#allocation4 + $0x1a0] sm:$0xff]  ;;  %v892_v17 = vld [vmem:[#allocation4 + $0x1a8] sm:$0xff]  ;;  %163 = vst.msk [vmem:[#allocation2 + $0x50] sm:$0xff] %vm157_vm0, %v6575_v3  ;;  %v6736_v48 = vld [vmem:[%s9507_s0 + $0x78] sm:$0xff]  ;;  %vm2022_vm9 = vcmask 1048320   ;;  %vm2117_vm10 = vcmask 523264  }
  0x24   :  { %1175 = vmatpush.msra.mxu2 %v896_v14  ;;  %v887_v18 = vld [vmem:[#allocation4 + $0x180] sm:$0xff]  ;;  %998 = vmatpush.msra.mxu0 %v891_v16  ;;  %v888_v19 = vld [vmem:[#allocation4 + $0x188] sm:$0xff]  ;;  %164 = vst.msk [vmem:[#allocation2 + $0x60] sm:$0xff] %vm157_vm0, %v6585_v5  ;;  %v6777_v60 = vld [vmem:[%s9507_s0 + $0x98] sm:$0xff]  ;;  %vm2025_vm11 = vcmask 654336   ;;  %vm2114_vm12 = vcmask 1048192  }
  0x25   :  { %v883_v20 = vld [vmem:[#allocation4 + $0x160] sm:$0xff]  ;;  %v884_v21 = vld [vmem:[#allocation4 + $0x168] sm:$0xff]  ;;  %165 = vst.msk [vmem:[#allocation2 + $0x70] sm:$0xff] %vm157_vm0, %v6602_v6  ;;  %v6798_v1 = vld [vmem:[%s9507_s0 + $0x90] sm:$0xff]  ;;  %vm2206_vm13 = vcmask 1048064   ;;  %vm2209_vm14 = vcmask 392192  }
  0x26   :  { %671 = vrot.lane.b32.xlu0 %v6575_v3, %s6473_s2  ;;  %377 = vrot.lane.b32.xlu1 %v6580_v4, %s6476_s30  ;;  %v879_v22 = vld [vmem:[#allocation4 + $0x140] sm:$0xff]  ;;  %v880_v23 = vld [vmem:[#allocation4 + $0x148] sm:$0xff]  ;;  %166 = vst.msk [vmem:[#allocation2 + $0x80] sm:$0xff] %vm157_vm0, %v6613_v7  ;;  %vm4823_vm15 = vcmask 588800  }
  0x27   :  { %673 = vrot.lane.b32.xlu2 %v6585_v5, %s6473_s2  ;;  %1176 = vmatpush.msra.mxu2 %v892_v17  ;;  %v875_v24 = vld [vmem:[#allocation4 + $0x120] sm:$0xff]  ;;  %v876_v25 = vld [vmem:[#allocation4 + $0x128] sm:$0xff]  ;;  %167 = vst.msk [vmem:[#allocation2 + $0x90] sm:$0xff] %vm157_vm0, %v6624_v8  ;;  %v6871_v17 = vld [vmem:[%s9507_s0 + $0xb0] sm:$0xff] }
  0x28   :  { %999 = vmatpush.msra.mxu0 %v887_v18  ;;  %v133_v26 = vld [vmem:[%s9507_s0] sm:$0xff]  ;;  %v872_v28 = vld [vmem:[#allocation4 + $0x108] sm:$0xff]  ;;  %168 = vst.msk [vmem:[#allocation2 + $0xa0] sm:$0xff] %vm157_vm0, %v6641_v9 }
  0x29   :  { %1177 = vmatpush.msra.mxu2 %v888_v19  ;;  %158 = vst.msk [vmem:[#allocation2] sm:$0xff] %vm157_vm0, %v133_v26  ;;  %v871_v27 = vld [vmem:[#allocation4 + $0x100] sm:$0xff]  ;;  %v868_v30 = vld [vmem:[#allocation4 + $0xe8] sm:$0xff] }
  0x2a   :  { %1000 = vmatpush.msra.mxu0 %v883_v20  ;;  %v867_v29 = vld [vmem:[#allocation4 + $0xe0] sm:$0xff]  ;;  %v6686_v31 = vld [vmem:[%s9507_s0 + $0x68] sm:$0xff]  ;;  %169 = vst.msk [vmem:[#allocation2 + $0xb0] sm:$0xff] %vm157_vm0, %v6652_v10 }
  0x2b   :  { %1178 = vmatpush.msra.mxu2 %v884_v21  ;;  %v907_v32 = vld [vmem:[#allocation4 + $0x220] sm:$0xf]  ;;  %v908_v33 = vld [vmem:[#allocation4 + $0x228] sm:$0xf]  ;;  %170 = vst.msk [vmem:[#allocation2 + $0xc0] sm:$0xff] %vm157_vm0, %v6663_v15 }
  0x2c   :  { %1001 = vmatpush.msra.mxu0 %v879_v22  ;;  %v863_v34 = vld [vmem:[#allocation4 + $0xc0] sm:$0xff]  ;;  %5976 = vmatpush.msk.msra.mxu1 %vm983_vm1, %v907_v32  ;;  %v864_v35 = vld [vmem:[#allocation4 + $0xc8] sm:$0xff]  ;;  %171 = vst.msk [vmem:[#allocation2 + $0xd0] sm:$0xff] %vm157_vm0, %v6686_v31 }
  0x2d   :  { %1179 = vmatpush.msra.mxu2 %v880_v23  ;;  %6001 = vmatpush.msk.msra.mxu3 %vm983_vm1, %v908_v33  ;;  %v859_v36 = vld [vmem:[#allocation4 + $0xa0] sm:$0xff]  ;;  %v860_v38 = vld [vmem:[#allocation4 + $0xa8] sm:$0xff]  ;;  %172 = vst.msk [vmem:[#allocation2 + $0xe0] sm:$0xff] %vm157_vm0, %v6717_v43 }
  0x2e   :  { %233 = vrot.lane.b32.xlu0 %v6580_v4, %s6474_s22  ;;  %379 = vrot.lane.b32.xlu1 %v6568_v2, %s6476_s30  ;;  %v903_v37 = vld [vmem:[#allocation4 + $0x200] sm:$0xff]  ;;  %v904_v39 = vld [vmem:[#allocation4 + $0x208] sm:$0xff]  ;;  %173 = vst.msk [vmem:[#allocation2 + $0xf0] sm:$0xff] %vm157_vm0, %v6736_v48 }
  0x2f   :  { %525 = vrot.lane.b32.xlu2 %v6554_v0, %s6475_s25  ;;  %1002 = vmatpush.msra.mxu0 %v875_v24  ;;  %v855_v41 = vld [vmem:[#allocation4 + $0x80] sm:$0xff]  ;;  %v856_v42 = vld [vmem:[#allocation4 + $0x88] sm:$0xff]  ;;  %177 = vst.msk [vmem:[#allocation2 + $0x130] sm:$0xff] %vm157_vm0, %v6777_v60  ;;  %v6909_v24 = vld [vmem:[%s9507_s0 + $0xb8] sm:$0xff] }
  0x30   :  { %1180 = vmatpush.msra.mxu2 %v876_v25  ;;  %1100 = vmatpush.msra.mxu1 %v903_v37  ;;  %v851_v44 = vld [vmem:[#allocation4 + $0x60] sm:$0xff]  ;;  %v852_v45 = vld [vmem:[#allocation4 + $0x68] sm:$0xff]  ;;  %176 = vst.msk [vmem:[#allocation2 + $0x120] sm:$0xff] %vm157_vm0, %v6798_v1 }
  0x31   :  { %1003 = vmatpush.msra.mxu0 %v871_v27  ;;  %1278 = vmatpush.msra.mxu3 %v904_v39  ;;  %v847_v46 = vld [vmem:[#allocation4 + $0x40] sm:$0xff]  ;;  %v848_v47 = vld [vmem:[#allocation4 + $0x48] sm:$0xff]  ;;  %180 = vst.msk [vmem:[#allocation2 + $0x160] sm:$0xff] %vm157_vm0, %v6871_v17 }
  0x32   :  { %1181 = vmatpush.msra.mxu2 %v872_v28  ;;  %v843_v49 = vld [vmem:[#allocation4 + $0x20] sm:$0xff]  ;;  %v844_v51 = vld [vmem:[#allocation4 + $0x28] sm:$0xff]  ;;  %181 = vst.msk [vmem:[#allocation2 + $0x170] sm:$0xff] %vm157_vm0, %v6909_v24 }
  0x33   :  { %1004 = vmatpush.msra.mxu0 %v867_v29  ;;  %v6743_v50 = vld [vmem:[%s9507_s0 + $0x80] sm:$0xff]  ;;  %v6756_v53 = vld [vmem:[%s9507_s0 + $0x88] sm:$0xff] }
  0x34   :  { %1182 = vmatpush.msra.mxu2 %v868_v30  ;;  %174 = vst.msk [vmem:[#allocation2 + $0x100] sm:$0xff] %vm157_vm0, %v6743_v50  ;;  %v839_v54 = vld [vmem:[#allocation4] sm:$0xff]  ;;  %v840_v55 = vld [vmem:[#allocation4 + $0x8] sm:$0xff] }
  0x35   :  { %1005 = vmatpush.msra.mxu0 %v863_v34  ;;  %175 = vst.msk [vmem:[#allocation2 + $0x110] sm:$0xff] %vm157_vm0, %v6756_v53  ;;  %v6898_v23 = vld [vmem:[%s9507_s0 + $0xa8] sm:$0xff] }
  0x36   :  { %675 = vrot.lane.b32.xlu0 %v6602_v6, %s6473_s2  ;;  %235 = vrot.lane.b32.xlu1 %v6568_v2, %s6474_s22  ;;  %v6807_v2 = vld [vmem:[%s9507_s0 + $0xa0] sm:$0xff]  ;;  %179 = vst.msk [vmem:[#allocation2 + $0x150] sm:$0xff] %vm157_vm0, %v6898_v23 }
  0x37   :  { %381 = vrot.lane.b32.xlu2 %v6554_v0, %s6476_s30  ;;  %1183 = vmatpush.msra.mxu2 %v864_v35  ;;  %178 = vst.msk [vmem:[#allocation2 + $0x140] sm:$0xff] %vm157_vm0, %v6807_v2  ;;  %vm5771_vm0 = vcmask 949248  }
  0x38   :  { %1006 = vmatpush.msra.mxu0 %v859_v36 }
  0x39   :  { %1184 = vmatpush.msra.mxu2 %v860_v38 }
  0x3a   :  { %1007 = vmatpush.msra.mxu0 %v855_v41 }
  0x3b   :  { %1185 = vmatpush.msra.mxu2 %v856_v42 }
  0x3c   :  { %1008 = vmatpush.msra.mxu0 %v851_v44 }
  0x3d   :  { %1186 = vmatpush.msra.mxu2 %v852_v45 }
  0x3e   :  { %527 = vrot.lane.b32.xlu0 %v6575_v3, %s6475_s25  ;;  %677 = vrot.lane.b32.xlu1 %v6613_v7, %s6473_s2 }
  0x3f   :  { %237 = vrot.lane.b32.xlu2 %v6554_v0, %s6474_s22  ;;  %1009 = vmatpush.msra.mxu0 %v847_v46 }
  0x40   :  { %1187 = vmatpush.msra.mxu2 %v848_v47 }
  0x41   :  { %1010 = vmatpush.msra.mxu0 %v843_v49 }
  0x42   :  { %1188 = vmatpush.msra.mxu2 %v844_v51 }
  0x43   :  { %1011 = vmatpush.msra.mxu0 %v839_v54  ;;  %v910_v54 = vld [vmem:[#allocation4 + $0x238] sm:$0xf] }
  0x44   :  { %1189 = vmatpush.msra.mxu2 %v840_v55 }
  0x46   :  { %383 = vrot.lane.b32.xlu0 %v6575_v3, %s6476_s30  ;;  %529 = vrot.lane.b32.xlu1 %v6585_v5, %s6475_s25 }
  0x47   :  { %679 = vrot.lane.b32.xlu2 %v6624_v8, %s6473_s2  ;;  %6051 = vmatpush.msk.msrb.mxu2 %vm983_vm1, %v910_v54 }
  0x4e   :  { %239 = vrot.lane.b32.xlu0 %v6575_v3, %s6474_s22  ;;  %385 = vrot.lane.b32.xlu1 %v6585_v5, %s6476_s30 }
  0x4f   :  { %531 = vrot.lane.b32.xlu2 %v6602_v6, %s6475_s25 }
  0x56   :  { %681 = vrot.lane.b32.xlu0 %v6641_v9, %s6473_s2  ;;  %241 = vrot.lane.b32.xlu1 %v6585_v5, %s6474_s22 }
  0x57   :  { %387 = vrot.lane.b32.xlu2 %v6602_v6, %s6476_s30 }
  0x5e   :  { %533 = vrot.lane.b32.xlu0 %v6613_v7, %s6475_s25  ;;  %683 = vrot.lane.b32.xlu1 %v6652_v10, %s6473_s2 }
  0x5f   :  { %243 = vrot.lane.b32.xlu2 %v6602_v6, %s6474_s22 }
  0x66   :  { %389 = vrot.lane.b32.xlu0 %v6613_v7, %s6476_s30  ;;  %535 = vrot.lane.b32.xlu1 %v6624_v8, %s6475_s25 }
  0x67   :  { %685 = vrot.lane.b32.xlu2 %v6663_v15, %s6473_s2 }
  0x6e   :  { %245 = vrot.lane.b32.xlu0 %v6613_v7, %s6474_s22  ;;  %391 = vrot.lane.b32.xlu1 %v6624_v8, %s6476_s30 }
  0x6f   :  { %537 = vrot.lane.b32.xlu2 %v6641_v9, %s6475_s25 }
  0x76   :  { %687 = vrot.lane.b32.xlu0 %v6686_v31, %s6473_s2  ;;  %247 = vrot.lane.b32.xlu1 %v6624_v8, %s6474_s22 }
  0x77   :  { %393 = vrot.lane.b32.xlu2 %v6641_v9, %s6476_s30 }
  0x79   :  { %v6708_v40 = vpop.permute.xlu2 %523 }
  0x7e   :  { %539 = vrot.lane.b32.xlu0 %v6652_v10, %s6475_s25  ;;  %689 = vrot.lane.b32.xlu1 %v6717_v43, %s6473_s2 }
  0x7f   :  { %249 = vrot.lane.b32.xlu2 %v6641_v9, %s6474_s22 }
  0x81   :  { %v6747_v52 = vpop.permute.xlu2 %673 }
  0x82   :  { %748 = vst.msk [vmem:[#allocation2 + $0x28] sm:$0xff] %vm743_vm2, %v6747_v52 }
  0x86   :  { %395 = vrot.lane.b32.xlu0 %v6652_v10, %s6476_s30  ;;  %541 = vrot.lane.b32.xlu1 %v6663_v15, %s6475_s25 }
  0x87   :  { %691 = vrot.lane.b32.xlu2 %v6736_v48, %s6473_s2 }
  0x89   :  { %v526_v56 = vpop.permute.xlu2 %525 }
  0x8e   :  { %251 = vrot.lane.b32.xlu0 %v6652_v10, %s6474_s22  ;;  %397 = vrot.lane.b32.xlu1 %v6663_v15, %s6476_s30  ;;  %v6839_v10 = vld [vmem:[#allocation2 + $0x28] sm:$0xff] }
  0x8f   :  { %543 = vrot.lane.b32.xlu2 %v6686_v31, %s6475_s25 }
  0x90   :  { %v670_v57 = vpop.permute.xlu0 %669  ;;  %v232_v58 = vpop.permute.xlu1 %231 }
  0x91   :  { %744 = vst.msk [vmem:[#allocation2 + $0x8] sm:$0xff] %vm743_vm2, %v670_v57  ;;  %v382_v59 = vpop.permute.xlu2 %381 }
  0x92   :  { %304 = vst.msk [vmem:[#allocation2] sm:$0xff] %vm303_vm3, %v232_v58 }
  0x96   :  { %693 = vrot.lane.b32.xlu0 %v6743_v50, %s6473_s2  ;;  %253 = vrot.lane.b32.xlu1 %v6663_v15, %s6474_s22 }
  0x97   :  { %399 = vrot.lane.b32.xlu2 %v6686_v31, %s6476_s30 }
  0x98   :  { %v672_v61 = vpop.permute.xlu0 %671  ;;  %v378_v62 = vpop.permute.xlu1 %377  ;;  %v792_v63 = vld [vmem:[#allocation2 + $0x8] sm:$0xff] }
  0x99   :  { %746 = vst.msk [vmem:[#allocation2 + $0x18] sm:$0xff] %vm743_vm2, %v672_v61  ;;  %5977 = vmatmul.msk.f32.vlgmr.msra.gmra.mxu1 %vm743_vm2, %v792_v63  ;;  %6002 = vmatmul.msk.f32.vlgmr.msra.gmra.mxu3 %vm743_vm2, %v792_v63  ;;  %v238_v0 = vpop.permute.xlu2 %237 }
  0x9a   :  { %450 = vst.msk [vmem:[#allocation2] sm:$0xff] %vm449_vm4, %v378_v62 }
  0x9b   :  { %596 = vst.msk [vmem:[#allocation2] sm:$0xff] %vm595_vm5, %v6708_v40 }
  0x9c   :  { %742 = vst.msk [vmem:[#allocation2] sm:$0xff] %vm741_vm6, %v670_v57 }
  0x9d   :  { %307 = vst.msk [vmem:[#allocation2 + $0x30] sm:$0xff] %vm303_vm3, %v238_v0 }
  0x9e   :  { %545 = vrot.lane.b32.xlu0 %v6717_v43, %s6475_s25  ;;  %695 = vrot.lane.b32.xlu1 %v6756_v53, %s6473_s2 }
  0x9f   :  { %255 = vrot.lane.b32.xlu2 %v6686_v31, %s6474_s22 }
  0xa0   :  { %v234_v3 = vpop.permute.xlu0 %233  ;;  %v380_v4 = vpop.permute.xlu1 %379  ;;  %v6815_v5 = vld [vmem:[#allocation2 + $0x18] sm:$0xff] }
  0xa1   :  { %305 = vst.msk [vmem:[#allocation2 + $0x10] sm:$0xff] %vm303_vm3, %v234_v3  ;;  %5978 = vmatmul.msk.f32.gmra.mxu1 %vm743_vm2, %v6815_v5  ;;  %6003 = vmatmul.msk.f32.gmra.mxu3 %vm743_vm2, %v6815_v5  ;;  %v6822_v6 = vpop.permute.xlu2 %679  ;;  %v5974_v3 = vld [vmem:[%s9507_s0 + $0xd0] sm:$0xff] }
  0xa2   :  { %451 = vst.msk [vmem:[#allocation2 + $0x10] sm:$0xff] %vm449_vm4, %v380_v4  ;;  %v897_v4 = vld [vmem:[#allocation4 + $0x1d0] sm:$0xff] }
  0xa3   :  { %597 = vst.msk [vmem:[#allocation2 + $0x10] sm:$0xff] %vm595_vm5, %v526_v56  ;;  %v6826_v7 = vld [vmem:[#allocation2] sm:$0xff] }
  0xa4   :  { %745 = vst.msk [vmem:[#allocation2 + $0x10] sm:$0xff] %vm741_vm6, %v672_v61  ;;  %1012 = vmatmul.f32.vlgmr.msra.gmra.mxu0 %v6826_v7  ;;  %1190 = vmatmul.f32.vlgmr.msra.gmra.mxu2 %v6826_v7  ;;  %v902_v61 = vld [vmem:[#allocation4 + $0x1f8] sm:$0xff] }
  0xa5   :  { %754 = vst.msk [vmem:[#allocation2 + $0x58] sm:$0xff] %vm743_vm2, %v6822_v6  ;;  %1530 = vmatpush.msrb.mxu0 %v902_v61 }
  0xa6   :  { %401 = vrot.lane.b32.xlu0 %v6717_v43, %s6476_s30  ;;  %547 = vrot.lane.b32.xlu1 %v6736_v48, %s6475_s25 }
  0xa7   :  { %697 = vrot.lane.b32.xlu2 %v6798_v1, %s6473_s2 }
  0xa8   :  { %v676_v8 = vpop.permute.xlu0 %675  ;;  %v236_v9 = vpop.permute.xlu1 %235 }
  0xa9   :  { %750 = vst.msk [vmem:[#allocation2 + $0x38] sm:$0xff] %vm743_vm2, %v676_v8  ;;  %5979 = vmatmul.msk.f32.gmra.mxu1 %vm743_vm2, %v6839_v10  ;;  %6004 = vmatmul.msk.f32.gmra.mxu3 %vm743_vm2, %v6839_v10  ;;  %v532_v11 = vpop.permute.xlu2 %531 }
  0xaa   :  { %306 = vst.msk [vmem:[#allocation2 + $0x20] sm:$0xff] %vm303_vm3, %v236_v9 }
  0xab   :  { %452 = vst.msk [vmem:[#allocation2 + $0x20] sm:$0xff] %vm449_vm4, %v382_v59  ;;  %v6848_v12 = vld [vmem:[#allocation2 + $0x10] sm:$0xff]  ;;  %v7045_v59 = vld [vmem:[%s9507_s0 + $0xc8] sm:$0xff] }
  0xac   :  { %1015 = vmatmul.f32.gmra.mxu0 %v6848_v12  ;;  %1193 = vmatmul.f32.gmra.mxu2 %v6848_v12  ;;  %v6915_v27 = vld [vmem:[#allocation2 + $0x58] sm:$0xff] }
  0xae   :  { %257 = vrot.lane.b32.xlu0 %v6717_v43, %s6474_s22  ;;  %403 = vrot.lane.b32.xlu1 %v6736_v48, %s6476_s30 }
  0xaf   :  { %549 = vrot.lane.b32.xlu2 %v6743_v50, %s6475_s25 }
  0xb0   :  { %v528_v13 = vpop.permute.xlu0 %527  ;;  %v678_v14 = vpop.permute.xlu1 %677  ;;  %v6858_v15 = vld [vmem:[#allocation2 + $0x38] sm:$0xff] }
  0xb1   :  { %598 = vst.msk [vmem:[#allocation2 + $0x20] sm:$0xff] %vm595_vm5, %v528_v13  ;;  %5980 = vmatmul.msk.f32.gmra.mxu1 %vm743_vm2, %v6858_v15  ;;  %6005 = vmatmul.msk.f32.gmra.mxu3 %vm743_vm2, %v6858_v15  ;;  %v388_v16 = vpop.permute.xlu2 %387 }
  0xb2   :  { %747 = vst.msk [vmem:[#allocation2 + $0x20] sm:$0xff] %vm741_vm6, %v6747_v52 }
  0xb3   :  { %752 = vst.msk [vmem:[#allocation2 + $0x48] sm:$0xff] %vm743_vm2, %v678_v14 }
  0xb6   :  { %699 = vrot.lane.b32.xlu0 %v6777_v60, %s6473_s2  ;;  %259 = vrot.lane.b32.xlu1 %v6736_v48, %s6474_s22  ;;  %v7007_v48 = vld [vmem:[%s9507_s0 + $0xc0] sm:$0xff] }
  0xb7   :  { %405 = vrot.lane.b32.xlu2 %v6743_v50, %s6476_s30 }
  0xb8   :  { %v384_v18 = vpop.permute.xlu0 %383  ;;  %v530_v19 = vpop.permute.xlu1 %529 }
  0xb9   :  { %453 = vst.msk [vmem:[#allocation2 + $0x30] sm:$0xff] %vm449_vm4, %v384_v18  ;;  %v6882_v20 = vld [vmem:[#allocation2 + $0x20] sm:$0xff]  ;;  %v244_v21 = vpop.permute.xlu2 %243 }
  0xba   :  { %599 = vst.msk [vmem:[#allocation2 + $0x30] sm:$0xff] %vm595_vm5, %v530_v19  ;;  %1018 = vmatmul.f32.gmra.mxu0 %v6882_v20  ;;  %v6886_v22 = vld [vmem:[#allocation2 + $0x48] sm:$0xff]  ;;  %1196 = vmatmul.f32.gmra.mxu2 %v6882_v20 }
  0xbb   :  { %749 = vst.msk [vmem:[#allocation2 + $0x30] sm:$0xff] %vm741_vm6, %v676_v8  ;;  %5981 = vmatmul.msk.f32.gmra.mxu1 %vm743_vm2, %v6886_v22  ;;  %6006 = vmatmul.msk.f32.gmra.mxu3 %vm743_vm2, %v6886_v22 }
  0xbc   :  { %310 = vst.msk [vmem:[#allocation2 + $0x60] sm:$0xff] %vm303_vm3, %v244_v21 }
  0xbe   :  { %551 = vrot.lane.b32.xlu0 %v6756_v53, %s6475_s25  ;;  %701 = vrot.lane.b32.xlu1 %v6807_v2, %s6473_s2 }
  0xbf   :  { %261 = vrot.lane.b32.xlu2 %v6743_v50, %s6474_s22 }
  0xc0   :  { %v240_v25 = vpop.permute.xlu0 %239  ;;  %v386_v26 = vpop.permute.xlu1 %385 }
  0xc1   :  { %308 = vst.msk [vmem:[#allocation2 + $0x40] sm:$0xff] %vm303_vm3, %v240_v25  ;;  %v6918_v28 = vpop.permute.xlu2 %685  ;;  %v894_v25 = vld [vmem:[#allocation4 + $0x1b8] sm:$0xff] }
  0xc2   :  { %454 = vst.msk [vmem:[#allocation2 + $0x40] sm:$0xff] %vm449_vm4, %v386_v26  ;;  %v6921_v29 = vld [vmem:[#allocation2 + $0x30] sm:$0xff] }
  0xc3   :  { %600 = vst.msk [vmem:[#allocation2 + $0x40] sm:$0xff] %vm595_vm5, %v532_v11  ;;  %1021 = vmatmul.f32.gmra.mxu0 %v6921_v29  ;;  %5982 = vmatmul.msk.f32.gmra.mxu1 %vm743_vm2, %v6915_v27 }
  0xc4   :  { %751 = vst.msk [vmem:[#allocation2 + $0x40] sm:$0xff] %vm741_vm6, %v678_v14  ;;  %1199 = vmatmul.f32.gmra.mxu2 %v6921_v29  ;;  %6007 = vmatmul.msk.f32.gmra.mxu3 %vm743_vm2, %v6915_v27 }
  0xc5   :  { %760 = vst.msk [vmem:[#allocation2 + $0x88] sm:$0xff] %vm743_vm2, %v6918_v28 }
  0xc6   :  { %407 = vrot.lane.b32.xlu0 %v6756_v53, %s6476_s30  ;;  %553 = vrot.lane.b32.xlu1 %v6798_v1, %s6475_s25 }
  0xc7   :  { %703 = vrot.lane.b32.xlu2 %v6898_v23, %s6473_s2 }
  0xc8   :  { %v682_v30 = vpop.permute.xlu0 %681  ;;  %v242_v31 = vpop.permute.xlu1 %241 }
  0xc9   :  { %756 = vst.msk [vmem:[#allocation2 + $0x68] sm:$0xff] %vm743_vm2, %v682_v30  ;;  %v538_v32 = vpop.permute.xlu2 %537 }
  0xca   :  { %309 = vst.msk [vmem:[#allocation2 + $0x50] sm:$0xff] %vm303_vm3, %v242_v31 }
  0xcb   :  { %455 = vst.msk [vmem:[#allocation2 + $0x50] sm:$0xff] %vm449_vm4, %v388_v16  ;;  %v6942_v33 = vld [vmem:[#allocation2 + $0x40] sm:$0xff]  ;;  %v5975_v16 = vld [vmem:[%s9507_s0 + $0xd8] sm:$0xff]  ;;  %s6477_s0 = smov 96  }
  0xcc   :  { %1024 = vmatmul.f32.gmra.mxu0 %v6942_v33  ;;  %1202 = vmatmul.f32.gmra.mxu2 %v6942_v33  ;;  %v6988_v45 = vld [vmem:[#allocation2 + $0x88] sm:$0xff] }
  0xce   :  { %263 = vrot.lane.b32.xlu0 %v6756_v53, %s6474_s22  ;;  %409 = vrot.lane.b32.xlu1 %v6798_v1, %s6476_s30  ;;  %v909_v53 = vld [vmem:[#allocation4 + $0x230] sm:$0xf] }
  0xcf   :  { %555 = vrot.lane.b32.xlu2 %v6777_v60, %s6475_s25  ;;  %6026 = vmatpush.msk.msrb.mxu3 %vm983_vm1, %v909_v53 }
  0xd0   :  { %v534_v34 = vpop.permute.xlu0 %533  ;;  %v684_v35 = vpop.permute.xlu1 %683  ;;  %v6952_v36 = vld [vmem:[#allocation2 + $0x68] sm:$0xff] }
  0xd1   :  { %601 = vst.msk [vmem:[#allocation2 + $0x50] sm:$0xff] %vm595_vm5, %v534_v34  ;;  %5983 = vmatmul.msk.f32.gmra.mxu1 %vm743_vm2, %v6952_v36  ;;  %6008 = vmatmul.msk.f32.gmra.mxu3 %vm743_vm2, %v6952_v36  ;;  %v394_v37 = vpop.permute.xlu2 %393  ;;  %v889_v34 = vld [vmem:[#allocation4 + $0x190] sm:$0xff] }
  0xd2   :  { %753 = vst.msk [vmem:[#allocation2 + $0x50] sm:$0xff] %vm741_vm6, %v6822_v6  ;;  %v898_v6 = vld [vmem:[#allocation4 + $0x1d8] sm:$0xff] }
  0xd3   :  { %758 = vst.msk [vmem:[#allocation2 + $0x78] sm:$0xff] %vm743_vm2, %v684_v35  ;;  %1531 = vmatpush.msrb.mxu0 %v898_v6 }
  0xd5   :  { %1532 = vmatpush.msrb.mxu0 %v894_v25 }
  0xd6   :  { %705 = vrot.lane.b32.xlu0 %v6871_v17, %s6473_s2  ;;  %265 = vrot.lane.b32.xlu1 %v6798_v1, %s6474_s22 }
  0xd7   :  { %411 = vrot.lane.b32.xlu2 %v6777_v60, %s6476_s30 }
  0xd8   :  { %v390_v38 = vpop.permute.xlu0 %389  ;;  %v536_v39 = vpop.permute.xlu1 %535 }
  0xd9   :  { %456 = vst.msk [vmem:[#allocation2 + $0x60] sm:$0xff] %vm449_vm4, %v390_v38  ;;  %v6969_v40 = vld [vmem:[#allocation2 + $0x50] sm:$0xff]  ;;  %v250_v41 = vpop.permute.xlu2 %249 }
  0xda   :  { %602 = vst.msk [vmem:[#allocation2 + $0x60] sm:$0xff] %vm595_vm5, %v536_v39  ;;  %1027 = vmatmul.f32.gmra.mxu0 %v6969_v40  ;;  %v6973_v42 = vld [vmem:[#allocation2 + $0x78] sm:$0xff]  ;;  %1205 = vmatmul.f32.gmra.mxu2 %v6969_v40 }
  0xdb   :  { %755 = vst.msk [vmem:[#allocation2 + $0x60] sm:$0xff] %vm741_vm6, %v682_v30  ;;  %5984 = vmatmul.msk.f32.gmra.mxu1 %vm743_vm2, %v6973_v42  ;;  %6009 = vmatmul.msk.f32.gmra.mxu3 %vm743_vm2, %v6973_v42 }
  0xdc   :  { %313 = vst.msk [vmem:[#allocation2 + $0x90] sm:$0xff] %vm303_vm3, %v250_v41 }
  0xde   :  { %557 = vrot.lane.b32.xlu0 %v6807_v2, %s6475_s25  ;;  %707 = vrot.lane.b32.xlu1 %v6909_v24, %s6473_s2 }
  0xdf   :  { %267 = vrot.lane.b32.xlu2 %v6777_v60, %s6474_s22  ;;  %v901_v60 = vld [vmem:[#allocation4 + $0x1f0] sm:$0xff] }
  0xe0   :  { %v246_v43 = vpop.permute.xlu0 %245  ;;  %v392_v44 = vpop.permute.xlu1 %391  ;;  %1352 = vmatpush.msrb.mxu1 %v901_v60 }
  0xe1   :  { %311 = vst.msk [vmem:[#allocation2 + $0x70] sm:$0xff] %vm303_vm3, %v246_v43  ;;  %v6991_v46 = vpop.permute.xlu2 %691 }
  0xe2   :  { %457 = vst.msk [vmem:[#allocation2 + $0x70] sm:$0xff] %vm449_vm4, %v392_v44  ;;  %v6994_v47 = vld [vmem:[#allocation2 + $0x60] sm:$0xff]  ;;  %1353 = vmatpush.msrb.mxu1 %v897_v4 }
  0xe3   :  { %603 = vst.msk [vmem:[#allocation2 + $0x70] sm:$0xff] %vm595_vm5, %v538_v32  ;;  %1030 = vmatmul.f32.gmra.mxu0 %v6994_v47  ;;  %5985 = vmatmul.msk.f32.gmra.mxu1 %vm743_vm2, %v6988_v45 }
  0xe4   :  { %757 = vst.msk [vmem:[#allocation2 + $0x70] sm:$0xff] %vm741_vm6, %v684_v35  ;;  %1208 = vmatmul.f32.gmra.mxu2 %v6994_v47  ;;  %6010 = vmatmul.msk.f32.gmra.mxu3 %vm743_vm2, %v6988_v45  ;;  %v890_v35 = vld [vmem:[#allocation4 + $0x198] sm:$0xff] }
  0xe5   :  { %766 = vst.msk [vmem:[#allocation2 + $0xb8] sm:$0xff] %vm743_vm2, %v6991_v46  ;;  %1533 = vmatpush.msrb.mxu0 %v890_v35 }
  0xe6   :  { %413 = vrot.lane.b32.xlu0 %v6807_v2, %s6476_s30  ;;  %559 = vrot.lane.b32.xlu1 %v6898_v23, %s6475_s25 }
  0xe7   :  { %709 = vrot.lane.b32.xlu2 %v7007_v48, %s6473_s2 }
  0xe8   :  { %v688_v49 = vpop.permute.xlu0 %687  ;;  %v248_v50 = vpop.permute.xlu1 %247 }
  0xe9   :  { %762 = vst.msk [vmem:[#allocation2 + $0x98] sm:$0xff] %vm743_vm2, %v688_v49  ;;  %v544_v51 = vpop.permute.xlu2 %543 }
  0xea   :  { %312 = vst.msk [vmem:[#allocation2 + $0x80] sm:$0xff] %vm303_vm3, %v248_v50  ;;  %v886_v50 = vld [vmem:[#allocation4 + $0x178] sm:$0xff] }
  0xeb   :  { %458 = vst.msk [vmem:[#allocation2 + $0x80] sm:$0xff] %vm449_vm4, %v394_v37  ;;  %v7020_v52 = vld [vmem:[#allocation2 + $0x70] sm:$0xff]  ;;  %1534 = vmatpush.msrb.mxu0 %v886_v50 }
  0xec   :  { %1033 = vmatmul.f32.gmra.mxu0 %v7020_v52  ;;  %1211 = vmatmul.f32.gmra.mxu2 %v7020_v52  ;;  %v7075_v11 = vld [vmem:[#allocation2 + $0xb8] sm:$0xff] }
  0xee   :  { %269 = vrot.lane.b32.xlu0 %v6807_v2, %s6474_s22  ;;  %415 = vrot.lane.b32.xlu1 %v6898_v23, %s6476_s30 }
  0xef   :  { %561 = vrot.lane.b32.xlu2 %v6871_v17, %s6475_s25 }
  0xf0   :  { %v540_v55 = vpop.permute.xlu0 %539  ;;  %v690_v56 = vpop.permute.xlu1 %689  ;;  %v7032_v57 = vld [vmem:[#allocation2 + $0x98] sm:$0xff] }
  0xf1   :  { %604 = vst.msk [vmem:[#allocation2 + $0x80] sm:$0xff] %vm595_vm5, %v540_v55  ;;  %5986 = vmatmul.msk.f32.gmra.mxu1 %vm743_vm2, %v7032_v57  ;;  %6011 = vmatmul.msk.f32.gmra.mxu3 %vm743_vm2, %v7032_v57  ;;  %v400_v58 = vpop.permute.xlu2 %399 }
  0xf2   :  { %759 = vst.msk [vmem:[#allocation2 + $0x80] sm:$0xff] %vm741_vm6, %v6918_v28 }
  0xf3   :  { %764 = vst.msk [vmem:[#allocation2 + $0xa8] sm:$0xff] %vm743_vm2, %v690_v56 }
  0xf6   :  { %711 = vrot.lane.b32.xlu0 %v7045_v59, %s6473_s2  ;;  %271 = vrot.lane.b32.xlu1 %v6898_v23, %s6474_s22  ;;  %v893_v23 = vld [vmem:[#allocation4 + $0x1b0] sm:$0xff] }
  0xf7   :  { %417 = vrot.lane.b32.xlu2 %v6871_v17, %s6476_s30  ;;  %1354 = vmatpush.msrb.mxu1 %v893_v23 }
  0xf8   :  { %v396_v62 = vpop.permute.xlu0 %395  ;;  %v542_v63 = vpop.permute.xlu1 %541 }
  0xf9   :  { %459 = vst.msk [vmem:[#allocation2 + $0x90] sm:$0xff] %vm449_vm4, %v396_v62  ;;  %v7054_v0 = vld [vmem:[#allocation2 + $0x80] sm:$0xff]  ;;  %v256_v1 = vpop.permute.xlu2 %255  ;;  %1355 = vmatpush.msrb.mxu1 %v889_v34  ;;  %v881_v62 = vld [vmem:[#allocation4 + $0x150] sm:$0xff] }
  0xfa   :  { %605 = vst.msk [vmem:[#allocation2 + $0x90] sm:$0xff] %vm595_vm5, %v542_v63  ;;  %1036 = vmatmul.f32.gmra.mxu0 %v7054_v0  ;;  %v7058_v2 = vld [vmem:[#allocation2 + $0xa8] sm:$0xff]  ;;  %1214 = vmatmul.f32.gmra.mxu2 %v7054_v0  ;;  %v882_v63 = vld [vmem:[#allocation4 + $0x158] sm:$0xff] }
  0xfb   :  { %761 = vst.msk [vmem:[#allocation2 + $0x90] sm:$0xff] %vm741_vm6, %v688_v49  ;;  %5987 = vmatmul.msk.f32.gmra.mxu1 %vm743_vm2, %v7058_v2  ;;  %6012 = vmatmul.msk.f32.gmra.mxu3 %vm743_vm2, %v7058_v2  ;;  %v885_v49 = vld [vmem:[#allocation4 + $0x170] sm:$0xff] }
  0xfc   :  { %316 = vst.msk [vmem:[#allocation2 + $0xc0] sm:$0xff] %vm303_vm3, %v256_v1  ;;  %1356 = vmatpush.msrb.mxu1 %v885_v49  ;;  %1535 = vmatpush.msrb.mxu0 %v882_v63  ;;  %v874_v49 = vld [vmem:[#allocation4 + $0x118] sm:$0xff] }
  0xfe   :  { %563 = vrot.lane.b32.xlu0 %v6909_v24, %s6475_s25  ;;  %713 = vrot.lane.b32.xlu1 %v5974_v3, %s6473_s2 }
  0xff   :  { %273 = vrot.lane.b32.xlu2 %v6871_v17, %s6474_s22  ;;  %1357 = vmatpush.msrb.mxu1 %v881_v62  ;;  %v906_v62 = vld [vmem:[#allocation4 + $0x218] sm:$0xff] }
 0x100   :  { %v252_v8 = vpop.permute.xlu0 %251  ;;  %v398_v9 = vpop.permute.xlu1 %397  ;;  %1634 = vmatpush.msrb.mxu2 %v906_v62 }
 0x101   :  { %314 = vst.msk [vmem:[#allocation2 + $0xa0] sm:$0xff] %vm303_vm3, %v252_v8  ;;  %v7078_v13 = vpop.permute.xlu2 %697 }
 0x102   :  { %460 = vst.msk [vmem:[#allocation2 + $0xa0] sm:$0xff] %vm449_vm4, %v398_v9  ;;  %v7081_v14 = vld [vmem:[#allocation2 + $0x90] sm:$0xff] }
 0x103   :  { %606 = vst.msk [vmem:[#allocation2 + $0xa0] sm:$0xff] %vm595_vm5, %v544_v51  ;;  %1039 = vmatmul.f32.gmra.mxu0 %v7081_v14  ;;  %5988 = vmatmul.msk.f32.gmra.mxu1 %vm743_vm2, %v7075_v11 }
 0x104   :  { %763 = vst.msk [vmem:[#allocation2 + $0xa0] sm:$0xff] %vm741_vm6, %v690_v56  ;;  %1217 = vmatmul.f32.gmra.mxu2 %v7081_v14  ;;  %6013 = vmatmul.msk.f32.gmra.mxu3 %vm743_vm2, %v7075_v11 }
 0x105   :  { %772 = vst.msk [vmem:[#allocation2 + $0xe8] sm:$0xff] %vm743_vm2, %v7078_v13 }
 0x106   :  { %419 = vrot.lane.b32.xlu0 %v6909_v24, %s6476_s30  ;;  %565 = vrot.lane.b32.xlu1 %v7007_v48, %s6475_s25 }
 0x107   :  { %715 = vrot.lane.b32.xlu2 %v5975_v16, %s6473_s2 }
 0x108   :  { %v694_v17 = vpop.permute.xlu0 %693  ;;  %v254_v18 = vpop.permute.xlu1 %253 }
 0x109   :  { %768 = vst.msk [vmem:[#allocation2 + $0xc8] sm:$0xff] %vm743_vm2, %v694_v17  ;;  %v550_v19 = vpop.permute.xlu2 %549 }
 0x10a   :  { %315 = vst.msk [vmem:[#allocation2 + $0xb0] sm:$0xff] %vm303_vm3, %v254_v18  ;;  %v878_v18 = vld [vmem:[#allocation4 + $0x138] sm:$0xff] }
 0x10b   :  { %461 = vst.msk [vmem:[#allocation2 + $0xb0] sm:$0xff] %vm449_vm4, %v400_v58  ;;  %v7104_v21 = vld [vmem:[#allocation2 + $0xa0] sm:$0xff]  ;;  %1536 = vmatpush.msrb.mxu0 %v878_v18  ;;  %v869_v18 = vld [vmem:[#allocation4 + $0xf0] sm:$0xff] }
 0x10c   :  { %1042 = vmatmul.f32.gmra.mxu0 %v7104_v21  ;;  %1220 = vmatmul.f32.gmra.mxu2 %v7104_v21  ;;  %v7143_v44 = vld [vmem:[#allocation2 + $0xe8] sm:$0xff] }
 0x10d   :  { %1537 = vmatpush.msrb.mxu0 %v874_v49 }
 0x10e   :  { %275 = vrot.lane.b32.xlu0 %v6909_v24, %s6474_s22  ;;  %421 = vrot.lane.b32.xlu1 %v7007_v48, %s6476_s30 }
 0x10f   :  { %567 = vrot.lane.b32.xlu2 %v7045_v59, %s6475_s25 }
 0x110   :  { %v546_v26 = vpop.permute.xlu0 %545  ;;  %v696_v28 = vpop.permute.xlu1 %695  ;;  %v7114_v30 = vld [vmem:[#allocation2 + $0xc8] sm:$0xff] }
 0x111   :  { %607 = vst.msk [vmem:[#allocation2 + $0xb0] sm:$0xff] %vm595_vm5, %v546_v26  ;;  %5989 = vmatmul.msk.f32.gmra.mxu1 %vm743_vm2, %v7114_v30  ;;  %6014 = vmatmul.msk.f32.gmra.mxu3 %vm743_vm2, %v7114_v30  ;;  %v406_v31 = vpop.permute.xlu2 %405 }
 0x112   :  { %765 = vst.msk [vmem:[#allocation2 + $0xb0] sm:$0xff] %vm741_vm6, %v6991_v46 }
 0x113   :  { %770 = vst.msk [vmem:[#allocation2 + $0xd8] sm:$0xff] %vm743_vm2, %v696_v28 }
 0x116   :  { %277 = vrot.lane.b32.xlu0 %v7007_v48, %s6474_s22  ;;  %423 = vrot.lane.b32.xlu1 %v7045_v59, %s6476_s30  ;;  %v7161_v51 = vpop.f32.mrf.mxu1  ;;  %s6478_s22 = smov 80  }
 0x117   :  { %569 = vrot.lane.b32.xlu2 %v5974_v3, %s6475_s25  ;;  %s6479_s25 = smov 64  }
 0x118   :  { %v402_v24 = vpop.permute.xlu0 %401  ;;  %v548_v32 = vpop.permute.xlu1 %547 }
 0x119   :  { %462 = vst.msk [vmem:[#allocation2 + $0xc0] sm:$0xff] %vm449_vm4, %v402_v24  ;;  %v7130_v37 = vld [vmem:[#allocation2 + $0xb0] sm:$0xff]  ;;  %v262_v38 = vpop.permute.xlu2 %261 }
 0x11a   :  { %608 = vst.msk [vmem:[#allocation2 + $0xc0] sm:$0xff] %vm595_vm5, %v548_v32  ;;  %1045 = vmatmul.f32.gmra.mxu0 %v7130_v37  ;;  %v7134_v39 = vld [vmem:[#allocation2 + $0xd8] sm:$0xff]  ;;  %1223 = vmatmul.f32.gmra.mxu2 %v7130_v37 }
 0x11b   :  { %767 = vst.msk [vmem:[#allocation2 + $0xc0] sm:$0xff] %vm741_vm6, %v694_v17  ;;  %5990 = vmatmul.msk.f32.gmra.mxu1 %vm743_vm2, %v7134_v39  ;;  %6015 = vmatmul.msk.f32.gmra.mxu3 %vm743_vm2, %v7134_v39 }
 0x11c   :  { %319 = vst.msk [vmem:[#allocation2 + $0xf0] sm:$0xff] %vm303_vm3, %v262_v38  ;;  %v7170_v58 = vpop.f32.mrf.mxu3 }
 0x11e   :  { %v7179_v3 = vpop.f32.mrf.mxu1 }
 0x120   :  { %v258_v41 = vpop.permute.xlu0 %257  ;;  %v404_v43 = vpop.permute.xlu1 %403 }
 0x121   :  { %317 = vst.msk [vmem:[#allocation2 + $0xd0] sm:$0xff] %vm303_vm3, %v258_v41  ;;  %v7146_v46 = vpop.permute.xlu2 %703  ;;  %v7202_v23 = vpop.f32.mrf.mxu0 }
 0x122   :  { %463 = vst.msk [vmem:[#allocation2 + $0xd0] sm:$0xff] %vm449_vm4, %v404_v43  ;;  %v7149_v48 = vld [vmem:[#allocation2 + $0xc0] sm:$0xff]  ;;  %v873_v43 = vld [vmem:[#allocation4 + $0x110] sm:$0xff] }
 0x123   :  { %609 = vst.msk [vmem:[#allocation2 + $0xd0] sm:$0xff] %vm595_vm5, %v550_v19  ;;  %1048 = vmatmul.f32.gmra.mxu0 %v7149_v48  ;;  %5991 = vmatmul.msk.f32.gmra.mxu1 %vm743_vm2, %v7143_v44 }
 0x124   :  { %769 = vst.msk [vmem:[#allocation2 + $0xd0] sm:$0xff] %vm741_vm6, %v696_v28  ;;  %1226 = vmatmul.f32.gmra.mxu2 %v7149_v48  ;;  %6016 = vmatmul.msk.f32.gmra.mxu3 %vm743_vm2, %v7143_v44  ;;  %v7184_v4 = vpop.f32.mrf.mxu3 }
 0x125   :  { %778 = vst.msk [vmem:[#allocation2 + $0x118] sm:$0xff] %vm743_vm2, %v7146_v46 }
 0x126   :  { %v7199_v19 = vpop.f32.mrf.mxu1 }
 0x127   :  { %v7214_v34 = vpop.f32.mrf.mxu2 }
 0x128   :  { %v700_v53 = vpop.permute.xlu0 %699  ;;  %v260_v54 = vpop.permute.xlu1 %259 }
 0x129   :  { %774 = vst.msk [vmem:[#allocation2 + $0xf8] sm:$0xff] %vm743_vm2, %v700_v53  ;;  %v556_v55 = vpop.permute.xlu2 %555  ;;  %v7228_v38 = vpop.f32.mrf.mxu0 }
 0x12a   :  { %318 = vst.msk [vmem:[#allocation2 + $0xe0] sm:$0xff] %vm303_vm3, %v260_v54 }
 0x12b   :  { %464 = vst.msk [vmem:[#allocation2 + $0xe0] sm:$0xff] %vm449_vm4, %v406_v31  ;;  %v7166_v56 = vld [vmem:[#allocation2 + $0xd0] sm:$0xff] }
 0x12c   :  { %1051 = vmatmul.f32.gmra.mxu0 %v7166_v56  ;;  %1229 = vmatmul.f32.gmra.mxu2 %v7166_v56  ;;  %v7204_v26 = vld [vmem:[#allocation2 + $0x118] sm:$0xff]  ;;  %v7207_v31 = vpop.f32.mrf.mxu3 }
 0x12d   :  { %9534 = vst [vmem:[#allocation19_spill] sm:$0xff] %v7207_v31 }
 0x12e   :  { %v7226_v35 = vpop.f32.mrf.mxu1 }
 0x130   :  { %v552_v59 = vpop.permute.xlu0 %551  ;;  %v702_v60 = vpop.permute.xlu1 %701  ;;  %v7172_v61 = vld [vmem:[#allocation2 + $0xf8] sm:$0xff] }
 0x131   :  { %610 = vst.msk [vmem:[#allocation2 + $0xe0] sm:$0xff] %vm595_vm5, %v552_v59  ;;  %5992 = vmatmul.msk.f32.gmra.mxu1 %vm743_vm2, %v7172_v61  ;;  %6017 = vmatmul.msk.f32.gmra.mxu3 %vm743_vm2, %v7172_v61  ;;  %v412_v1 = vpop.permute.xlu2 %411  ;;  %v905_v59 = vld [vmem:[#allocation4 + $0x210] sm:$0xff] }
 0x132   :  { %771 = vst.msk [vmem:[#allocation2 + $0xe0] sm:$0xff] %vm741_vm6, %v7078_v13  ;;  %v877_v13 = vld [vmem:[#allocation4 + $0x130] sm:$0xff]  ;;  %1456 = vmatpush.msrb.mxu3 %v905_v59 }
 0x133   :  { %776 = vst.msk [vmem:[#allocation2 + $0x108] sm:$0xff] %vm743_vm2, %v702_v60  ;;  %1358 = vmatpush.msrb.mxu1 %v877_v13 }
 0x135   :  { %1359 = vmatpush.msrb.mxu1 %v873_v43 }
 0x137   :  { %v7241_v63 = vpop.f32.mrf.mxu0  ;;  %1360 = vmatpush.msrb.mxu1 %v869_v18 }
 0x138   :  { %v408_v6 = vpop.permute.xlu0 %407  ;;  %v554_v8 = vpop.permute.xlu1 %553 }
 0x139   :  { %465 = vst.msk [vmem:[#allocation2 + $0xf0] sm:$0xff] %vm449_vm4, %v408_v6  ;;  %v7187_v9 = vld [vmem:[#allocation2 + $0xe0] sm:$0xff]  ;;  %v268_v16 = vpop.permute.xlu2 %267  ;;  %v7243_v6 = vpop.f32.mrf.mxu1 }
 0x13a   :  { %611 = vst.msk [vmem:[#allocation2 + $0xf0] sm:$0xff] %vm595_vm5, %v554_v8  ;;  %1054 = vmatmul.f32.gmra.mxu0 %v7187_v9  ;;  %v7191_v17 = vld [vmem:[#allocation2 + $0x108] sm:$0xff]  ;;  %1232 = vmatmul.f32.gmra.mxu2 %v7187_v9 }
 0x13b   :  { %773 = vst.msk [vmem:[#allocation2 + $0xf0] sm:$0xff] %vm741_vm6, %v700_v53  ;;  %5993 = vmatmul.msk.f32.gmra.mxu1 %vm743_vm2, %v7191_v17  ;;  %6018 = vmatmul.msk.f32.gmra.mxu3 %vm743_vm2, %v7191_v17 }
 0x13c   :  { %322 = vst.msk [vmem:[#allocation2 + $0x120] sm:$0xff] %vm303_vm3, %v268_v16 }
 0x13d   :  { %9536 = vst [vmem:[#allocation21_spill] sm:$0xff] %v7243_v6 }
 0x140   :  { %v264_v25 = vpop.permute.xlu0 %263  ;;  %v410_v28 = vpop.permute.xlu1 %409 }
 0x141   :  { %320 = vst.msk [vmem:[#allocation2 + $0x100] sm:$0xff] %vm303_vm3, %v264_v25  ;;  %v7212_v32 = vpop.permute.xlu2 %709  ;;  %v870_v25 = vld [vmem:[#allocation4 + $0xf8] sm:$0xff] }
 0x142   :  { %466 = vst.msk [vmem:[#allocation2 + $0x100] sm:$0xff] %vm449_vm4, %v410_v28  ;;  %v7210_v24 = vld [vmem:[#allocation2 + $0xf0] sm:$0xff]  ;;  %1538 = vmatpush.msrb.mxu0 %v870_v25 }
 0x143   :  { %612 = vst.msk [vmem:[#allocation2 + $0x100] sm:$0xff] %vm595_vm5, %v556_v55  ;;  %1057 = vmatmul.f32.gmra.mxu0 %v7210_v24  ;;  %5994 = vmatmul.msk.f32.gmra.mxu1 %vm743_vm2, %v7204_v26  ;;  %v7235_v55 = vpop.f32.mrf.mxu3  ;;  %v865_v25 = vld [vmem:[#allocation4 + $0xd0] sm:$0xff] }
 0x144   :  { %775 = vst.msk [vmem:[#allocation2 + $0x100] sm:$0xff] %vm741_vm6, %v702_v60  ;;  %1235 = vmatmul.f32.gmra.mxu2 %v7210_v24  ;;  %6019 = vmatmul.msk.f32.gmra.mxu3 %vm743_vm2, %v7204_v26  ;;  %v7239_v60 = vpop.f32.mrf.mxu2 }
 0x145   :  { %784 = vst.msk [vmem:[#allocation2 + $0x148] sm:$0xff] %vm743_vm2, %v7212_v32  ;;  %1361 = vmatpush.msrb.mxu1 %v865_v25 }
 0x146   :  { %9535 = vst [vmem:[#allocation20_spill] sm:$0xff] %v7235_v55 }
 0x148   :  { %v706_v41 = vpop.permute.xlu0 %705  ;;  %v266_v50 = vpop.permute.xlu1 %265 }
 0x149   :  { %780 = vst.msk [vmem:[#allocation2 + $0x128] sm:$0xff] %vm743_vm2, %v706_v41  ;;  %v562_v53 = vpop.permute.xlu2 %561 }
 0x14a   :  { %321 = vst.msk [vmem:[#allocation2 + $0x110] sm:$0xff] %vm303_vm3, %v266_v50  ;;  %v7261_v50 = vpop.f32.mrf.mxu0 }
 0x14b   :  { %467 = vst.msk [vmem:[#allocation2 + $0x110] sm:$0xff] %vm449_vm4, %v412_v1  ;;  %v7233_v54 = vld [vmem:[#allocation2 + $0x100] sm:$0xff]  ;;  %v7259_v43 = vpop.f32.mrf.mxu3 }
 0x14c   :  { %1060 = vmatmul.f32.gmra.mxu0 %v7233_v54  ;;  %1238 = vmatmul.f32.gmra.mxu2 %v7233_v54  ;;  %v7257_v28 = vpop.f32.mrf.mxu2  ;;  %9538 = vst [vmem:[#allocation23_spill] sm:$0xff] %v7259_v43  ;;  %v866_v43 = vld [vmem:[#allocation4 + $0xd8] sm:$0xff] }
 0x14d   :  { %9537 = vst [vmem:[#allocation22_spill] sm:$0xff] %v7257_v28  ;;  %1539 = vmatpush.msrb.mxu0 %v866_v43  ;;  %v7283_v28 = vld [vmem:[#allocation2 + $0x148] sm:$0xff]  ;;  %v853_v43 = vld [vmem:[#allocation4 + $0x70] sm:$0xff] }
 0x14e   :  { %9542 = vst [vmem:[#allocation27_spill] sm:$0xff] %v7283_v28 }
 0x150   :  { %v558_v8 = vpop.permute.xlu0 %557  ;;  %v7245_v1 = vld [vmem:[#allocation2 + $0x128] sm:$0xff]  ;;  %v708_v16 = vpop.permute.xlu1 %707 }
 0x151   :  { %613 = vst.msk [vmem:[#allocation2 + $0x110] sm:$0xff] %vm595_vm5, %v558_v8  ;;  %5995 = vmatmul.msk.f32.gmra.mxu1 %vm743_vm2, %v7245_v1  ;;  %6020 = vmatmul.msk.f32.gmra.mxu3 %vm743_vm2, %v7245_v1  ;;  %v7254_v13 = vpop.permute.xlu2 %417 }
 0x152   :  { %777 = vst.msk [vmem:[#allocation2 + $0x110] sm:$0xff] %vm741_vm6, %v7146_v46  ;;  %v7266_v46 = vpop.f32.mrf.mxu1 }
 0x153   :  { %782 = vst.msk [vmem:[#allocation2 + $0x138] sm:$0xff] %vm743_vm2, %v708_v16  ;;  %v7281_v31 = vpop.f32.mrf.mxu3 }
 0x154   :  { %9539 = vst [vmem:[#allocation24_spill] sm:$0xff] %v7266_v46  ;;  %v7279_v55 = vpop.f32.mrf.mxu2 }
 0x155   :  { %9540 = vst [vmem:[#allocation25_spill] sm:$0xff] %v7279_v55  ;;  %v7293_v55 = vpop.f32.mrf.mxu0 }
 0x156   :  { %9541 = vst [vmem:[#allocation26_spill] sm:$0xff] %v7281_v31 }
 0x157   :  { %9544 = vst [vmem:[#allocation29_spill] sm:$0xff] %v7293_v55  ;;  %v850_v55 = vld [vmem:[#allocation4 + $0x58] sm:$0xff] }
 0x158   :  { %v414_v49 = vpop.permute.xlu0 %413  ;;  %v560_v59 = vpop.permute.xlu1 %559 }
 0x159   :  { %468 = vst.msk [vmem:[#allocation2 + $0x120] sm:$0xff] %vm449_vm4, %v414_v49  ;;  %v7264_v62 = vld [vmem:[#allocation2 + $0x110] sm:$0xff]  ;;  %v274_v18 = vpop.permute.xlu2 %273 }
 0x15a   :  { %614 = vst.msk [vmem:[#allocation2 + $0x120] sm:$0xff] %vm595_vm5, %v560_v59  ;;  %1063 = vmatmul.f32.gmra.mxu0 %v7264_v62  ;;  %v7270_v8 = vld [vmem:[#allocation2 + $0x138] sm:$0xff]  ;;  %1241 = vmatmul.f32.gmra.mxu2 %v7264_v62  ;;  %v861_v49 = vld [vmem:[#allocation4 + $0xb0] sm:$0xff]  ;;  %v7286_v6 = vpop.f32.mrf.mxu1 }
 0x15b   :  { %779 = vst.msk [vmem:[#allocation2 + $0x120] sm:$0xff] %vm741_vm6, %v706_v41  ;;  %5996 = vmatmul.msk.f32.gmra.mxu1 %vm743_vm2, %v7270_v8  ;;  %6021 = vmatmul.msk.f32.gmra.mxu3 %vm743_vm2, %v7270_v8  ;;  %v857_v59 = vld [vmem:[#allocation4 + $0x90] sm:$0xff] }
 0x15c   :  { %325 = vst.msk [vmem:[#allocation2 + $0x150] sm:$0xff] %vm303_vm3, %v274_v18  ;;  %1362 = vmatpush.msrb.mxu1 %v861_v49  ;;  %v7305_v49 = vpop.f32.mrf.mxu3  ;;  %v7307_v31 = vpop.f32.mrf.mxu2 }
 0x15d   :  { %9543 = vst [vmem:[#allocation28_spill] sm:$0xff] %v7286_v6  ;;  %v7311_v6 = vpop.f32.mrf.mxu0 }
 0x15e   :  { %1363 = vmatpush.msrb.mxu1 %v857_v59  ;;  %9545 = vst [vmem:[#allocation30_spill] sm:$0xff] %v7305_v49  ;;  %v862_v49 = vld [vmem:[#allocation4 + $0xb8] sm:$0xff] }
 0x15f   :  { %9546 = vst [vmem:[#allocation31_spill] sm:$0xff] %v7307_v31  ;;  %1540 = vmatpush.msrb.mxu0 %v862_v49  ;;  %v858_v49 = vld [vmem:[#allocation4 + $0x98] sm:$0xff] }
 0x160   :  { %v270_v41 = vpop.permute.xlu0 %269  ;;  %v416_v46 = vpop.permute.xlu1 %415  ;;  %1364 = vmatpush.msrb.mxu1 %v853_v43  ;;  %9547 = vst [vmem:[#allocation32_spill] sm:$0xff] %v7311_v6 }
 0x161   :  { %323 = vst.msk [vmem:[#allocation2 + $0x130] sm:$0xff] %vm303_vm3, %v270_v41  ;;  %v7291_v25 = vpop.permute.xlu2 %715  ;;  %v841_v41 = vld [vmem:[#allocation4 + $0x10] sm:$0xff]  ;;  %1541 = vmatpush.msrb.mxu0 %v858_v49 }
 0x162   :  { %469 = vst.msk [vmem:[#allocation2 + $0x130] sm:$0xff] %vm449_vm4, %v416_v46  ;;  %v7289_v18 = vld [vmem:[#allocation2 + $0x120] sm:$0xff]  ;;  %v849_v46 = vld [vmem:[#allocation4 + $0x50] sm:$0xff] }
 0x163   :  { %615 = vst.msk [vmem:[#allocation2 + $0x130] sm:$0xff] %vm595_vm5, %v562_v53  ;;  %1066 = vmatmul.f32.gmra.mxu0 %v7289_v18  ;;  %5997 = vmatmul.msk.f32.gmra.mxu1 %vm743_vm2, %v7283_v28  ;;  %v845_v53 = vld [vmem:[#allocation4 + $0x30] sm:$0xff] }
 0x164   :  { %781 = vst.msk [vmem:[#allocation2 + $0x130] sm:$0xff] %vm741_vm6, %v708_v16  ;;  %1244 = vmatmul.f32.gmra.mxu2 %v7289_v18  ;;  %6022 = vmatmul.msk.f32.gmra.mxu3 %vm743_vm2, %v7283_v28 }
 0x165   :  { %790 = vst.msk [vmem:[#allocation2 + $0x178] sm:$0xff] %vm743_vm2, %v7291_v25  ;;  %1365 = vmatpush.msrb.mxu1 %v849_v46  ;;  %v7317_v46 = vpop.f32.mrf.mxu1 }
 0x166   :  { %9548 = vst [vmem:[#allocation33_spill] sm:$0xff] %v7317_v46 }
 0x167   :  { %1366 = vmatpush.msrb.mxu1 %v845_v53 }
 0x168   :  { %v712_v59 = vpop.permute.xlu0 %711  ;;  %v272_v16 = vpop.permute.xlu1 %271 }
 0x169   :  { %786 = vst.msk [vmem:[#allocation2 + $0x158] sm:$0xff] %vm743_vm2, %v712_v59  ;;  %1367 = vmatpush.msrb.mxu1 %v841_v41  ;;  %v854_v41 = vld [vmem:[#allocation4 + $0x78] sm:$0xff] }
 0x16a   :  { %324 = vst.msk [vmem:[#allocation2 + $0x140] sm:$0xff] %vm303_vm3, %v272_v16  ;;  %v7323_v16 = vpop.f32.mrf.mxu2  ;;  %1542 = vmatpush.msrb.mxu0 %v854_v41 }
 0x16b   :  { %470 = vst.msk [vmem:[#allocation2 + $0x140] sm:$0xff] %vm449_vm4, %v7254_v13  ;;  %v7315_v43 = vld [vmem:[#allocation2 + $0x130] sm:$0xff]  ;;  %v7330_v13 = vpop.f32.mrf.mxu3 }
 0x16c   :  { %1069 = vmatmul.f32.gmra.mxu0 %v7315_v43  ;;  %1247 = vmatmul.f32.gmra.mxu2 %v7315_v43  ;;  %9550 = vst [vmem:[#allocation35_spill] sm:$0xff] %v7323_v16  ;;  %v7335_v16 = vpop.f32.mrf.mxu0 }
 0x16d   :  { %9551 = vst [vmem:[#allocation36_spill] sm:$0xff] %v7330_v13  ;;  %1543 = vmatpush.msrb.mxu0 %v850_v55  ;;  %v842_v55 = vld [vmem:[#allocation4 + $0x18] sm:$0xff] }
 0x16e   :  { %9552 = vst [vmem:[#allocation37_spill] sm:$0xff] %v7335_v16 }
 0x170   :  { %v564_v31 = vpop.permute.xlu0 %563  ;;  %v7321_v53 = vld [vmem:[#allocation2 + $0x158] sm:$0xff]  ;;  %v714_v6 = vpop.permute.xlu1 %713 }
 0x171   :  { %9549 = vst [vmem:[#allocation34_spill] sm:$0xff] %v7321_v53  ;;  %5998 = vmatmul.msk.f32.gmra.mxu1 %vm743_vm2, %v7321_v53  ;;  %6023 = vmatmul.msk.f32.gmra.mxu3 %vm743_vm2, %v7321_v53 }
 0x172   :  { %616 = vst.msk [vmem:[#allocation2 + $0x140] sm:$0xff] %vm595_vm5, %v564_v31  ;;  %v7337_v31 = vpop.f32.mrf.mxu1  ;;  %v7347_v49 = vpop.f32.mrf.mxu2 }
 0x173   :  { %783 = vst.msk [vmem:[#allocation2 + $0x140] sm:$0xff] %vm741_vm6, %v7212_v32  ;;  %v846_v32 = vld [vmem:[#allocation4 + $0x38] sm:$0xff] }
 0x174   :  { %788 = vst.msk [vmem:[#allocation2 + $0x168] sm:$0xff] %vm743_vm2, %v714_v6  ;;  %1544 = vmatpush.msrb.mxu0 %v846_v32 }
 0x175   :  { %9553 = vst [vmem:[#allocation38_spill] sm:$0xff] %v7337_v31  ;;  %v7358_v31 = vpop.f32.mrf.mxu0 }
 0x176   :  { %9556 = vst [vmem:[#allocation41_spill] sm:$0xff] %v7347_v49  ;;  %1545 = vmatpush.msrb.mxu0 %v842_v55  ;;  %v7360_v49 = vld [vmem:[#allocation2 + $0x178] sm:$0xff] }
 0x178   :  { %v420_v46 = vpop.permute.xlu0 %419  ;;  %v566_v53 = vpop.permute.xlu1 %565 }
 0x179   :  { %471 = vst.msk [vmem:[#allocation2 + $0x150] sm:$0xff] %vm449_vm4, %v420_v46  ;;  %v7354_v46 = vpop.f32.mrf.mxu3 }
 0x17a   :  { %v7340_v28 = vld [vmem:[#allocation2 + $0x140] sm:$0xff]  ;;  %617 = vst.msk [vmem:[#allocation2 + $0x150] sm:$0xff] %vm595_vm5, %v566_v53  ;;  %v568_v53 = vpop.permute.xlu2 %567  ;;  %v7356_v41 = vpop.f32.mrf.mxu1 }
 0x17b   :  { %9554 = vst [vmem:[#allocation39_spill] sm:$0xff] %v7340_v28  ;;  %v7342_v13 = vld [vmem:[#allocation2 + $0x168] sm:$0xff]  ;;  %1072 = vmatmul.f32.gmra.mxu0 %v7340_v28  ;;  %1250 = vmatmul.f32.gmra.mxu2 %v7340_v28 }
 0x17c   :  { %9555 = vst [vmem:[#allocation40_spill] sm:$0xff] %v7342_v13  ;;  %5999 = vmatmul.msk.f32.gmra.mxu1 %vm743_vm2, %v7342_v13  ;;  %6024 = vmatmul.msk.f32.gmra.mxu3 %vm743_vm2, %v7342_v13 }
 0x17d   :  { %785 = vst.msk [vmem:[#allocation2 + $0x150] sm:$0xff] %vm741_vm6, %v712_v59 }
 0x17e   :  { %9557 = vst [vmem:[#allocation42_spill] sm:$0xff] %v7354_v46 }
 0x17f   :  { %9558 = vst [vmem:[#allocation43_spill] sm:$0xff] %v7356_v41 }
 0x180   :  { %v276_v16 = vpop.permute.xlu0 %275  ;;  %v422_v28 = vpop.permute.xlu1 %421 }
 0x181   :  { %326 = vst.msk [vmem:[#allocation2 + $0x160] sm:$0xff] %vm303_vm3, %v276_v16  ;;  %v7371_v59 = vpop.f32.mrf.mxu3  ;;  %v7376_v16 = vpop.f32.mrf.mxu2 }
 0x182   :  { %472 = vst.msk [vmem:[#allocation2 + $0x160] sm:$0xff] %vm449_vm4, %v422_v28  ;;  %v7378_v28 = vpop.f32.mrf.mxu0  ;;  %v570_v32 = vpop.permute.xlu2 %569 }
 0x183   :  { %618 = vst.msk [vmem:[#allocation2 + $0x160] sm:$0xff] %vm595_vm5, %v568_v53  ;;  %v7380_v55 = vpop.f32.mrf.mxu1  ;;  %v6147_v53 = vld [vmem:[#allocation2 + $0x8] sm:$0xff] }
 0x184   :  { %v7364_v13 = vld [vmem:[#allocation2 + $0x150] sm:$0xff]  ;;  %6000 = vmatmul.msk.f32.gmra.mxu1 %vm743_vm2, %v7360_v49  ;;  %6025 = vmatmul.msk.f32.gmra.mxu3 %vm743_vm2, %v7360_v49  ;;  %9559 = vst [vmem:[#allocation44_spill] sm:$0xff] %v7371_v59 }
 0x185   :  { %787 = vst.msk [vmem:[#allocation2 + $0x160] sm:$0xff] %vm741_vm6, %v714_v6  ;;  %1075 = vmatmul.f32.gmra.mxu0 %v7364_v13  ;;  %1253 = vmatmul.f32.gmra.mxu2 %v7364_v13 }
 0x186   :  { %9560 = vst [vmem:[#allocation45_spill] sm:$0xff] %v7376_v16 }
 0x187   :  { %9561 = vst [vmem:[#allocation46_spill] sm:$0xff] %v7380_v55 }
 0x188   :  { %v278_v46 = vpop.permute.xlu0 %277  ;;  %v424_v41 = vpop.permute.xlu1 %423 }
 0x189   :  { %327 = vst.msk [vmem:[#allocation2 + $0x170] sm:$0xff] %vm303_vm3, %v278_v46  ;;  %v7393_v46 = vpop.f32.mrf.mxu2  ;;  %v7395_v59 = vpop.f32.mrf.mxu3 }
 0x18a   :  { %473 = vst.msk [vmem:[#allocation2 + $0x170] sm:$0xff] %vm449_vm4, %v424_v41  ;;  %v7397_v41 = vpop.f32.mrf.mxu0 }
 0x18b   :  { %619 = vst.msk [vmem:[#allocation2 + $0x170] sm:$0xff] %vm595_vm5, %v570_v32  ;;  %v7399_v55 = vpop.f32.mrf.mxu1 }
 0x18c   :  { %6027 = vmatmul.msk.f32.vlgmr.msrb.gmra.mxu3 %vm743_vm2, %v6147_v53  ;;  %1368 = vmatmul.f32.vlgmr.msrb.gmra.mxu1 %v6826_v7  ;;  %v7387_v6 = vld [vmem:[#allocation2 + $0x160] sm:$0xff]  ;;  %789 = vst.msk [vmem:[#allocation2 + $0x170] sm:$0xff] %vm741_vm6, %v7291_v25 }
 0x18d   :  { %1078 = vmatmul.f32.gmra.mxu0 %v7387_v6  ;;  %1256 = vmatmul.f32.gmra.mxu2 %v7387_v6  ;;  %9562 = vst [vmem:[#allocation47_spill] sm:$0xff] %v7393_v46 }
 0x18e   :  { %9563 = vst [vmem:[#allocation48_spill] sm:$0xff] %v7395_v59 }
 0x18f   :  { %9564 = vst [vmem:[#allocation49_spill] sm:$0xff] %v7399_v55 }
 0x191   :  { %v7408_v25 = vpop.f32.mrf.mxu2  ;;  %v7410_v46 = vpop.f32.mrf.mxu3 }
 0x192   :  { %9565 = vst [vmem:[#allocation50_spill] sm:$0xff] %v7408_v25  ;;  %v7414_v16 = vpop.f32.mrf.mxu0 }
 0x193   :  { %v7404_v32 = vld [vmem:[#allocation2 + $0x170] sm:$0xff]  ;;  %9566 = vst [vmem:[#allocation51_spill] sm:$0xff] %v7410_v46  ;;  %v7412_v59 = vpop.f32.mrf.mxu1 }
 0x194   :  { %1371 = vmatmul.f32.gmra.mxu1 %v6848_v12  ;;  %6028 = vmatmul.msk.f32.gmra.mxu3 %vm743_vm2, %v6815_v5 }
 0x195   :  { %1081 = vmatmul.f32.gmra.mxu0 %v7404_v32  ;;  %1259 = vmatmul.f32.gmra.mxu2 %v7404_v32 }
 0x199   :  { %v7421_v5 = vpop.f32.mrf.mxu3  ;;  %v7423_v55 = vpop.f32.mrf.mxu2 }
 0x19a   :  { %9567 = vst [vmem:[#allocation52_spill] sm:$0xff] %v7421_v5  ;;  %v7425_v25 = vpop.f32.mrf.mxu0  ;;  %v6149_v5 = vld [vmem:[#allocation2 + $0x28] sm:$0xff] }
 0x19b   :  { %9568 = vst [vmem:[#allocation53_spill] sm:$0xff] %v7423_v55  ;;  %v7430_v46 = vpop.f32.mrf.mxu1 }
 0x19c   :  { %1374 = vmatmul.f32.gmra.mxu1 %v6882_v20  ;;  %6029 = vmatmul.msk.f32.gmra.mxu3 %vm743_vm2, %v6839_v10  ;;  %9569 = vst [vmem:[#allocation54_spill] sm:$0xff] %v7430_v46  ;;  %v6148_v10 = vld [vmem:[#allocation2 + $0x18] sm:$0xff] }
 0x19d   :  { %1546 = vmatmul.f32.vlgmr.msrb.gmra.mxu0 %v6826_v7  ;;  %6052 = vmatmul.msk.f32.vlgmr.msrb.gmra.mxu2 %vm743_vm2, %v6147_v53 }
 0x1a1   :  { %v7434_v7 = vpop.f32.mrf.mxu2  ;;  %v7436_v53 = vpop.f32.mrf.mxu3 }
 0x1a2   :  { %9570 = vst [vmem:[#allocation55_spill] sm:$0xff] %v7436_v53  ;;  %v7443_v55 = vpop.f32.mrf.mxu0 }
 0x1a4   :  { %1377 = vmatmul.f32.gmra.mxu1 %v6921_v29  ;;  %6030 = vmatmul.msk.f32.gmra.mxu3 %vm743_vm2, %v6858_v15 }
 0x1a5   :  { %1549 = vmatmul.f32.gmra.mxu0 %v6848_v12  ;;  %6053 = vmatmul.msk.f32.gmra.mxu2 %vm743_vm2, %v6148_v10  ;;  %v7445_v12 = vpop.f32.mrf.mxu1 }
 0x1a9   :  { %v7447_v46 = vpop.f32.mrf.mxu2  ;;  %v7452_v10 = vpop.f32.mrf.mxu3 }
 0x1aa   :  { %9571 = vst [vmem:[#allocation56_spill] sm:$0xff] %v7452_v10 }
 0x1ac   :  { %1380 = vmatmul.f32.gmra.mxu1 %v6942_v33  ;;  %6031 = vmatmul.msk.f32.gmra.mxu3 %vm743_vm2, %v6886_v22 }
 0x1ad   :  { %1552 = vmatmul.f32.gmra.mxu0 %v6882_v20  ;;  %6054 = vmatmul.msk.f32.gmra.mxu2 %vm743_vm2, %v6149_v5  ;;  %v7459_v5 = vpop.f32.mrf.mxu0 }
 0x1ae   :  { %v7457_v20 = vpop.f32.mrf.mxu1 }
 0x1b4   :  { %1383 = vmatmul.f32.gmra.mxu1 %v6969_v40  ;;  %6032 = vmatmul.msk.f32.gmra.mxu3 %vm743_vm2, %v6915_v27  ;;  %v7464_v53 = vpop.f32.mrf.mxu3 }
 0x1b5   :  { %1555 = vmatmul.f32.gmra.mxu0 %v6921_v29  ;;  %6055 = vmatmul.msk.f32.gmra.mxu2 %vm743_vm2, %v6858_v15  ;;  %9572 = vst [vmem:[#allocation57_spill] sm:$0xff] %v7464_v53  ;;  %v7469_v29 = vpop.f32.mrf.mxu2 }
 0x1b6   :  { %9573 = vst [vmem:[#allocation58_spill] sm:$0xff] %v7469_v29 }
 0x1b7   :  { %v7471_v10 = vpop.f32.mrf.mxu0 }
 0x1b8   :  { %v7473_v15 = vpop.f32.mrf.mxu1 }
 0x1bc   :  { %1386 = vmatmul.f32.gmra.mxu1 %v6994_v47  ;;  %6033 = vmatmul.msk.f32.gmra.mxu3 %vm743_vm2, %v6952_v36 }
 0x1bd   :  { %1558 = vmatmul.f32.gmra.mxu0 %v6942_v33  ;;  %6056 = vmatmul.msk.f32.gmra.mxu2 %vm743_vm2, %v6886_v22  ;;  %v7481_v33 = vpop.f32.mrf.mxu2 }
 0x1be   :  { %9574 = vst [vmem:[#allocation59_spill] sm:$0xff] %v7481_v33  ;;  %v7483_v53 = vpop.f32.mrf.mxu3 }
 0x1bf   :  { %9575 = vst [vmem:[#allocation60_spill] sm:$0xff] %v7483_v53 }
 0x1c0   :  { %v7485_v22 = vpop.f32.mrf.mxu0  ;;  %v7487_v29 = vpop.f32.mrf.mxu1 }
 0x1c4   :  { %1389 = vmatmul.f32.gmra.mxu1 %v7020_v52  ;;  %6034 = vmatmul.msk.f32.gmra.mxu3 %vm743_vm2, %v6973_v42 }
 0x1c5   :  { %1561 = vmatmul.f32.gmra.mxu0 %v6969_v40  ;;  %6057 = vmatmul.msk.f32.gmra.mxu2 %vm743_vm2, %v6915_v27 }
 0x1c7   :  { %v7495_v40 = vpop.f32.mrf.mxu2  ;;  %v7497_v27 = vpop.f32.mrf.mxu3 }
 0x1c8   :  { %9576 = vst [vmem:[#allocation61_spill] sm:$0xff] %v7495_v40 }
 0x1c9   :  { %9577 = vst [vmem:[#allocation62_spill] sm:$0xff] %v7497_v27  ;;  %v7501_v53 = vpop.f32.mrf.mxu0 }
 0x1cc   :  { %1392 = vmatmul.f32.gmra.mxu1 %v7054_v0  ;;  %6035 = vmatmul.msk.f32.gmra.mxu3 %vm743_vm2, %v6988_v45 }
 0x1cd   :  { %1564 = vmatmul.f32.gmra.mxu0 %v6994_v47  ;;  %6058 = vmatmul.msk.f32.gmra.mxu2 %vm743_vm2, %v6952_v36 }
 0x1ce   :  { %v7499_v33 = vpop.f32.mrf.mxu1 }
 0x1cf   :  { %v7511_v36 = vpop.f32.mrf.mxu2 }
 0x1d0   :  { %9579 = vst [vmem:[#allocation64_spill] sm:$0xff] %v7511_v36 }
 0x1d4   :  { %1395 = vmatmul.f32.gmra.mxu1 %v7081_v14  ;;  %6036 = vmatmul.msk.f32.gmra.mxu3 %vm743_vm2, %v7032_v57  ;;  %v7509_v47 = vpop.f32.mrf.mxu3 }
 0x1d5   :  { %1567 = vmatmul.f32.gmra.mxu0 %v7020_v52  ;;  %6059 = vmatmul.msk.f32.gmra.mxu2 %vm743_vm2, %v6973_v42  ;;  %9578 = vst [vmem:[#allocation63_spill] sm:$0xff] %v7509_v47 }
 0x1d7   :  { %v7513_v40 = vpop.f32.mrf.mxu0 }
 0x1d8   :  { %v7518_v27 = vpop.f32.mrf.mxu1 }
 0x1d9   :  { %9580 = vst [vmem:[#allocation65_spill] sm:$0xff] %v7518_v27 }
 0x1dc   :  { %1398 = vmatmul.f32.gmra.mxu1 %v7104_v21  ;;  %6037 = vmatmul.msk.f32.gmra.mxu3 %vm743_vm2, %v7058_v2 }
 0x1dd   :  { %1570 = vmatmul.f32.gmra.mxu0 %v7054_v0  ;;  %6060 = vmatmul.msk.f32.gmra.mxu2 %vm743_vm2, %v6988_v45  ;;  %v7523_v52 = vpop.f32.mrf.mxu2 }
 0x1de   :  { %9581 = vst [vmem:[#allocation66_spill] sm:$0xff] %v7523_v52  ;;  %v7525_v42 = vpop.f32.mrf.mxu3 }
 0x1df   :  { %9582 = vst [vmem:[#allocation67_spill] sm:$0xff] %v7525_v42 }
 0x1e0   :  { %v7533_v47 = vpop.f32.mrf.mxu0  ;;  %v7535_v0 = vpop.f32.mrf.mxu1 }
 0x1e1   :  { %9583 = vst [vmem:[#allocation68_spill] sm:$0xff] %v7535_v0 }
 0x1e4   :  { %1401 = vmatmul.f32.gmra.mxu1 %v7130_v37  ;;  %6038 = vmatmul.msk.f32.gmra.mxu3 %vm743_vm2, %v7075_v11 }
 0x1e5   :  { %1573 = vmatmul.f32.gmra.mxu0 %v7081_v14  ;;  %6061 = vmatmul.msk.f32.gmra.mxu2 %vm743_vm2, %v7032_v57 }
 0x1e7   :  { %v7537_v36 = vpop.f32.mrf.mxu2  ;;  %v1340_v45 = vpop.f32.mrf.mxu3 }
 0x1e8   :  { %9584 = vst [vmem:[#allocation69_spill] sm:$0xff] %v7537_v36 }
 0x1e9   :  { %v7547_v57 = vpop.f32.mrf.mxu0 }
 0x1ec   :  { %1404 = vmatmul.f32.gmra.mxu1 %v7149_v48  ;;  %6039 = vmatmul.msk.f32.gmra.mxu3 %vm743_vm2, %v7114_v30 }
 0x1ed   :  { %1576 = vmatmul.f32.gmra.mxu0 %v7104_v21  ;;  %6062 = vmatmul.msk.f32.gmra.mxu2 %vm743_vm2, %v7058_v2 }
 0x1ee   :  { %v7545_v14 = vpop.f32.mrf.mxu1 }
 0x1ef   :  { %9585 = vst [vmem:[#allocation70_spill] sm:$0xff] %v7545_v14  ;;  %v7555_v36 = vpop.f32.mrf.mxu2 }
 0x1f0   :  { %9586 = vst [vmem:[#allocation71_spill] sm:$0xff] %v7555_v36 }
 0x1f4   :  { %1407 = vmatmul.f32.gmra.mxu1 %v7166_v56  ;;  %6040 = vmatmul.msk.f32.gmra.mxu3 %vm743_vm2, %v7134_v39  ;;  %v1343_v42 = vpop.f32.mrf.mxu3 }
 0x1f5   :  { %1579 = vmatmul.f32.gmra.mxu0 %v7130_v37  ;;  %6063 = vmatmul.msk.f32.gmra.mxu2 %vm743_vm2, %v7075_v11 }
 0x1f8   :  { %v7557_v21 = vpop.f32.mrf.mxu0 }
 0x1f9   :  { %9587 = vst [vmem:[#allocation72_spill] sm:$0xff] %v7557_v21  ;;  %v7559_v2 = vpop.f32.mrf.mxu1 }
 0x1fa   :  { %9588 = vst [vmem:[#allocation73_spill] sm:$0xff] %v7559_v2 }
 0x1fc   :  { %1410 = vmatmul.f32.gmra.mxu1 %v7187_v9  ;;  %6041 = vmatmul.msk.f32.gmra.mxu3 %vm743_vm2, %v7143_v44 }
 0x1fd   :  { %1582 = vmatmul.f32.gmra.mxu0 %v7149_v48  ;;  %6064 = vmatmul.msk.f32.gmra.mxu2 %vm743_vm2, %v7114_v30 }
 0x1fe   :  { %v1251_v37 = vpop.f32.mrf.mxu2 }
 0x1ff   :  { %v1346_v14 = vpop.f32.mrf.mxu3  ;;  %v7567_v0 = vadd.f32 %v1340_v45, %v1251_v37 }
 0x201   :  { %9589 = vst [vmem:[#allocation74_spill] sm:$0xff] %v7567_v0  ;;  %v7569_v11 = vpop.f32.mrf.mxu1  ;;  %v2372_v0 = vld [vmem:[#allocation8 + $0x1e0] sm:$0xff] }
 0x202   :  { %9590 = vst [vmem:[#allocation75_spill] sm:$0xff] %v7569_v11  ;;  %v7571_v36 = vpop.f32.mrf.mxu0  ;;  %2936 = vmatpush.msra.mxu1 %v2372_v0 }
 0x203   :  { %9591 = vst [vmem:[#allocation76_spill] sm:$0xff] %v7571_v36  ;;  %v2360_v36 = vld [vmem:[#allocation8 + $0x180] sm:$0xff] }
 0x204   :  { %1413 = vmatmul.f32.gmra.mxu1 %v7210_v24  ;;  %6042 = vmatmul.msk.f32.gmra.mxu3 %vm743_vm2, %v7172_v61 }
 0x205   :  { %1585 = vmatmul.f32.gmra.mxu0 %v7166_v56  ;;  %6065 = vmatmul.msk.f32.gmra.mxu2 %vm743_vm2, %v7134_v39  ;;  %v2368_v39 = vld [vmem:[#allocation8 + $0x1c0] sm:$0xff] }
 0x206   :  { %2937 = vmatpush.msra.mxu1 %v2368_v39  ;;  %v1103_v39 = vadd.f32 %v7161_v51, %v7202_v23  ;;  %v2344_v51 = vld [vmem:[#allocation8 + $0x100] sm:$0xff] }
 0x207   :  { %v1349_v48 = vpop.f32.mrf.mxu3 }
 0x208   :  { %v1254_v30 = vpop.f32.mrf.mxu2 }
 0x209   :  { %v7579_v2 = vadd.f32 %v1343_v42, %v1254_v30  ;;  %v1369_v45 = vpop.f32.mrf.mxu1  ;;  %v2364_v42 = vld [vmem:[#allocation8 + $0x1a0] sm:$0xff] }
 0x20a   :  { %v7581_v37 = vpop.f32.mrf.mxu0  ;;  %2938 = vmatpush.msra.mxu1 %v2364_v42  ;;  %v1106_v42 = vadd.f32 %v7179_v3, %v7228_v38  ;;  %v2340_v38 = vld [vmem:[#allocation8 + $0xe0] sm:$0xff] }
 0x20b   :  { %9592 = vst [vmem:[#allocation77_spill] sm:$0xff] %v7579_v2 }
 0x20c   :  { %9593 = vst [vmem:[#allocation78_spill] sm:$0xff] %v7581_v37  ;;  %1416 = vmatmul.f32.gmra.mxu1 %v7233_v54  ;;  %6043 = vmatmul.msk.f32.gmra.mxu3 %vm743_vm2, %v7191_v17 }
 0x20d   :  { %1588 = vmatmul.f32.gmra.mxu0 %v7187_v9  ;;  %6066 = vmatmul.msk.f32.gmra.mxu2 %vm743_vm2, %v7143_v44  ;;  %v2356_v44 = vld [vmem:[#allocation8 + $0x160] sm:$0xff] }
 0x20e   :  { %2939 = vmatpush.msra.mxu1 %v2360_v36 }
 0x20f   :  { %v1458_v56 = vpop.f32.mrf.mxu3 }
 0x210   :  { %v1257_v11 = vpop.f32.mrf.mxu2  ;;  %v1459_v9 = vadd.f32 %v1458_v56, %v1369_v45  ;;  %2940 = vmatpush.msra.mxu1 %v2356_v44  ;;  %v2348_v45 = vld [vmem:[#allocation8 + $0x120] sm:$0xff] }
 0x211   :  { %v1372_v30 = vpop.f32.mrf.mxu1  ;;  %v7589_v2 = vadd.f32 %v1346_v14, %v1257_v11  ;;  %v1780_v14 = vld [vmem:[#allocation6] sm:$0x3]  ;;  %v2352_v11 = vld [vmem:[#allocation8 + $0x140] sm:$0xff] }
 0x212   :  { %v7591_v37 = vpop.f32.mrf.mxu0  ;;  %v1708_v52 = vmax.f32 %v1103_v39, %v1459_v9  ;;  %v7605_v27 = vperm.slane %v1780_v14, 0  ;;  %2941 = vmatpush.msra.mxu1 %v2352_v11  ;;  %v1109_v11 = vadd.f32 %v7199_v19, %v7241_v63  ;;  %v1112_v39 = vadd.f32 %v7226_v35, %v7261_v50  ;;  %v2324_v35 = vld [vmem:[#allocation8 + $0x60] sm:$0xff] }
 0x213   :  { %9594 = vst [vmem:[#allocation79_spill] sm:$0xff] %v7589_v2  ;;  %v7633_v63 = vperm.slane %v1780_v14, 1 }
 0x214   :  { %9595 = vst [vmem:[#allocation80_spill] sm:$0xff] %v7591_v37  ;;  %1419 = vmatmul.f32.gmra.mxu1 %v7264_v62  ;;  %6044 = vmatmul.msk.f32.gmra.mxu3 %vm743_vm2, %v7204_v26 }
 0x215   :  { %1591 = vmatmul.f32.gmra.mxu0 %v7210_v24  ;;  %6067 = vmatmul.msk.f32.gmra.mxu2 %vm743_vm2, %v7172_v61 }
 0x216   :  { %2942 = vmatpush.msra.mxu1 %v2348_v45 }
 0x217   :  { %v1461_v0 = vpop.f32.mrf.mxu3 }
 0x218   :  { %v1462_v2 = vadd.f32 %v1461_v0, %v1372_v30  ;;  %v1260_v37 = vpop.f32.mrf.mxu2  ;;  %2943 = vmatpush.msra.mxu1 %v2344_v51  ;;  %v2328_v0 = vld [vmem:[#allocation8 + $0x80] sm:$0xff] }
 0x219   :  { %v1375_v21 = vpop.f32.mrf.mxu1  ;;  %v7603_v24 = vadd.f32 %v1349_v48, %v1260_v37 }
 0x21a   :  { %v1710_v61 = vmax.f32 %v1106_v42, %v1462_v2  ;;  %v1547_v36 = vpop.f32.mrf.mxu0  ;;  %2944 = vmatpush.msra.mxu1 %v2340_v38  ;;  %v9596_v38 = vld [vmem:[#allocation39_spill] sm:$0xff] }
 0x21c   :  { %v1756_v56 = vmax.f32 %v1708_v52, %v1710_v61  ;;  %1422 = vmatmul.f32.gmra.mxu1 %v7289_v18  ;;  %6045 = vmatmul.msk.f32.gmra.mxu3 %vm743_vm2, %v7245_v1 }
 0x21d   :  { %1594 = vmatmul.f32.gmra.mxu0 %v7233_v54  ;;  %6068 = vmatmul.msk.f32.gmra.mxu2 %vm743_vm2, %v7191_v17  ;;  %v2336_v54 = vld [vmem:[#allocation8 + $0xc0] sm:$0xff] }
 0x21e   :  { %v7614_v3 = vadd.f32 %v7605_v27, %v1756_v56  ;;  %v2332_v17 = vld [vmem:[#allocation8 + $0xa0] sm:$0xff]  ;;  %2945 = vmatpush.msra.mxu1 %v2336_v54 }
 0x21f   :  { %v1464_v23 = vpop.f32.mrf.mxu3 }
 0x220   :  { %v1810_v2 = vmax.f32 %v7614_v3, 0.0  ;;  %v1636_v52 = vpop.f32.mrf.mxu2  ;;  %v1465_v30 = vadd.f32 %v1464_v23, %v1375_v21  ;;  %2946 = vmatpush.msra.mxu1 %v2332_v17 }
 0x221   :  { %v1378_v48 = vpop.f32.mrf.mxu1  ;;  %v1637_v44 = vadd.f32 %v1636_v52, %v1547_v36  ;;  %v9597_v52 = vld [vmem:[#allocation27_spill] sm:$0xff] }
 0x222   :  { %1834 = vst [vmem:[#allocation3] sm:$0xff] %v1810_v2  ;;  %v1550_v37 = vpop.f32.mrf.mxu0  ;;  %v1712_v36 = vmax.f32 %v1109_v11, %v1465_v30  ;;  %2947 = vmatpush.msra.mxu1 %v2328_v0 }
 0x224   :  { %1425 = vmatmul.f32.gmra.mxu1 %v7315_v43  ;;  %6046 = vmatmul.msk.f32.gmra.mxu3 %vm743_vm2, %v7270_v8 }
 0x225   :  { %1597 = vmatmul.f32.gmra.mxu0 %v7264_v62  ;;  %6069 = vmatmul.msk.f32.gmra.mxu2 %vm743_vm2, %v7204_v26  ;;  %v1281_v62 = vadd.f32 %v7170_v58, %v7214_v34  ;;  %v1284_v26 = vadd.f32 %v7184_v4, %v7239_v60  ;;  %v2320_v4 = vld [vmem:[#allocation8 + $0x40] sm:$0xff] }
 0x226   :  { %2948 = vmatpush.msra.mxu1 %v2324_v35 }
 0x227   :  { %v1467_v9 = vpop.f32.mrf.mxu3  ;;  %v1709_v23 = vmax.f32 %v1281_v62, %v1637_v44  ;;  %v9598_v44 = vld [vmem:[#allocation34_spill] sm:$0xff]  ;;  %v9601_v62 = vld [vmem:[#allocation32_spill] sm:$0xff] }
 0x228   :  { %v1468_v42 = vadd.f32 %v1467_v9, %v1378_v48  ;;  %v1639_v61 = vpop.f32.mrf.mxu2  ;;  %v2316_v48 = vld [vmem:[#allocation8 + $0x20] sm:$0xff]  ;;  %2949 = vmatpush.msra.mxu1 %v2320_v4 }
 0x229   :  { %v1381_v21 = vpop.f32.mrf.mxu1  ;;  %v1640_v45 = vadd.f32 %v1639_v61, %v1550_v37 }
 0x22a   :  { %v1714_v56 = vmax.f32 %v1112_v39, %v1468_v42  ;;  %v1553_v51 = vpop.f32.mrf.mxu0  ;;  %2950 = vmatpush.msra.mxu1 %v2316_v48  ;;  %v9599_v39 = vld [vmem:[#allocation29_spill] sm:$0xff] }
 0x22b   :  { %v1711_v19 = vmax.f32 %v1284_v26, %v1640_v45  ;;  %v9600_v42 = vld [vmem:[#allocation21_spill] sm:$0xff]  ;;  %v9602_v26 = vld [vmem:[#allocation24_spill] sm:$0xff] }
 0x22c   :  { %v1758_v50 = vmax.f32 %v1712_v36, %v1714_v56  ;;  %1428 = vmatmul.f32.gmra.mxu1 %v9596_v38  ;;  %6047 = vmatmul.msk.f32.gmra.mxu3 %vm743_vm2, %v9597_v52  ;;  %v1115_v61 = vadd.f32 %v9600_v42, %v9599_v39  ;;  %v1118_v45 = vadd.f32 %v9602_v26, %v9601_v62  ;;  %v9608_v62 = vld [vmem:[#allocation37_spill] sm:$0xff]  ;;  %v9609_v26 = vld [vmem:[#allocation28_spill] sm:$0xff] }
 0x22d   :  { %v1757_v58 = vmax.f32 %v1709_v23, %v1711_v19  ;;  %1600 = vmatmul.f32.gmra.mxu0 %v7289_v18  ;;  %6070 = vmatmul.msk.f32.gmra.mxu2 %vm743_vm2, %v7245_v1  ;;  %v2312_v18 = vld [vmem:[#allocation8] sm:$0xff]  ;;  %v9604_v19 = vld [vmem:[#allocation19_spill] sm:$0xff] }
 0x22e   :  { %v1788_v34 = vadd.f32 %v7605_v27, %v1758_v50  ;;  %2951 = vmatpush.msra.mxu1 %v2312_v18  ;;  %v9603_v23 = vld [vmem:[#allocation22_spill] sm:$0xff]  ;;  %v9605_v50 = vld [vmem:[#allocation25_spill] sm:$0xff] }
 0x22f   :  { %v1787_v60 = vadd.f32 %v7633_v63, %v1757_v58  ;;  %v1470_v14 = vpop.f32.mrf.mxu3  ;;  %v1287_v35 = vadd.f32 %v9604_v19, %v9603_v23 }
 0x230   :  { %v1642_v37 = vpop.f32.mrf.mxu2  ;;  %v7643_v54 = vmax.f32 %v1788_v34, 0.0  ;;  %v1471_v9 = vadd.f32 %v1470_v14, %v1381_v21 }
 0x231   :  { %v1811_v17 = vmax.f32 %v1787_v60, 0.0  ;;  %v1384_v30 = vpop.f32.mrf.mxu1  ;;  %v1643_v0 = vadd.f32 %v1642_v37, %v1553_v51  ;;  %v9607_v37 = vld [vmem:[#allocation40_spill] sm:$0xff] }
 0x232   :  { %1867 = vrot.lane.b32.xlu0 %v7643_v54, %s6473_s2  ;;  %1837 = vst [vmem:[#allocation3 + $0x50] sm:$0xff] %v7643_v54  ;;  %v1556_v1 = vpop.f32.mrf.mxu0  ;;  %v1716_v21 = vmax.f32 %v1115_v61, %v1471_v9 }
 0x233   :  { %1836 = vst.msk [vmem:[#allocation3 + $0x8] sm:$0xff] %vm1835_vm7, %v1811_v17  ;;  %v1713_v60 = vmax.f32 %v1287_v35, %v1643_v0  ;;  %v9611_v35 = vld [vmem:[#allocation31_spill] sm:$0xff] }
 0x234   :  { %1431 = vmatmul.f32.gmra.mxu1 %v7364_v13  ;;  %6048 = vmatmul.msk.f32.gmra.mxu3 %vm743_vm2, %v9598_v44 }
 0x235   :  { %1603 = vmatmul.f32.gmra.mxu0 %v7315_v43  ;;  %6071 = vmatmul.msk.f32.gmra.mxu2 %vm743_vm2, %v7270_v8  ;;  %v9606_v43 = vld [vmem:[#allocation20_spill] sm:$0xff] }
 0x236   :  { %v1290_v58 = vadd.f32 %v9606_v43, %v9605_v50  ;;  %v9612_v50 = vld [vmem:[#allocation23_spill] sm:$0xff] }
 0x237   :  { %v1473_v11 = vpop.f32.mrf.mxu3  ;;  %v1293_v43 = vadd.f32 %v9612_v50, %v9611_v35  ;;  %v9620_v35 = vld [vmem:[#allocation36_spill] sm:$0xff] }
 0x238   :  { %v1474_v36 = vadd.f32 %v1473_v11, %v1384_v30  ;;  %v1645_v56 = vpop.f32.mrf.mxu2 }
 0x239   :  { %v1387_v4 = vpop.f32.mrf.mxu1  ;;  %v1646_v8 = vadd.f32 %v1645_v56, %v1556_v1 }
 0x23a   :  { %v1718_v34 = vmax.f32 %v1118_v45, %v1474_v36  ;;  %v1559_v51 = vpop.f32.mrf.mxu0  ;;  %v1121_v45 = vadd.f32 %v9609_v26, %v9608_v62  ;;  %v9610_v36 = vld [vmem:[#allocation33_spill] sm:$0xff]  ;;  %v9616_v26 = vld [vmem:[#allocation43_spill] sm:$0xff] }
 0x23b   :  { %v1715_v14 = vmax.f32 %v1290_v58, %v1646_v8  ;;  %v1124_v56 = vadd.f32 %v9610_v36, %v7358_v31  ;;  %v9613_v58 = vld [vmem:[#allocation35_spill] sm:$0xff]  ;;  %v9614_v8 = vld [vmem:[#allocation26_spill] sm:$0xff] }
 0x23c   :  { %v1760_v48 = vmax.f32 %v1716_v21, %v1718_v34  ;;  %1434 = vmatmul.f32.gmra.mxu1 %v7387_v6  ;;  %6049 = vmatmul.msk.f32.gmra.mxu3 %vm743_vm2, %v9607_v37 }
 0x23d   :  { %v1759_v17 = vmax.f32 %v1713_v60, %v1715_v14  ;;  %1606 = vmatmul.f32.gmra.mxu0 %v9596_v38  ;;  %6072 = vmatmul.msk.f32.gmra.mxu2 %vm743_vm2, %v9597_v52 }
 0x23e   :  { %v1790_v30 = vadd.f32 %v7605_v27, %v1760_v48 }
 0x23f   :  { %v1476_v1 = vpop.f32.mrf.mxu3  ;;  %v1789_v18 = vadd.f32 %v7633_v63, %v1759_v17 }
 0x240   :  { %v1648_v9 = vpop.f32.mrf.mxu2  ;;  %v7671_v0 = vmax.f32 %v1790_v30, 0.0  ;;  %v1477_v52 = vadd.f32 %v1476_v1, %v1387_v4 }
 0x241   :  { %v1390_v11 = vpop.f32.mrf.mxu1  ;;  %v1813_v39 = vmax.f32 %v1789_v18, 0.0  ;;  %v1649_v42 = vadd.f32 %v1648_v9, %v1559_v51 }
 0x242   :  { %1871 = vrot.lane.b32.xlu0 %v7671_v0, %s6473_s2  ;;  %1839 = vst [vmem:[#allocation3 + $0xa0] sm:$0xff] %v7671_v0  ;;  %1958 = vrot.lane.b32.xlu2 %v7671_v0, %s6477_s0  ;;  %v1562_v38 = vpop.f32.mrf.mxu0 }
 0x243   :  { %1869 = vrot.lane.b32.xlu1 %v1813_v39, %s6473_s2  ;;  %1838 = vst.msk [vmem:[#allocation3 + $0x58] sm:$0xff] %vm1835_vm7, %v1813_v39  ;;  %v1717_v60 = vmax.f32 %v1293_v43, %v1649_v42 }
 0x244   :  { %1437 = vmatmul.f32.gmra.mxu1 %v7404_v32  ;;  %6050 = vmatmul.msk.f32.gmra.mxu3 %vm743_vm2, %v7360_v49 }
 0x245   :  { %1609 = vmatmul.f32.gmra.mxu0 %v7364_v13  ;;  %6073 = vmatmul.msk.f32.gmra.mxu2 %vm743_vm2, %v9598_v44  ;;  %v1296_v13 = vadd.f32 %v9614_v8, %v9613_v58  ;;  %v1720_v44 = vmax.f32 %v1121_v45, %v1477_v52  ;;  %v1130_v45 = vadd.f32 %v9616_v26, %v7397_v41  ;;  %v9625_v26 = vld [vmem:[#allocation50_spill] sm:$0xff] }
 0x247   :  { %v1479_v61 = vpop.f32.mrf.mxu3 }
 0x248   :  { %v1480_v23 = vadd.f32 %v1479_v61, %v1390_v11  ;;  %v1651_v19 = vpop.f32.mrf.mxu2  ;;  %v9615_v61 = vld [vmem:[#allocation38_spill] sm:$0xff] }
 0x249   :  { %v1393_v21 = vpop.f32.mrf.mxu1  ;;  %v1652_v34 = vadd.f32 %v1651_v19, %v1562_v38  ;;  %v1127_v62 = vadd.f32 %v9615_v61, %v7378_v28  ;;  %v9623_v61 = vld [vmem:[#allocation47_spill] sm:$0xff] }
 0x24a   :  { %v1722_v4 = vmax.f32 %v1124_v56, %v1480_v23  ;;  %v1565_v51 = vpop.f32.mrf.mxu0  ;;  %v9617_v56 = vld [vmem:[#allocation41_spill] sm:$0xff]  ;;  %v9618_v23 = vld [vmem:[#allocation30_spill] sm:$0xff] }
 0x24b   :  { %v1719_v14 = vmax.f32 %v1296_v13, %v1652_v34  ;;  %v1299_v19 = vadd.f32 %v9618_v23, %v9617_v56 }
 0x24c   :  { %v1762_v48 = vmax.f32 %v1720_v44, %v1722_v4  ;;  %2952 = vmatmul.f32.vlgmr.msra.gmra.mxu1 %v1810_v2  ;;  %v2436_v2 = vld [vmem:[#allocation8 + $0x3e0] sm:$0xff] }
 0x24d   :  { %v1761_v31 = vmax.f32 %v1717_v60, %v1719_v14  ;;  %1612 = vmatmul.f32.gmra.mxu0 %v7387_v6  ;;  %6074 = vmatmul.msk.f32.gmra.mxu2 %vm743_vm2, %v9607_v37  ;;  %v2564_v6 = vld [vmem:[#allocation8 + $0x7e0] sm:$0xff] }
 0x24e   :  { %v1792_v17 = vadd.f32 %v7605_v27, %v1762_v48  ;;  %2977 = vmatpush.msra.mxu3 %v2436_v2  ;;  %v2500_v37 = vld [vmem:[#allocation8 + $0x5e0] sm:$0xff]  ;;  %3059 = vmatpush.msra.mxu2 %v2564_v6 }
 0x24f   :  { %v1482_v30 = vpop.f32.mrf.mxu3  ;;  %v1791_v1 = vadd.f32 %v7633_v63, %v1761_v31  ;;  %3018 = vmatpush.msra.mxu0 %v2500_v37  ;;  %v9621_v2 = vld [vmem:[#allocation46_spill] sm:$0xff]  ;;  %v9622_v37 = vld [vmem:[#allocation49_spill] sm:$0xff] }
 0x250   :  { %v1654_v18 = vpop.f32.mrf.mxu2  ;;  %v1816_v9 = vmax.f32 %v1792_v17, 0.0  ;;  %v1483_v38 = vadd.f32 %v1482_v30, %v1393_v21  ;;  %v2432_v30 = vld [vmem:[#allocation8 + $0x3c0] sm:$0xff]  ;;  %v1133_v6 = vadd.f32 %v9621_v2, %v7414_v16 }
 0x251   :  { %v1396_v11 = vpop.f32.mrf.mxu1  ;;  %v1815_v39 = vmax.f32 %v1791_v1, 0.0  ;;  %v1655_v52 = vadd.f32 %v1654_v18, %v1565_v51  ;;  %v2560_v1 = vld [vmem:[#allocation8 + $0x7c0] sm:$0xff]  ;;  %2978 = vmatpush.msra.mxu3 %v2432_v30 }
 0x252   :  { %1962 = vrot.lane.b32.xlu2 %v1816_v9, %s6477_s0  ;;  %1841 = vst [vmem:[#allocation3 + $0xf0] sm:$0xff] %v1816_v9  ;;  %v1568_v3 = vpop.f32.mrf.mxu0  ;;  %v1724_v58 = vmax.f32 %v1127_v62, %v1483_v38  ;;  %v2496_v18 = vld [vmem:[#allocation8 + $0x5c0] sm:$0xff]  ;;  %3060 = vmatpush.msra.mxu2 %v2560_v1  ;;  %v1136_v38 = vadd.f32 %v9622_v37, %v7425_v25 }
 0x253   :  { %1960 = vrot.lane.b32.xlu0 %v1815_v39, %s6477_s0  ;;  %1873 = vrot.lane.b32.xlu1 %v1815_v39, %s6473_s2  ;;  %1840 = vst.msk [vmem:[#allocation3 + $0xa8] sm:$0xff] %vm1835_vm7, %v1815_v39  ;;  %v1721_v21 = vmax.f32 %v1299_v19, %v1655_v52  ;;  %v2416_v30 = vld [vmem:[#allocation8 + $0x340] sm:$0xff] }
 0x254   :  { %2955 = vmatmul.f32.gmra.mxu1 %v7643_v54  ;;  %3019 = vmatpush.msra.mxu0 %v2496_v18  ;;  %v9627_v1 = vld [vmem:[#allocation54_spill] sm:$0xff] }
 0x255   :  { %1615 = vmatmul.f32.gmra.mxu0 %v7404_v32  ;;  %6075 = vmatmul.msk.f32.gmra.mxu2 %vm743_vm2, %v7360_v49  ;;  %v9619_v32 = vld [vmem:[#allocation45_spill] sm:$0xff]  ;;  %v1142_v18 = vadd.f32 %v9627_v1, %v7459_v5 }
 0x256   :  { %v1302_v50 = vadd.f32 %v9620_v35, %v9619_v32 }
 0x257   :  { %v1485_v42 = vpop.f32.mrf.mxu3 }
 0x258   :  { %v1486_v36 = vadd.f32 %v1485_v42, %v1396_v11  ;;  %v1657_v54 = vpop.f32.mrf.mxu2 }
 0x259   :  { %v1399_v49 = vpop.f32.mrf.mxu1  ;;  %v1658_v43 = vadd.f32 %v1657_v54, %v1568_v3 }
 0x25a   :  { %v1726_v8 = vmax.f32 %v1130_v45, %v1486_v36  ;;  %v1571_v13 = vpop.f32.mrf.mxu0  ;;  %v9626_v45 = vld [vmem:[#allocation44_spill] sm:$0xff] }
 0x25b   :  { %v1723_v34 = vmax.f32 %v1302_v50, %v1658_v43  ;;  %1875 = vrot.lane.b32.xlu0 %v1816_v9, %s6473_s2  ;;  %2050 = vrot.lane.b32.xlu1 %v1816_v9, %s6478_s22  ;;  %v1308_v36 = vadd.f32 %v9626_v45, %v9625_v26  ;;  %v2408_v26 = vld [vmem:[#allocation8 + $0x300] sm:$0xff] }
 0x25c   :  { %v1764_v28 = vmax.f32 %v1724_v58, %v1726_v8  ;;  %2958 = vmatmul.f32.gmra.mxu1 %v7671_v0  ;;  %v2428_v0 = vld [vmem:[#allocation8 + $0x3a0] sm:$0xff] }
 0x25d   :  { %v1763_v41 = vmax.f32 %v1721_v21, %v1723_v34  ;;  %2979 = vmatpush.msra.mxu3 %v2428_v0 }
 0x25e   :  { %v1794_v44 = vadd.f32 %v7605_v27, %v1764_v28 }
 0x25f   :  { %v1793_v4 = vadd.f32 %v7633_v63, %v1763_v41  ;;  %v1488_v51 = vpop.f32.mrf.mxu3  ;;  %v2556_v41 = vld [vmem:[#allocation8 + $0x7a0] sm:$0xff] }
 0x260   :  { %v1818_v60 = vmax.f32 %v1794_v44, 0.0  ;;  %v1660_v14 = vpop.f32.mrf.mxu2  ;;  %v1489_v11 = vadd.f32 %v1488_v51, %v1399_v49  ;;  %v2492_v44 = vld [vmem:[#allocation8 + $0x5a0] sm:$0xff]  ;;  %3061 = vmatpush.msra.mxu2 %v2556_v41 }
 0x261   :  { %v1402_v48 = vpop.f32.mrf.mxu1  ;;  %v1817_v31 = vmax.f32 %v1793_v4, 0.0  ;;  %v1661_v39 = vadd.f32 %v1660_v14, %v1571_v13  ;;  %v2424_v4 = vld [vmem:[#allocation8 + $0x380] sm:$0xff]  ;;  %3020 = vmatpush.msra.mxu0 %v2492_v44 }
 0x262   :  { %1843 = vst [vmem:[#allocation3 + $0x140] sm:$0xff] %v1818_v60  ;;  %v1574_v17 = vpop.f32.mrf.mxu0  ;;  %v1728_v23 = vmax.f32 %v1133_v6, %v1489_v11  ;;  %v2552_v51 = vld [vmem:[#allocation8 + $0x780] sm:$0xff]  ;;  %2980 = vmatpush.msra.mxu3 %v2424_v4  ;;  %v9630_v6 = vld [vmem:[#allocation51_spill] sm:$0xff] }
 0x263   :  { %1879 = vrot.lane.b32.xlu0 %v1818_v60, %s6473_s2  ;;  %2052 = vrot.lane.b32.xlu2 %v1817_v31, %s6478_s22  ;;  %1842 = vst.msk [vmem:[#allocation3 + $0xf8] sm:$0xff] %vm1835_vm7, %v1817_v31  ;;  %v2420_v14 = vld [vmem:[#allocation8 + $0x360] sm:$0xff]  ;;  %v1314_v37 = vadd.f32 %v9630_v6, %v7434_v7 }
 0x264   :  { %2961 = vmatmul.f32.gmra.mxu1 %v1816_v9  ;;  %1877 = vrot.lane.b32.xlu1 %v1817_v31, %s6473_s2  ;;  %v9624_v9 = vld [vmem:[#allocation42_spill] sm:$0xff] }
 0x265   :  { %v1305_v62 = vadd.f32 %v9624_v9, %v9623_v61  ;;  %3062 = vmatpush.msra.mxu2 %v2552_v51  ;;  %2981 = vmatpush.msra.mxu3 %v2420_v14  ;;  %v2404_v7 = vld [vmem:[#allocation8 + $0x2e0] sm:$0xff]  ;;  %v1145_v14 = vadd.f32 %v7445_v12, %v7471_v10 }
 0x266   :  { %v2476_v41 = vld [vmem:[#allocation8 + $0x520] sm:$0xff] }
 0x267   :  { %v1491_v3 = vpop.f32.mrf.mxu3  ;;  %v1725_v35 = vmax.f32 %v1305_v62, %v1661_v39  ;;  %v9628_v39 = vld [vmem:[#allocation53_spill] sm:$0xff]  ;;  %2982 = vmatpush.msra.mxu3 %v2416_v30  ;;  %v2412_v62 = vld [vmem:[#allocation8 + $0x320] sm:$0xff] }
 0x268   :  { %v1492_v52 = vadd.f32 %v1491_v3, %v1402_v48  ;;  %v1663_v42 = vpop.f32.mrf.mxu2  ;;  %v9629_v3 = vld [vmem:[#allocation48_spill] sm:$0xff]  ;;  %v2388_v51 = vld [vmem:[#allocation8 + $0x260] sm:$0xff] }
 0x269   :  { %v1405_v54 = vpop.f32.mrf.mxu1  ;;  %v1664_v56 = vadd.f32 %v1663_v42, %v1574_v17  ;;  %v1311_v2 = vadd.f32 %v9629_v3, %v9628_v39  ;;  %2983 = vmatpush.msra.mxu3 %v2412_v62  ;;  %v2472_v30 = vld [vmem:[#allocation8 + $0x500] sm:$0xff] }
 0x26a   :  { %v1730_v19 = vmax.f32 %v1136_v38, %v1492_v52  ;;  %v1577_v32 = vpop.f32.mrf.mxu0  ;;  %v2468_v10 = vld [vmem:[#allocation8 + $0x4e0] sm:$0xff] }
 0x26b   :  { %v1727_v50 = vmax.f32 %v1308_v36, %v1664_v56  ;;  %2142 = vrot.lane.b32.xlu0 %v1818_v60, %s6479_s25  ;;  %1966 = vrot.lane.b32.xlu2 %v1818_v60, %s6477_s0  ;;  %v2376_v62 = vld [vmem:[#allocation8 + $0x200] sm:$0xff] }
 0x26c   :  { %v1766_v16 = vmax.f32 %v1728_v23, %v1730_v19  ;;  %2964 = vmatmul.f32.gmra.mxu1 %v1818_v60  ;;  %1964 = vrot.lane.b32.xlu1 %v1817_v31, %s6477_s0 }
 0x26d   :  { %v1765_v25 = vmax.f32 %v1725_v35, %v1727_v50  ;;  %2984 = vmatpush.msra.mxu3 %v2408_v26  ;;  %v2460_v26 = vld [vmem:[#allocation8 + $0x4a0] sm:$0xff] }
 0x26e   :  { %v1796_v49 = vadd.f32 %v7605_v27, %v1766_v16  ;;  %v2400_v16 = vld [vmem:[#allocation8 + $0x2c0] sm:$0xff] }
 0x26f   :  { %v1795_v43 = vadd.f32 %v7633_v63, %v1765_v25  ;;  %v1494_v58 = vpop.f32.mrf.mxu3  ;;  %2985 = vmatpush.msra.mxu3 %v2404_v7 }
 0x270   :  { %v7739_v8 = vmax.f32 %v1796_v49, 0.0  ;;  %v1666_v13 = vpop.f32.mrf.mxu2  ;;  %v1495_v48 = vadd.f32 %v1494_v58, %v1405_v54  ;;  %v2484_v49 = vld [vmem:[#allocation8 + $0x560] sm:$0xff] }
 0x271   :  { %v7741_v21 = vmax.f32 %v1795_v43, 0.0  ;;  %v1408_v34 = vpop.f32.mrf.mxu1  ;;  %v1667_v31 = vadd.f32 %v1666_v13, %v1577_v32  ;;  %v2488_v32 = vld [vmem:[#allocation8 + $0x580] sm:$0xff]  ;;  %2986 = vmatpush.msra.mxu3 %v2400_v16 }
 0x272   :  { %1845 = vst [vmem:[#allocation3 + $0x190] sm:$0xff] %v7739_v8  ;;  %v1580_v28 = vpop.f32.mrf.mxu0  ;;  %3021 = vmatpush.msra.mxu0 %v2488_v32  ;;  %v2396_v43 = vld [vmem:[#allocation8 + $0x2a0] sm:$0xff] }
 0x273   :  { %1883 = vrot.lane.b32.xlu0 %v7739_v8, %s6473_s2  ;;  %2054 = vrot.lane.b32.xlu2 %v1818_v60, %s6478_s22  ;;  %1844 = vst.msk [vmem:[#allocation3 + $0x148] sm:$0xff] %vm1835_vm7, %v7741_v21  ;;  %v1139_v60 = vadd.f32 %v7412_v59, %v7443_v55  ;;  %v1729_v59 = vmax.f32 %v1311_v2, %v1667_v31  ;;  %v2548_v58 = vld [vmem:[#allocation8 + $0x760] sm:$0xff] }
 0x274   :  { %1881 = vrot.lane.b32.xlu1 %v7741_v21, %s6473_s2  ;;  %2967 = vmatmul.f32.gmra.mxu1 %v7739_v8  ;;  %v2480_v13 = vld [vmem:[#allocation8 + $0x540] sm:$0xff] }
 0x275   :  { %v1732_v42 = vmax.f32 %v1139_v60, %v1495_v48  ;;  %3063 = vmatpush.msra.mxu2 %v2548_v58  ;;  %3022 = vmatpush.msra.mxu0 %v2484_v49  ;;  %v1148_v48 = vadd.f32 %v7457_v20, %v7485_v22  ;;  %v9631_v60 = vld [vmem:[#allocation52_spill] sm:$0xff]  ;;  %v2384_v2 = vld [vmem:[#allocation8 + $0x240] sm:$0xff] }
 0x276   :  { %2987 = vmatpush.msra.mxu3 %v2396_v43  ;;  %v1317_v1 = vadd.f32 %v9631_v60, %v7447_v46  ;;  %v2628_v20 = vld [vmem:[#allocation8 + $0x9e0] sm:$0xff] }
 0x277   :  { %v1497_v17 = vpop.f32.mrf.mxu3  ;;  %3023 = vmatpush.msra.mxu0 %v2480_v13  ;;  %3100 = vmatpush.msrb.mxu1 %v2628_v20  ;;  %v2544_v46 = vld [vmem:[#allocation8 + $0x740] sm:$0xff] }
 0x278   :  { %v1498_v0 = vadd.f32 %v1497_v17, %v1408_v34  ;;  %v1669_v11 = vpop.f32.mrf.mxu2  ;;  %v2392_v34 = vld [vmem:[#allocation8 + $0x280] sm:$0xff]  ;;  %3064 = vmatpush.msra.mxu2 %v2544_v46 }
 0x279   :  { %v1411_v38 = vpop.f32.mrf.mxu1  ;;  %v1670_v52 = vadd.f32 %v1669_v11, %v1580_v28  ;;  %2988 = vmatpush.msra.mxu3 %v2392_v34  ;;  %3024 = vmatpush.msra.mxu0 %v2476_v41  ;;  %v2456_v16 = vld [vmem:[#allocation8 + $0x480] sm:$0xff] }
 0x27a   :  { %v1734_v61 = vmax.f32 %v1142_v18, %v1498_v0  ;;  %v1583_v9 = vpop.f32.mrf.mxu0  ;;  %v9632_v18 = vld [vmem:[#allocation58_spill] sm:$0xff]  ;;  %v9633_v0 = vld [vmem:[#allocation55_spill] sm:$0xff] }
 0x27b   :  { %v1731_v55 = vmax.f32 %v1314_v37, %v1670_v52  ;;  %1970 = vrot.lane.b32.xlu2 %v7739_v8, %s6477_s0  ;;  %v1320_v11 = vadd.f32 %v9633_v0, %v9632_v18  ;;  %2989 = vmatpush.msra.mxu3 %v2388_v51  ;;  %v2380_v52 = vld [vmem:[#allocation8 + $0x220] sm:$0xff]  ;;  %v9634_v0 = vld [vmem:[#allocation59_spill] sm:$0xff] }
 0x27c   :  { %v1768_v5 = vmax.f32 %v1732_v42, %v1734_v61  ;;  %3025 = vmatpush.msra.mxu0 %v2472_v30  ;;  %v2464_v61 = vld [vmem:[#allocation8 + $0x4c0] sm:$0xff] }
 0x27d   :  { %v1767_v45 = vmax.f32 %v1729_v59, %v1731_v55  ;;  %2990 = vmatpush.msra.mxu3 %v2384_v2  ;;  %v2624_v59 = vld [vmem:[#allocation8 + $0x9c0] sm:$0xff]  ;;  %v9637_v2 = vld [vmem:[#allocation57_spill] sm:$0xff] }
 0x27e   :  { %v1798_v36 = vadd.f32 %v7605_v27, %v1768_v5  ;;  %3026 = vmatpush.msra.mxu0 %v2468_v10  ;;  %v2540_v5 = vld [vmem:[#allocation8 + $0x720] sm:$0xff]  ;;  %3101 = vmatpush.msrb.mxu1 %v2624_v59 }
 0x27f   :  { %v1797_v54 = vadd.f32 %v7633_v63, %v1767_v45  ;;  %v1500_v56 = vpop.f32.mrf.mxu3  ;;  %2991 = vmatpush.msra.mxu3 %v2380_v52  ;;  %v2620_v45 = vld [vmem:[#allocation8 + $0x9a0] sm:$0xff]  ;;  %3065 = vmatpush.msra.mxu2 %v2540_v5 }
 0x280   :  { %v7764_v23 = vmax.f32 %v1798_v36, 0.0  ;;  %v1672_v19 = vpop.f32.mrf.mxu2  ;;  %v1501_v28 = vadd.f32 %v1500_v56, %v1411_v38  ;;  %3027 = vmatpush.msra.mxu0 %v2464_v61  ;;  %3102 = vmatpush.msrb.mxu1 %v2620_v45  ;;  %v2532_v49 = vld [vmem:[#allocation8 + $0x6e0] sm:$0xff] }
 0x281   :  { %v7766_v35 = vmax.f32 %v1797_v54, 0.0  ;;  %v1414_v50 = vpop.f32.mrf.mxu1  ;;  %v1673_v44 = vadd.f32 %v1672_v19, %v1583_v9  ;;  %2992 = vmatpush.msra.mxu3 %v2376_v62  ;;  %v2536_v19 = vld [vmem:[#allocation8 + $0x700] sm:$0xff] }
 0x282   :  { %1847 = vst [vmem:[#allocation3 + $0x1e0] sm:$0xff] %v7764_v23  ;;  %1887 = vrot.lane.b32.xlu0 %v7764_v23, %s6473_s2  ;;  %v1586_v25 = vpop.f32.mrf.mxu0  ;;  %2970 = vmatmul.f32.gmra.mxu1 %v7764_v23  ;;  %v1736_v6 = vmax.f32 %v1145_v14, %v1501_v28  ;;  %v2616_v43 = vld [vmem:[#allocation8 + $0x980] sm:$0xff] }
 0x283   :  { %1974 = vrot.lane.b32.xlu2 %v7764_v23, %s6477_s0  ;;  %1885 = vrot.lane.b32.xlu1 %v7766_v35, %s6473_s2  ;;  %1846 = vst.msk [vmem:[#allocation3 + $0x198] sm:$0xff] %vm1835_vm7, %v7766_v35  ;;  %v1733_v22 = vmax.f32 %v1317_v1, %v1673_v44  ;;  %v2528_v58 = vld [vmem:[#allocation8 + $0x6c0] sm:$0xff] }
 0x284   :  { %3066 = vmatpush.msra.mxu2 %v2536_v19  ;;  %3028 = vmatpush.msra.mxu0 %v2460_v26  ;;  %v2452_v13 = vld [vmem:[#allocation8 + $0x460] sm:$0xff] }
 0x285   :  { %v2612_v34 = vld [vmem:[#allocation8 + $0x960] sm:$0xff]  ;;  %3103 = vmatpush.msrb.mxu1 %v2616_v43 }
 0x286   :  { %3067 = vmatpush.msra.mxu2 %v2532_v49  ;;  %3029 = vmatpush.msra.mxu0 %v2456_v16  ;;  %v2524_v28 = vld [vmem:[#allocation8 + $0x6a0] sm:$0xff] }
 0x287   :  { %v1503_v4 = vpop.f32.mrf.mxu3  ;;  %v2448_v41 = vld [vmem:[#allocation8 + $0x440] sm:$0xff]  ;;  %3104 = vmatpush.msrb.mxu1 %v2612_v34 }
 0x288   :  { %v1504_v31 = vadd.f32 %v1503_v4, %v1414_v50  ;;  %v1675_v17 = vpop.f32.mrf.mxu2  ;;  %3068 = vmatpush.msra.mxu2 %v2528_v58  ;;  %3030 = vmatpush.msra.mxu0 %v2452_v13  ;;  %v2608_v4 = vld [vmem:[#allocation8 + $0x940] sm:$0xff] }
 0x289   :  { %v1417_v39 = vpop.f32.mrf.mxu1  ;;  %v1676_v3 = vadd.f32 %v1675_v17, %v1586_v25  ;;  %v1154_v17 = vadd.f32 %v7487_v29, %v7513_v40  ;;  %v2520_v1 = vld [vmem:[#allocation8 + $0x680] sm:$0xff]  ;;  %3105 = vmatpush.msrb.mxu1 %v2608_v4 }
 0x28a   :  { %v1738_v37 = vmax.f32 %v1148_v48, %v1504_v31  ;;  %v1589_v12 = vpop.f32.mrf.mxu0  ;;  %v2444_v48 = vld [vmem:[#allocation8 + $0x420] sm:$0xff]  ;;  %v1151_v31 = vadd.f32 %v7473_v15, %v7501_v53  ;;  %3069 = vmatpush.msra.mxu2 %v2524_v28  ;;  %3031 = vmatpush.msra.mxu0 %v2448_v41  ;;  %v1157_v28 = vadd.f32 %v7499_v33, %v7533_v47  ;;  %v9638_v41 = vld [vmem:[#allocation65_spill] sm:$0xff] }
 0x28b   :  { %v1735_v38 = vmax.f32 %v1320_v11, %v1676_v3  ;;  %v2604_v18 = vld [vmem:[#allocation8 + $0x920] sm:$0xff]  ;;  %v9635_v11 = vld [vmem:[#allocation56_spill] sm:$0xff]  ;;  %v9636_v3 = vld [vmem:[#allocation61_spill] sm:$0xff] }
 0x28c   :  { %v1770_v42 = vmax.f32 %v1736_v6, %v1738_v37  ;;  %v1326_v6 = vadd.f32 %v9637_v2, %v9636_v3  ;;  %v2440_v10 = vld [vmem:[#allocation8 + $0x400] sm:$0xff]  ;;  %3070 = vmatpush.msra.mxu2 %v2520_v1  ;;  %3032 = vmatpush.msra.mxu0 %v2444_v48  ;;  %v9640_v48 = vld [vmem:[#allocation60_spill] sm:$0xff] }
 0x28d   :  { %v1769_v9 = vmax.f32 %v1733_v22, %v1735_v38  ;;  %v2516_v29 = vld [vmem:[#allocation8 + $0x660] sm:$0xff]  ;;  %3106 = vmatpush.msrb.mxu1 %v2604_v18 }
 0x28e   :  { %v1800_v55 = vadd.f32 %v7605_v27, %v1770_v42  ;;  %v2600_v40 = vld [vmem:[#allocation8 + $0x900] sm:$0xff]  ;;  %3071 = vmatpush.msra.mxu2 %v2516_v29  ;;  %3033 = vmatpush.msra.mxu0 %v2440_v10 }
 0x28f   :  { %v1799_v36 = vadd.f32 %v7633_v63, %v1769_v9  ;;  %v1506_v7 = vpop.f32.mrf.mxu3  ;;  %v2512_v42 = vld [vmem:[#allocation8 + $0x640] sm:$0xff]  ;;  %3107 = vmatpush.msrb.mxu1 %v2600_v40 }
 0x290   :  { %v7788_v54 = vmax.f32 %v1800_v55, 0.0  ;;  %v1678_v56 = vpop.f32.mrf.mxu2  ;;  %v1507_v44 = vadd.f32 %v1506_v7, %v1417_v39  ;;  %v1323_v39 = vadd.f32 %v9635_v11, %v9634_v0  ;;  %v2596_v46 = vld [vmem:[#allocation8 + $0x8e0] sm:$0xff]  ;;  %3072 = vmatpush.msra.mxu2 %v2512_v42 }
 0x291   :  { %v7790_v32 = vmax.f32 %v1799_v36, 0.0  ;;  %v1420_v50 = vpop.f32.mrf.mxu1  ;;  %v1679_v51 = vadd.f32 %v1678_v56, %v1589_v12  ;;  %v2508_v62 = vld [vmem:[#allocation8 + $0x620] sm:$0xff]  ;;  %3108 = vmatpush.msrb.mxu1 %v2596_v46 }
 0x292   :  { %1849 = vst [vmem:[#allocation3 + $0x230] sm:$0xff] %v7788_v54  ;;  %1891 = vrot.lane.b32.xlu0 %v7788_v54, %s6473_s2  ;;  %1978 = vrot.lane.b32.xlu2 %v7788_v54, %s6477_s0  ;;  %v1592_v25 = vpop.f32.mrf.mxu0  ;;  %v1740_v53 = vmax.f32 %v1151_v31, %v1507_v44  ;;  %v2592_v59 = vld [vmem:[#allocation8 + $0x8c0] sm:$0xff]  ;;  %v1160_v44 = vadd.f32 %v9638_v41, %v7547_v57 }
 0x293   :  { %1889 = vrot.lane.b32.xlu1 %v7790_v32, %s6473_s2  ;;  %2973 = vmatmul.f32.gmra.mxu1 %v7788_v54  ;;  %1848 = vst.msk [vmem:[#allocation3 + $0x1e8] sm:$0xff] %vm1835_vm7, %v7790_v32  ;;  %v1737_v22 = vmax.f32 %v1323_v39, %v1679_v51  ;;  %v2504_v36 = vld [vmem:[#allocation8 + $0x600] sm:$0xff] }
 0x294   :  { %3073 = vmatpush.msra.mxu2 %v2508_v62  ;;  %3109 = vmatpush.msrb.mxu1 %v2592_v59  ;;  %v2588_v19 = vld [vmem:[#allocation8 + $0x8a0] sm:$0xff] }
 0x295   :  { %v2584_v16 = vld [vmem:[#allocation8 + $0x880] sm:$0xff] }
 0x296   :  { %3074 = vmatpush.msra.mxu2 %v2504_v36  ;;  %3110 = vmatpush.msrb.mxu1 %v2588_v19  ;;  %v2580_v49 = vld [vmem:[#allocation8 + $0x860] sm:$0xff]  ;;  %v9645_v36 = vld [vmem:[#allocation76_spill] sm:$0xff] }
 0x297   :  { %v1509_v14 = vpop.f32.mrf.mxu3  ;;  %v2576_v34 = vld [vmem:[#allocation8 + $0x840] sm:$0xff] }
 0x298   :  { %v1510_v30 = vadd.f32 %v1509_v14, %v1420_v50  ;;  %v1681_v60 = vpop.f32.mrf.mxu2  ;;  %3111 = vmatpush.msrb.mxu1 %v2584_v16  ;;  %v9639_v14 = vld [vmem:[#allocation64_spill] sm:$0xff]  ;;  %v2572_v0 = vld [vmem:[#allocation8 + $0x820] sm:$0xff] }
 0x299   :  { %v1423_v37 = vpop.f32.mrf.mxu1  ;;  %v1682_v12 = vadd.f32 %v1681_v60, %v1592_v25  ;;  %v1329_v31 = vadd.f32 %v9640_v48, %v9639_v14  ;;  %v2568_v3 = vld [vmem:[#allocation8 + $0x800] sm:$0xff] }
 0x29a   :  { %v1742_v15 = vmax.f32 %v1154_v17, %v1510_v30  ;;  %v1595_v20 = vpop.f32.mrf.mxu0  ;;  %3112 = vmatpush.msrb.mxu1 %v2580_v49  ;;  %v9641_v17 = vld [vmem:[#allocation66_spill] sm:$0xff]  ;;  %v9647_v49 = vld [vmem:[#allocation69_spill] sm:$0xff] }
 0x29b   :  { %v1739_v38 = vmax.f32 %v1326_v6, %v1682_v12  ;;  %v9642_v30 = vld [vmem:[#allocation62_spill] sm:$0xff] }
 0x29c   :  { %v1772_v52 = vmax.f32 %v1740_v53, %v1742_v15  ;;  %v1332_v60 = vadd.f32 %v9642_v30, %v9641_v17  ;;  %3113 = vmatpush.msrb.mxu1 %v2576_v34 }
 0x29d   :  { %v1771_v61 = vmax.f32 %v1737_v22, %v1739_v38 }
 0x29e   :  { %v1802_v9 = vadd.f32 %v7605_v27, %v1772_v52  ;;  %3114 = vmatpush.msrb.mxu1 %v2572_v0 }
 0x29f   :  { %v1801_v55 = vadd.f32 %v7633_v63, %v1771_v61  ;;  %v1512_v5 = vpop.f32.mrf.mxu3 }
 0x2a0   :  { %v1684_v26 = vpop.f32.mrf.mxu2  ;;  %v7812_v45 = vmax.f32 %v1802_v9, 0.0  ;;  %v1513_v43 = vadd.f32 %v1512_v5, %v1423_v37  ;;  %v7835_v37 = vpop.permute.xlu2 %1958  ;;  %3115 = vmatpush.msrb.mxu1 %v2568_v3  ;;  %v9644_v5 = vld [vmem:[#allocation68_spill] sm:$0xff] }
 0x2a1   :  { %v7814_v7 = vmax.f32 %v1801_v55, 0.0  ;;  %v1426_v56 = vpop.f32.mrf.mxu1  ;;  %v1685_v58 = vadd.f32 %v1684_v26, %v1595_v20  ;;  %v9643_v55 = vld [vmem:[#allocation72_spill] sm:$0xff] }
 0x2a2   :  { %1895 = vrot.lane.b32.xlu0 %v7812_v45, %s6473_s2  ;;  %1982 = vrot.lane.b32.xlu2 %v7812_v45, %s6477_s0  ;;  %v1598_v50 = vpop.f32.mrf.mxu0  ;;  %v1744_v11 = vmax.f32 %v1157_v28, %v1513_v43  ;;  %v1163_v26 = vadd.f32 %v9644_v5, %v9643_v55  ;;  %v9648_v43 = vld [vmem:[#allocation63_spill] sm:$0xff] }
 0x2a3   :  { %1850 = vst.msk [vmem:[#allocation3 + $0x238] sm:$0xff] %vm1835_vm7, %v7814_v7  ;;  %1893 = vrot.lane.b32.xlu1 %v7814_v7, %s6473_s2  ;;  %v1741_v47 = vmax.f32 %v1329_v31, %v1685_v58  ;;  %v9649_v58 = vld [vmem:[#allocation71_spill] sm:$0xff] }
 0x2a4   :  { %v1868_v25 = vpop.permute.xlu0 %1867 }
 0x2a5   :  { %1931 = vst.msk [vmem:[#allocation3 + $0x8] sm:$0xff] %vm741_vm6, %v1868_v25 }
 0x2a7   :  { %v1515_v13 = vpop.f32.mrf.mxu3 }
 0x2a8   :  { %v1516_v4 = vadd.f32 %v1515_v13, %v1426_v56  ;;  %v1687_v51 = vpop.f32.mrf.mxu2  ;;  %v9646_v56 = vld [vmem:[#allocation70_spill] sm:$0xff]  ;;  %v9650_v13 = vld [vmem:[#allocation67_spill] sm:$0xff] }
 0x2a9   :  { %v1429_v1 = vpop.f32.mrf.mxu1  ;;  %v1688_v18 = vadd.f32 %v1687_v51, %v1598_v50  ;;  %v1166_v19 = vadd.f32 %v9646_v56, %v9645_v36  ;;  %v1338_v34 = vadd.f32 %v9650_v13, %v9649_v58 }
 0x2aa   :  { %v1746_v39 = vmax.f32 %v1160_v44, %v1516_v4  ;;  %2056 = vrot.lane.b32.xlu0 %v7741_v21, %s6478_s22  ;;  %v1601_v33 = vpop.f32.mrf.mxu0 }
 0x2ab   :  { %v1743_v57 = vmax.f32 %v1332_v60, %v1688_v18 }
 0x2ac   :  { %v1774_v2 = vmax.f32 %v1744_v11, %v1746_v39  ;;  %v2233_v6 = vld [vmem:[#allocation3 + $0x8] sm:$0xff]  ;;  %v7849_v42 = vpop.permute.xlu2 %1962 }
 0x2ad   :  { %v1773_v12 = vmax.f32 %v1741_v47, %v1743_v57  ;;  %2993 = vmatmul.f32.vlgmr.msra.gmra.mxu3 %v2233_v6 }
 0x2ae   :  { %v1804_v10 = vadd.f32 %v7605_v27, %v1774_v2 }
 0x2af   :  { %v1803_v53 = vadd.f32 %v7633_v63, %v1773_v12  ;;  %v1518_v15 = vpop.f32.mrf.mxu3  ;;  %v9651_v12 = vld [vmem:[#allocation78_spill] sm:$0xff] }
 0x2b0   :  { %v1690_v20 = vpop.f32.mrf.mxu2  ;;  %v7839_v29 = vmax.f32 %v1804_v10, 0.0  ;;  %v1519_v61 = vadd.f32 %v1518_v15, %v1429_v1  ;;  %v9652_v10 = vld [vmem:[#allocation73_spill] sm:$0xff]  ;;  %v9653_v15 = vld [vmem:[#allocation80_spill] sm:$0xff] }
 0x2b1   :  { %v7841_v40 = vmax.f32 %v1803_v53, 0.0  ;;  %v1432_v38 = vpop.f32.mrf.mxu1  ;;  %v1691_v62 = vadd.f32 %v1690_v20, %v1601_v33  ;;  %v1169_v53 = vadd.f32 %v9652_v10, %v9651_v12  ;;  %v9654_v20 = vld [vmem:[#allocation75_spill] sm:$0xff]  ;;  %v2676_v10 = vld [vmem:[#allocation8 + $0xb60] sm:$0xff] }
 0x2b2   :  { %1986 = vrot.lane.b32.xlu2 %v7839_v29, %s6477_s0  ;;  %2058 = vrot.lane.b32.xlu0 %v7739_v8, %s6478_s22  ;;  %v1604_v22 = vpop.f32.mrf.mxu0  ;;  %v1748_v41 = vmax.f32 %v1163_v26, %v1519_v61 }
 0x2b3   :  { %1897 = vrot.lane.b32.xlu1 %v7841_v40, %s6473_s2 }
 0x2b4   :  { %v1872_v52 = vpop.permute.xlu0 %1871 }
 0x2b5   :  { %1935 = vst.msk [vmem:[#allocation3 + $0x58] sm:$0xff] %vm741_vm6, %v1872_v52  ;;  %v1870_v46 = vpop.permute.xlu1 %1869 }
 0x2b6   :  { %v1899_v9 = vsel %vm1835_vm7, %v1868_v25, %v1870_v46  ;;  %1934 = vst.msk [vmem:[#allocation3 + $0x18] sm:$0xff] %vm1933_vm8, %v1870_v46  ;;  %v1335_v25 = vadd.f32 %v9648_v43, %v9647_v49 }
 0x2b7   :  { %v1521_v59 = vpop.f32.mrf.mxu3  ;;  %1932 = vst [vmem:[#allocation3 + $0x10] sm:$0xff] %v1899_v9  ;;  %3034 = vmatmul.f32.vlgmr.msra.gmra.mxu0 %v1899_v9  ;;  %v9655_v9 = vld [vmem:[#allocation74_spill] sm:$0xff] }
 0x2b8   :  { %v1522_v50 = vadd.f32 %v1521_v59, %v1432_v38  ;;  %2023 = vst.msk [vmem:[#allocation3 + $0x18] sm:$0xff] %vm2022_vm9, %v7835_v37  ;;  %v1693_v16 = vpop.f32.mrf.mxu2  ;;  %v1745_v51 = vmax.f32 %v1335_v25, %v1691_v62  ;;  %v9656_v59 = vld [vmem:[#allocation77_spill] sm:$0xff] }
 0x2b9   :  { %v1694_v28 = vadd.f32 %v1693_v16, %v1604_v22  ;;  %v1435_v17 = vpop.f32.mrf.mxu1  ;;  %v1172_v22 = vadd.f32 %v9654_v20, %v9653_v15  ;;  %v2672_v15 = vld [vmem:[#allocation8 + $0xb40] sm:$0xff] }
 0x2ba   :  { %v1750_v44 = vmax.f32 %v1166_v19, %v1522_v50  ;;  %1968 = vrot.lane.b32.xlu2 %v7741_v21, %s6477_s0  ;;  %1972 = vrot.lane.b32.xlu0 %v7766_v35, %s6477_s0  ;;  %v1607_v4 = vpop.f32.mrf.mxu0  ;;  %v2668_v20 = vld [vmem:[#allocation8 + $0xb20] sm:$0xff] }
 0x2bb   :  { %v1747_v14 = vmax.f32 %v1338_v34, %v1694_v28  ;;  %2146 = vrot.lane.b32.xlu1 %v7739_v8, %s6479_s25 }
 0x2bc   :  { %v7870_v48 = vmax.f32 %v1748_v41, %v1750_v44  ;;  %v2243_v31 = vld [vmem:[#allocation3 + $0x58] sm:$0xff]  ;;  %v9657_v44 = vld [vmem:[#allocation79_spill] sm:$0xff] }
 0x2bd   :  { %v7872_v30 = vmax.f32 %v1745_v51, %v1747_v14  ;;  %2996 = vmatmul.f32.gmra.mxu3 %v2243_v31  ;;  %v2053_v60 = vpop.permute.xlu2 %2052 }
 0x2be   :  { %2118 = vst.msk [vmem:[#allocation3 + $0x38] sm:$0xff] %vm2117_vm10, %v2053_v60  ;;  %v1806_v14 = vadd.f32 %v7605_v27, %v7870_v48 }
 0x2bf   :  { %v1524_v1 = vpop.f32.mrf.mxu3  ;;  %v2235_v18 = vld [vmem:[#allocation3 + $0x18] sm:$0xff] }
 0x2c0   :  { %3075 = vmatmul.f32.vlgmr.msra.gmra.mxu2 %v2235_v18  ;;  %v1696_v0 = vpop.f32.mrf.mxu2  ;;  %v1525_v33 = vadd.f32 %v1524_v1, %v1435_v17  ;;  %v1830_v48 = vmax.f32 %v1806_v14, 0.0  ;;  %v2632_v14 = vld [vmem:[#allocation8 + $0xa00] sm:$0xff] }
 0x2c1   :  { %v1438_v3 = vpop.f32.mrf.mxu1  ;;  %v1697_v2 = vadd.f32 %v1696_v0, %v1607_v4 }
 0x2c2   :  { %2150 = vrot.lane.b32.xlu2 %v7764_v23, %s6479_s25  ;;  %2154 = vrot.lane.b32.xlu0 %v7788_v54, %s6479_s25  ;;  %v1610_v8 = vpop.f32.mrf.mxu0  ;;  %v1752_v61 = vmax.f32 %v1169_v53, %v1525_v33 }
 0x2c3   :  { %2060 = vrot.lane.b32.xlu1 %v7766_v35, %s6478_s22  ;;  %v1749_v62 = vmax.f32 %v9655_v9, %v1697_v2  ;;  %v2684_v2 = vld [vmem:[#allocation8 + $0xba0] sm:$0xff] }
 0x2c4   :  { %v2660_v9 = vld [vmem:[#allocation8 + $0xae0] sm:$0xff] }
 0x2c5   :  { %v1961_v11 = vpop.permute.xlu0 %1960  ;;  %v1874_v39 = vpop.permute.xlu1 %1873 }
 0x2c6   :  { %v1990_v47 = vsel %vm1933_vm8, %v7835_v37, %v1961_v11  ;;  %2026 = vst.msk [vmem:[#allocation3 + $0x28] sm:$0xff] %vm2025_vm11, %v1961_v11  ;;  %v1900_v57 = vsel %vm1835_vm7, %v1872_v52, %v1874_v39  ;;  %v2692_v11 = vld [vmem:[#allocation8 + $0xbe0] sm:$0xff] }
 0x2c7   :  { %v1527_v6 = vpop.f32.mrf.mxu3  ;;  %2024 = vst [vmem:[#allocation3 + $0x20] sm:$0xff] %v1990_v47  ;;  %3037 = vmatmul.f32.gmra.mxu0 %v1900_v57  ;;  %3116 = vmatmul.f32.vlgmr.msrb.gmra.mxu1 %v1990_v47 }
 0x2c8   :  { %v1528_v38 = vadd.f32 %v1527_v6, %v1438_v3  ;;  %1936 = vst [vmem:[#allocation3 + $0x60] sm:$0xff] %v1900_v57  ;;  %v1699_v46 = vpop.f32.mrf.mxu2  ;;  %3141 = vmatpush.msrb.mxu3 %v2692_v11  ;;  %v2680_v6 = vld [vmem:[#allocation8 + $0xb80] sm:$0xff] }
 0x2c9   :  { %1937 = vst.msk [vmem:[#allocation3 + $0x68] sm:$0xff] %vm1933_vm8, %v1874_v39  ;;  %v1700_v37 = vadd.f32 %v1699_v46, %v1610_v8  ;;  %v2716_v11 = vld [vmem:[#allocation8 + $0xca0] sm:$0xff] }
 0x2ca   :  { %v1754_v52 = vmax.f32 %v1172_v22, %v1528_v38  ;;  %2027 = vst.msk [vmem:[#allocation3 + $0x68] sm:$0xff] %vm2022_vm9, %v7849_v42  ;;  %2064 = vrot.lane.b32.xlu2 %v7790_v32, %s6478_s22  ;;  %2068 = vrot.lane.b32.xlu0 %v7814_v7, %s6478_s22  ;;  %v1613_v19 = vpop.f32.mrf.mxu0 }
 0x2cb   :  { %v1751_v55 = vmax.f32 %v9656_v59, %v1700_v37  ;;  %2062 = vrot.lane.b32.xlu1 %v7764_v23, %s6478_s22  ;;  %v7914_v23 = vpop.permute.xlu2 %1966  ;;  %v2656_v59 = vld [vmem:[#allocation8 + $0xac0] sm:$0xff] }
 0x2cc   :  { %v7900_v5 = vmax.f32 %v1752_v61, %v1754_v52  ;;  %v2664_v61 = vld [vmem:[#allocation8 + $0xb00] sm:$0xff] }
 0x2cd   :  { %v1777_v26 = vmax.f32 %v1749_v62, %v1751_v55  ;;  %v1876_v36 = vpop.permute.xlu0 %1875  ;;  %v2051_v56 = vpop.permute.xlu1 %2050  ;;  %v2748_v62 = vld [vmem:[#allocation8 + $0xda0] sm:$0xff] }
 0x2ce   :  { %1938 = vst.msk [vmem:[#allocation3 + $0xa8] sm:$0xff] %vm741_vm6, %v1876_v36  ;;  %v7904_v50 = vsel %vm2025_vm11, %v2051_v56, %v2053_v60  ;;  %v1808_v46 = vadd.f32 %v7605_v27, %v7900_v5  ;;  %v2820_v55 = vld [vmem:[#allocation8 + $0xfe0] sm:$0xff] }
 0x2cf   :  { %2115 = vst.msk [vmem:[#allocation3 + $0x28] sm:$0xff] %vm2114_vm12, %v2051_v56  ;;  %v7952_v0 = vadd.f32 %v7633_v63, %v1777_v26  ;;  %v2744_v5 = vld [vmem:[#allocation8 + $0xd80] sm:$0xff]  ;;  %3223 = vmatpush.msrb.mxu2 %v2820_v55 }
 0x2d0   :  { %2116 = vst [vmem:[#allocation3 + $0x30] sm:$0xff] %v7904_v50  ;;  %v1702_v16 = vpop.f32.mrf.mxu2  ;;  %v1832_v27 = vmax.f32 %v1808_v46, 0.0  ;;  %v2652_v26 = vld [vmem:[#allocation8 + $0xaa0] sm:$0xff] }
 0x2d1   :  { %v2245_v49 = vld [vmem:[#allocation3 + $0x68] sm:$0xff]  ;;  %v1703_v13 = vadd.f32 %v1702_v16, %v1613_v19  ;;  %v1831_v3 = vmax.f32 %v7952_v0, 0.0 }
 0x2d2   :  { %3078 = vmatmul.f32.gmra.mxu2 %v2245_v49  ;;  %2066 = vrot.lane.b32.xlu2 %v7788_v54, %s6478_s22  ;;  %v1616_v54 = vpop.f32.mrf.mxu0  ;;  %v2740_v16 = vld [vmem:[#allocation8 + $0xd60] sm:$0xff] }
 0x2d3   :  { %2070 = vrot.lane.b32.xlu0 %v7812_v45, %s6478_s22  ;;  %1976 = vrot.lane.b32.xlu1 %v7790_v32, %s6477_s0  ;;  %v1753_v4 = vmax.f32 %v9657_v44, %v1703_v13  ;;  %v7935_v1 = vpop.permute.xlu2 %2054  ;;  %v2780_v0 = vld [vmem:[#allocation8 + $0xea0] sm:$0xff] }
 0x2d4   :  { %v2696_v46 = vld [vmem:[#allocation8 + $0xc00] sm:$0xff] }
 0x2d5   :  { %v1880_v43 = vpop.permute.xlu0 %1879  ;;  %v2253_v25 = vld [vmem:[#allocation3 + $0xa8] sm:$0xff] }
 0x2d6   :  { %1941 = vst.msk [vmem:[#allocation3 + $0xf8] sm:$0xff] %vm741_vm6, %v1880_v43  ;;  %v1878_v58 = vpop.permute.xlu1 %1877  ;;  %2999 = vmatmul.f32.gmra.mxu3 %v2253_v25  ;;  %v8035_v55 = vld [vmem:[#allocation3 + $0x28] sm:$0xff] }
 0x2d7   :  { %v1901_v34 = vsel %vm1835_vm7, %v1876_v36, %v1878_v58  ;;  %1940 = vst.msk [vmem:[#allocation3 + $0xb8] sm:$0xff] %vm1933_vm8, %v1878_v58  ;;  %v2816_v36 = vld [vmem:[#allocation8 + $0xfc0] sm:$0xff] }
 0x2d8   :  { %1939 = vst [vmem:[#allocation3 + $0xb0] sm:$0xff] %v1901_v34  ;;  %v1705_v28 = vpop.f32.mrf.mxu2  ;;  %3040 = vmatmul.f32.gmra.mxu0 %v1901_v34  ;;  %3224 = vmatpush.msrb.mxu2 %v2816_v36  ;;  %v2644_v58 = vld [vmem:[#allocation8 + $0xa60] sm:$0xff] }
 0x2d9   :  { %2030 = vst.msk [vmem:[#allocation3 + $0xb8] sm:$0xff] %vm2022_vm9, %v7914_v23  ;;  %v1706_v41 = vadd.f32 %v1705_v28, %v1616_v54  ;;  %v2640_v34 = vld [vmem:[#allocation8 + $0xa40] sm:$0xff] }
 0x2da   :  { %1980 = vrot.lane.b32.xlu2 %v7814_v7, %s6477_s0  ;;  %v2808_v54 = vld [vmem:[#allocation8 + $0xf80] sm:$0xff] }
 0x2db   :  { %v1755_v51 = vmax.f32 %v7603_v24, %v1706_v41  ;;  %1984 = vrot.lane.b32.xlu0 %v7841_v40, %s6477_s0  ;;  %2158 = vrot.lane.b32.xlu1 %v7812_v45, %s6479_s25  ;;  %v7957_v47 = vpop.permute.xlu2 %1970  ;;  %v2636_v28 = vld [vmem:[#allocation8 + $0xa20] sm:$0xff] }
 0x2dc   :  { %v2804_v41 = vld [vmem:[#allocation8 + $0xf60] sm:$0xff] }
 0x2dd   :  { %v7931_v31 = vmax.f32 %v1753_v4, %v1755_v51  ;;  %v7933_v17 = vpop.permute.xlu0 %2142  ;;  %v2263_v60 = vld [vmem:[#allocation3 + $0xf8] sm:$0xff] }
 0x2de   :  { %2207 = vst.msk [vmem:[#allocation3 + $0x38] sm:$0xff] %vm2206_vm13, %v7933_v17  ;;  %v1965_v24 = vpop.permute.xlu1 %1964  ;;  %3002 = vmatmul.f32.gmra.mxu3 %v2263_v60  ;;  %v2796_v60 = vld [vmem:[#allocation8 + $0xf20] sm:$0xff] }
 0x2df   :  { %v1991_v18 = vsel %vm1933_vm8, %v7849_v42, %v1965_v24  ;;  %2029 = vst.msk [vmem:[#allocation3 + $0x78] sm:$0xff] %vm2025_vm11, %v1965_v24  ;;  %v1805_v42 = vadd.f32 %v7633_v63, %v7872_v30  ;;  %v2688_v30 = vld [vmem:[#allocation8 + $0xbc0] sm:$0xff]  ;;  %v1809_v49 = vadd.f32 %v7633_v63, %v7931_v31 }
 0x2e0   :  { %2028 = vst [vmem:[#allocation3 + $0x70] sm:$0xff] %v1991_v18  ;;  %v2255_v45 = vld [vmem:[#allocation3 + $0xb8] sm:$0xff]  ;;  %3119 = vmatmul.f32.gmra.mxu1 %v1991_v18  ;;  %3142 = vmatpush.msrb.mxu3 %v2688_v30  ;;  %v2732_v63 = vld [vmem:[#allocation8 + $0xd20] sm:$0xff] }
 0x2e1   :  { %2119 = vst.msk [vmem:[#allocation3 + $0x78] sm:$0xff] %vm2114_vm12, %v7935_v1  ;;  %3081 = vmatmul.f32.gmra.mxu2 %v2255_v45  ;;  %v7959_v57 = vmax.f32 %v1805_v42, 0.0  ;;  %v1833_v13 = vmax.f32 %v1809_v49, 0.0  ;;  %v2800_v31 = vld [vmem:[#allocation8 + $0xf40] sm:$0xff] }
 0x2e2   :  { %2162 = vrot.lane.b32.xlu2 %v7839_v29, %s6479_s25  ;;  %3143 = vmatpush.msrb.mxu3 %v2684_v2  ;;  %v2724_v24 = vld [vmem:[#allocation8 + $0xce0] sm:$0xff] }
 0x2e3   :  { %2166 = vrot.lane.b32.xlu0 %v1830_v48, %s6479_s25  ;;  %2072 = vrot.lane.b32.xlu1 %v7841_v40, %s6478_s22  ;;  %v7976_v22 = vpop.permute.xlu2 %1974  ;;  %v2792_v18 = vld [vmem:[#allocation8 + $0xf00] sm:$0xff] }
 0x2e4   :  { %3144 = vmatpush.msrb.mxu3 %v2680_v6  ;;  %v2720_v45 = vld [vmem:[#allocation8 + $0xcc0] sm:$0xff] }
 0x2e5   :  { %v1884_v8 = vpop.permute.xlu0 %1883  ;;  %v2704_v2 = vld [vmem:[#allocation8 + $0xc40] sm:$0xff] }
 0x2e6   :  { %1944 = vst.msk [vmem:[#allocation3 + $0x148] sm:$0xff] %vm741_vm6, %v1884_v8  ;;  %v1882_v39 = vpop.permute.xlu1 %1881  ;;  %3145 = vmatpush.msrb.mxu3 %v2676_v10  ;;  %v2772_v10 = vld [vmem:[#allocation8 + $0xe60] sm:$0xff] }
 0x2e7   :  { %v1902_v33 = vsel %vm1835_vm7, %v1880_v43, %v1882_v39  ;;  %1943 = vst.msk [vmem:[#allocation3 + $0x108] sm:$0xff] %vm1933_vm8, %v1882_v39  ;;  %v2812_v43 = vld [vmem:[#allocation8 + $0xfa0] sm:$0xff] }
 0x2e8   :  { %1942 = vst [vmem:[#allocation3 + $0x100] sm:$0xff] %v1902_v33  ;;  %3043 = vmatmul.f32.gmra.mxu0 %v1902_v33  ;;  %3146 = vmatpush.msrb.mxu3 %v2672_v15  ;;  %v2784_v39 = vld [vmem:[#allocation8 + $0xec0] sm:$0xff] }
 0x2e9   :  { %2033 = vst.msk [vmem:[#allocation3 + $0x108] sm:$0xff] %vm2022_vm9, %v7957_v47  ;;  %3225 = vmatpush.msrb.mxu2 %v2812_v43  ;;  %v2712_v33 = vld [vmem:[#allocation8 + $0xc80] sm:$0xff] }
 0x2ea   :  { %2076 = vrot.lane.b32.xlu2 %v7959_v57, %s6478_s22  ;;  %3147 = vmatpush.msrb.mxu3 %v2668_v20  ;;  %v2700_v20 = vld [vmem:[#allocation8 + $0xc20] sm:$0xff] }
 0x2eb   :  { %2080 = vrot.lane.b32.xlu0 %v1831_v3, %s6478_s22  ;;  %2074 = vrot.lane.b32.xlu1 %v7839_v29, %s6478_s22  ;;  %v2756_v29 = vld [vmem:[#allocation8 + $0xde0] sm:$0xff] }
 0x2ec   :  { %3182 = vmatpush.msrb.mxu0 %v2756_v29  ;;  %3148 = vmatpush.msrb.mxu3 %v2664_v61  ;;  %v7993_v56 = vpop.permute.xlu2 %1978  ;;  %v2884_v43 = vld [vmem:[#allocation8 + $0x11e0] sm:$0xff] }
 0x2ed   :  { %v2273_v12 = vld [vmem:[#allocation3 + $0x148] sm:$0xff]  ;;  %3226 = vmatpush.msrb.mxu2 %v2808_v54  ;;  %3264 = vmatpush.msra.mxu1 %v2884_v43 }
 0x2ee   :  { %3005 = vmatmul.f32.gmra.mxu3 %v2273_v12  ;;  %v2369_v54 = vld [vmem:[#allocation8 + $0x1c8] sm:$0xff] }
 0x2ef   :  { %3149 = vmatpush.msrb.mxu3 %v2660_v9  ;;  %3227 = vmatpush.msrb.mxu2 %v2804_v41  ;;  %v2876_v41 = vld [vmem:[#allocation8 + $0x11a0] sm:$0xff] }
 0x2f0   :  { %v2265_v53 = vld [vmem:[#allocation3 + $0x108] sm:$0xff] }
 0x2f1   :  { %3084 = vmatmul.f32.gmra.mxu2 %v2265_v53  ;;  %3150 = vmatpush.msrb.mxu3 %v2656_v59 }
 0x2f2   :  { %2078 = vrot.lane.b32.xlu2 %v1830_v48, %s6478_s22  ;;  %3228 = vmatpush.msrb.mxu2 %v2800_v31  ;;  %v2788_v48 = vld [vmem:[#allocation8 + $0xee0] sm:$0xff] }
 0x2f3   :  { %2148 = vrot.lane.b32.xlu0 %v7766_v35, %s6479_s25  ;;  %1988 = vrot.lane.b32.xlu1 %v7959_v57, %s6477_s0  ;;  %v2752_v35 = vld [vmem:[#allocation8 + $0xdc0] sm:$0xff] }
 0x2f4   :  { %v7978_v38 = vpop.permute.xlu0 %1887  ;;  %3183 = vmatpush.msrb.mxu0 %v2752_v35  ;;  %3151 = vmatpush.msrb.mxu3 %v2652_v26 }
 0x2f5   :  { %1947 = vst.msk [vmem:[#allocation3 + $0x198] sm:$0xff] %vm741_vm6, %v7978_v38  ;;  %v1886_v37 = vpop.permute.xlu1 %1885  ;;  %3229 = vmatpush.msrb.mxu2 %v2796_v60 }
 0x2f6   :  { %v1903_v52 = vsel %vm1835_vm7, %v1884_v8, %v1886_v37  ;;  %1946 = vst.msk [vmem:[#allocation3 + $0x158] sm:$0xff] %vm1933_vm8, %v1886_v37  ;;  %3184 = vmatpush.msrb.mxu0 %v2748_v62  ;;  %v2764_v37 = vld [vmem:[#allocation8 + $0xe20] sm:$0xff] }
 0x2f7   :  { %1945 = vst [vmem:[#allocation3 + $0x150] sm:$0xff] %v1903_v52  ;;  %3046 = vmatmul.f32.gmra.mxu0 %v1903_v52  ;;  %3230 = vmatpush.msrb.mxu2 %v2792_v18 }
 0x2f8   :  { %2036 = vst.msk [vmem:[#allocation3 + $0x158] sm:$0xff] %vm2022_vm9, %v7976_v22  ;;  %3185 = vmatpush.msrb.mxu0 %v2744_v5 }
 0x2f9   :  { %3231 = vmatpush.msrb.mxu2 %v2788_v48  ;;  %v2353_v48 = vld [vmem:[#allocation8 + $0x148] sm:$0xff] }
 0x2fa   :  { %2144 = vrot.lane.b32.xlu2 %v7741_v21, %s6479_s25  ;;  %v2648_v21 = vld [vmem:[#allocation8 + $0xa80] sm:$0xff]  ;;  %3186 = vmatpush.msrb.mxu0 %v2740_v16 }
 0x2fb   :  { %2160 = vrot.lane.b32.xlu0 %v7841_v40, %s6479_s25  ;;  %2170 = vrot.lane.b32.xlu1 %v1832_v27, %s6479_s25  ;;  %v2736_v40 = vld [vmem:[#allocation8 + $0xd40] sm:$0xff] }
 0x2fc   :  { %v2283_v19 = vld [vmem:[#allocation3 + $0x198] sm:$0xff]  ;;  %3152 = vmatpush.msrb.mxu3 %v2648_v21  ;;  %3187 = vmatpush.msrb.mxu0 %v2736_v40  ;;  %v8002_v44 = vpop.permute.xlu2 %1982  ;;  %v2373_v40 = vld [vmem:[#allocation8 + $0x1e8] sm:$0xff] }
 0x2fd   :  { %3008 = vmatmul.f32.gmra.mxu3 %v2283_v19  ;;  %3232 = vmatpush.msrb.mxu2 %v2784_v39  ;;  %v2247_v19 = vld [vmem:[#allocation3 + $0x78] sm:$0xff]  ;;  %v2349_v39 = vld [vmem:[#allocation8 + $0x128] sm:$0xff] }
 0x2fe   :  { %3153 = vmatpush.msrb.mxu3 %v2644_v58  ;;  %3188 = vmatpush.msrb.mxu0 %v2732_v63 }
 0x2ff   :  { %v2275_v25 = vld [vmem:[#allocation3 + $0x158] sm:$0xff]  ;;  %3233 = vmatpush.msrb.mxu2 %v2780_v0  ;;  %v2856_v0 = vld [vmem:[#allocation8 + $0x1100] sm:$0xff] }
 0x300   :  { %3087 = vmatmul.f32.gmra.mxu2 %v2275_v25  ;;  %3154 = vmatpush.msrb.mxu3 %v2640_v34 }
 0x302   :  { %2156 = vrot.lane.b32.xlu2 %v7814_v7, %s6479_s25  ;;  %3155 = vmatpush.msrb.mxu3 %v2636_v28  ;;  %v2239_v28 = vld [vmem:[#allocation3 + $0x38] sm:$0xff] }
 0x303   :  { %2172 = vrot.lane.b32.xlu0 %v1833_v13, %s6479_s25  ;;  %2152 = vrot.lane.b32.xlu1 %v7790_v32, %s6479_s25  ;;  %v2728_v32 = vld [vmem:[#allocation8 + $0xd00] sm:$0xff] }
 0x304   :  { %v1892_v4 = vpop.permute.xlu0 %1891  ;;  %3156 = vmatpush.msrb.mxu3 %v2632_v14  ;;  %3189 = vmatpush.msrb.mxu0 %v2728_v32  ;;  %v2357_v32 = vld [vmem:[#allocation8 + $0x168] sm:$0xff] }
 0x305   :  { %1950 = vst.msk [vmem:[#allocation3 + $0x1e8] sm:$0xff] %vm741_vm6, %v1892_v4  ;;  %v1890_v51 = vpop.permute.xlu1 %1889 }
 0x306   :  { %v1904_v7 = vsel %vm1835_vm7, %v7978_v38, %v1890_v51  ;;  %1949 = vst.msk [vmem:[#allocation3 + $0x1a8] sm:$0xff] %vm1933_vm8, %v1890_v51  ;;  %3190 = vmatpush.msrb.mxu0 %v2724_v24  ;;  %v2768_v38 = vld [vmem:[#allocation8 + $0xe40] sm:$0xff]  ;;  %v2361_v51 = vld [vmem:[#allocation8 + $0x188] sm:$0xff] }
 0x307   :  { %1948 = vst [vmem:[#allocation3 + $0x1a0] sm:$0xff] %v1904_v7  ;;  %3049 = vmatmul.f32.gmra.mxu0 %v1904_v7  ;;  %v2868_v7 = vld [vmem:[#allocation8 + $0x1160] sm:$0xff] }
 0x308   :  { %2039 = vst.msk [vmem:[#allocation3 + $0x1a8] sm:$0xff] %vm2022_vm9, %v7993_v56  ;;  %3191 = vmatpush.msrb.mxu0 %v2720_v45  ;;  %v2864_v45 = vld [vmem:[#allocation8 + $0x1140] sm:$0xff] }
 0x30a   :  { %2168 = vrot.lane.b32.xlu2 %v1831_v3, %s6479_s25  ;;  %3192 = vmatpush.msrb.mxu0 %v2716_v11  ;;  %v2708_v3 = vld [vmem:[#allocation8 + $0xc60] sm:$0xff] }
 0x30b   :  { %2164 = vrot.lane.b32.xlu1 %v7959_v57, %s6479_s25  ;;  %v2776_v57 = vld [vmem:[#allocation8 + $0xe80] sm:$0xff] }
 0x30c   :  { %v8015_v42 = vpop.permute.xlu2 %1986  ;;  %v2293_v8 = vld [vmem:[#allocation3 + $0x1e8] sm:$0xff]  ;;  %3193 = vmatpush.msrb.mxu0 %v2712_v33  ;;  %3234 = vmatpush.msrb.mxu2 %v2776_v57 }
 0x30d   :  { %3011 = vmatmul.f32.gmra.mxu3 %v2293_v8  ;;  %v2860_v11 = vld [vmem:[#allocation8 + $0x1120] sm:$0xff]  ;;  %v2437_v33 = vld [vmem:[#allocation8 + $0x3e8] sm:$0xff] }
 0x30e   :  { %3194 = vmatpush.msrb.mxu0 %v2708_v3  ;;  %3235 = vmatpush.msrb.mxu2 %v2772_v10  ;;  %v2345_v3 = vld [vmem:[#allocation8 + $0x108] sm:$0xff] }
 0x30f   :  { %v2285_v30 = vld [vmem:[#allocation3 + $0x1a8] sm:$0xff] }
 0x310   :  { %3090 = vmatmul.f32.gmra.mxu2 %v2285_v30  ;;  %3195 = vmatpush.msrb.mxu0 %v2704_v2  ;;  %v2433_v30 = vld [vmem:[#allocation8 + $0x3c8] sm:$0xff]  ;;  %v2852_v2 = vld [vmem:[#allocation8 + $0x10e0] sm:$0xff] }
 0x311   :  { %3236 = vmatpush.msrb.mxu2 %v2768_v38  ;;  %v2337_v38 = vld [vmem:[#allocation8 + $0xc8] sm:$0xff] }
 0x312   :  { %3196 = vmatpush.msrb.mxu0 %v2700_v20  ;;  %v2848_v20 = vld [vmem:[#allocation8 + $0x10c0] sm:$0xff] }
 0x313   :  { %3237 = vmatpush.msrb.mxu2 %v2764_v37  ;;  %v2425_v37 = vld [vmem:[#allocation8 + $0x388] sm:$0xff] }
 0x314   :  { %v1896_v6 = vpop.permute.xlu0 %1895  ;;  %v1969_v12 = vpop.permute.xlu2 %1968  ;;  %3197 = vmatpush.msrb.mxu0 %v2696_v46 }
 0x315   :  { %1953 = vst.msk [vmem:[#allocation3 + $0x238] sm:$0xff] %vm741_vm6, %v1896_v6  ;;  %v1992_v53 = vsel %vm1933_vm8, %v7914_v23, %v1969_v12  ;;  %v1894_v15 = vpop.permute.xlu1 %1893  ;;  %v2760_v23 = vld [vmem:[#allocation8 + $0xe00] sm:$0xff] }
 0x316   :  { %2031 = vst [vmem:[#allocation3 + $0xc0] sm:$0xff] %v1992_v53  ;;  %v1905_v29 = vsel %vm1835_vm7, %v1892_v4, %v1894_v15  ;;  %3122 = vmatmul.f32.gmra.mxu1 %v1992_v53  ;;  %3238 = vmatpush.msrb.mxu2 %v2760_v23  ;;  %v2365_v4 = vld [vmem:[#allocation8 + $0x1a8] sm:$0xff] }
 0x317   :  { %2032 = vst.msk [vmem:[#allocation3 + $0xc8] sm:$0xff] %vm2025_vm11, %v1969_v12  ;;  %3052 = vmatmul.f32.gmra.mxu0 %v1905_v29  ;;  %v2333_v23 = vld [vmem:[#allocation8 + $0xa8] sm:$0xff] }
 0x318   :  { %1951 = vst [vmem:[#allocation3 + $0x1f0] sm:$0xff] %v1905_v29  ;;  %3346 = vmatpush.msra.mxu0 %v2373_v40  ;;  %3387 = vmatpush.msra.mxu2 %v2437_v33  ;;  %v2429_v29 = vld [vmem:[#allocation8 + $0x3a8] sm:$0xff] }
 0x319   :  { %1952 = vst.msk [vmem:[#allocation3 + $0x1f8] sm:$0xff] %vm1933_vm8, %v1894_v15  ;;  %v2325_v40 = vld [vmem:[#allocation8 + $0x68] sm:$0xff] }
 0x31a   :  { %2042 = vst.msk [vmem:[#allocation3 + $0x1f8] sm:$0xff] %vm2022_vm9, %v8002_v44  ;;  %3347 = vmatpush.msra.mxu0 %v2369_v54  ;;  %3388 = vmatpush.msra.mxu2 %v2433_v30  ;;  %v2401_v54 = vld [vmem:[#allocation8 + $0x2c8] sm:$0xff] }
 0x31c   :  { %v8025_v61 = vpop.permute.xlu2 %2150  ;;  %v2057_v35 = vpop.permute.xlu0 %2056  ;;  %v8027_v52 = vld [vmem:[#allocation3 + $0x238] sm:$0xff]  ;;  %3348 = vmatpush.msra.mxu0 %v2365_v4  ;;  %3389 = vmatpush.msra.mxu2 %v2429_v29 }
 0x31d   :  { %v2083_v9 = vsel %vm2025_vm11, %v7935_v1, %v2057_v35  ;;  %2121 = vst.msk [vmem:[#allocation3 + $0x88] sm:$0xff] %vm2117_vm10, %v2057_v35  ;;  %3014 = vmatmul.f32.gmra.mxu3 %v8027_v52  ;;  %v2840_v35 = vld [vmem:[#allocation8 + $0x1080] sm:$0xff] }
 0x31e   :  { %2120 = vst [vmem:[#allocation3 + $0x80] sm:$0xff] %v2083_v9  ;;  %3349 = vmatpush.msra.mxu0 %v2361_v51  ;;  %3390 = vmatpush.msra.mxu2 %v2425_v37 }
 0x320   :  { %3350 = vmatpush.msra.mxu0 %v2357_v32  ;;  %v2828_v32 = vld [vmem:[#allocation8 + $0x1020] sm:$0xff] }
 0x321   :  { %v2295_v62 = vld [vmem:[#allocation3 + $0x1f8] sm:$0xff] }
 0x322   :  { %3093 = vmatmul.f32.gmra.mxu2 %v2295_v62  ;;  %3351 = vmatpush.msra.mxu0 %v2353_v48  ;;  %v2417_v62 = vld [vmem:[#allocation8 + $0x348] sm:$0xff]  ;;  %v2824_v48 = vld [vmem:[#allocation8 + $0x1000] sm:$0xff] }
 0x324   :  { %v2059_v27 = vpop.permute.xlu0 %2058  ;;  %v8033_v59 = vpop.permute.xlu2 %2064  ;;  %3352 = vmatpush.msra.mxu0 %v2349_v39 }
 0x325   :  { %2122 = vst.msk [vmem:[#allocation3 + $0xc8] sm:$0xff] %vm2114_vm12, %v2059_v27  ;;  %3157 = vmatmul.f32.vlgmr.msrb.gmra.mxu3 %v8035_v55  ;;  %v1898_v5 = vpop.permute.xlu1 %1897 }
 0x326   :  { %2127 = vst.msk [vmem:[#allocation3 + $0x128] sm:$0xff] %vm2117_vm10, %v8033_v59  ;;  %v1906_v1 = vsel %vm1835_vm7, %v1896_v6, %v1898_v5  ;;  %3353 = vmatpush.msra.mxu0 %v2345_v3  ;;  %v2341_v6 = vld [vmem:[#allocation8 + $0xe8] sm:$0xff] }
 0x327   :  { %1954 = vst [vmem:[#allocation3 + $0x240] sm:$0xff] %v1906_v1  ;;  %3055 = vmatmul.f32.gmra.mxu0 %v1906_v1 }
 0x328   :  { %1955 = vst.msk [vmem:[#allocation3 + $0x248] sm:$0xff] %vm1933_vm8, %v1898_v5  ;;  %3354 = vmatpush.msra.mxu0 %v2341_v6  ;;  %v8141_v6 = vpop.f32.mrf.mxu1 }
 0x329   :  { %2045 = vst.msk [vmem:[#allocation3 + $0x248] sm:$0xff] %vm2022_vm9, %v8015_v42 }
 0x32a   :  { %3355 = vmatpush.msra.mxu0 %v2337_v38  ;;  %9658 = vst [vmem:[#allocation39_spill] sm:$0xff] %v8141_v6  ;;  %v8356_v6 = vld [vmem:[#allocation3 + $0x150] sm:$0xff] }
 0x32b   :  { %9685 = vst [vmem:[#allocation47_spill] sm:$0xff] %v8356_v6 }
 0x32c   :  { %v1973_v26 = vpop.permute.xlu0 %1972  ;;  %v8045_v36 = vpop.permute.xlu2 %2066  ;;  %3356 = vmatpush.msra.mxu0 %v2333_v23 }
 0x32d   :  { %v1993_v16 = vsel %vm1933_vm8, %v7957_v47, %v1973_v26  ;;  %2035 = vst.msk [vmem:[#allocation3 + $0x118] sm:$0xff] %vm2025_vm11, %v1973_v26  ;;  %3160 = vmatmul.f32.gmra.mxu3 %v2247_v19  ;;  %v8050_v49 = vpop.permute.xlu1 %2146  ;;  %v2257_v47 = vld [vmem:[#allocation3 + $0xc8] sm:$0xff] }
 0x32e   :  { %2034 = vst [vmem:[#allocation3 + $0x110] sm:$0xff] %v1993_v16  ;;  %3125 = vmatmul.f32.gmra.mxu1 %v1993_v16  ;;  %v2413_v19 = vld [vmem:[#allocation8 + $0x328] sm:$0xff]  ;;  %v2908_v16 = vld [vmem:[#allocation8 + $0x12a0] sm:$0xff] }
 0x32f   :  { %2211 = vst.msk [vmem:[#allocation3 + $0x88] sm:$0xff] %vm2206_vm13, %v8050_v49  ;;  %3198 = vmatmul.f32.vlgmr.msrb.gmra.mxu0 %v7904_v50  ;;  %v2880_v50 = vld [vmem:[#allocation8 + $0x11c0] sm:$0xff]  ;;  %3315 = vmatpush.msra.mxu3 %v2908_v16  ;;  %v2501_v16 = vld [vmem:[#allocation8 + $0x5e8] sm:$0xff] }
 0x330   :  { %v2305_v21 = vld [vmem:[#allocation3 + $0x248] sm:$0xff]  ;;  %3265 = vmatpush.msra.mxu1 %v2880_v50 }
 0x331   :  { %3096 = vmatmul.f32.gmra.mxu2 %v2305_v21  ;;  %v2409_v21 = vld [vmem:[#allocation8 + $0x308] sm:$0xff]  ;;  %v2900_v50 = vld [vmem:[#allocation8 + $0x1260] sm:$0xff] }
 0x332   :  { %3266 = vmatpush.msra.mxu1 %v2876_v41 }
 0x334   :  { %v8055_v25 = vpop.permute.xlu0 %2154  ;;  %v1981_v58 = vpop.permute.xlu2 %1980 }
 0x335   :  { %2217 = vst.msk [vmem:[#allocation3 + $0x128] sm:$0xff] %vm2206_vm13, %v8055_v25  ;;  %v8061_v13 = vsel %vm1933_vm8, %v7993_v56, %v1981_v58  ;;  %3163 = vmatmul.f32.gmra.mxu3 %v2257_v47  ;;  %v2061_v34 = vpop.permute.xlu1 %2060  ;;  %v2872_v56 = vld [vmem:[#allocation8 + $0x1180] sm:$0xff] }
 0x336   :  { %2040 = vst [vmem:[#allocation3 + $0x1b0] sm:$0xff] %v8061_v13  ;;  %v2084_v63 = vsel %vm2025_vm11, %v2059_v27, %v2061_v34  ;;  %3267 = vmatpush.msra.mxu1 %v2872_v56  ;;  %v2249_v8 = vld [vmem:[#allocation3 + $0x88] sm:$0xff] }
 0x337   :  { %2041 = vst.msk [vmem:[#allocation3 + $0x1b8] sm:$0xff] %vm2025_vm11, %v1981_v58  ;;  %3201 = vmatmul.f32.gmra.mxu0 %v2083_v9  ;;  %v2421_v9 = vld [vmem:[#allocation8 + $0x368] sm:$0xff]  ;;  %v2904_v58 = vld [vmem:[#allocation8 + $0x1280] sm:$0xff] }
 0x338   :  { %2123 = vst [vmem:[#allocation3 + $0xd0] sm:$0xff] %v2084_v63  ;;  %3268 = vmatpush.msra.mxu1 %v2868_v7  ;;  %v2329_v27 = vld [vmem:[#allocation8 + $0x88] sm:$0xff]  ;;  %3391 = vmatpush.msra.mxu2 %v2421_v9  ;;  %v2832_v47 = vld [vmem:[#allocation8 + $0x1040] sm:$0xff] }
 0x339   :  { %2124 = vst.msk [vmem:[#allocation3 + $0xd8] sm:$0xff] %vm2117_vm10, %v2061_v34  ;;  %3239 = vmatmul.f32.vlgmr.msrb.gmra.mxu2 %v2239_v28  ;;  %3357 = vmatpush.msra.mxu0 %v2329_v27  ;;  %v2405_v34 = vld [vmem:[#allocation8 + $0x2e8] sm:$0xff]  ;;  %v2896_v56 = vld [vmem:[#allocation8 + $0x1240] sm:$0xff] }
 0x33a   :  { %2214 = vst.msk [vmem:[#allocation3 + $0xd8] sm:$0xff] %vm2206_vm13, %v8025_v61  ;;  %3269 = vmatpush.msra.mxu1 %v2864_v45  ;;  %3392 = vmatpush.msra.mxu2 %v2417_v62  ;;  %v2317_v28 = vld [vmem:[#allocation8 + $0x28] sm:$0xff] }
 0x33b   :  { %3358 = vmatpush.msra.mxu0 %v2325_v40  ;;  %3316 = vmatpush.msra.mxu3 %v2904_v58  ;;  %v2393_v45 = vld [vmem:[#allocation8 + $0x288] sm:$0xff] }
 0x33c   :  { %v8069_v14 = vpop.permute.xlu2 %2162  ;;  %v2069_v31 = vpop.permute.xlu0 %2068  ;;  %3270 = vmatpush.msra.mxu1 %v2860_v11  ;;  %3393 = vmatpush.msra.mxu2 %v2413_v19  ;;  %v2389_v11 = vld [vmem:[#allocation8 + $0x268] sm:$0xff] }
 0x33d   :  { %v8073_v60 = vsel %vm2025_vm11, %v8045_v36, %v2069_v31  ;;  %2130 = vst.msk [vmem:[#allocation3 + $0x178] sm:$0xff] %vm2117_vm10, %v2069_v31  ;;  %v2063_v24 = vpop.permute.xlu1 %2062  ;;  %3317 = vmatpush.msra.mxu3 %v2900_v50 }
 0x33e   :  { %2129 = vst [vmem:[#allocation3 + $0x170] sm:$0xff] %v8073_v60  ;;  %v2085_v18 = vsel %vm2025_vm11, %v2063_v24, %v8033_v59  ;;  %3271 = vmatpush.msra.mxu1 %v2856_v0  ;;  %3394 = vmatpush.msra.mxu2 %v2409_v21  ;;  %v2385_v0 = vld [vmem:[#allocation8 + $0x248] sm:$0xff] }
 0x33f   :  { %2125 = vst.msk [vmem:[#allocation3 + $0x118] sm:$0xff] %vm2114_vm12, %v2063_v24  ;;  %3204 = vmatmul.f32.gmra.mxu0 %v2084_v63  ;;  %3318 = vmatpush.msra.mxu3 %v2896_v56  ;;  %v2892_v24 = vld [vmem:[#allocation8 + $0x1220] sm:$0xff]  ;;  %v2629_v21 = vld [vmem:[#allocation8 + $0x9e8] sm:$0xff] }
 0x340   :  { %2126 = vst [vmem:[#allocation3 + $0x120] sm:$0xff] %v2085_v18  ;;  %3272 = vmatpush.msra.mxu1 %v2852_v2  ;;  %3395 = vmatpush.msra.mxu2 %v2405_v34 }
 0x341   :  { %3242 = vmatmul.f32.gmra.mxu2 %v2249_v8  ;;  %v2259_v46 = vld [vmem:[#allocation3 + $0xd8] sm:$0xff]  ;;  %v2888_v8 = vld [vmem:[#allocation8 + $0x1200] sm:$0xff]  ;;  %3319 = vmatpush.msra.mxu3 %v2892_v24  ;;  %v2485_v24 = vld [vmem:[#allocation8 + $0x568] sm:$0xff] }
 0x342   :  { %3273 = vmatpush.msra.mxu1 %v2848_v20  ;;  %3396 = vmatpush.msra.mxu2 %v2401_v54  ;;  %v2377_v20 = vld [vmem:[#allocation8 + $0x208] sm:$0xff] }
 0x343   :  { %3320 = vmatpush.msra.mxu3 %v2888_v8  ;;  %v2557_v8 = vld [vmem:[#allocation8 + $0x7a8] sm:$0xff] }
 0x344   :  { %v8080_v57 = vpop.permute.xlu2 %2076 }
 0x345   :  { %v8082_v12 = vpop.permute.xlu0 %2070  ;;  %2136 = vst.msk [vmem:[#allocation3 + $0x218] sm:$0xff] %vm2117_vm10, %v8080_v57  ;;  %v1977_v10 = vpop.permute.xlu1 %1976 }
 0x346   :  { %2131 = vst.msk [vmem:[#allocation3 + $0x1b8] sm:$0xff] %vm2114_vm12, %v8082_v12  ;;  %v8090_v53 = vsel %vm1933_vm8, %v7976_v22, %v1977_v10  ;;  %v8092_v15 = vld [vmem:[#allocation3 + $0x118] sm:$0xff]  ;;  %v2844_v22 = vld [vmem:[#allocation8 + $0x10a0] sm:$0xff] }
 0x347   :  { %2037 = vst [vmem:[#allocation3 + $0x160] sm:$0xff] %v8090_v53  ;;  %3166 = vmatmul.f32.gmra.mxu3 %v8092_v15  ;;  %3128 = vmatmul.f32.gmra.mxu1 %v8090_v53 }
 0x348   :  { %2038 = vst.msk [vmem:[#allocation3 + $0x168] sm:$0xff] %vm2025_vm11, %v1977_v10  ;;  %3207 = vmatmul.f32.gmra.mxu0 %v2085_v18  ;;  %3274 = vmatpush.msra.mxu1 %v2844_v22  ;;  %v2313_v18 = vld [vmem:[#allocation8 + $0x8] sm:$0xff] }
 0x349   :  { %2128 = vst.msk [vmem:[#allocation3 + $0x168] sm:$0xff] %vm2114_vm12, %v8045_v36  ;;  %3245 = vmatmul.f32.gmra.mxu2 %v2259_v46  ;;  %v2269_v36 = vld [vmem:[#allocation3 + $0x128] sm:$0xff] }
 0x34a   :  { %3275 = vmatpush.msra.mxu1 %v2840_v35  ;;  %v8165_v35 = vpop.f32.mrf.mxu1 }
 0x34b   :  { %9659 = vst [vmem:[#allocation27_spill] sm:$0xff] %v8165_v35  ;;  %v6173_v35 = vld [vmem:[#allocation3 + $0x78] sm:$0xff] }
 0x34c   :  { %v8100_v59 = vpop.permute.xlu2 %2078 }
 0x34d   :  { %v1985_v5 = vpop.permute.xlu0 %1984  ;;  %v8102_v1 = vpop.permute.xlu1 %2158 }
 0x34e   :  { %v8106_v26 = vsel %vm1933_vm8, %v8002_v44, %v1985_v5  ;;  %2044 = vst.msk [vmem:[#allocation3 + $0x208] sm:$0xff] %vm2025_vm11, %v1985_v5  ;;  %v2836_v44 = vld [vmem:[#allocation8 + $0x1060] sm:$0xff]  ;;  %v8179_v5 = vpop.f32.mrf.mxu3 }
 0x34f   :  { %2043 = vst [vmem:[#allocation3 + $0x200] sm:$0xff] %v8106_v26  ;;  %3131 = vmatmul.f32.gmra.mxu1 %v8061_v13  ;;  %v2321_v13 = vld [vmem:[#allocation8 + $0x48] sm:$0xff] }
 0x350   :  { %2220 = vst.msk [vmem:[#allocation3 + $0x178] sm:$0xff] %vm2206_vm13, %v8102_v1  ;;  %v8113_v43 = vld [vmem:[#allocation3 + $0x168] sm:$0xff]  ;;  %3210 = vmatmul.f32.gmra.mxu0 %v8073_v60  ;;  %3276 = vmatpush.msra.mxu1 %v2836_v44  ;;  %v8127_v60 = vld [vmem:[#allocation3 + $0x1b8] sm:$0xff] }
 0x351   :  { %3169 = vmatmul.f32.gmra.mxu3 %v8113_v43  ;;  %3248 = vmatmul.f32.gmra.mxu2 %v2269_v36  ;;  %9661 = vst [vmem:[#allocation29_spill] sm:$0xff] %v8179_v5  ;;  %v6150_v36 = vld [vmem:[#allocation3] sm:$0xff]  ;;  %v6177_v5 = vld [vmem:[#allocation3 + $0xc8] sm:$0xff] }
 0x352   :  { %3277 = vmatpush.msra.mxu1 %v2832_v47  ;;  %3359 = vmatpush.msra.mxu0 %v2321_v13  ;;  %v8186_v19 = vpop.f32.mrf.mxu1  ;;  %v2497_v47 = vld [vmem:[#allocation8 + $0x5c8] sm:$0xff] }
 0x353   :  { %9662 = vst [vmem:[#allocation21_spill] sm:$0xff] %v8186_v19  ;;  %v2625_v13 = vld [vmem:[#allocation8 + $0x9c8] sm:$0xff] }
 0x354   :  { %v2145_v63 = vpop.permute.xlu2 %2144  ;;  %3360 = vmatpush.msra.mxu0 %v2317_v28  ;;  %3278 = vmatpush.msra.mxu1 %v2828_v32  ;;  %v2621_v28 = vld [vmem:[#allocation8 + $0x9a8] sm:$0xff] }
 0x355   :  { %v2167_v41 = vpop.permute.xlu0 %2166  ;;  %v8119_v4 = vsel %vm2117_vm10, %v7933_v17, %v2145_v63  ;;  %2210 = vst.msk [vmem:[#allocation3 + $0x48] sm:$0xff] %vm2209_vm14, %v2145_v63  ;;  %v2073_v51 = vpop.permute.xlu1 %2072  ;;  %v2397_v17 = vld [vmem:[#allocation8 + $0x2a8] sm:$0xff] }
 0x356   :  { %2226 = vst.msk [vmem:[#allocation3 + $0x218] sm:$0xff] %vm2206_vm13, %v2167_v41  ;;  %v2087_v31 = vsel %vm2025_vm11, %v8082_v12, %v2073_v51  ;;  %3397 = vmatpush.msra.mxu2 %v2397_v17  ;;  %3361 = vmatpush.msra.mxu0 %v2313_v18  ;;  %v8195_v34 = vpop.f32.mrf.mxu3  ;;  %v2493_v63 = vld [vmem:[#allocation8 + $0x5a8] sm:$0xff]  ;;  %v8209_v17 = vpop.f32.mrf.mxu2 }
 0x357   :  { %2208 = vst [vmem:[#allocation3 + $0x40] sm:$0xff] %v8119_v4  ;;  %v2279_v7 = vld [vmem:[#allocation3 + $0x178] sm:$0xff]  ;;  %3134 = vmatmul.f32.gmra.mxu1 %v8106_v26  ;;  %v2613_v18 = vld [vmem:[#allocation8 + $0x968] sm:$0xff] }
 0x358   :  { %2132 = vst [vmem:[#allocation3 + $0x1c0] sm:$0xff] %v2087_v31  ;;  %3213 = vmatmul.f32.gmra.mxu0 %v2087_v31  ;;  %3398 = vmatpush.msra.mxu2 %v2393_v45  ;;  %v2565_v31 = vld [vmem:[#allocation8 + $0x7e8] sm:$0xff] }
 0x359   :  { %2133 = vst.msk [vmem:[#allocation3 + $0x1c8] sm:$0xff] %vm2117_vm10, %v2073_v51  ;;  %3172 = vmatmul.f32.gmra.mxu3 %v8127_v60  ;;  %3251 = vmatmul.f32.gmra.mxu2 %v2279_v7  ;;  %v2617_v51 = vld [vmem:[#allocation8 + $0x988] sm:$0xff] }
 0x35a   :  { %2223 = vst.msk [vmem:[#allocation3 + $0x1c8] sm:$0xff] %vm2206_vm13, %v8069_v14  ;;  %3279 = vmatpush.msra.mxu1 %v2824_v48  ;;  %3399 = vmatpush.msra.mxu2 %v2389_v11  ;;  %v2561_v7 = vld [vmem:[#allocation8 + $0x7c8] sm:$0xff]  ;;  %v8213_v45 = vpop.f32.mrf.mxu1 }
 0x35b   :  { %3510 = vmatpush.msrb.mxu0 %v2629_v21  ;;  %9664 = vst [vmem:[#allocation24_spill] sm:$0xff] %v8195_v34  ;;  %3469 = vmatpush.msrb.mxu3 %v2565_v31  ;;  %v2481_v11 = vld [vmem:[#allocation8 + $0x548] sm:$0xff] }
 0x35c   :  { %v2157_v39 = vpop.permute.xlu2 %2156  ;;  %3400 = vmatpush.msra.mxu2 %v2385_v0  ;;  %3428 = vmatpush.msrb.mxu1 %v2501_v16  ;;  %v8205_v56 = vld [vmem:[#allocation3 + $0x48] sm:$0xff]  ;;  %9665 = vst [vmem:[#allocation22_spill] sm:$0xff] %v8209_v17  ;;  %v6168_v19 = vld [vmem:[#allocation3 + $0x70] sm:$0xff] }
 0x35d   :  { %v8135_v33 = vsel %vm2117_vm10, %v8055_v25, %v2157_v39  ;;  %2219 = vst.msk [vmem:[#allocation3 + $0x138] sm:$0xff] %vm2209_vm14, %v2157_v39  ;;  %v2081_v30 = vpop.permute.xlu0 %2080  ;;  %v2075_v2 = vpop.permute.xlu1 %2074  ;;  %v2381_v25 = vld [vmem:[#allocation8 + $0x228] sm:$0xff]  ;;  %3511 = vmatpush.msrb.mxu0 %v2625_v13  ;;  %3470 = vmatpush.msrb.mxu3 %v2561_v7 }
 0x35e   :  { %2218 = vst [vmem:[#allocation3 + $0x130] sm:$0xff] %v8135_v33  ;;  %v2089_v3 = vsel %vm2025_vm11, %v8100_v59, %v2081_v30  ;;  %v2088_v12 = vsel %vm2025_vm11, %v2075_v2, %v8080_v57  ;;  %3401 = vmatpush.msra.mxu2 %v2381_v25  ;;  %3429 = vmatpush.msrb.mxu1 %v2497_v47  ;;  %v8215_v39 = vpop.f32.mrf.mxu3  ;;  %v2609_v0 = vld [vmem:[#allocation8 + $0x948] sm:$0xff]  ;;  %v6154_v47 = vld [vmem:[#allocation3 + $0x58] sm:$0xff] }
 0x35f   :  { %2138 = vst [vmem:[#allocation3 + $0x260] sm:$0xff] %v2089_v3  ;;  %3512 = vmatpush.msrb.mxu0 %v2621_v28  ;;  %3471 = vmatpush.msrb.mxu3 %v2557_v8  ;;  %v2553_v25 = vld [vmem:[#allocation8 + $0x788] sm:$0xff] }
 0x360   :  { %2139 = vst.msk [vmem:[#allocation3 + $0x268] sm:$0xff] %vm2117_vm10, %v2081_v30  ;;  %3216 = vmatmul.f32.gmra.mxu0 %v2088_v12  ;;  %3402 = vmatpush.msra.mxu2 %v2377_v20  ;;  %v2473_v20 = vld [vmem:[#allocation8 + $0x508] sm:$0xff] }
 0x361   :  { %2134 = vst.msk [vmem:[#allocation3 + $0x208] sm:$0xff] %vm2114_vm12, %v2075_v2  ;;  %v2289_v10 = vld [vmem:[#allocation3 + $0x1c8] sm:$0xff]  ;;  %3430 = vmatpush.msrb.mxu1 %v2493_v63  ;;  %3513 = vmatpush.msrb.mxu0 %v2617_v51  ;;  %v6155_v63 = vld [vmem:[#allocation3 + $0xf0] sm:$0xff] }
 0x362   :  { %2135 = vst [vmem:[#allocation3 + $0x210] sm:$0xff] %v2088_v12  ;;  %3254 = vmatmul.f32.gmra.mxu2 %v2289_v10  ;;  %v2477_v2 = vld [vmem:[#allocation8 + $0x528] sm:$0xff]  ;;  %v6153_v12 = vld [vmem:[#allocation3 + $0xa0] sm:$0xff]  ;;  %3472 = vmatpush.msrb.mxu3 %v2553_v25  ;;  %v8232_v21 = vpop.f32.mrf.mxu1 }
 0x363   :  { %3514 = vmatpush.msrb.mxu0 %v2613_v18  ;;  %9667 = vst [vmem:[#allocation25_spill] sm:$0xff] %v8215_v39  ;;  %v2545_v16 = vld [vmem:[#allocation8 + $0x748] sm:$0xff] }
 0x364   :  { %v2169_v29 = vpop.permute.xlu2 %2168  ;;  %v2465_v13 = vld [vmem:[#allocation8 + $0x4c8] sm:$0xff] }
 0x365   :  { %v8148_v38 = vsel %vm2117_vm10, %v2167_v41, %v2169_v29  ;;  %2228 = vst.msk [vmem:[#allocation3 + $0x228] sm:$0xff] %vm2209_vm14, %v2169_v29  ;;  %v2149_v46 = vpop.permute.xlu0 %2148  ;;  %v1989_v37 = vpop.permute.xlu1 %1988  ;;  %v6151_v41 = vld [vmem:[#allocation3 + $0x50] sm:$0xff]  ;;  %3515 = vmatpush.msrb.mxu0 %v2609_v0 }
 0x366   :  { %2227 = vst [vmem:[#allocation3 + $0x220] sm:$0xff] %v8148_v38  ;;  %v8154_v57 = vsel %vm2117_vm10, %v8050_v49, %v2149_v46  ;;  %v8159_v22 = vsel %vm1933_vm8, %v8015_v42, %v1989_v37  ;;  %v2299_v49 = vld [vmem:[#allocation3 + $0x218] sm:$0xff]  ;;  %v8172_v42 = vpop.f32.mrf.mxu0  ;;  %v2693_v29 = vld [vmem:[#allocation8 + $0xbe8] sm:$0xff] }
 0x367   :  { %2212 = vst [vmem:[#allocation3 + $0x90] sm:$0xff] %v8154_v57  ;;  %3137 = vmatmul.f32.gmra.mxu1 %v8159_v22  ;;  %3551 = vmatpush.msrb.mxu2 %v2693_v29  ;;  %v2541_v28 = vld [vmem:[#allocation8 + $0x728] sm:$0xff] }
 0x368   :  { %2213 = vst.msk [vmem:[#allocation3 + $0x98] sm:$0xff] %vm2209_vm14, %v2149_v46  ;;  %v8162_v23 = vld [vmem:[#allocation3 + $0x208] sm:$0xff]  ;;  %3219 = vmatmul.f32.gmra.mxu0 %v2089_v3 }
 0x369   :  { %2046 = vst [vmem:[#allocation3 + $0x250] sm:$0xff] %v8159_v22  ;;  %3175 = vmatmul.f32.gmra.mxu3 %v8162_v23  ;;  %v6152_v3 = vld [vmem:[#allocation3 + $0x8] sm:$0xff] }
 0x36a   :  { %2047 = vst.msk [vmem:[#allocation3 + $0x258] sm:$0xff] %vm2025_vm11, %v1989_v37  ;;  %3257 = vmatmul.f32.gmra.mxu2 %v2299_v49  ;;  %v2549_v46 = vld [vmem:[#allocation8 + $0x768] sm:$0xff]  ;;  %v8228_v49 = vpop.f32.mrf.mxu2  ;;  %v8246_v25 = vpop.f32.mrf.mxu1 }
 0x36b   :  { %2137 = vst.msk [vmem:[#allocation3 + $0x258] sm:$0xff] %vm2114_vm12, %v8100_v59  ;;  %v2689_v37 = vld [vmem:[#allocation8 + $0xbc8] sm:$0xff]  ;;  %3473 = vmatpush.msrb.mxu3 %v2549_v46 }
 0x36c   :  { %9660 = vst [vmem:[#allocation34_spill] sm:$0xff] %v8172_v42  ;;  %3552 = vmatpush.msrb.mxu2 %v2689_v37  ;;  %v2593_v51 = vld [vmem:[#allocation8 + $0x8c8] sm:$0xff]  ;;  %v8250_v37 = vld [vmem:[#allocation3 + $0x138] sm:$0xff] }
 0x36d   :  { %v2161_v9 = vpop.permute.xlu0 %2160  ;;  %v2171_v27 = vpop.permute.xlu1 %2170  ;;  %9668 = vst [vmem:[#allocation20_spill] sm:$0xff] %v8228_v49  ;;  %3474 = vmatpush.msrb.mxu3 %v2545_v16  ;;  %v2461_v31 = vld [vmem:[#allocation8 + $0x4a8] sm:$0xff] }
 0x36e   :  { %v8176_v62 = vsel %vm2117_vm10, %v8102_v1, %v2161_v9  ;;  %2222 = vst.msk [vmem:[#allocation3 + $0x188] sm:$0xff] %vm2209_vm14, %v2161_v9  ;;  %v8189_v1 = vpop.f32.mrf.mxu0  ;;  %v2537_v7 = vld [vmem:[#allocation8 + $0x708] sm:$0xff] }
 0x36f   :  { %2221 = vst [vmem:[#allocation3 + $0x180] sm:$0xff] %v8176_v62  ;;  %3280 = vmatmul.f32.vlgmr.msra.gmra.mxu1 %v8119_v4  ;;  %v8224_v10 = vld [vmem:[#allocation3 + $0x98] sm:$0xff]  ;;  %3475 = vmatpush.msrb.mxu3 %v2541_v28  ;;  %v2457_v8 = vld [vmem:[#allocation8 + $0x488] sm:$0xff] }
 0x370   :  { %2229 = vst.msk [vmem:[#allocation3 + $0x268] sm:$0xff] %vm2206_vm13, %v2171_v27  ;;  %3362 = vmatmul.f32.vlgmr.msra.gmra.mxu0 %v6150_v36  ;;  %v2469_v36 = vld [vmem:[#allocation8 + $0x4e8] sm:$0xff] }
 0x371   :  { %9663 = vst [vmem:[#allocation32_spill] sm:$0xff] %v8189_v1  ;;  %3476 = vmatpush.msrb.mxu3 %v2537_v7  ;;  %v2673_v0 = vld [vmem:[#allocation8 + $0xb48] sm:$0xff] }
 0x372   :  { %v8184_v59 = vld [vmem:[#allocation3 + $0x258] sm:$0xff]  ;;  %v2529_v29 = vld [vmem:[#allocation8 + $0x6c8] sm:$0xff]  ;;  %v8259_v7 = vpop.f32.mrf.mxu1 }
 0x373   :  { %3178 = vmatmul.f32.gmra.mxu3 %v8184_v59  ;;  %v2669_v46 = vld [vmem:[#allocation8 + $0xb28] sm:$0xff] }
 0x374   :  { %v2665_v16 = vld [vmem:[#allocation8 + $0xb08] sm:$0xff] }
 0x375   :  { %v2173_v44 = vpop.permute.xlu0 %2172  ;;  %v2153_v58 = vpop.permute.xlu1 %2152  ;;  %v2661_v28 = vld [vmem:[#allocation8 + $0xae8] sm:$0xff] }
 0x376   :  { %v8192_v40 = vsel %vm2117_vm10, %v2171_v27, %v2173_v44  ;;  %2231 = vst.msk [vmem:[#allocation3 + $0x278] sm:$0xff] %vm2209_vm14, %v2173_v44  ;;  %v8200_v50 = vsel %vm2117_vm10, %v8025_v61, %v2153_v58  ;;  %v2489_v61 = vld [vmem:[#allocation8 + $0x588] sm:$0xff]  ;;  %v8211_v32 = vpop.f32.mrf.mxu0 }
 0x377   :  { %2230 = vst [vmem:[#allocation3 + $0x270] sm:$0xff] %v8192_v40  ;;  %v2309_v54 = vld [vmem:[#allocation3 + $0x268] sm:$0xff]  ;;  %3283 = vmatmul.f32.gmra.mxu1 %v8154_v57 }
 0x378   :  { %2215 = vst [vmem:[#allocation3 + $0xe0] sm:$0xff] %v8200_v50  ;;  %3260 = vmatmul.f32.gmra.mxu2 %v2309_v54  ;;  %3365 = vmatmul.f32.gmra.mxu0 %v6151_v41  ;;  %v2601_v27 = vld [vmem:[#allocation8 + $0x908] sm:$0xff]  ;;  %v8235_v54 = vpop.f32.mrf.mxu3 }
 0x379   :  { %2216 = vst.msk [vmem:[#allocation3 + $0xe8] sm:$0xff] %vm2209_vm14, %v2153_v58  ;;  %3431 = vmatpush.msrb.mxu1 %v2489_v61  ;;  %v2685_v44 = vld [vmem:[#allocation8 + $0xba8] sm:$0xff] }
 0x37a   :  { %9666 = vst [vmem:[#allocation19_spill] sm:$0xff] %v8211_v32  ;;  %v2597_v58 = vld [vmem:[#allocation8 + $0x8e8] sm:$0xff]  ;;  %3553 = vmatpush.msrb.mxu2 %v2685_v44 }
 0x37b   :  { %6076 = vmatmul.msk.f32.vlgmr.msra.gmra.mxu3 %vm2209_vm14, %v8205_v56  ;;  %3432 = vmatpush.msrb.mxu1 %v2485_v24  ;;  %v2681_v41 = vld [vmem:[#allocation8 + $0xb88] sm:$0xff] }
 0x37c   :  { %v2677_v24 = vld [vmem:[#allocation8 + $0xb68] sm:$0xff]  ;;  %3554 = vmatpush.msrb.mxu2 %v2681_v41 }
 0x37d   :  { %v2165_v48 = vpop.permute.xlu1 %2164  ;;  %3433 = vmatpush.msrb.mxu1 %v2481_v11  ;;  %v2533_v11 = vld [vmem:[#allocation8 + $0x6e8] sm:$0xff] }
 0x37e   :  { %v8219_v30 = vsel %vm2117_vm10, %v8069_v14, %v2165_v48  ;;  %2225 = vst.msk [vmem:[#allocation3 + $0x1d8] sm:$0xff] %vm2209_vm14, %v2165_v48  ;;  %v2605_v14 = vld [vmem:[#allocation8 + $0x928] sm:$0xff]  ;;  %v8230_v9 = vpop.f32.mrf.mxu0  ;;  %3555 = vmatpush.msrb.mxu2 %v2677_v24  ;;  %3477 = vmatpush.msrb.mxu3 %v2533_v11 }
 0x37f   :  { %2224 = vst [vmem:[#allocation3 + $0x1d0] sm:$0xff] %v8219_v30  ;;  %3286 = vmatmul.f32.gmra.mxu1 %v8200_v50  ;;  %3516 = vmatpush.msrb.mxu0 %v2605_v14  ;;  %v2589_v48 = vld [vmem:[#allocation8 + $0x8a8] sm:$0xff] }
 0x380   :  { %3403 = vmatmul.f32.vlgmr.msra.gmra.mxu2 %v6152_v3  ;;  %3368 = vmatmul.f32.gmra.mxu0 %v6153_v12  ;;  %v8237_v61 = vld [vmem:[#allocation3 + $0xe8] sm:$0xff]  ;;  %v8248_v14 = vpop.f32.mrf.mxu3 }
 0x381   :  { %3434 = vmatpush.msrb.mxu1 %v2477_v2  ;;  %3517 = vmatpush.msrb.mxu0 %v2601_v27  ;;  %v2585_v3 = vld [vmem:[#allocation8 + $0x888] sm:$0xff] }
 0x382   :  { %v6156_v2 = vld [vmem:[#allocation3 + $0xa8] sm:$0xff]  ;;  %3556 = vmatpush.msrb.mxu2 %v2673_v0  ;;  %3478 = vmatpush.msrb.mxu3 %v2529_v29 }
 0x383   :  { %6077 = vmatmul.msk.f32.gmra.mxu3 %vm2209_vm14, %v8224_v10  ;;  %3435 = vmatpush.msrb.mxu1 %v2473_v20  ;;  %v2453_v12 = vld [vmem:[#allocation8 + $0x468] sm:$0xff]  ;;  %v6157_v20 = vld [vmem:[#allocation3 + $0x140] sm:$0xff] }
 0x384   :  { %3518 = vmatpush.msrb.mxu0 %v2597_v58  ;;  %v2581_v27 = vld [vmem:[#allocation8 + $0x868] sm:$0xff]  ;;  %3557 = vmatpush.msrb.mxu2 %v2669_v46 }
 0x385   :  { %3436 = vmatpush.msrb.mxu1 %v2469_v36  ;;  %v2449_v36 = vld [vmem:[#allocation8 + $0x448] sm:$0xff] }
 0x386   :  { %v8243_v18 = vpop.f32.mrf.mxu0  ;;  %3519 = vmatpush.msrb.mxu0 %v2593_v51  ;;  %3558 = vmatpush.msrb.mxu2 %v2665_v16  ;;  %v2573_v41 = vld [vmem:[#allocation8 + $0x828] sm:$0xff]  ;;  %v6158_v51 = vld [vmem:[#allocation3 + $0xf8] sm:$0xff] }
 0x387   :  { %3289 = vmatmul.f32.gmra.mxu1 %v8135_v33  ;;  %v8241_v33 = vpop.f32.mrf.mxu2  ;;  %v2657_v11 = vld [vmem:[#allocation8 + $0xac8] sm:$0xff] }
 0x388   :  { %3406 = vmatmul.f32.gmra.mxu2 %v6154_v47  ;;  %3371 = vmatmul.f32.gmra.mxu0 %v6155_v63  ;;  %9669 = vst [vmem:[#allocation40_spill] sm:$0xff] %v8241_v33  ;;  %v2577_v47 = vld [vmem:[#allocation8 + $0x848] sm:$0xff]  ;;  %v8261_v24 = vpop.f32.mrf.mxu3 }
 0x389   :  { %3437 = vmatpush.msrb.mxu1 %v2465_v13  ;;  %3520 = vmatpush.msrb.mxu0 %v2589_v48  ;;  %v2445_v13 = vld [vmem:[#allocation8 + $0x428] sm:$0xff] }
 0x38a   :  { %v2521_v63 = vld [vmem:[#allocation8 + $0x688] sm:$0xff]  ;;  %3559 = vmatpush.msrb.mxu2 %v2661_v28  ;;  %v8276_v28 = vld [vmem:[#allocation3 + $0x1d8] sm:$0xff] }
 0x38b   :  { %6078 = vmatmul.msk.f32.gmra.mxu3 %vm2209_vm14, %v8237_v61  ;;  %3438 = vmatpush.msrb.mxu1 %v2461_v31  ;;  %v2441_v31 = vld [vmem:[#allocation8 + $0x408] sm:$0xff] }
 0x38c   :  { %3521 = vmatpush.msrb.mxu0 %v2585_v3  ;;  %v6159_v48 = vld [vmem:[#allocation3 + $0x190] sm:$0xff]  ;;  %v8263_v0 = vld [vmem:[#allocation3 + $0x188] sm:$0xff]  ;;  %3560 = vmatpush.msrb.mxu2 %v2657_v11 }
 0x38d   :  { %3439 = vmatpush.msrb.mxu1 %v2457_v8  ;;  %v2517_v8 = vld [vmem:[#allocation8 + $0x668] sm:$0xff] }
 0x38e   :  { %v8256_v58 = vpop.f32.mrf.mxu0  ;;  %3522 = vmatpush.msrb.mxu0 %v2581_v27  ;;  %v2569_v3 = vld [vmem:[#allocation8 + $0x808] sm:$0xff] }
 0x38f   :  { %3292 = vmatmul.f32.gmra.mxu1 %v8176_v62  ;;  %v2525_v62 = vld [vmem:[#allocation8 + $0x6a8] sm:$0xff]  ;;  %v8254_v44 = vpop.f32.mrf.mxu2 }
 0x390   :  { %3409 = vmatmul.f32.gmra.mxu2 %v6156_v2  ;;  %3374 = vmatmul.f32.gmra.mxu0 %v6157_v20  ;;  %v2513_v2 = vld [vmem:[#allocation8 + $0x648] sm:$0xff]  ;;  %v8274_v16 = vpop.f32.mrf.mxu3 }
 0x391   :  { %3440 = vmatpush.msrb.mxu1 %v2453_v12  ;;  %3479 = vmatpush.msrb.mxu3 %v2525_v62  ;;  %v2653_v12 = vld [vmem:[#allocation8 + $0xaa8] sm:$0xff]  ;;  %v8272_v62 = vpop.f32.mrf.mxu1 }
 0x392   :  { %3523 = vmatpush.msrb.mxu0 %v2577_v47  ;;  %3561 = vmatpush.msrb.mxu2 %v2653_v12  ;;  %v2509_v46 = vld [vmem:[#allocation8 + $0x628] sm:$0xff]  ;;  %v6161_v47 = vld [vmem:[#allocation3 + $0x1e0] sm:$0xff] }
 0x393   :  { %6079 = vmatmul.msk.f32.gmra.mxu3 %vm2209_vm14, %v8250_v37  ;;  %3441 = vmatpush.msrb.mxu1 %v2449_v36  ;;  %v2649_v27 = vld [vmem:[#allocation8 + $0xa88] sm:$0xff] }
 0x394   :  { %3480 = vmatpush.msrb.mxu3 %v2521_v63  ;;  %3524 = vmatpush.msrb.mxu0 %v2573_v41  ;;  %v6160_v36 = vld [vmem:[#allocation3 + $0x148] sm:$0xff] }
 0x395   :  { %3442 = vmatpush.msrb.mxu1 %v2445_v13  ;;  %v2505_v13 = vld [vmem:[#allocation8 + $0x608] sm:$0xff]  ;;  %3562 = vmatpush.msrb.mxu2 %v2649_v27 }
 0x396   :  { %v8269_v29 = vpop.f32.mrf.mxu0  ;;  %3481 = vmatpush.msrb.mxu3 %v2517_v8  ;;  %3525 = vmatpush.msrb.mxu0 %v2569_v3  ;;  %v2645_v63 = vld [vmem:[#allocation8 + $0xa68] sm:$0xff] }
 0x397   :  { %3295 = vmatmul.f32.gmra.mxu1 %v8219_v30  ;;  %v8267_v20 = vpop.f32.mrf.mxu2  ;;  %v2641_v41 = vld [vmem:[#allocation8 + $0xa48] sm:$0xff]  ;;  %3563 = vmatpush.msrb.mxu2 %v2645_v63  ;;  %v8302_v63 = vld [vmem:[#allocation3 + $0x278] sm:$0xff] }
 0x398   :  { %3412 = vmatmul.f32.gmra.mxu2 %v6158_v51  ;;  %3377 = vmatmul.f32.gmra.mxu0 %v6159_v48  ;;  %v6162_v48 = vld [vmem:[#allocation3 + $0x198] sm:$0xff]  ;;  %v2633_v8 = vld [vmem:[#allocation8 + $0xa08] sm:$0xff] }
 0x399   :  { %3443 = vmatpush.msrb.mxu1 %v2441_v31  ;;  %3482 = vmatpush.msrb.mxu3 %v2513_v2  ;;  %v8285_v11 = vpop.f32.mrf.mxu1  ;;  %v6163_v2 = vld [vmem:[#allocation3 + $0x230] sm:$0xff]  ;;  %v8289_v12 = vld [vmem:[#allocation3 + $0x228] sm:$0xff] }
 0x39a   :  { %3564 = vmatpush.msrb.mxu2 %v2641_v41  ;;  %9670 = vst [vmem:[#allocation37_spill] sm:$0xff] %v8285_v11  ;;  %v2881_v33 = vld [vmem:[#allocation8 + $0x11c8] sm:$0xff]  ;;  %v8342_v11 = vld [vmem:[#allocation3 + $0x100] sm:$0xff] }
 0x39b   :  { %6080 = vmatmul.msk.f32.gmra.mxu3 %vm2209_vm14, %v8263_v0  ;;  %v2749_v32 = vld [vmem:[#allocation8 + $0xda8] sm:$0xff]  ;;  %9682 = vst [vmem:[#allocation36_spill] sm:$0xff] %v8342_v11 }
 0x39c   :  { %3483 = vmatpush.msrb.mxu3 %v2509_v46  ;;  %v2741_v49 = vld [vmem:[#allocation8 + $0xd68] sm:$0xff] }
 0x39d   :  { %v2865_v1 = vld [vmem:[#allocation8 + $0x1148] sm:$0xff] }
 0x39e   :  { %3484 = vmatpush.msrb.mxu3 %v2505_v13  ;;  %v6166_v13 = vld [vmem:[#allocation3 + $0x20] sm:$0xff]  ;;  %v2713_v17 = vld [vmem:[#allocation8 + $0xc88] sm:$0xff] }
 0x39f   :  { %3298 = vmatmul.f32.gmra.mxu1 %v8148_v38  ;;  %v8280_v51 = vpop.f32.mrf.mxu2  ;;  %v2637_v38 = vld [vmem:[#allocation8 + $0xa28] sm:$0xff] }
 0x3a0   :  { %3415 = vmatmul.f32.gmra.mxu2 %v6160_v36  ;;  %3380 = vmatmul.f32.gmra.mxu0 %v6161_v47  ;;  %v8287_v3 = vpop.f32.mrf.mxu3  ;;  %v6164_v36 = vld [vmem:[#allocation3 + $0x1e8] sm:$0xff] }
 0x3a1   :  { %3565 = vmatpush.msrb.mxu2 %v2637_v38  ;;  %v8300_v47 = vpop.f32.mrf.mxu1 }
 0x3a2   :  { %9672 = vst [vmem:[#allocation33_spill] sm:$0xff] %v8300_v47  ;;  %v2877_v47 = vld [vmem:[#allocation8 + $0x11a8] sm:$0xff] }
 0x3a3   :  { %6081 = vmatmul.msk.f32.gmra.mxu3 %vm2209_vm14, %v8276_v28  ;;  %3566 = vmatpush.msrb.mxu2 %v2633_v8  ;;  %v2757_v8 = vld [vmem:[#allocation8 + $0xde8] sm:$0xff] }
 0x3a4   :  { %v8282_v31 = vpop.f32.mrf.mxu0  ;;  %3592 = vmatpush.msra.mxu1 %v2757_v8  ;;  %v2745_v8 = vld [vmem:[#allocation8 + $0xd88] sm:$0xff] }
 0x3a7   :  { %3301 = vmatmul.f32.gmra.mxu1 %v8192_v40  ;;  %v8293_v46 = vpop.f32.mrf.mxu2  ;;  %v8297_v40 = vld [vmem:[#allocation3 + $0x10] sm:$0xff] }
 0x3a8   :  { %3418 = vmatmul.f32.gmra.mxu2 %v6162_v48  ;;  %3383 = vmatmul.f32.gmra.mxu0 %v6163_v2  ;;  %v8304_v41 = vpop.f32.mrf.mxu3  ;;  %v2885_v2 = vld [vmem:[#allocation8 + $0x11e8] sm:$0xff] }
 0x3a9   :  { %9673 = vst [vmem:[#allocation31_spill] sm:$0xff] %v8304_v41  ;;  %3674 = vmatpush.msra.mxu0 %v2885_v2  ;;  %v8316_v39 = vpop.f32.mrf.mxu1  ;;  %v2873_v2 = vld [vmem:[#allocation8 + $0x1188] sm:$0xff] }
 0x3aa   :  { %9675 = vst [vmem:[#allocation35_spill] sm:$0xff] %v8316_v39  ;;  %v2869_v39 = vld [vmem:[#allocation8 + $0x1168] sm:$0xff] }
 0x3ab   :  { %6082 = vmatmul.msk.f32.gmra.mxu3 %vm2209_vm14, %v8289_v12  ;;  %3675 = vmatpush.msra.mxu0 %v2881_v33  ;;  %v2821_v33 = vld [vmem:[#allocation8 + $0xfe8] sm:$0xff] }
 0x3ac   :  { %v8295_v27 = vpop.f32.mrf.mxu0  ;;  %3633 = vmatpush.msra.mxu3 %v2821_v33  ;;  %v2733_v33 = vld [vmem:[#allocation8 + $0xd28] sm:$0xff] }
 0x3ad   :  { %9671 = vst [vmem:[#allocation28_spill] sm:$0xff] %v8295_v27  ;;  %3676 = vmatpush.msra.mxu0 %v2877_v47  ;;  %v2817_v27 = vld [vmem:[#allocation8 + $0xfc8] sm:$0xff] }
 0x3ae   :  { %3634 = vmatpush.msra.mxu3 %v2817_v27  ;;  %v2813_v47 = vld [vmem:[#allocation8 + $0xfa8] sm:$0xff] }
 0x3af   :  { %3444 = vmatmul.f32.vlgmr.msrb.gmra.mxu1 %v8297_v40  ;;  %3677 = vmatpush.msra.mxu0 %v2873_v2  ;;  %v8333_v27 = vld [vmem:[#allocation3 + $0x68] sm:$0xff] }
 0x3b0   :  { %3421 = vmatmul.f32.gmra.mxu2 %v6164_v36  ;;  %3526 = vmatmul.f32.vlgmr.msrb.gmra.mxu0 %v6166_v13  ;;  %v2753_v36 = vld [vmem:[#allocation8 + $0xdc8] sm:$0xff]  ;;  %v8313_v13 = vld [vmem:[#allocation3 + $0x60] sm:$0xff]  ;;  %9679 = vst [vmem:[#allocation41_spill] sm:$0xff] %v8333_v27 }
 0x3b1   :  { %3593 = vmatpush.msra.mxu1 %v2753_v36  ;;  %3678 = vmatpush.msra.mxu0 %v2869_v39  ;;  %v8331_v2 = vpop.f32.mrf.mxu1  ;;  %v2729_v39 = vld [vmem:[#allocation8 + $0xd08] sm:$0xff] }
 0x3b2   :  { %3635 = vmatpush.msra.mxu3 %v2813_v47  ;;  %v2725_v41 = vld [vmem:[#allocation8 + $0xce8] sm:$0xff] }
 0x3b3   :  { %6083 = vmatmul.msk.f32.gmra.mxu3 %vm2209_vm14, %v8302_v63  ;;  %3594 = vmatpush.msra.mxu1 %v2749_v32  ;;  %v2737_v32 = vld [vmem:[#allocation8 + $0xd48] sm:$0xff] }
 0x3b4   :  { %v8308_v38 = vpop.f32.mrf.mxu2  ;;  %v8310_v48 = vpop.f32.mrf.mxu0  ;;  %3679 = vmatpush.msra.mxu0 %v2865_v1  ;;  %v2853_v1 = vld [vmem:[#allocation8 + $0x10e8] sm:$0xff] }
 0x3b5   :  { %9674 = vst [vmem:[#allocation23_spill] sm:$0xff] %v8310_v48  ;;  %v8318_v48 = vld [vmem:[#allocation3 + $0x18] sm:$0xff]  ;;  %3595 = vmatpush.msra.mxu1 %v2745_v8  ;;  %v8328_v8 = vld [vmem:[#allocation3 + $0xb0] sm:$0xff] }
 0x3b6   :  { %v2721_v47 = vld [vmem:[#allocation8 + $0xcc8] sm:$0xff] }
 0x3b7   :  { %3447 = vmatmul.f32.gmra.mxu1 %v8313_v13 }
 0x3b8   :  { %3424 = vmatmul.f32.gmra.mxu2 %v8027_v52  ;;  %3529 = vmatmul.f32.gmra.mxu0 %v6168_v19  ;;  %v8325_v19 = vpop.f32.mrf.mxu3 }
 0x3b9   :  { %3596 = vmatpush.msra.mxu1 %v2741_v49  ;;  %9678 = vst [vmem:[#allocation43_spill] sm:$0xff] %v8325_v19  ;;  %v2809_v49 = vld [vmem:[#allocation8 + $0xf88] sm:$0xff] }
 0x3ba   :  { %v2861_v19 = vld [vmem:[#allocation8 + $0x1128] sm:$0xff]  ;;  %3636 = vmatpush.msra.mxu3 %v2809_v49 }
 0x3bb   :  { %3485 = vmatmul.f32.vlgmr.msrb.gmra.mxu3 %v8318_v48  ;;  %3597 = vmatpush.msra.mxu1 %v2737_v32  ;;  %v2857_v32 = vld [vmem:[#allocation8 + $0x1108] sm:$0xff] }
 0x3bc   :  { %v8321_v52 = vpop.f32.mrf.mxu2  ;;  %v8323_v36 = vpop.f32.mrf.mxu0  ;;  %3680 = vmatpush.msra.mxu0 %v2861_v19  ;;  %v6175_v19 = vld [vmem:[#allocation3 + $0x110] sm:$0xff] }
 0x3bd   :  { %9676 = vst [vmem:[#allocation26_spill] sm:$0xff] %v8321_v52  ;;  %3598 = vmatpush.msra.mxu1 %v2733_v33 }
 0x3be   :  { %9677 = vst [vmem:[#allocation38_spill] sm:$0xff] %v8323_v36  ;;  %v6171_v36 = vld [vmem:[#allocation3 + $0xc0] sm:$0xff]  ;;  %3681 = vmatpush.msra.mxu0 %v2857_v32  ;;  %v8347_v32 = vld [vmem:[#allocation3 + $0xb8] sm:$0xff] }
 0x3bf   :  { %3450 = vmatmul.f32.gmra.mxu1 %v8328_v8  ;;  %9683 = vst [vmem:[#allocation46_spill] sm:$0xff] %v8347_v32 }
 0x3c0   :  { %3567 = vmatmul.f32.vlgmr.msrb.gmra.mxu2 %v8035_v55  ;;  %3532 = vmatmul.f32.gmra.mxu0 %v6171_v36  ;;  %v2805_v55 = vld [vmem:[#allocation8 + $0xf68] sm:$0xff]  ;;  %v8340_v33 = vpop.f32.mrf.mxu3 }
 0x3c1   :  { %3599 = vmatpush.msra.mxu1 %v2729_v39  ;;  %3637 = vmatpush.msra.mxu3 %v2805_v55  ;;  %v2801_v36 = vld [vmem:[#allocation8 + $0xf48] sm:$0xff]  ;;  %9681 = vst [vmem:[#allocation45_spill] sm:$0xff] %v8340_v33 }
 0x3c2   :  { %v2797_v39 = vld [vmem:[#allocation8 + $0xf28] sm:$0xff]  ;;  %3682 = vmatpush.msra.mxu0 %v2853_v1 }
 0x3c3   :  { %3488 = vmatmul.f32.gmra.mxu3 %v8333_v27  ;;  %3600 = vmatpush.msra.mxu1 %v2725_v41  ;;  %v2849_v55 = vld [vmem:[#allocation8 + $0x10c8] sm:$0xff] }
 0x3c4   :  { %v8336_v52 = vpop.f32.mrf.mxu2  ;;  %v8345_v49 = vpop.f32.mrf.mxu1  ;;  %3638 = vmatpush.msra.mxu3 %v2801_v36  ;;  %v2717_v41 = vld [vmem:[#allocation8 + $0xca8] sm:$0xff]  ;;  %3683 = vmatpush.msra.mxu0 %v2849_v55 }
 0x3c5   :  { %9680 = vst [vmem:[#allocation30_spill] sm:$0xff] %v8336_v52  ;;  %v8338_v34 = vpop.f32.mrf.mxu0  ;;  %3601 = vmatpush.msra.mxu1 %v2721_v47  ;;  %v2793_v33 = vld [vmem:[#allocation8 + $0xf08] sm:$0xff] }
 0x3c6   :  { %3639 = vmatpush.msra.mxu3 %v2797_v39  ;;  %v2789_v36 = vld [vmem:[#allocation8 + $0xee8] sm:$0xff] }
 0x3c7   :  { %3453 = vmatmul.f32.gmra.mxu1 %v8342_v11  ;;  %v2841_v1 = vld [vmem:[#allocation8 + $0x1088] sm:$0xff] }
 0x3c8   :  { %3570 = vmatmul.f32.gmra.mxu2 %v6173_v35  ;;  %3535 = vmatmul.f32.gmra.mxu0 %v6175_v19  ;;  %v2845_v35 = vld [vmem:[#allocation8 + $0x10a8] sm:$0xff] }
 0x3c9   :  { %3602 = vmatpush.msra.mxu1 %v2717_v41  ;;  %3640 = vmatpush.msra.mxu3 %v2793_v33  ;;  %v2709_v47 = vld [vmem:[#allocation8 + $0xc68] sm:$0xff] }
 0x3ca   :  { %3684 = vmatpush.msra.mxu0 %v2845_v35  ;;  %v8354_v19 = vpop.f32.mrf.mxu3  ;;  %v2785_v39 = vld [vmem:[#allocation8 + $0xec8] sm:$0xff] }
 0x3cb   :  { %3491 = vmatmul.f32.gmra.mxu3 %v8347_v32  ;;  %3603 = vmatpush.msra.mxu1 %v2713_v17  ;;  %v2837_v55 = vld [vmem:[#allocation8 + $0x1068] sm:$0xff] }
 0x3cc   :  { %v8350_v52 = vpop.f32.mrf.mxu2  ;;  %3641 = vmatpush.msra.mxu3 %v2789_v36  ;;  %3685 = vmatpush.msra.mxu0 %v2841_v1  ;;  %v2705_v33 = vld [vmem:[#allocation8 + $0xc48] sm:$0xff]  ;;  %v8363_v17 = vpop.f32.mrf.mxu1 }
 0x3cd   :  { %9684 = vst [vmem:[#allocation49_spill] sm:$0xff] %v8350_v52  ;;  %v8352_v42 = vpop.f32.mrf.mxu0  ;;  %3604 = vmatpush.msra.mxu1 %v2709_v47  ;;  %v8360_v41 = vld [vmem:[#allocation3 + $0x108] sm:$0xff] }
 0x3ce   :  { %9686 = vst [vmem:[#allocation42_spill] sm:$0xff] %v8360_v41  ;;  %v2781_v35 = vld [vmem:[#allocation8 + $0xea8] sm:$0xff]  ;;  %3642 = vmatpush.msra.mxu3 %v2785_v39  ;;  %3686 = vmatpush.msra.mxu0 %v2837_v55 }
 0x3cf   :  { %3456 = vmatmul.f32.gmra.mxu1 %v8356_v6  ;;  %v2833_v52 = vld [vmem:[#allocation8 + $0x1048] sm:$0xff]  ;;  %v8370_v6 = vld [vmem:[#allocation3 + $0x1a0] sm:$0xff] }
 0x3d0   :  { %3573 = vmatmul.f32.gmra.mxu2 %v6177_v5  ;;  %3538 = vmatmul.f32.gmra.mxu0 %v8090_v53  ;;  %v2909_v5 = vld [vmem:[#allocation8 + $0x12a8] sm:$0xff]  ;;  %9687 = vst [vmem:[#allocation50_spill] sm:$0xff] %v8370_v6 }
 0x3d1   :  { %v2701_v53 = vld [vmem:[#allocation8 + $0xc28] sm:$0xff]  ;;  %3725 = vmatpush.msra.mxu2 %v2909_v5  ;;  %3605 = vmatpush.msra.mxu1 %v2705_v33 }
 0x3d2   :  { %3643 = vmatpush.msra.mxu3 %v2781_v35  ;;  %v2777_v1 = vld [vmem:[#allocation8 + $0xe88] sm:$0xff]  ;;  %3687 = vmatpush.msra.mxu0 %v2833_v52  ;;  %v8375_v52 = vld [vmem:[#allocation3 + $0x158] sm:$0xff] }
 0x3d3   :  { %3494 = vmatmul.f32.gmra.mxu3 %v8360_v41  ;;  %3606 = vmatpush.msra.mxu1 %v2701_v53  ;;  %v2829_v47 = vld [vmem:[#allocation8 + $0x1028] sm:$0xff] }
 0x3d4   :  { %v8365_v32 = vpop.f32.mrf.mxu2  ;;  %v2905_v41 = vld [vmem:[#allocation8 + $0x1288] sm:$0xff]  ;;  %3644 = vmatpush.msra.mxu3 %v2777_v1  ;;  %v8373_v5 = vpop.f32.mrf.mxu3  ;;  %3688 = vmatpush.msra.mxu0 %v2829_v47 }
 0x3d5   :  { %v8367_v36 = vpop.f32.mrf.mxu0  ;;  %v2697_v11 = vld [vmem:[#allocation8 + $0xc08] sm:$0xff]  ;;  %3726 = vmatpush.msra.mxu2 %v2905_v41 }
 0x3d6   :  { %v6181_v39 = vld [vmem:[#allocation3 + $0x1b0] sm:$0xff]  ;;  %3607 = vmatpush.msra.mxu1 %v2697_v11 }
 0x3d7   :  { %3459 = vmatmul.f32.gmra.mxu1 %v8370_v6  ;;  %v2773_v55 = vld [vmem:[#allocation8 + $0xe68] sm:$0xff] }
 0x3d8   :  { %3576 = vmatmul.f32.gmra.mxu2 %v8092_v15  ;;  %3541 = vmatmul.f32.gmra.mxu0 %v6181_v39  ;;  %v2825_v27 = vld [vmem:[#allocation8 + $0x1008] sm:$0xff]  ;;  %v3135_v39 = vpop.f32.mrf.mxu1 }
 0x3d9   :  { %v2769_v33 = vld [vmem:[#allocation8 + $0xe48] sm:$0xff]  ;;  %3645 = vmatpush.msra.mxu3 %v2773_v55  ;;  %3689 = vmatpush.msra.mxu0 %v2825_v27 }
 0x3da   :  { %v2901_v15 = vld [vmem:[#allocation8 + $0x1268] sm:$0xff] }
 0x3db   :  { %3497 = vmatmul.f32.gmra.mxu3 %v8375_v52  ;;  %v2897_v53 = vld [vmem:[#allocation8 + $0x1248] sm:$0xff]  ;;  %3727 = vmatpush.msra.mxu2 %v2901_v15 }
 0x3dc   :  { %v8378_v35 = vpop.f32.mrf.mxu2  ;;  %3646 = vmatpush.msra.mxu3 %v2769_v33  ;;  %v2765_v6 = vld [vmem:[#allocation8 + $0xe28] sm:$0xff]  ;;  %v8388_v33 = vpop.f32.mrf.mxu3 }
 0x3dd   :  { %v3217_v1 = vpop.f32.mrf.mxu0  ;;  %3728 = vmatpush.msra.mxu2 %v2897_v53  ;;  %v2893_v47 = vld [vmem:[#allocation8 + $0x1228] sm:$0xff] }
 0x3de   :  { %v8381_v41 = vld [vmem:[#allocation3 + $0x1f0] sm:$0xff]  ;;  %3647 = vmatpush.msra.mxu3 %v2765_v6  ;;  %v8385_v27 = vld [vmem:[#allocation3 + $0x1a8] sm:$0xff]  ;;  %v8396_v6 = vld [vmem:[#allocation3 + $0x240] sm:$0xff] }
 0x3df   :  { %9688 = vst [vmem:[#allocation44_spill] sm:$0xff] %v8381_v41  ;;  %3462 = vmatmul.f32.gmra.mxu1 %v8381_v41  ;;  %v2761_v11 = vld [vmem:[#allocation8 + $0xe08] sm:$0xff]  ;;  %3729 = vmatpush.msra.mxu2 %v2893_v47 }
 0x3e0   :  { %3579 = vmatmul.f32.gmra.mxu2 %v8113_v43  ;;  %3544 = vmatmul.f32.gmra.mxu0 %v8106_v26  ;;  %v2889_v55 = vld [vmem:[#allocation8 + $0x1208] sm:$0xff]  ;;  %9689 = vst [vmem:[#allocation54_spill] sm:$0xff] %v8385_v27  ;;  %v3013_v43 = vadd.f32 %v8274_v16, %v8259_v7 }
 0x3e1   :  { %3648 = vmatpush.msra.mxu3 %v2761_v11  ;;  %3730 = vmatpush.msra.mxu2 %v2889_v55  ;;  %9690 = vst [vmem:[#allocation53_spill] sm:$0xff] %v8396_v6  ;;  %v8401_v55 = vld [vmem:[#allocation3 + $0x1f8] sm:$0xff] }
 0x3e2   :  { %v3054_v26 = vadd.f32 %v8269_v29, %v3013_v43 }
 0x3e3   :  { %3500 = vmatmul.f32.gmra.mxu3 %v8385_v27 }
 0x3e4   :  { %v3138_v15 = vpop.f32.mrf.mxu1  ;;  %v3095_v47 = vadd.f32 %v8293_v46, %v3054_v26  ;;  %v8411_v46 = vld [vmem:[#allocation3 + $0x30] sm:$0xff] }
 0x3e5   :  { %v8392_v53 = vpop.f32.mrf.mxu2  ;;  %v3220_v41 = vpop.f32.mrf.mxu0 }
 0x3e6   :  { %v3136_v11 = vadd.f32 %v3135_v39, %v3095_v47  ;;  %v8419_v47 = vld [vmem:[#allocation3 + $0x248] sm:$0xff] }
 0x3e7   :  { %3465 = vmatmul.f32.gmra.mxu1 %v8396_v6 }
 0x3e8   :  { %3582 = vmatmul.f32.gmra.mxu2 %v8127_v60  ;;  %3547 = vmatmul.f32.gmra.mxu0 %v8159_v22  ;;  %v3016_v60 = vadd.f32 %v8287_v3, %v8272_v62  ;;  %v2374_v62 = vld [vmem:[#allocation8 + $0x1f0] sm:$0xff] }
 0x3e9   :  { %v2502_v3 = vld [vmem:[#allocation8 + $0x5f0] sm:$0xff]  ;;  %3756 = vmatpush.msrb.mxu1 %v2374_v62 }
 0x3ea   :  { %v3057_v22 = vadd.f32 %v8282_v31, %v3016_v60  ;;  %3838 = vmatpush.msrb.mxu0 %v2502_v3  ;;  %v2370_v31 = vld [vmem:[#allocation8 + $0x1d0] sm:$0xff] }
 0x3eb   :  { %3503 = vmatmul.f32.gmra.mxu3 %v8401_v55  ;;  %3757 = vmatpush.msrb.mxu1 %v2370_v31  ;;  %v2438_v3 = vld [vmem:[#allocation8 + $0x3f0] sm:$0xff] }
 0x3ec   :  { %v3176_v7 = vpop.f32.mrf.mxu3  ;;  %v8404_v27 = vpop.f32.mrf.mxu1  ;;  %v3098_v26 = vadd.f32 %v8308_v38, %v3057_v22  ;;  %v2366_v38 = vld [vmem:[#allocation8 + $0x1b0] sm:$0xff]  ;;  %3797 = vmatpush.msrb.mxu3 %v2438_v3 }
 0x3ed   :  { %v3177_v16 = vadd.f32 %v3176_v7, %v3136_v11  ;;  %v8406_v29 = vpop.f32.mrf.mxu0  ;;  %v3258_v6 = vpop.f32.mrf.mxu2  ;;  %3758 = vmatpush.msrb.mxu1 %v2366_v38  ;;  %v2490_v22 = vld [vmem:[#allocation8 + $0x590] sm:$0xff] }
 0x3ee   :  { %v2430_v38 = vld [vmem:[#allocation8 + $0x3b0] sm:$0xff] }
 0x3ef   :  { %v3218_v43 = vadd.f32 %v3217_v1, %v3177_v16  ;;  %3608 = vmatmul.f32.vlgmr.msra.gmra.mxu1 %v8411_v46  ;;  %v3139_v1 = vadd.f32 %v3138_v15, %v3098_v26  ;;  %v2494_v15 = vld [vmem:[#allocation8 + $0x5b0] sm:$0xff] }
 0x3f0   :  { %3585 = vmatmul.f32.gmra.mxu2 %v8162_v23  ;;  %3690 = vmatmul.f32.vlgmr.msra.gmra.mxu0 %v8119_v4  ;;  %v8427_v4 = vld [vmem:[#allocation3 + $0x80] sm:$0xff]  ;;  %v8431_v26 = vld [vmem:[#allocation3 + $0x38] sm:$0xff] }
 0x3f1   :  { %v8415_v39 = vadd.f32 %v3258_v6, %v3218_v43  ;;  %v2498_v6 = vld [vmem:[#allocation8 + $0x5d0] sm:$0xff] }
 0x3f2   :  { %3839 = vmatpush.msrb.mxu0 %v2498_v6  ;;  %v2362_v43 = vld [vmem:[#allocation8 + $0x190] sm:$0xff] }
 0x3f3   :  { %3506 = vmatmul.f32.gmra.mxu3 %v8419_v47  ;;  %3759 = vmatpush.msrb.mxu1 %v2362_v43  ;;  %v2434_v6 = vld [vmem:[#allocation8 + $0x3d0] sm:$0xff] }
 0x3f4   :  { %v8422_v23 = vpop.f32.mrf.mxu1  ;;  %3840 = vmatpush.msrb.mxu0 %v2494_v15  ;;  %3798 = vmatpush.msrb.mxu3 %v2434_v6  ;;  %v2482_v15 = vld [vmem:[#allocation8 + $0x550] sm:$0xff] }
 0x3f5   :  { %9691 = vst [vmem:[#allocation48_spill] sm:$0xff] %v8422_v23  ;;  %v8424_v7 = vpop.f32.mrf.mxu0  ;;  %v2350_v43 = vld [vmem:[#allocation8 + $0x130] sm:$0xff] }
 0x3f6   :  { %v3179_v11 = vpop.f32.mrf.mxu3  ;;  %3841 = vmatpush.msrb.mxu0 %v2490_v22  ;;  %3799 = vmatpush.msrb.mxu3 %v2430_v38  ;;  %v2426_v22 = vld [vmem:[#allocation8 + $0x390] sm:$0xff] }
 0x3f7   :  { %v3180_v16 = vadd.f32 %v3179_v11, %v3139_v1  ;;  %3611 = vmatmul.f32.gmra.mxu1 %v8427_v4  ;;  %v2358_v1 = vld [vmem:[#allocation8 + $0x170] sm:$0xff] }
 0x3f8   :  { %3588 = vmatmul.f32.gmra.mxu2 %v8184_v59  ;;  %3693 = vmatmul.f32.gmra.mxu0 %v8154_v57  ;;  %v2486_v11 = vld [vmem:[#allocation8 + $0x570] sm:$0xff] }
 0x3f9   :  { %v3221_v60 = vadd.f32 %v3220_v41, %v3180_v16  ;;  %3760 = vmatpush.msrb.mxu1 %v2358_v1  ;;  %3842 = vmatpush.msrb.mxu0 %v2486_v11  ;;  %v2354_v16 = vld [vmem:[#allocation8 + $0x150] sm:$0xff]  ;;  %v3004_v1 = vadd.f32 %v8235_v54, %v8213_v45  ;;  %v8450_v11 = vld [vmem:[#allocation3 + $0x88] sm:$0xff] }
 0x3fa   :  { %v2346_v3 = vld [vmem:[#allocation8 + $0x110] sm:$0xff]  ;;  %3800 = vmatpush.msrb.mxu3 %v2426_v22 }
 0x3fb   :  { %3649 = vmatmul.f32.vlgmr.msra.gmra.mxu3 %v8431_v26  ;;  %v3261_v62 = vpop.f32.mrf.mxu2  ;;  %3761 = vmatpush.msrb.mxu1 %v2354_v16  ;;  %v2566_v6 = vld [vmem:[#allocation8 + $0x7f0] sm:$0xff] }
 0x3fc   :  { %v8434_v59 = vadd.f32 %v3261_v62, %v3221_v60  ;;  %v8436_v41 = vpop.f32.mrf.mxu1  ;;  %v8444_v60 = vld [vmem:[#allocation3 + $0xd0] sm:$0xff]  ;;  %3843 = vmatpush.msrb.mxu0 %v2482_v15  ;;  %3879 = vmatpush.msrb.mxu2 %v2566_v6 }
 0x3fd   :  { %9692 = vst [vmem:[#allocation51_spill] sm:$0xff] %v8436_v41  ;;  %v8440_v31 = vpop.f32.mrf.mxu0  ;;  %3762 = vmatpush.msrb.mxu1 %v2350_v43  ;;  %v2478_v62 = vld [vmem:[#allocation8 + $0x530] sm:$0xff] }
 0x3fe   :  { %v8438_v57 = vpop.f32.mrf.mxu3  ;;  %v2422_v16 = vld [vmem:[#allocation8 + $0x370] sm:$0xff]  ;;  %3844 = vmatpush.msrb.mxu0 %v2478_v62 }
 0x3ff   :  { %9693 = vst [vmem:[#allocation52_spill] sm:$0xff] %v8438_v57  ;;  %3614 = vmatmul.f32.gmra.mxu1 %v8444_v60  ;;  %v2474_v38 = vld [vmem:[#allocation8 + $0x510] sm:$0xff]  ;;  %3801 = vmatpush.msrb.mxu3 %v2422_v16  ;;  %v3045_v57 = vadd.f32 %v8230_v9, %v3004_v1 }
 0x400   :  { %6084 = vmatmul.msk.f32.vlgmr.msra.gmra.mxu2 %vm2209_vm14, %v8205_v56  ;;  %3696 = vmatmul.f32.gmra.mxu0 %v8200_v50  ;;  %v2562_v50 = vld [vmem:[#allocation8 + $0x7d0] sm:$0xff] }
 0x401   :  { %v2342_v15 = vld [vmem:[#allocation8 + $0xf0] sm:$0xff]  ;;  %3763 = vmatpush.msrb.mxu1 %v2346_v3  ;;  %3880 = vmatpush.msrb.mxu2 %v2562_v50  ;;  %v3086_v3 = vadd.f32 %v8254_v44, %v3045_v57 }
 0x402   :  { %v2418_v23 = vld [vmem:[#allocation8 + $0x350] sm:$0xff]  ;;  %3845 = vmatpush.msrb.mxu0 %v2474_v38  ;;  %v3007_v38 = vadd.f32 %v8248_v14, %v8232_v21 }
 0x403   :  { %3652 = vmatmul.f32.gmra.mxu3 %v8450_v11  ;;  %v3404_v56 = vpop.f32.mrf.mxu2  ;;  %3764 = vmatpush.msrb.mxu1 %v2342_v15  ;;  %v2470_v22 = vld [vmem:[#allocation8 + $0x4f0] sm:$0xff] }
 0x404   :  { %v8454_v41 = vadd.f32 %v3404_v56, %v8406_v29  ;;  %v8456_v43 = vpop.f32.mrf.mxu1  ;;  %v2558_v29 = vld [vmem:[#allocation8 + $0x7b0] sm:$0xff]  ;;  %v8465_v56 = vld [vmem:[#allocation3 + $0x120] sm:$0xff]  ;;  %3802 = vmatpush.msrb.mxu3 %v2418_v23  ;;  %3846 = vmatpush.msrb.mxu0 %v2470_v22 }
 0x405   :  { %v8460_v54 = vpop.f32.mrf.mxu0  ;;  %v2338_v62 = vld [vmem:[#allocation8 + $0xd0] sm:$0xff]  ;;  %3881 = vmatpush.msrb.mxu2 %v2558_v29 }
 0x406   :  { %v8458_v45 = vpop.f32.mrf.mxu3  ;;  %v6194_v6 = vld [vmem:[#allocation3 + $0x130] sm:$0xff]  ;;  %v8472_v15 = vld [vmem:[#allocation3 + $0xd8] sm:$0xff]  ;;  %3765 = vmatpush.msrb.mxu1 %v2338_v62 }
 0x407   :  { %9694 = vst [vmem:[#allocation58_spill] sm:$0xff] %v8458_v45  ;;  %3617 = vmatmul.f32.gmra.mxu1 %v8465_v56  ;;  %v2414_v16 = vld [vmem:[#allocation8 + $0x330] sm:$0xff] }
 0x408   :  { %6085 = vmatmul.msk.f32.gmra.mxu2 %vm2209_vm14, %v8224_v10  ;;  %3699 = vmatmul.f32.gmra.mxu0 %v6194_v6  ;;  %v2554_v50 = vld [vmem:[#allocation8 + $0x790] sm:$0xff]  ;;  %v3127_v10 = vadd.f32 %v8331_v2, %v3086_v3 }
 0x409   :  { %v2466_v9 = vld [vmem:[#allocation8 + $0x4d0] sm:$0xff]  ;;  %3803 = vmatpush.msrb.mxu3 %v2414_v16  ;;  %3882 = vmatpush.msrb.mxu2 %v2554_v50 }
 0x40a   :  { %v2334_v1 = vld [vmem:[#allocation8 + $0xb0] sm:$0xff]  ;;  %v3168_v6 = vadd.f32 %v8354_v19, %v3127_v10  ;;  %3847 = vmatpush.msrb.mxu0 %v2466_v9 }
 0x40b   :  { %3655 = vmatmul.f32.gmra.mxu3 %v8472_v15  ;;  %v3407_v45 = vpop.f32.mrf.mxu2  ;;  %v2410_v44 = vld [vmem:[#allocation8 + $0x310] sm:$0xff]  ;;  %3766 = vmatpush.msrb.mxu1 %v2334_v1  ;;  %v6197_v1 = vld [vmem:[#allocation3 + $0x180] sm:$0xff] }
 0x40c   :  { %v2550_v57 = vld [vmem:[#allocation8 + $0x770] sm:$0xff]  ;;  %v8476_v23 = vadd.f32 %v3407_v45, %v8424_v7  ;;  %v8479_v21 = vpop.f32.mrf.mxu1  ;;  %3804 = vmatpush.msrb.mxu3 %v2410_v44  ;;  %v3048_v7 = vadd.f32 %v8243_v18, %v3007_v38  ;;  %v3209_v9 = vadd.f32 %v8338_v34, %v3168_v6 }
 0x40d   :  { %v2462_v29 = vld [vmem:[#allocation8 + $0x4b0] sm:$0xff]  ;;  %v8483_v2 = vpop.f32.mrf.mxu0  ;;  %3883 = vmatpush.msrb.mxu2 %v2550_v57 }
 0x40e   :  { %v2330_v22 = vld [vmem:[#allocation8 + $0x90] sm:$0xff]  ;;  %v8481_v14 = vpop.f32.mrf.mxu3  ;;  %3848 = vmatpush.msrb.mxu0 %v2462_v29  ;;  %v3089_v50 = vadd.f32 %v8267_v20, %v3048_v7  ;;  %v3250_v57 = vadd.f32 %v8365_v32, %v3209_v9  ;;  %v8495_v29 = vld [vmem:[#allocation3 + $0x128] sm:$0xff] }
 0x40f   :  { %v2406_v62 = vld [vmem:[#allocation8 + $0x2f0] sm:$0xff]  ;;  %3767 = vmatpush.msrb.mxu1 %v2330_v22 }
 0x410   :  { %v2546_v45 = vld [vmem:[#allocation8 + $0x750] sm:$0xff]  ;;  %6086 = vmatmul.msk.f32.gmra.mxu2 %vm2209_vm14, %v8237_v61  ;;  %3702 = vmatmul.f32.gmra.mxu0 %v6197_v1  ;;  %v3130_v61 = vadd.f32 %v8345_v49, %v3089_v50  ;;  %v3010_v49 = vadd.f32 %v8261_v24, %v8246_v25  ;;  %v8514_v24 = vld [vmem:[#allocation3 + $0x1c0] sm:$0xff] }
 0x411   :  { %v2458_v3 = vld [vmem:[#allocation8 + $0x490] sm:$0xff]  ;;  %3805 = vmatpush.msrb.mxu3 %v2406_v62  ;;  %3884 = vmatpush.msrb.mxu2 %v2546_v45  ;;  %v3291_v45 = vadd.f32 %v8456_v43, %v3250_v57 }
 0x412   :  { %v8488_v19 = vld [vmem:[#allocation3 + $0x170] sm:$0xff]  ;;  %3849 = vmatpush.msrb.mxu0 %v2458_v3  ;;  %v3171_v32 = vadd.f32 %v8373_v5, %v3130_v61  ;;  %v3051_v9 = vadd.f32 %v8256_v58, %v3010_v49  ;;  %v8522_v57 = vld [vmem:[#allocation3 + $0x178] sm:$0xff] }
 0x413   :  { %3620 = vmatmul.f32.gmra.mxu1 %v8488_v19  ;;  %v2326_v16 = vld [vmem:[#allocation8 + $0x70] sm:$0xff]  ;;  %3658 = vmatmul.f32.gmra.mxu3 %v8495_v29  ;;  %v3410_v20 = vpop.f32.mrf.mxu2 }
 0x414   :  { %v2402_v18 = vld [vmem:[#allocation8 + $0x2d0] sm:$0xff]  ;;  %3768 = vmatpush.msrb.mxu1 %v2326_v16  ;;  %v8499_v6 = vadd.f32 %v3410_v20, %v8440_v31  ;;  %v8505_v3 = vpop.f32.mrf.mxu1  ;;  %v3092_v43 = vadd.f32 %v8280_v51, %v3051_v9  ;;  %v8539_v9 = vld [vmem:[#allocation3 + $0x1c8] sm:$0xff] }
 0x415   :  { %v2542_v38 = vld [vmem:[#allocation8 + $0x730] sm:$0xff]  ;;  %3806 = vmatpush.msrb.mxu3 %v2402_v18  ;;  %v8507_v16 = vpop.f32.mrf.mxu0 }
 0x416   :  { %v2454_v10 = vld [vmem:[#allocation8 + $0x470] sm:$0xff]  ;;  %3885 = vmatpush.msrb.mxu2 %v2542_v38  ;;  %v3331_v50 = vpop.f32.mrf.mxu3  ;;  %v3212_v38 = vadd.f32 %v8352_v42, %v3171_v32  ;;  %v3133_v61 = vadd.f32 %v8363_v17, %v3092_v43 }
 0x417   :  { %v2322_v44 = vld [vmem:[#allocation8 + $0x50] sm:$0xff]  ;;  %3850 = vmatpush.msrb.mxu0 %v2454_v10  ;;  %v8510_v1 = vadd.f32 %v3331_v50, %v3291_v45 }
 0x418   :  { %v2398_v22 = vld [vmem:[#allocation8 + $0x2b0] sm:$0xff]  ;;  %3769 = vmatpush.msrb.mxu1 %v2322_v44  ;;  %6087 = vmatmul.msk.f32.gmra.mxu2 %vm2209_vm14, %v8250_v37  ;;  %v3253_v37 = vadd.f32 %v8378_v35, %v3212_v38 }
 0x419   :  { %v2538_v34 = vld [vmem:[#allocation8 + $0x710] sm:$0xff]  ;;  %3807 = vmatpush.msrb.mxu3 %v2398_v22  ;;  %3705 = vmatmul.f32.gmra.mxu0 %v8219_v30  ;;  %v3174_v30 = vadd.f32 %v8388_v33, %v3133_v61 }
 0x41a   :  { %v2450_v62 = vld [vmem:[#allocation8 + $0x450] sm:$0xff]  ;;  %3886 = vmatpush.msrb.mxu2 %v2538_v34  ;;  %v3294_v34 = vadd.f32 %v8479_v21, %v3253_v37  ;;  %v6202_v21 = vld [vmem:[#allocation3 + $0x220] sm:$0xff] }
 0x41b   :  { %v2318_v7 = vld [vmem:[#allocation8 + $0x30] sm:$0xff]  ;;  %3851 = vmatpush.msrb.mxu0 %v2450_v62  ;;  %3623 = vmatmul.f32.gmra.mxu1 %v8514_v24  ;;  %v3413_v20 = vpop.f32.mrf.mxu2  ;;  %v3215_v33 = vadd.f32 %v8367_v36, %v3174_v30 }
 0x41c   :  { %v2394_v31 = vld [vmem:[#allocation8 + $0x290] sm:$0xff]  ;;  %3770 = vmatpush.msrb.mxu1 %v2318_v7  ;;  %3661 = vmatmul.f32.gmra.mxu3 %v8522_v57  ;;  %v8526_v42 = vadd.f32 %v3413_v20, %v8460_v54  ;;  %v3299_v17 = vpop.f32.mrf.mxu1 }
 0x41d   :  { %v2534_v18 = vld [vmem:[#allocation8 + $0x6f0] sm:$0xff]  ;;  %3808 = vmatpush.msrb.mxu3 %v2394_v31  ;;  %v3381_v62 = vpop.f32.mrf.mxu0  ;;  %v3256_v31 = vadd.f32 %v8392_v53, %v3215_v33  ;;  %v8550_v53 = vld [vmem:[#allocation3 + $0x260] sm:$0xff]  ;;  %v3300_v20 = vadd.f32 %v3299_v17, %v8415_v39 }
 0x41e   :  { %v2446_v25 = vld [vmem:[#allocation8 + $0x430] sm:$0xff]  ;;  %3887 = vmatpush.msrb.mxu2 %v2534_v18  ;;  %v3334_v35 = vpop.f32.mrf.mxu3 }
 0x41f   :  { %v2314_v5 = vld [vmem:[#allocation8 + $0x10] sm:$0xff]  ;;  %3852 = vmatpush.msrb.mxu0 %v2446_v25  ;;  %v8530_v49 = vadd.f32 %v3334_v35, %v3294_v34  ;;  %v3297_v36 = vadd.f32 %v8505_v3, %v3256_v31  ;;  %v8564_v34 = vld [vmem:[#allocation3] sm:$0xff]  ;;  %v8568_v35 = vld [vmem:[#allocation3 + $0x268] sm:$0xff] }
 0x420   :  { %v2390_v58 = vld [vmem:[#allocation8 + $0x270] sm:$0xff]  ;;  %3771 = vmatpush.msrb.mxu1 %v2314_v5  ;;  %6088 = vmatmul.msk.f32.gmra.mxu2 %vm2209_vm14, %v8263_v0 }
 0x421   :  { %v2530_v10 = vld [vmem:[#allocation8 + $0x6d0] sm:$0xff]  ;;  %3809 = vmatpush.msrb.mxu3 %v2390_v58  ;;  %3708 = vmatmul.f32.gmra.mxu0 %v6202_v21 }
 0x422   :  { %v2442_v44 = vld [vmem:[#allocation8 + $0x410] sm:$0xff]  ;;  %3888 = vmatpush.msrb.mxu2 %v2530_v10 }
 0x423   :  { %v2386_v51 = vld [vmem:[#allocation8 + $0x250] sm:$0xff]  ;;  %3853 = vmatpush.msrb.mxu0 %v2442_v44  ;;  %v3416_v18 = vpop.f32.mrf.mxu2 }
 0x424   :  { %v2526_v22 = vld [vmem:[#allocation8 + $0x6b0] sm:$0xff]  ;;  %3810 = vmatpush.msrb.mxu3 %v2386_v51  ;;  %v8543_v25 = vadd.f32 %v3416_v18, %v8483_v2  ;;  %v3302_v5 = vpop.f32.mrf.mxu1 }
 0x425   :  { %3889 = vmatpush.msrb.mxu2 %v2526_v22  ;;  %v2382_v7 = vld [vmem:[#allocation8 + $0x230] sm:$0xff]  ;;  %3664 = vmatmul.f32.gmra.mxu3 %v8539_v9  ;;  %v3384_v38 = vpop.f32.mrf.mxu0 }
 0x426   :  { %v2522_v32 = vld [vmem:[#allocation8 + $0x690] sm:$0xff]  ;;  %3811 = vmatpush.msrb.mxu3 %v2382_v7  ;;  %v3337_v43 = vpop.f32.mrf.mxu3 }
 0x427   :  { %v8534_v54 = vld [vmem:[#allocation3 + $0x210] sm:$0xff]  ;;  %3890 = vmatpush.msrb.mxu2 %v2522_v32  ;;  %v8546_v10 = vadd.f32 %v3337_v43, %v3297_v36  ;;  %v8553_v61 = vld [vmem:[#allocation3 + $0x218] sm:$0xff]  ;;  %v3303_v32 = vadd.f32 %v3302_v5, %v8434_v59  ;;  %v8586_v36 = vld [vmem:[#allocation3 + $0x8] sm:$0xff] }
 0x428   :  { %3626 = vmatmul.f32.gmra.mxu1 %v8534_v54  ;;  %v2378_v45 = vld [vmem:[#allocation8 + $0x210] sm:$0xff]  ;;  %6089 = vmatmul.msk.f32.gmra.mxu2 %vm2209_vm14, %v8276_v28 }
 0x429   :  { %v2518_v50 = vld [vmem:[#allocation8 + $0x670] sm:$0xff]  ;;  %3812 = vmatpush.msrb.mxu3 %v2378_v45  ;;  %9695 = vst [vmem:[#allocation55_spill] sm:$0xff] %v8546_v10  ;;  %v2343_v10 = vld [vmem:[#allocation8 + $0xf8] sm:$0xff] }
 0x42a   :  { %v2514_v0 = vld [vmem:[#allocation8 + $0x650] sm:$0xff]  ;;  %3891 = vmatpush.msrb.mxu2 %v2518_v50 }
 0x42b   :  { %v2510_v58 = vld [vmem:[#allocation8 + $0x630] sm:$0xff]  ;;  %v3419_v3 = vpop.f32.mrf.mxu2 }
 0x42c   :  { %3892 = vmatpush.msrb.mxu2 %v2514_v0  ;;  %v2506_v2 = vld [vmem:[#allocation8 + $0x610] sm:$0xff]  ;;  %v8557_v37 = vadd.f32 %v3419_v3, %v8507_v16  ;;  %v3445_v28 = vpop.f32.mrf.mxu1 }
 0x42d   :  { %v6205_v44 = vld [vmem:[#allocation3 + $0x270] sm:$0xff]  ;;  %3667 = vmatmul.f32.gmra.mxu3 %v8553_v61  ;;  %v3527_v22 = vpop.f32.mrf.mxu0 }
 0x42e   :  { %3711 = vmatmul.f32.gmra.mxu0 %v6205_v44  ;;  %3893 = vmatpush.msrb.mxu2 %v2510_v58  ;;  %v3340_v51 = vpop.f32.mrf.mxu3  ;;  %v2630_v17 = vld [vmem:[#allocation8 + $0x9f0] sm:$0xff]  ;;  %v3446_v44 = vadd.f32 %v3445_v28, %v8454_v41 }
 0x42f   :  { %v8560_v30 = vadd.f32 %v3340_v51, %v3300_v20  ;;  %v2758_v7 = vld [vmem:[#allocation8 + $0xdf0] sm:$0xff]  ;;  %3920 = vmatpush.msra.mxu1 %v2630_v17 }
 0x430   :  { %3629 = vmatmul.f32.gmra.mxu1 %v8550_v53  ;;  %3894 = vmatpush.msrb.mxu2 %v2506_v2  ;;  %v2626_v45 = vld [vmem:[#allocation8 + $0x9d0] sm:$0xff] }
 0x431   :  { %9696 = vst [vmem:[#allocation59_spill] sm:$0xff] %v8560_v30  ;;  %6090 = vmatmul.msk.f32.gmra.mxu2 %vm2209_vm14, %v8289_v12  ;;  %4002 = vmatpush.msra.mxu0 %v2758_v7  ;;  %v2622_v59 = vld [vmem:[#allocation8 + $0x9b0] sm:$0xff] }
 0x432   :  { %3921 = vmatpush.msra.mxu1 %v2626_v45  ;;  %v2750_v31 = vld [vmem:[#allocation8 + $0xdb0] sm:$0xff] }
 0x433   :  { %v3422_v16 = vpop.f32.mrf.mxu2  ;;  %v2618_v18 = vld [vmem:[#allocation8 + $0x990] sm:$0xff] }
 0x434   :  { %v8571_v39 = vadd.f32 %v3422_v16, %v3381_v62  ;;  %v8574_v33 = vpop.f32.mrf.mxu1  ;;  %v8582_v62 = vld [vmem:[#allocation3 + $0x50] sm:$0xff]  ;;  %3922 = vmatpush.msra.mxu1 %v2622_v59  ;;  %v8601_v59 = vld [vmem:[#allocation3 + $0x58] sm:$0xff] }
 0x435   :  { %3670 = vmatmul.f32.gmra.mxu3 %v8568_v35  ;;  %v8576_v21 = vpop.f32.mrf.mxu0  ;;  %v2746_v0 = vld [vmem:[#allocation8 + $0xd90] sm:$0xff] }
 0x436   :  { %3854 = vmatmul.f32.vlgmr.msrb.gmra.mxu0 %v8297_v40  ;;  %v3343_v12 = vpop.f32.mrf.mxu3  ;;  %v2754_v40 = vld [vmem:[#allocation8 + $0xdd0] sm:$0xff]  ;;  %3923 = vmatpush.msra.mxu1 %v2618_v18 }
 0x437   :  { %v8578_v50 = vadd.f32 %v3343_v12, %v3303_v32  ;;  %4003 = vmatpush.msra.mxu0 %v2754_v40  ;;  %v2694_v43 = vld [vmem:[#allocation8 + $0xbf0] sm:$0xff]  ;;  %v8597_v32 = vld [vmem:[#allocation3 + $0xa0] sm:$0xff] }
 0x438   :  { %3772 = vmatmul.f32.vlgmr.msrb.gmra.mxu1 %v8564_v34  ;;  %3961 = vmatpush.msra.mxu3 %v2694_v43  ;;  %v2614_v58 = vld [vmem:[#allocation8 + $0x970] sm:$0xff]  ;;  %v3449_v43 = vadd.f32 %v8574_v33, %v8476_v23 }
 0x439   :  { %9697 = vst [vmem:[#allocation56_spill] sm:$0xff] %v8578_v50  ;;  %6091 = vmatmul.msk.f32.gmra.mxu2 %vm2209_vm14, %v8302_v63  ;;  %4004 = vmatpush.msra.mxu0 %v2750_v31  ;;  %v2742_v2 = vld [vmem:[#allocation8 + $0xd70] sm:$0xff]  ;;  %v8658_v50 = vld [vmem:[#allocation3 + $0x1e0] sm:$0xff] }
 0x43a   :  { %3924 = vmatpush.msra.mxu1 %v2614_v58  ;;  %v2690_v51 = vld [vmem:[#allocation8 + $0xbd0] sm:$0xff] }
 0x43b   :  { %v3425_v5 = vpop.f32.mrf.mxu2  ;;  %4005 = vmatpush.msra.mxu0 %v2746_v0  ;;  %v2610_v16 = vld [vmem:[#allocation8 + $0x950] sm:$0xff]  ;;  %3962 = vmatpush.msra.mxu3 %v2690_v51 }
 0x43c   :  { %v8589_v63 = vadd.f32 %v3425_v5, %v3384_v38  ;;  %v2686_v7 = vld [vmem:[#allocation8 + $0xbb0] sm:$0xff]  ;;  %3925 = vmatpush.msra.mxu1 %v2610_v16 }
 0x43d   :  { %3813 = vmatmul.f32.vlgmr.msrb.gmra.mxu3 %v8586_v36  ;;  %v8594_v20 = vpop.f32.mrf.mxu0  ;;  %4006 = vmatpush.msra.mxu0 %v2742_v2  ;;  %v2738_v38 = vld [vmem:[#allocation8 + $0xd50] sm:$0xff] }
 0x43e   :  { %3857 = vmatmul.f32.gmra.mxu0 %v8313_v13  ;;  %v8592_v13 = vpop.f32.mrf.mxu1  ;;  %v3486_v3 = vpop.f32.mrf.mxu3  ;;  %v2606_v41 = vld [vmem:[#allocation8 + $0x930] sm:$0xff]  ;;  %3963 = vmatpush.msra.mxu3 %v2686_v7  ;;  %v9698_v7 = vld [vmem:[#allocation41_spill] sm:$0xff] }
 0x43f   :  { %v3487_v17 = vadd.f32 %v3486_v3, %v3446_v44  ;;  %v2682_v12 = vld [vmem:[#allocation8 + $0xb90] sm:$0xff]  ;;  %4007 = vmatpush.msra.mxu0 %v2738_v38  ;;  %3926 = vmatpush.msra.mxu1 %v2606_v41 }
 0x440   :  { %3775 = vmatmul.f32.gmra.mxu1 %v8582_v62  ;;  %v2734_v45 = vld [vmem:[#allocation8 + $0xd30] sm:$0xff]  ;;  %3964 = vmatpush.msra.mxu3 %v2682_v12 }
 0x441   :  { %3895 = vmatmul.f32.vlgmr.msrb.gmra.mxu2 %v8318_v48  ;;  %v3528_v28 = vadd.f32 %v3527_v22, %v3487_v17  ;;  %v2602_v40 = vld [vmem:[#allocation8 + $0x910] sm:$0xff]  ;;  %4008 = vmatpush.msra.mxu0 %v2734_v45 }
 0x442   :  { %v2822_v48 = vld [vmem:[#allocation8 + $0xff0] sm:$0xff]  ;;  %3927 = vmatpush.msra.mxu1 %v2602_v40 }
 0x443   :  { %v3568_v31 = vpop.f32.mrf.mxu2  ;;  %v2678_v18 = vld [vmem:[#allocation8 + $0xb70] sm:$0xff]  ;;  %4043 = vmatpush.msra.mxu2 %v2822_v48 }
 0x444   :  { %v8604_v0 = vadd.f32 %v3568_v31, %v3528_v28  ;;  %v2818_v22 = vld [vmem:[#allocation8 + $0xfd0] sm:$0xff]  ;;  %3965 = vmatpush.msra.mxu3 %v2678_v18  ;;  %v8618_v31 = vld [vmem:[#allocation3 + $0xa8] sm:$0xff] }
 0x445   :  { %3816 = vmatmul.f32.gmra.mxu3 %v8601_v59  ;;  %v2730_v5 = vld [vmem:[#allocation8 + $0xd10] sm:$0xff]  ;;  %v8610_v44 = vpop.f32.mrf.mxu0  ;;  %4044 = vmatpush.msra.mxu2 %v2818_v22 }
 0x446   :  { %3860 = vmatmul.f32.gmra.mxu0 %v8328_v8  ;;  %v2598_v8 = vld [vmem:[#allocation8 + $0x8f0] sm:$0xff]  ;;  %v8608_v58 = vpop.f32.mrf.mxu1  ;;  %v3489_v2 = vpop.f32.mrf.mxu3 }
 0x447   :  { %v2674_v3 = vld [vmem:[#allocation8 + $0xb50] sm:$0xff]  ;;  %v3490_v51 = vadd.f32 %v3489_v2, %v3449_v43  ;;  %4009 = vmatpush.msra.mxu0 %v2730_v5  ;;  %3928 = vmatpush.msra.mxu1 %v2598_v8  ;;  %v3452_v43 = vadd.f32 %v8592_v13, %v8499_v6 }
 0x448   :  { %3778 = vmatmul.f32.gmra.mxu1 %v8597_v32  ;;  %v2814_v16 = vld [vmem:[#allocation8 + $0xfb0] sm:$0xff]  ;;  %3966 = vmatpush.msra.mxu3 %v2674_v3 }
 0x449   :  { %v2726_v17 = vld [vmem:[#allocation8 + $0xcf0] sm:$0xff]  ;;  %3898 = vmatmul.f32.gmra.mxu2 %v9698_v7  ;;  %v3531_v33 = vadd.f32 %v8576_v21, %v3490_v51 }
 0x44a   :  { %v8613_v38 = vld [vmem:[#allocation3 + $0xf0] sm:$0xff]  ;;  %4045 = vmatpush.msra.mxu2 %v2814_v16  ;;  %4010 = vmatpush.msra.mxu0 %v2726_v17 }
 0x44b   :  { %v2594_v23 = vld [vmem:[#allocation8 + $0x8d0] sm:$0xff]  ;;  %v3571_v48 = vpop.f32.mrf.mxu2 }
 0x44c   :  { %v9699_v41 = vld [vmem:[#allocation36_spill] sm:$0xff]  ;;  %3929 = vmatpush.msra.mxu1 %v2594_v23  ;;  %v8621_v5 = vadd.f32 %v3571_v48, %v3531_v33  ;;  %v9700_v33 = vld [vmem:[#allocation46_spill] sm:$0xff] }
 0x44d   :  { %v2670_v28 = vld [vmem:[#allocation8 + $0xb30] sm:$0xff]  ;;  %3819 = vmatmul.f32.gmra.mxu3 %v8618_v31  ;;  %v8627_v51 = vpop.f32.mrf.mxu0 }
 0x44e   :  { %3863 = vmatmul.f32.gmra.mxu0 %v9699_v41  ;;  %v2810_v12 = vld [vmem:[#allocation8 + $0xf90] sm:$0xff]  ;;  %3967 = vmatpush.msra.mxu3 %v2670_v28  ;;  %v8625_v2 = vpop.f32.mrf.mxu1  ;;  %v3492_v3 = vpop.f32.mrf.mxu3  ;;  %v8630_v41 = vld [vmem:[#allocation3 + $0x140] sm:$0xff]  ;;  %v9701_v28 = vld [vmem:[#allocation47_spill] sm:$0xff] }
 0x44f   :  { %v2722_v45 = vld [vmem:[#allocation8 + $0xcd0] sm:$0xff]  ;;  %4046 = vmatpush.msra.mxu2 %v2810_v12  ;;  %v3493_v17 = vadd.f32 %v3492_v3, %v3452_v43 }
 0x450   :  { %3781 = vmatmul.f32.gmra.mxu1 %v8613_v38  ;;  %v2590_v40 = vld [vmem:[#allocation8 + $0x8b0] sm:$0xff]  ;;  %4011 = vmatpush.msra.mxu0 %v2722_v45 }
 0x451   :  { %v2666_v18 = vld [vmem:[#allocation8 + $0xb10] sm:$0xff]  ;;  %3930 = vmatpush.msra.mxu1 %v2590_v40  ;;  %3901 = vmatmul.f32.gmra.mxu2 %v9700_v33  ;;  %v3534_v13 = vadd.f32 %v8594_v20, %v3493_v17 }
 0x452   :  { %v2806_v22 = vld [vmem:[#allocation8 + $0xf70] sm:$0xff]  ;;  %3968 = vmatpush.msra.mxu3 %v2666_v18 }
 0x453   :  { %v2718_v21 = vld [vmem:[#allocation8 + $0xcb0] sm:$0xff]  ;;  %4047 = vmatpush.msra.mxu2 %v2806_v22  ;;  %v3574_v22 = vpop.f32.mrf.mxu2 }
 0x454   :  { %v2586_v8 = vld [vmem:[#allocation8 + $0x890] sm:$0xff]  ;;  %4012 = vmatpush.msra.mxu0 %v2718_v21  ;;  %v8638_v43 = vadd.f32 %v3574_v22, %v3534_v13 }
 0x455   :  { %v2662_v16 = vld [vmem:[#allocation8 + $0xaf0] sm:$0xff]  ;;  %3931 = vmatpush.msra.mxu1 %v2586_v8 }
 0x456   :  { %v2802_v7 = vld [vmem:[#allocation8 + $0xf50] sm:$0xff]  ;;  %3866 = vmatmul.f32.gmra.mxu0 %v9701_v28  ;;  %3969 = vmatpush.msra.mxu3 %v2662_v16  ;;  %v3455_v16 = vadd.f32 %v8608_v58, %v8526_v42  ;;  %v3460_v17 = vpop.f32.mrf.mxu1 }
 0x457   :  { %v2714_v23 = vld [vmem:[#allocation8 + $0xc90] sm:$0xff]  ;;  %4048 = vmatpush.msra.mxu2 %v2802_v7  ;;  %v3495_v7 = vpop.f32.mrf.mxu3 }
 0x458   :  { %3784 = vmatmul.f32.gmra.mxu1 %v8630_v41  ;;  %v2582_v6 = vld [vmem:[#allocation8 + $0x870] sm:$0xff]  ;;  %4013 = vmatpush.msra.mxu0 %v2714_v23  ;;  %v8642_v23 = vpop.f32.mrf.mxu0  ;;  %v3496_v28 = vadd.f32 %v3495_v7, %v3455_v16 }
 0x459   :  { %v2658_v12 = vld [vmem:[#allocation8 + $0xad0] sm:$0xff]  ;;  %3932 = vmatpush.msra.mxu1 %v2582_v6 }
 0x45a   :  { %v2798_v45 = vld [vmem:[#allocation8 + $0xf30] sm:$0xff]  ;;  %3970 = vmatpush.msra.mxu3 %v2658_v12  ;;  %v9702_v12 = vld [vmem:[#allocation42_spill] sm:$0xff]  ;;  %v3537_v58 = vadd.f32 %v8610_v44, %v3496_v28  ;;  %v3458_v44 = vadd.f32 %v8625_v2, %v8543_v25 }
 0x45b   :  { %v2710_v40 = vld [vmem:[#allocation8 + $0xc70] sm:$0xff]  ;;  %4049 = vmatpush.msra.mxu2 %v2798_v45 }
 0x45c   :  { %v2578_v48 = vld [vmem:[#allocation8 + $0x850] sm:$0xff]  ;;  %4014 = vmatpush.msra.mxu0 %v2710_v40  ;;  %3904 = vmatmul.f32.gmra.mxu2 %v9702_v12  ;;  %v9703_v40 = vld [vmem:[#allocation50_spill] sm:$0xff] }
 0x45d   :  { %v8635_v18 = vld [vmem:[#allocation3 + $0xf8] sm:$0xff]  ;;  %3933 = vmatpush.msra.mxu1 %v2578_v48  ;;  %v8645_v45 = vld [vmem:[#allocation3 + $0x190] sm:$0xff] }
 0x45e   :  { %3822 = vmatmul.f32.gmra.mxu3 %v8635_v18  ;;  %v2654_v21 = vld [vmem:[#allocation8 + $0xab0] sm:$0xff]  ;;  %3869 = vmatmul.f32.gmra.mxu0 %v9703_v40 }
 0x45f   :  { %v2794_v8 = vld [vmem:[#allocation8 + $0xf10] sm:$0xff]  ;;  %3971 = vmatpush.msra.mxu3 %v2654_v21  ;;  %v3498_v28 = vpop.f32.mrf.mxu3 }
 0x460   :  { %v2706_v20 = vld [vmem:[#allocation8 + $0xc50] sm:$0xff]  ;;  %4050 = vmatpush.msra.mxu2 %v2794_v8  ;;  %3787 = vmatmul.f32.gmra.mxu1 %v8645_v45  ;;  %v8650_v8 = vld [vmem:[#allocation3 + $0x148] sm:$0xff]  ;;  %v3499_v12 = vadd.f32 %v3498_v28, %v3458_v44 }
 0x461   :  { %v2574_v3 = vld [vmem:[#allocation8 + $0x830] sm:$0xff]  ;;  %4015 = vmatpush.msra.mxu0 %v2706_v20  ;;  %v3577_v20 = vpop.f32.mrf.mxu2 }
 0x462   :  { %v2650_v33 = vld [vmem:[#allocation8 + $0xa90] sm:$0xff]  ;;  %3934 = vmatpush.msra.mxu1 %v2574_v3  ;;  %v8653_v7 = vadd.f32 %v3577_v20, %v3537_v58 }
 0x463   :  { %v2790_v6 = vld [vmem:[#allocation8 + $0xef0] sm:$0xff]  ;;  %3972 = vmatpush.msra.mxu3 %v2650_v33  ;;  %v3463_v33 = vpop.f32.mrf.mxu1 }
 0x464   :  { %v2702_v13 = vld [vmem:[#allocation8 + $0xc30] sm:$0xff]  ;;  %4051 = vmatpush.msra.mxu2 %v2790_v6  ;;  %v3545_v6 = vpop.f32.mrf.mxu0 }
 0x465   :  { %v2570_v42 = vld [vmem:[#allocation8 + $0x810] sm:$0xff]  ;;  %4016 = vmatpush.msra.mxu0 %v2702_v13  ;;  %3907 = vmatmul.f32.gmra.mxu2 %v8375_v52  ;;  %v3461_v52 = vadd.f32 %v3460_v17, %v8557_v37 }
 0x466   :  { %v2646_v48 = vld [vmem:[#allocation8 + $0xa70] sm:$0xff]  ;;  %3825 = vmatmul.f32.gmra.mxu3 %v8650_v8  ;;  %3935 = vmatpush.msra.mxu1 %v2570_v42  ;;  %v3540_v42 = vadd.f32 %v8627_v51, %v3499_v12 }
 0x467   :  { %v2786_v22 = vld [vmem:[#allocation8 + $0xed0] sm:$0xff]  ;;  %3973 = vmatpush.msra.mxu3 %v2646_v48  ;;  %v3501_v51 = vpop.f32.mrf.mxu3 }
 0x468   :  { %v2698_v21 = vld [vmem:[#allocation8 + $0xc10] sm:$0xff]  ;;  %4052 = vmatpush.msra.mxu2 %v2786_v22  ;;  %3790 = vmatmul.f32.gmra.mxu1 %v8658_v50  ;;  %v3502_v28 = vadd.f32 %v3501_v51, %v3461_v52 }
 0x469   :  { %v2642_v3 = vld [vmem:[#allocation8 + $0xa50] sm:$0xff]  ;;  %4017 = vmatpush.msra.mxu0 %v2698_v21  ;;  %v3580_v22 = vpop.f32.mrf.mxu2 }
 0x46a   :  { %v2782_v16 = vld [vmem:[#allocation8 + $0xeb0] sm:$0xff]  ;;  %3974 = vmatpush.msra.mxu3 %v2642_v3  ;;  %v8666_v20 = vadd.f32 %v3580_v22, %v3540_v42  ;;  %v3543_v42 = vadd.f32 %v8642_v23, %v3502_v28  ;;  %v8682_v23 = vld [vmem:[#allocation3 + $0x20] sm:$0xff] }
 0x46b   :  { %4053 = vmatpush.msra.mxu2 %v2782_v16  ;;  %v2638_v13 = vld [vmem:[#allocation8 + $0xa30] sm:$0xff]  ;;  %v3466_v3 = vpop.f32.mrf.mxu1 }
 0x46c   :  { %v2778_v40 = vld [vmem:[#allocation8 + $0xe90] sm:$0xff]  ;;  %3975 = vmatpush.msra.mxu3 %v2638_v13  ;;  %v3548_v16 = vpop.f32.mrf.mxu0  ;;  %v9705_v13 = vld [vmem:[#allocation54_spill] sm:$0xff] }
 0x46d   :  { %v9704_v58 = vld [vmem:[#allocation44_spill] sm:$0xff]  ;;  %4054 = vmatpush.msra.mxu2 %v2778_v40 }
 0x46e   :  { %3872 = vmatmul.f32.gmra.mxu0 %v9704_v58  ;;  %v2634_v25 = vld [vmem:[#allocation8 + $0xa10] sm:$0xff]  ;;  %3910 = vmatmul.f32.gmra.mxu2 %v9705_v13  ;;  %v9706_v58 = vld [vmem:[#allocation53_spill] sm:$0xff] }
 0x46f   :  { %v2774_v2 = vld [vmem:[#allocation8 + $0xe70] sm:$0xff]  ;;  %3976 = vmatpush.msra.mxu3 %v2634_v25  ;;  %v8675_v25 = vld [vmem:[#allocation3 + $0x1e8] sm:$0xff] }
 0x470   :  { %v8663_v48 = vld [vmem:[#allocation3 + $0x198] sm:$0xff]  ;;  %4055 = vmatpush.msra.mxu2 %v2774_v2  ;;  %v8670_v12 = vld [vmem:[#allocation3 + $0x230] sm:$0xff]  ;;  %v3464_v2 = vadd.f32 %v3463_v33, %v8571_v39 }
 0x471   :  { %3828 = vmatmul.f32.gmra.mxu3 %v8663_v48  ;;  %v2770_v21 = vld [vmem:[#allocation8 + $0xe50] sm:$0xff]  ;;  %3793 = vmatmul.f32.gmra.mxu1 %v8670_v12  ;;  %v3583_v37 = vpop.f32.mrf.mxu2  ;;  %v2375_v33 = vld [vmem:[#allocation8 + $0x1f8] sm:$0xff] }
 0x472   :  { %4056 = vmatpush.msra.mxu2 %v2770_v21  ;;  %v2766_v44 = vld [vmem:[#allocation8 + $0xe30] sm:$0xff]  ;;  %v8678_v17 = vadd.f32 %v3583_v37, %v3543_v42  ;;  %v3504_v21 = vpop.f32.mrf.mxu3  ;;  %v3467_v42 = vadd.f32 %v3466_v3, %v8589_v63  ;;  %4166 = vmatpush.msrb.mxu0 %v2375_v33 }
 0x473   :  { %v2762_v40 = vld [vmem:[#allocation8 + $0xe10] sm:$0xff]  ;;  %v3609_v22 = vpop.f32.mrf.mxu1  ;;  %v3505_v51 = vadd.f32 %v3504_v21, %v3464_v2  ;;  %v2371_v2 = vld [vmem:[#allocation8 + $0x1d8] sm:$0xff] }
 0x474   :  { %4057 = vmatpush.msra.mxu2 %v2766_v44  ;;  %v3691_v52 = vpop.f32.mrf.mxu0  ;;  %v8686_v28 = vld [vmem:[#allocation3 + $0x238] sm:$0xff]  ;;  %4167 = vmatpush.msrb.mxu0 %v2371_v2  ;;  %v8695_v21 = vld [vmem:[#allocation3 + $0x70] sm:$0xff] }
 0x475   :  { %v3546_v44 = vadd.f32 %v3545_v6, %v3505_v51  ;;  %v2886_v39 = vld [vmem:[#allocation8 + $0x11f0] sm:$0xff] }
 0x476   :  { %3875 = vmatmul.f32.gmra.mxu0 %v9706_v58  ;;  %4058 = vmatpush.msra.mxu2 %v2762_v40  ;;  %v2882_v6 = vld [vmem:[#allocation8 + $0x11d0] sm:$0xff] }
 0x477   :  { %3913 = vmatmul.f32.gmra.mxu2 %v8401_v55  ;;  %4084 = vmatpush.msrb.mxu1 %v2886_v39  ;;  %v2878_v51 = vld [vmem:[#allocation8 + $0x11b0] sm:$0xff]  ;;  %v8699_v39 = vld [vmem:[#allocation3 + $0x28] sm:$0xff] }
 0x478   :  { %v2874_v3 = vld [vmem:[#allocation8 + $0x1190] sm:$0xff] }
 0x479   :  { %3831 = vmatmul.f32.gmra.mxu3 %v8675_v25  ;;  %3936 = vmatmul.f32.vlgmr.msra.gmra.mxu1 %v8682_v23  ;;  %v3586_v13 = vpop.f32.mrf.mxu2 }
 0x47a   :  { %v8689_v40 = vadd.f32 %v3586_v13, %v3546_v44  ;;  %v3507_v55 = vpop.f32.mrf.mxu3  ;;  %4085 = vmatpush.msrb.mxu1 %v2882_v6  ;;  %v2367_v44 = vld [vmem:[#allocation8 + $0x1b8] sm:$0xff]  ;;  %v3610_v6 = vadd.f32 %v3609_v22, %v8604_v0  ;;  %v2858_v22 = vld [vmem:[#allocation8 + $0x1110] sm:$0xff] }
 0x47b   :  { %v3612_v58 = vpop.f32.mrf.mxu1  ;;  %4168 = vmatpush.msrb.mxu0 %v2367_v44  ;;  %v2363_v13 = vld [vmem:[#allocation8 + $0x198] sm:$0xff] }
 0x47c   :  { %v8692_v37 = vpop.f32.mrf.mxu0  ;;  %4086 = vmatpush.msrb.mxu1 %v2878_v51  ;;  %v2355_v44 = vld [vmem:[#allocation8 + $0x158] sm:$0xff] }
 0x47d   :  { %4169 = vmatpush.msrb.mxu0 %v2363_v13  ;;  %v2351_v0 = vld [vmem:[#allocation8 + $0x138] sm:$0xff] }
 0x47e   :  { %4018 = vmatmul.f32.vlgmr.msra.gmra.mxu0 %v8411_v46  ;;  %v3508_v46 = vadd.f32 %v3507_v55, %v3467_v42  ;;  %4087 = vmatpush.msrb.mxu1 %v2874_v3  ;;  %v2870_v42 = vld [vmem:[#allocation8 + $0x1170] sm:$0xff]  ;;  %v2359_v55 = vld [vmem:[#allocation8 + $0x178] sm:$0xff] }
 0x47f   :  { %3916 = vmatmul.f32.gmra.mxu2 %v8419_v47  ;;  %4170 = vmatpush.msrb.mxu0 %v2359_v55  ;;  %v2862_v3 = vld [vmem:[#allocation8 + $0x1130] sm:$0xff]  ;;  %v2439_v55 = vld [vmem:[#allocation8 + $0x3f8] sm:$0xff] }
 0x480   :  { %v3549_v63 = vadd.f32 %v3548_v16, %v3508_v46  ;;  %4088 = vmatpush.msrb.mxu1 %v2870_v42  ;;  %v2866_v46 = vld [vmem:[#allocation8 + $0x1150] sm:$0xff]  ;;  %4207 = vmatpush.msrb.mxu2 %v2439_v55 }
 0x481   :  { %3834 = vmatmul.f32.gmra.mxu3 %v8686_v28  ;;  %3939 = vmatmul.f32.gmra.mxu1 %v8695_v21  ;;  %v3589_v33 = vpop.f32.mrf.mxu2  ;;  %v2842_v55 = vld [vmem:[#allocation8 + $0x1090] sm:$0xff] }
 0x482   :  { %v8702_v47 = vadd.f32 %v3589_v33, %v3549_v63  ;;  %4089 = vmatpush.msrb.mxu1 %v2866_v46  ;;  %v8710_v63 = vld [vmem:[#allocation3 + $0xc0] sm:$0xff]  ;;  %4171 = vmatpush.msrb.mxu0 %v2355_v44  ;;  %v8714_v33 = vld [vmem:[#allocation3 + $0x78] sm:$0xff] }
 0x483   :  { %v8705_v16 = vpop.f32.mrf.mxu1 }
 0x484   :  { %v8707_v2 = vpop.f32.mrf.mxu0  ;;  %4090 = vmatpush.msrb.mxu1 %v2862_v3  ;;  %4172 = vmatpush.msrb.mxu0 %v2351_v0  ;;  %v2850_v3 = vld [vmem:[#allocation8 + $0x10d0] sm:$0xff] }
 0x486   :  { %4021 = vmatmul.f32.gmra.mxu0 %v8427_v4  ;;  %v3650_v4 = vpop.f32.mrf.mxu3  ;;  %4091 = vmatpush.msrb.mxu1 %v2858_v22  ;;  %v2431_v22 = vld [vmem:[#allocation8 + $0x3b8] sm:$0xff] }
 0x487   :  { %v3651_v51 = vadd.f32 %v3650_v4, %v3610_v6  ;;  %4059 = vmatmul.f32.vlgmr.msra.gmra.mxu2 %v8431_v26  ;;  %v2347_v26 = vld [vmem:[#allocation8 + $0x118] sm:$0xff] }
 0x488   :  { %v2435_v4 = vld [vmem:[#allocation8 + $0x3d8] sm:$0xff]  ;;  %4173 = vmatpush.msrb.mxu0 %v2347_v26  ;;  %v8730_v26 = vld [vmem:[#allocation3 + $0xc8] sm:$0xff] }
 0x489   :  { %3977 = vmatmul.f32.vlgmr.msra.gmra.mxu3 %v8699_v39  ;;  %3942 = vmatmul.f32.gmra.mxu1 %v8710_v63  ;;  %v3692_v13 = vadd.f32 %v3691_v52, %v3651_v51  ;;  %v3732_v42 = vpop.f32.mrf.mxu2  ;;  %v2854_v52 = vld [vmem:[#allocation8 + $0x10f0] sm:$0xff] }
 0x48a   :  { %4092 = vmatpush.msrb.mxu1 %v2854_v52  ;;  %4208 = vmatpush.msrb.mxu2 %v2435_v4  ;;  %v2423_v4 = vld [vmem:[#allocation8 + $0x378] sm:$0xff] }
 0x48b   :  { %v8717_v6 = vadd.f32 %v3732_v42, %v3692_v13  ;;  %v8720_v46 = vpop.f32.mrf.mxu1  ;;  %v8725_v13 = vld [vmem:[#allocation3 + $0x110] sm:$0xff]  ;;  %v2339_v42 = vld [vmem:[#allocation8 + $0xd8] sm:$0xff]  ;;  %4174 = vmatpush.msrb.mxu0 %v2343_v10 }
 0x48c   :  { %v8722_v44 = vpop.f32.mrf.mxu0  ;;  %4093 = vmatpush.msrb.mxu1 %v2850_v3  ;;  %4209 = vmatpush.msrb.mxu2 %v2431_v22  ;;  %v2335_v52 = vld [vmem:[#allocation8 + $0xb8] sm:$0xff] }
 0x48d   :  { %9707 = vst [vmem:[#allocation61_spill] sm:$0xff] %v8717_v6  ;;  %4175 = vmatpush.msrb.mxu0 %v2339_v42  ;;  %v8742_v42 = vld [vmem:[#allocation3 + $0x160] sm:$0xff] }
 0x48e   :  { %4024 = vmatmul.f32.gmra.mxu0 %v8444_v60  ;;  %v3613_v60 = vadd.f32 %v3612_v58, %v8621_v5  ;;  %v3653_v51 = vpop.f32.mrf.mxu3  ;;  %v2427_v5 = vld [vmem:[#allocation8 + $0x398] sm:$0xff]  ;;  %v2846_v58 = vld [vmem:[#allocation8 + $0x10b0] sm:$0xff] }
 0x48f   :  { %4062 = vmatmul.f32.gmra.mxu2 %v8450_v11  ;;  %4094 = vmatpush.msrb.mxu1 %v2846_v58  ;;  %v2910_v58 = vld [vmem:[#allocation8 + $0x12b0] sm:$0xff]  ;;  %v2399_v6 = vld [vmem:[#allocation8 + $0x2b8] sm:$0xff] }
 0x490   :  { %v3654_v30 = vadd.f32 %v3653_v51, %v3613_v60  ;;  %4210 = vmatpush.msrb.mxu2 %v2427_v5  ;;  %v2419_v51 = vld [vmem:[#allocation8 + $0x358] sm:$0xff]  ;;  %4176 = vmatpush.msrb.mxu0 %v2335_v52 }
 0x491   :  { %3980 = vmatmul.f32.gmra.mxu3 %v8714_v33  ;;  %3945 = vmatmul.f32.gmra.mxu1 %v8725_v13  ;;  %v3735_v11 = vpop.f32.mrf.mxu2  ;;  %v2415_v5 = vld [vmem:[#allocation8 + $0x338] sm:$0xff] }
 0x492   :  { %v3695_v0 = vadd.f32 %v8692_v37, %v3654_v30  ;;  %4095 = vmatpush.msrb.mxu1 %v2842_v55  ;;  %v2838_v30 = vld [vmem:[#allocation8 + $0x1070] sm:$0xff]  ;;  %4211 = vmatpush.msrb.mxu2 %v2423_v4 }
 0x493   :  { %v8737_v10 = vpop.f32.mrf.mxu1  ;;  %v2906_v55 = vld [vmem:[#allocation8 + $0x1290] sm:$0xff]  ;;  %4135 = vmatpush.msrb.mxu3 %v2910_v58 }
 0x494   :  { %v8733_v60 = vadd.f32 %v3735_v11, %v3695_v0  ;;  %v8739_v3 = vpop.f32.mrf.mxu0  ;;  %4096 = vmatpush.msrb.mxu1 %v2838_v30  ;;  %4212 = vmatpush.msrb.mxu2 %v2419_v51  ;;  %v2331_v0 = vld [vmem:[#allocation8 + $0x98] sm:$0xff]  ;;  %v2834_v4 = vld [vmem:[#allocation8 + $0x1050] sm:$0xff] }
 0x495   :  { %v2327_v11 = vld [vmem:[#allocation8 + $0x78] sm:$0xff]  ;;  %4177 = vmatpush.msrb.mxu0 %v2331_v0  ;;  %v2902_v30 = vld [vmem:[#allocation8 + $0x1270] sm:$0xff]  ;;  %4136 = vmatpush.msrb.mxu3 %v2906_v55 }
 0x496   :  { %4027 = vmatmul.f32.gmra.mxu0 %v8465_v56  ;;  %9708 = vst [vmem:[#allocation57_spill] sm:$0xff] %v8733_v60  ;;  %v3616_v56 = vadd.f32 %v8705_v16, %v8638_v43  ;;  %v3656_v37 = vpop.f32.mrf.mxu3  ;;  %v2411_v43 = vld [vmem:[#allocation8 + $0x318] sm:$0xff]  ;;  %4213 = vmatpush.msrb.mxu2 %v2415_v5  ;;  %v2898_v60 = vld [vmem:[#allocation8 + $0x1250] sm:$0xff] }
 0x497   :  { %4065 = vmatmul.f32.gmra.mxu2 %v8472_v15  ;;  %v8747_v52 = vld [vmem:[#allocation3 + $0x118] sm:$0xff]  ;;  %4178 = vmatpush.msrb.mxu0 %v2327_v11  ;;  %v8755_v55 = vld [vmem:[#allocation3 + $0x1b0] sm:$0xff] }
 0x498   :  { %v3657_v22 = vadd.f32 %v3656_v37, %v3616_v56  ;;  %4214 = vmatpush.msrb.mxu2 %v2411_v43  ;;  %v2407_v51 = vld [vmem:[#allocation8 + $0x2f8] sm:$0xff]  ;;  %4097 = vmatpush.msrb.mxu1 %v2834_v4  ;;  %v2894_v11 = vld [vmem:[#allocation8 + $0x1230] sm:$0xff] }
 0x499   :  { %3983 = vmatmul.f32.gmra.mxu3 %v8730_v26  ;;  %3948 = vmatmul.f32.gmra.mxu1 %v8742_v42  ;;  %v3738_v15 = vpop.f32.mrf.mxu2  ;;  %v2323_v56 = vld [vmem:[#allocation8 + $0x58] sm:$0xff] }
 0x49a   :  { %v3698_v16 = vadd.f32 %v8707_v2, %v3657_v22  ;;  %v2830_v2 = vld [vmem:[#allocation8 + $0x1030] sm:$0xff]  ;;  %v3619_v22 = vadd.f32 %v8720_v46, %v8653_v7  ;;  %4215 = vmatpush.msrb.mxu2 %v2407_v51  ;;  %4137 = vmatpush.msrb.mxu3 %v2902_v30  ;;  %v2395_v4 = vld [vmem:[#allocation8 + $0x298] sm:$0xff]  ;;  %v8760_v51 = vld [vmem:[#allocation3 + $0x168] sm:$0xff] }
 0x49b   :  { %v3624_v5 = vpop.f32.mrf.mxu1  ;;  %4179 = vmatpush.msrb.mxu0 %v2323_v56  ;;  %4098 = vmatpush.msrb.mxu1 %v2830_v2  ;;  %v2826_v7 = vld [vmem:[#allocation8 + $0x1010] sm:$0xff]  ;;  %v2391_v56 = vld [vmem:[#allocation8 + $0x278] sm:$0xff] }
 0x49c   :  { %v8750_v37 = vadd.f32 %v3738_v15, %v3698_v16  ;;  %v3706_v0 = vpop.f32.mrf.mxu0  ;;  %v2319_v16 = vld [vmem:[#allocation8 + $0x38] sm:$0xff]  ;;  %4138 = vmatpush.msrb.mxu3 %v2898_v60  ;;  %v2890_v30 = vld [vmem:[#allocation8 + $0x1210] sm:$0xff] }
 0x49d   :  { %4180 = vmatpush.msrb.mxu0 %v2319_v16  ;;  %v2315_v15 = vld [vmem:[#allocation8 + $0x18] sm:$0xff]  ;;  %4099 = vmatpush.msrb.mxu1 %v2826_v7 }
 0x49e   :  { %4030 = vmatmul.f32.gmra.mxu0 %v8488_v19  ;;  %v2403_v19 = vld [vmem:[#allocation8 + $0x2d8] sm:$0xff]  ;;  %v3659_v58 = vpop.f32.mrf.mxu3  ;;  %4139 = vmatpush.msrb.mxu3 %v2894_v11 }
 0x49f   :  { %v3660_v43 = vadd.f32 %v3659_v58, %v3619_v22  ;;  %4216 = vmatpush.msrb.mxu2 %v2403_v19  ;;  %4181 = vmatpush.msrb.mxu0 %v2315_v15  ;;  %v2387_v2 = vld [vmem:[#allocation8 + $0x258] sm:$0xff] }
 0x4a0   :  { %4068 = vmatmul.f32.gmra.mxu2 %v8495_v29  ;;  %4140 = vmatpush.msrb.mxu3 %v2890_v30  ;;  %v8768_v58 = vld [vmem:[#allocation3 + $0x200] sm:$0xff]  ;;  %v8784_v30 = vld [vmem:[#allocation3 + $0x208] sm:$0xff] }
 0x4a1   :  { %3986 = vmatmul.f32.gmra.mxu3 %v8747_v52  ;;  %3951 = vmatmul.f32.gmra.mxu1 %v8755_v55  ;;  %v3701_v46 = vadd.f32 %v8722_v44, %v3660_v43  ;;  %v3741_v29 = vpop.f32.mrf.mxu2  ;;  %v2383_v43 = vld [vmem:[#allocation8 + $0x238] sm:$0xff] }
 0x4a2   :  { %4217 = vmatpush.msrb.mxu2 %v2399_v6 }
 0x4a3   :  { %v8763_v19 = vadd.f32 %v3741_v29, %v3701_v46 }
 0x4a4   :  { %4218 = vmatpush.msrb.mxu2 %v2395_v4  ;;  %v3709_v60 = vpop.f32.mrf.mxu0 }
 0x4a5   :  { %v3627_v44 = vpop.f32.mrf.mxu1 }
 0x4a6   :  { %4033 = vmatmul.f32.gmra.mxu0 %v8514_v24  ;;  %v3622_v24 = vadd.f32 %v8737_v10, %v8666_v20  ;;  %v3662_v6 = vpop.f32.mrf.mxu3  ;;  %4219 = vmatpush.msrb.mxu2 %v2391_v56  ;;  %v2379_v20 = vld [vmem:[#allocation8 + $0x218] sm:$0xff] }
 0x4a7   :  { %v8773_v10 = vld [vmem:[#allocation3 + $0x1b8] sm:$0xff] }
 0x4a8   :  { %v3663_v22 = vadd.f32 %v3662_v6, %v3622_v24  ;;  %4071 = vmatmul.f32.gmra.mxu2 %v8522_v57  ;;  %v3625_v57 = vadd.f32 %v3624_v5, %v8678_v17  ;;  %v3628_v5 = vadd.f32 %v3627_v44, %v8689_v40  ;;  %v2503_v40 = vld [vmem:[#allocation8 + $0x5f8] sm:$0xff] }
 0x4a9   :  { %3989 = vmatmul.f32.gmra.mxu3 %v8760_v51  ;;  %3954 = vmatmul.f32.gmra.mxu1 %v8768_v58  ;;  %v3744_v7 = vpop.f32.mrf.mxu2  ;;  %v2631_v44 = vld [vmem:[#allocation8 + $0x9f8] sm:$0xff] }
 0x4aa   :  { %v3704_v16 = vadd.f32 %v8739_v3, %v3663_v22  ;;  %4220 = vmatpush.msrb.mxu2 %v2387_v2  ;;  %v8791_v22 = vld [vmem:[#allocation3 + $0x40] sm:$0xff]  ;;  %4248 = vmatpush.msra.mxu1 %v2503_v40 }
 0x4ab   :  { %4330 = vmatpush.msra.mxu0 %v2631_v44 }
 0x4ac   :  { %4221 = vmatpush.msrb.mxu2 %v2383_v43  ;;  %v8776_v46 = vadd.f32 %v3744_v7, %v3704_v16  ;;  %v3712_v15 = vpop.f32.mrf.mxu0 }
 0x4ad   :  { %v3630_v11 = vpop.f32.mrf.mxu1 }
 0x4ae   :  { %4036 = vmatmul.f32.gmra.mxu0 %v8534_v54  ;;  %9709 = vst [vmem:[#allocation65_spill] sm:$0xff] %v8776_v46  ;;  %4222 = vmatpush.msrb.mxu2 %v2379_v20  ;;  %v3665_v4 = vpop.f32.mrf.mxu3  ;;  %v8780_v54 = vld [vmem:[#allocation3 + $0x250] sm:$0xff]  ;;  %v3631_v20 = vadd.f32 %v3630_v11, %v8702_v47  ;;  %v2623_v47 = vld [vmem:[#allocation8 + $0x9b8] sm:$0xff] }
 0x4af   :  { %v3666_v29 = vadd.f32 %v3665_v4, %v3625_v57  ;;  %v2823_v46 = vld [vmem:[#allocation8 + $0xff8] sm:$0xff] }
 0x4b0   :  { %4074 = vmatmul.f32.gmra.mxu2 %v8539_v9 }
 0x4b1   :  { %3992 = vmatmul.f32.gmra.mxu3 %v8773_v10  ;;  %3957 = vmatmul.f32.gmra.mxu1 %v8780_v54  ;;  %v3707_v3 = vadd.f32 %v3706_v0, %v3666_v29  ;;  %v3747_v56 = vpop.f32.mrf.mxu2  ;;  %v8795_v0 = vld [vmem:[#allocation3 + $0x258] sm:$0xff]  ;;  %v8806_v29 = vld [vmem:[#allocation3 + $0x90] sm:$0xff] }
 0x4b3   :  { %v8787_v17 = vadd.f32 %v3747_v56, %v3707_v3  ;;  %v2495_v3 = vld [vmem:[#allocation8 + $0x5b8] sm:$0xff] }
 0x4b4   :  { %v3855_v2 = vpop.f32.mrf.mxu0  ;;  %v2491_v56 = vld [vmem:[#allocation8 + $0x598] sm:$0xff] }
 0x4b5   :  { %9710 = vst [vmem:[#allocation64_spill] sm:$0xff] %v8787_v17  ;;  %v3773_v24 = vpop.f32.mrf.mxu1  ;;  %v2663_v17 = vld [vmem:[#allocation8 + $0xaf8] sm:$0xff] }
 0x4b6   :  { %4039 = vmatmul.f32.gmra.mxu0 %v8550_v53  ;;  %v3668_v6 = vpop.f32.mrf.mxu3 }
 0x4b7   :  { %v3669_v9 = vadd.f32 %v3668_v6, %v3628_v5  ;;  %v2619_v5 = vld [vmem:[#allocation8 + $0x998] sm:$0xff]  ;;  %v8810_v6 = vld [vmem:[#allocation3 + $0x48] sm:$0xff] }
 0x4b8   :  { %4077 = vmatmul.f32.gmra.mxu2 %v8553_v61 }
 0x4b9   :  { %3995 = vmatmul.f32.gmra.mxu3 %v8784_v30  ;;  %4100 = vmatmul.f32.vlgmr.msrb.gmra.mxu1 %v8791_v22  ;;  %v3710_v53 = vadd.f32 %v3709_v60, %v3669_v9  ;;  %v3750_v43 = vpop.f32.mrf.mxu2  ;;  %v2499_v60 = vld [vmem:[#allocation8 + $0x5d8] sm:$0xff] }
 0x4ba   :  { %4249 = vmatpush.msra.mxu1 %v2499_v60 }
 0x4bb   :  { %v8798_v16 = vadd.f32 %v3750_v43, %v3710_v53  ;;  %v2487_v43 = vld [vmem:[#allocation8 + $0x578] sm:$0xff] }
 0x4bc   :  { %v8803_v57 = vpop.f32.mrf.mxu0  ;;  %4250 = vmatpush.msra.mxu1 %v2495_v3  ;;  %v8821_v3 = vld [vmem:[#allocation3 + $0xe0] sm:$0xff] }
 0x4bd   :  { %9711 = vst [vmem:[#allocation60_spill] sm:$0xff] %v8798_v16  ;;  %v8801_v7 = vpop.f32.mrf.mxu1  ;;  %v2675_v16 = vld [vmem:[#allocation8 + $0xb58] sm:$0xff] }
 0x4be   :  { %4182 = vmatmul.f32.vlgmr.msrb.gmra.mxu0 %v8564_v34  ;;  %v3671_v61 = vpop.f32.mrf.mxu3  ;;  %v2627_v34 = vld [vmem:[#allocation8 + $0x9d8] sm:$0xff]  ;;  %4251 = vmatpush.msra.mxu1 %v2491_v56 }
 0x4bf   :  { %v3672_v4 = vadd.f32 %v3671_v61, %v3631_v20  ;;  %4331 = vmatpush.msra.mxu0 %v2627_v34  ;;  %v2563_v20 = vld [vmem:[#allocation8 + $0x7d8] sm:$0xff] }
 0x4c0   :  { %4080 = vmatmul.f32.gmra.mxu2 %v8568_v35  ;;  %v2567_v35 = vld [vmem:[#allocation8 + $0x7f8] sm:$0xff]  ;;  %4252 = vmatpush.msra.mxu1 %v2487_v43 }
 0x4c1   :  { %3998 = vmatmul.f32.gmra.mxu3 %v8795_v0  ;;  %4103 = vmatmul.f32.gmra.mxu1 %v8806_v29  ;;  %v3713_v11 = vadd.f32 %v3712_v15, %v3672_v4  ;;  %v3753_v9 = vpop.f32.mrf.mxu2  ;;  %v2615_v15 = vld [vmem:[#allocation8 + $0x978] sm:$0xff] }
 0x4c2   :  { %4332 = vmatpush.msra.mxu0 %v2623_v47  ;;  %4289 = vmatpush.msra.mxu3 %v2567_v35  ;;  %v2483_v61 = vld [vmem:[#allocation8 + $0x558] sm:$0xff] }
 0x4c3   :  { %v8814_v53 = vadd.f32 %v3753_v9, %v3713_v11  ;;  %v2559_v34 = vld [vmem:[#allocation8 + $0x7b8] sm:$0xff]  ;;  %4253 = vmatpush.msra.mxu1 %v2483_v61 }
 0x4c4   :  { %4333 = vmatpush.msra.mxu0 %v2619_v5  ;;  %v8818_v44 = vpop.f32.mrf.mxu0  ;;  %4290 = vmatpush.msra.mxu3 %v2563_v20  ;;  %v2611_v4 = vld [vmem:[#allocation8 + $0x958] sm:$0xff] }
 0x4c5   :  { %9712 = vst [vmem:[#allocation66_spill] sm:$0xff] %v8814_v53  ;;  %v8816_v40 = vpop.f32.mrf.mxu1  ;;  %v2479_v47 = vld [vmem:[#allocation8 + $0x538] sm:$0xff] }
 0x4c6   :  { %4185 = vmatmul.f32.gmra.mxu0 %v8582_v62  ;;  %v3814_v62 = vpop.f32.mrf.mxu3  ;;  %4291 = vmatpush.msra.mxu3 %v2559_v34  ;;  %v2555_v56 = vld [vmem:[#allocation8 + $0x798] sm:$0xff] }
 0x4c7   :  { %4334 = vmatpush.msra.mxu0 %v2615_v15  ;;  %v3815_v60 = vadd.f32 %v3814_v62, %v3773_v24  ;;  %4254 = vmatpush.msra.mxu1 %v2479_v47  ;;  %v2607_v5 = vld [vmem:[#allocation8 + $0x938] sm:$0xff] }
 0x4c8   :  { %4223 = vmatmul.f32.vlgmr.msrb.gmra.mxu2 %v8586_v36  ;;  %v2475_v24 = vld [vmem:[#allocation8 + $0x518] sm:$0xff]  ;;  %4292 = vmatpush.msra.mxu3 %v2555_v56  ;;  %v8837_v56 = vld [vmem:[#allocation3 + $0x130] sm:$0xff] }
 0x4c9   :  { %6092 = vmatmul.msk.f32.vlgmr.msrb.gmra.mxu3 %vm2209_vm14, %v8810_v6  ;;  %4106 = vmatmul.f32.gmra.mxu1 %v8821_v3  ;;  %v3856_v11 = vadd.f32 %v3855_v2, %v3815_v60  ;;  %v8825_v9 = vld [vmem:[#allocation3 + $0x98] sm:$0xff]  ;;  %v3896_v36 = vpop.f32.mrf.mxu2 }
 0x4ca   :  { %4335 = vmatpush.msra.mxu0 %v2611_v4  ;;  %v2695_v35 = vld [vmem:[#allocation8 + $0xbf8] sm:$0xff]  ;;  %4255 = vmatpush.msra.mxu1 %v2475_v24 }
 0x4cb   :  { %v2551_v43 = vld [vmem:[#allocation8 + $0x778] sm:$0xff]  ;;  %v8829_v15 = vadd.f32 %v3896_v36, %v3856_v11  ;;  %4371 = vmatpush.msra.mxu2 %v2695_v35 }
 0x4cc   :  { %v2691_v2 = vld [vmem:[#allocation8 + $0xbd8] sm:$0xff]  ;;  %4336 = vmatpush.msra.mxu0 %v2607_v5  ;;  %v8833_v60 = vpop.f32.mrf.mxu0  ;;  %4293 = vmatpush.msra.mxu3 %v2551_v43 }
 0x4cd   :  { %v2471_v62 = vld [vmem:[#allocation8 + $0x4f8] sm:$0xff]  ;;  %v8831_v20 = vpop.f32.mrf.mxu1  ;;  %4372 = vmatpush.msra.mxu2 %v2691_v2  ;;  %v8842_v2 = vld [vmem:[#allocation3 + $0xe8] sm:$0xff] }
 0x4ce   :  { %4188 = vmatmul.f32.gmra.mxu0 %v8597_v32  ;;  %v2603_v32 = vld [vmem:[#allocation8 + $0x918] sm:$0xff]  ;;  %v3817_v61 = vpop.f32.mrf.mxu3  ;;  %4256 = vmatpush.msra.mxu1 %v2471_v62 }
 0x4cf   :  { %v2547_v34 = vld [vmem:[#allocation8 + $0x758] sm:$0xff]  ;;  %v3818_v4 = vadd.f32 %v3817_v61, %v8801_v7  ;;  %4337 = vmatpush.msra.mxu0 %v2603_v32 }
 0x4d0   :  { %v2687_v47 = vld [vmem:[#allocation8 + $0xbb8] sm:$0xff]  ;;  %4226 = vmatmul.f32.gmra.mxu2 %v8601_v59  ;;  %4294 = vmatpush.msra.mxu3 %v2547_v34 }
 0x4d1   :  { %6093 = vmatmul.msk.f32.gmra.mxu3 %vm2209_vm14, %v8825_v9  ;;  %v2599_v11 = vld [vmem:[#allocation8 + $0x8f8] sm:$0xff]  ;;  %4109 = vmatmul.f32.gmra.mxu1 %v8837_v56  ;;  %v3859_v24 = vadd.f32 %v8803_v57, %v3818_v4  ;;  %v3899_v59 = vpop.f32.mrf.mxu2 }
 0x4d2   :  { %v2467_v5 = vld [vmem:[#allocation8 + $0x4d8] sm:$0xff]  ;;  %4373 = vmatpush.msra.mxu2 %v2687_v47  ;;  %4338 = vmatpush.msra.mxu0 %v2599_v11 }
 0x4d3   :  { %v2543_v36 = vld [vmem:[#allocation8 + $0x738] sm:$0xff]  ;;  %4257 = vmatpush.msra.mxu1 %v2467_v5  ;;  %v8846_v61 = vadd.f32 %v3899_v59, %v3859_v24 }
 0x4d4   :  { %v2683_v35 = vld [vmem:[#allocation8 + $0xb98] sm:$0xff]  ;;  %4295 = vmatpush.msra.mxu3 %v2543_v36  ;;  %v8850_v47 = vpop.f32.mrf.mxu0 }
 0x4d5   :  { %v2595_v7 = vld [vmem:[#allocation8 + $0x8d8] sm:$0xff]  ;;  %4374 = vmatpush.msra.mxu2 %v2683_v35  ;;  %v8848_v34 = vpop.f32.mrf.mxu1 }
 0x4d6   :  { %4191 = vmatmul.f32.gmra.mxu0 %v8613_v38  ;;  %v2463_v43 = vld [vmem:[#allocation8 + $0x4b8] sm:$0xff]  ;;  %v3820_v4 = vpop.f32.mrf.mxu3 }
 0x4d7   :  { %v2539_v32 = vld [vmem:[#allocation8 + $0x718] sm:$0xff]  ;;  %4339 = vmatpush.msra.mxu0 %v2595_v7  ;;  %4258 = vmatpush.msra.mxu1 %v2463_v43  ;;  %v3821_v53 = vadd.f32 %v3820_v4, %v8816_v40 }
 0x4d8   :  { %v2679_v62 = vld [vmem:[#allocation8 + $0xb78] sm:$0xff]  ;;  %4296 = vmatpush.msra.mxu3 %v2539_v32  ;;  %4229 = vmatmul.f32.gmra.mxu2 %v8618_v31 }
 0x4d9   :  { %6094 = vmatmul.msk.f32.gmra.mxu3 %vm2209_vm14, %v8842_v2  ;;  %v2591_v38 = vld [vmem:[#allocation8 + $0x8b8] sm:$0xff]  ;;  %4375 = vmatpush.msra.mxu2 %v2679_v62  ;;  %v3862_v35 = vadd.f32 %v8818_v44, %v3821_v53  ;;  %v3902_v31 = vpop.f32.mrf.mxu2 }
 0x4da   :  { %v2459_v57 = vld [vmem:[#allocation8 + $0x498] sm:$0xff]  ;;  %4340 = vmatpush.msra.mxu0 %v2591_v38 }
 0x4db   :  { %v2535_v11 = vld [vmem:[#allocation8 + $0x6f8] sm:$0xff]  ;;  %4259 = vmatpush.msra.mxu1 %v2459_v57  ;;  %4376 = vmatpush.msra.mxu2 %v2675_v16  ;;  %v8863_v57 = vadd.f32 %v3902_v31, %v3862_v35  ;;  %v8871_v35 = vld [vmem:[#allocation3 + $0x1d0] sm:$0xff]  ;;  %v8876_v31 = vld [vmem:[#allocation3 + $0x188] sm:$0xff] }
 0x4dc   :  { %v2587_v5 = vld [vmem:[#allocation8 + $0x898] sm:$0xff]  ;;  %4297 = vmatpush.msra.mxu3 %v2535_v11  ;;  %v8867_v4 = vpop.f32.mrf.mxu0 }
 0x4dd   :  { %v8854_v24 = vld [vmem:[#allocation3 + $0x180] sm:$0xff]  ;;  %4341 = vmatpush.msra.mxu0 %v2587_v5  ;;  %v8859_v32 = vld [vmem:[#allocation3 + $0x138] sm:$0xff]  ;;  %v8865_v44 = vpop.f32.mrf.mxu1 }
 0x4de   :  { %4112 = vmatmul.f32.gmra.mxu1 %v8854_v24  ;;  %v2455_v36 = vld [vmem:[#allocation8 + $0x478] sm:$0xff]  ;;  %4194 = vmatmul.f32.gmra.mxu0 %v8630_v41 }
 0x4df   :  { %v2531_v7 = vld [vmem:[#allocation8 + $0x6d8] sm:$0xff]  ;;  %4260 = vmatpush.msra.mxu1 %v2455_v36 }
 0x4e0   :  { %v2671_v43 = vld [vmem:[#allocation8 + $0xb38] sm:$0xff]  ;;  %4298 = vmatpush.msra.mxu3 %v2531_v7  ;;  %4232 = vmatmul.f32.gmra.mxu2 %v8635_v18 }
 0x4e1   :  { %v2583_v40 = vld [vmem:[#allocation8 + $0x878] sm:$0xff]  ;;  %6095 = vmatmul.msk.f32.gmra.mxu3 %vm2209_vm14, %v8859_v32  ;;  %4377 = vmatpush.msra.mxu2 %v2671_v43  ;;  %v3823_v16 = vpop.f32.mrf.mxu3  ;;  %v3905_v18 = vpop.f32.mrf.mxu2 }
 0x4e2   :  { %v2451_v59 = vld [vmem:[#allocation8 + $0x458] sm:$0xff]  ;;  %4342 = vmatpush.msra.mxu0 %v2583_v40  ;;  %v3824_v5 = vadd.f32 %v3823_v16, %v8831_v20 }
 0x4e3   :  { %v2527_v62 = vld [vmem:[#allocation8 + $0x6b8] sm:$0xff]  ;;  %4261 = vmatpush.msra.mxu1 %v2451_v59 }
 0x4e4   :  { %v2667_v38 = vld [vmem:[#allocation8 + $0xb18] sm:$0xff]  ;;  %4299 = vmatpush.msra.mxu3 %v2527_v62  ;;  %v3865_v43 = vadd.f32 %v8833_v60, %v3824_v5 }
 0x4e5   :  { %v2579_v41 = vld [vmem:[#allocation8 + $0x858] sm:$0xff]  ;;  %4378 = vmatpush.msra.mxu2 %v2667_v38 }
 0x4e6   :  { %v2447_v53 = vld [vmem:[#allocation8 + $0x438] sm:$0xff]  ;;  %4343 = vmatpush.msra.mxu0 %v2579_v41  ;;  %4115 = vmatmul.f32.gmra.mxu1 %v8871_v35  ;;  %v8880_v41 = vadd.f32 %v3905_v18, %v3865_v43 }
 0x4e7   :  { %v2523_v11 = vld [vmem:[#allocation8 + $0x698] sm:$0xff]  ;;  %4262 = vmatpush.msra.mxu1 %v2447_v53  ;;  %4197 = vmatmul.f32.gmra.mxu0 %v8645_v45  ;;  %v3791_v45 = vpop.f32.mrf.mxu1 }
 0x4e8   :  { %v2575_v36 = vld [vmem:[#allocation8 + $0x838] sm:$0xff]  ;;  %4300 = vmatpush.msra.mxu3 %v2523_v11  ;;  %4379 = vmatpush.msra.mxu2 %v2663_v17 }
 0x4e9   :  { %v2443_v7 = vld [vmem:[#allocation8 + $0x418] sm:$0xff]  ;;  %4344 = vmatpush.msra.mxu0 %v2575_v36  ;;  %6096 = vmatmul.msk.f32.gmra.mxu3 %vm2209_vm14, %v8876_v31  ;;  %v3826_v60 = vpop.f32.mrf.mxu3 }
 0x4ea   :  { %v2519_v40 = vld [vmem:[#allocation8 + $0x678] sm:$0xff]  ;;  %4263 = vmatpush.msra.mxu1 %v2443_v7  ;;  %v3827_v16 = vadd.f32 %v3826_v60, %v8848_v34  ;;  %4235 = vmatmul.f32.gmra.mxu2 %v8650_v8  ;;  %v3908_v34 = vpop.f32.mrf.mxu2 }
 0x4eb   :  { %v2659_v59 = vld [vmem:[#allocation8 + $0xad8] sm:$0xff]  ;;  %4301 = vmatpush.msra.mxu3 %v2519_v40  ;;  %v3873_v53 = vpop.f32.mrf.mxu0 }
 0x4ec   :  { %v2571_v20 = vld [vmem:[#allocation8 + $0x818] sm:$0xff]  ;;  %4380 = vmatpush.msra.mxu2 %v2659_v59  ;;  %v3868_v36 = vadd.f32 %v8850_v47, %v3827_v16  ;;  %v8902_v16 = vld [vmem:[#allocation3 + $0x228] sm:$0xff] }
 0x4ed   :  { %v2515_v62 = vld [vmem:[#allocation8 + $0x658] sm:$0xff]  ;;  %4345 = vmatpush.msra.mxu0 %v2571_v20 }
 0x4ee   :  { %v2655_v38 = vld [vmem:[#allocation8 + $0xab8] sm:$0xff]  ;;  %4302 = vmatpush.msra.mxu3 %v2515_v62  ;;  %v8893_v8 = vadd.f32 %v3908_v34, %v3868_v36  ;;  %v6255_v34 = vld [vmem:[#allocation3 + $0x10] sm:$0xff] }
 0x4ef   :  { %4381 = vmatpush.msra.mxu2 %v2655_v38  ;;  %v2511_v17 = vld [vmem:[#allocation8 + $0x638] sm:$0xff]  ;;  %4200 = vmatmul.f32.gmra.mxu0 %v8658_v50  ;;  %v3794_v20 = vpop.f32.mrf.mxu1  ;;  %v8897_v38 = vld [vmem:[#allocation3 + $0x270] sm:$0xff] }
 0x4f0   :  { %v2651_v11 = vld [vmem:[#allocation8 + $0xa98] sm:$0xff]  ;;  %4303 = vmatpush.msra.mxu3 %v2511_v17 }
 0x4f1   :  { %v8884_v5 = vld [vmem:[#allocation3 + $0x220] sm:$0xff]  ;;  %4382 = vmatpush.msra.mxu2 %v2651_v11  ;;  %v8889_v40 = vld [vmem:[#allocation3 + $0x1d8] sm:$0xff] }
 0x4f2   :  { %4118 = vmatmul.f32.gmra.mxu1 %v8884_v5  ;;  %v2507_v7 = vld [vmem:[#allocation8 + $0x618] sm:$0xff]  ;;  %6097 = vmatmul.msk.f32.gmra.mxu3 %vm2209_vm14, %v8889_v40  ;;  %v3911_v11 = vpop.f32.mrf.mxu2 }
 0x4f3   :  { %v2647_v43 = vld [vmem:[#allocation8 + $0xa78] sm:$0xff]  ;;  %4304 = vmatpush.msra.mxu3 %v2507_v7  ;;  %v3876_v47 = vpop.f32.mrf.mxu0  ;;  %4238 = vmatmul.f32.gmra.mxu2 %v8663_v48 }
 0x4f4   :  { %v2643_v59 = vld [vmem:[#allocation8 + $0xa58] sm:$0xff]  ;;  %4383 = vmatpush.msra.mxu2 %v2647_v43  ;;  %v3829_v18 = vpop.f32.mrf.mxu3 }
 0x4f5   :  { %v2639_v50 = vld [vmem:[#allocation8 + $0xa38] sm:$0xff]  ;;  %v3830_v62 = vadd.f32 %v3829_v18, %v8865_v44  ;;  %4453 = vmatpush.msrb.mxu3 %v2823_v46  ;;  %v6259_v46 = vld [vmem:[#allocation3 + $0xb0] sm:$0xff] }
 0x4f6   :  { %4384 = vmatpush.msra.mxu2 %v2643_v59  ;;  %v2635_v60 = vld [vmem:[#allocation8 + $0xa18] sm:$0xff] }
 0x4f7   :  { %v3871_v17 = vadd.f32 %v8867_v4, %v3830_v62  ;;  %4203 = vmatmul.f32.gmra.mxu0 %v8670_v12  ;;  %v3937_v48 = vpop.f32.mrf.mxu1  ;;  %v8910_v12 = vld [vmem:[#allocation3 + $0x278] sm:$0xff] }
 0x4f8   :  { %4385 = vmatpush.msra.mxu2 %v2639_v50  ;;  %v2759_v50 = vld [vmem:[#allocation8 + $0xdf8] sm:$0xff] }
 0x4f9   :  { %v8906_v44 = vadd.f32 %v3911_v11, %v3871_v17  ;;  %v2887_v62 = vld [vmem:[#allocation8 + $0x11f8] sm:$0xff]  ;;  %4412 = vmatpush.msrb.mxu1 %v2759_v50 }
 0x4fa   :  { %4121 = vmatmul.f32.gmra.mxu1 %v8897_v38  ;;  %6098 = vmatmul.msk.f32.gmra.mxu3 %vm2209_vm14, %v8902_v16  ;;  %v3914_v59 = vpop.f32.mrf.mxu2  ;;  %v2883_v17 = vld [vmem:[#allocation8 + $0x11d8] sm:$0xff] }
 0x4fb   :  { %4386 = vmatpush.msra.mxu2 %v2635_v60  ;;  %v4019_v7 = vpop.f32.mrf.mxu0  ;;  %4494 = vmatpush.msrb.mxu0 %v2887_v62  ;;  %v6257_v11 = vld [vmem:[#allocation3 + $0x60] sm:$0xff]  ;;  %v6258_v50 = vld [vmem:[#allocation3 + $0x18] sm:$0xff] }
 0x4fc   :  { %v3832_v36 = vpop.f32.mrf.mxu3  ;;  %4241 = vmatmul.f32.gmra.mxu2 %v8675_v25 }
 0x4fd   :  { %v3833_v43 = vadd.f32 %v3832_v36, %v3791_v45  ;;  %4495 = vmatpush.msrb.mxu0 %v2883_v17  ;;  %v2751_v36 = vld [vmem:[#allocation8 + $0xdb8] sm:$0xff] }
 0x4ff   :  { %v3874_v4 = vadd.f32 %v3873_v53, %v3833_v43  ;;  %4346 = vmatmul.f32.vlgmr.msra.gmra.mxu0 %v8682_v23  ;;  %v8916_v60 = vpop.f32.mrf.mxu1  ;;  %v2755_v53 = vld [vmem:[#allocation8 + $0xdd8] sm:$0xff] }
 0x500   :  { %4413 = vmatpush.msrb.mxu1 %v2755_v53  ;;  %v2879_v43 = vld [vmem:[#allocation8 + $0x11b8] sm:$0xff]  ;;  %v3938_v53 = vadd.f32 %v3937_v48, %v8829_v15 }
 0x501   :  { %v8914_v18 = vadd.f32 %v3914_v59, %v3874_v4  ;;  %4496 = vmatpush.msrb.mxu0 %v2879_v43  ;;  %v2747_v4 = vld [vmem:[#allocation8 + $0xd98] sm:$0xff] }
 0x502   :  { %4264 = vmatmul.f32.vlgmr.msra.gmra.mxu1 %v6255_v34  ;;  %6099 = vmatmul.msk.f32.gmra.mxu3 %vm2209_vm14, %v8910_v12  ;;  %v2875_v59 = vld [vmem:[#allocation8 + $0x1198] sm:$0xff]  ;;  %v3917_v62 = vpop.f32.mrf.mxu2 }
 0x503   :  { %v8918_v45 = vpop.f32.mrf.mxu0  ;;  %4414 = vmatpush.msrb.mxu1 %v2751_v36  ;;  %4497 = vmatpush.msrb.mxu0 %v2875_v59  ;;  %v2815_v43 = vld [vmem:[#allocation8 + $0xfb8] sm:$0xff] }
 0x504   :  { %v3835_v25 = vpop.f32.mrf.mxu3  ;;  %4244 = vmatmul.f32.gmra.mxu2 %v8686_v28  ;;  %v2743_v28 = vld [vmem:[#allocation8 + $0xd78] sm:$0xff] }
 0x505   :  { %v3836_v23 = vadd.f32 %v3835_v25, %v3794_v20  ;;  %4415 = vmatpush.msrb.mxu1 %v2747_v4  ;;  %v2871_v25 = vld [vmem:[#allocation8 + $0x1178] sm:$0xff] }
 0x506   :  { %4498 = vmatpush.msrb.mxu0 %v2871_v25  ;;  %v2735_v4 = vld [vmem:[#allocation8 + $0xd38] sm:$0xff] }
 0x507   :  { %v3877_v34 = vadd.f32 %v3876_v47, %v3836_v23  ;;  %4349 = vmatmul.f32.gmra.mxu0 %v8695_v21  ;;  %v8925_v47 = vpop.f32.mrf.mxu1  ;;  %4416 = vmatpush.msrb.mxu1 %v2743_v28  ;;  %v2819_v23 = vld [vmem:[#allocation8 + $0xfd8] sm:$0xff] }
 0x508   :  { %4454 = vmatpush.msrb.mxu3 %v2819_v23  ;;  %v2811_v48 = vld [vmem:[#allocation8 + $0xf98] sm:$0xff] }
 0x509   :  { %v8922_v20 = vadd.f32 %v3917_v62, %v3877_v34  ;;  %v2867_v34 = vld [vmem:[#allocation8 + $0x1158] sm:$0xff]  ;;  %v6260_v62 = vld [vmem:[#allocation3 + $0x68] sm:$0xff] }
 0x50a   :  { %4267 = vmatmul.f32.gmra.mxu1 %v6257_v11  ;;  %4305 = vmatmul.f32.vlgmr.msra.gmra.mxu3 %v6258_v50  ;;  %v2739_v11 = vld [vmem:[#allocation8 + $0xd58] sm:$0xff]  ;;  %v4060_v28 = vpop.f32.mrf.mxu2 }
 0x50b   :  { %v8927_v17 = vpop.f32.mrf.mxu0  ;;  %4417 = vmatpush.msrb.mxu1 %v2739_v11  ;;  %4455 = vmatpush.msrb.mxu3 %v2815_v43  ;;  %v2863_v59 = vld [vmem:[#allocation8 + $0x1138] sm:$0xff] }
 0x50c   :  { %v3978_v21 = vpop.f32.mrf.mxu3  ;;  %4387 = vmatmul.f32.vlgmr.msra.gmra.mxu2 %v8699_v39  ;;  %4499 = vmatpush.msrb.mxu0 %v2867_v34  ;;  %v2731_v50 = vld [vmem:[#allocation8 + $0xd18] sm:$0xff] }
 0x50d   :  { %v3979_v36 = vadd.f32 %v3978_v21, %v3938_v53  ;;  %4418 = vmatpush.msrb.mxu1 %v2735_v4  ;;  %v2807_v25 = vld [vmem:[#allocation8 + $0xf78] sm:$0xff]  ;;  %4456 = vmatpush.msrb.mxu3 %v2811_v48 }
 0x50e   :  { %v2859_v53 = vld [vmem:[#allocation8 + $0x1118] sm:$0xff]  ;;  %4500 = vmatpush.msrb.mxu0 %v2863_v59 }
 0x50f   :  { %v4020_v15 = vadd.f32 %v4019_v7, %v3979_v36  ;;  %4352 = vmatmul.f32.gmra.mxu0 %v8710_v63  ;;  %v2727_v39 = vld [vmem:[#allocation8 + $0xcf8] sm:$0xff]  ;;  %v3941_v7 = vadd.f32 %v8916_v60, %v8846_v61  ;;  %v3946_v63 = vpop.f32.mrf.mxu1  ;;  %4419 = vmatpush.msrb.mxu1 %v2731_v50 }
 0x510   :  { %v8936_v11 = vadd.f32 %v3946_v63, %v8880_v41  ;;  %4457 = vmatpush.msrb.mxu3 %v2807_v25  ;;  %v2803_v43 = vld [vmem:[#allocation8 + $0xf58] sm:$0xff]  ;;  %4501 = vmatpush.msrb.mxu0 %v2859_v53 }
 0x511   :  { %v8931_v21 = vadd.f32 %v4060_v28, %v4020_v15  ;;  %4420 = vmatpush.msrb.mxu1 %v2727_v39  ;;  %v2723_v4 = vld [vmem:[#allocation8 + $0xcd8] sm:$0xff] }
 0x512   :  { %4270 = vmatmul.f32.gmra.mxu1 %v6259_v46  ;;  %4308 = vmatmul.f32.gmra.mxu3 %v6260_v62  ;;  %v2855_v46 = vld [vmem:[#allocation8 + $0x10f8] sm:$0xff]  ;;  %v4063_v50 = vpop.f32.mrf.mxu2 }
 0x513   :  { %v8938_v36 = vpop.f32.mrf.mxu0  ;;  %v6261_v15 = vld [vmem:[#allocation3 + $0x100] sm:$0xff]  ;;  %4458 = vmatpush.msrb.mxu3 %v2803_v43  ;;  %4502 = vmatpush.msrb.mxu0 %v2855_v46  ;;  %v6262_v59 = vld [vmem:[#allocation3 + $0xb8] sm:$0xff] }
 0x514   :  { %v3981_v23 = vpop.f32.mrf.mxu3  ;;  %4390 = vmatmul.f32.gmra.mxu2 %v8714_v33  ;;  %v2799_v41 = vld [vmem:[#allocation8 + $0xf38] sm:$0xff]  ;;  %4421 = vmatpush.msrb.mxu1 %v2723_v4 }
 0x515   :  { %v3982_v34 = vadd.f32 %v3981_v23, %v3941_v7  ;;  %v2851_v60 = vld [vmem:[#allocation8 + $0x10d8] sm:$0xff]  ;;  %4459 = vmatpush.msrb.mxu3 %v2799_v41 }
 0x516   :  { %v2719_v48 = vld [vmem:[#allocation8 + $0xcb8] sm:$0xff]  ;;  %4503 = vmatpush.msrb.mxu0 %v2851_v60 }
 0x517   :  { %v4023_v61 = vadd.f32 %v8918_v45, %v3982_v34  ;;  %4355 = vmatmul.f32.gmra.mxu0 %v8725_v13  ;;  %v2795_v62 = vld [vmem:[#allocation8 + $0xf18] sm:$0xff]  ;;  %v3944_v45 = vadd.f32 %v8925_v47, %v8863_v57  ;;  %v8947_v13 = vpop.f32.mrf.mxu1  ;;  %4422 = vmatpush.msrb.mxu1 %v2719_v48  ;;  %v6263_v34 = vld [vmem:[#allocation3 + $0x150] sm:$0xff] }
 0x518   :  { %v2847_v28 = vld [vmem:[#allocation8 + $0x10b8] sm:$0xff]  ;;  %4460 = vmatpush.msrb.mxu3 %v2795_v62 }
 0x519   :  { %v8943_v25 = vadd.f32 %v4063_v50, %v4023_v61  ;;  %v2715_v33 = vld [vmem:[#allocation8 + $0xc98] sm:$0xff]  ;;  %4504 = vmatpush.msrb.mxu0 %v2847_v28 }
 0x51a   :  { %4273 = vmatmul.f32.gmra.mxu1 %v6261_v15  ;;  %4311 = vmatmul.f32.gmra.mxu3 %v6262_v59  ;;  %v2791_v7 = vld [vmem:[#allocation8 + $0xef8] sm:$0xff]  ;;  %v6264_v15 = vld [vmem:[#allocation3 + $0x108] sm:$0xff]  ;;  %v4066_v61 = vpop.f32.mrf.mxu2 }
 0x51b   :  { %v8949_v39 = vpop.f32.mrf.mxu0  ;;  %4423 = vmatpush.msrb.mxu1 %v2715_v33  ;;  %v2843_v23 = vld [vmem:[#allocation8 + $0x1098] sm:$0xff]  ;;  %4461 = vmatpush.msrb.mxu3 %v2791_v7 }
 0x51c   :  { %v3984_v53 = vpop.f32.mrf.mxu3  ;;  %v2711_v43 = vld [vmem:[#allocation8 + $0xc78] sm:$0xff]  ;;  %4393 = vmatmul.f32.gmra.mxu2 %v8730_v26  ;;  %4505 = vmatpush.msrb.mxu0 %v2843_v23 }
 0x51d   :  { %v3985_v63 = vadd.f32 %v3984_v53, %v3944_v45  ;;  %v2787_v57 = vld [vmem:[#allocation8 + $0xed8] sm:$0xff]  ;;  %4424 = vmatpush.msrb.mxu1 %v2711_v43 }
 0x51e   :  { %v2839_v47 = vld [vmem:[#allocation8 + $0x1078] sm:$0xff]  ;;  %4462 = vmatpush.msrb.mxu3 %v2787_v57 }
 0x51f   :  { %v4026_v46 = vadd.f32 %v8927_v17, %v3985_v63  ;;  %4358 = vmatmul.f32.gmra.mxu0 %v8742_v42  ;;  %v2707_v4 = vld [vmem:[#allocation8 + $0xc58] sm:$0xff]  ;;  %v8956_v17 = vpop.f32.mrf.mxu1 }
 0x520   :  { %v2783_v41 = vld [vmem:[#allocation8 + $0xeb8] sm:$0xff]  ;;  %4506 = vmatpush.msrb.mxu0 %v2839_v47  ;;  %4425 = vmatpush.msrb.mxu1 %v2707_v4  ;;  %v4784_v4 = vld [vmem:[#allocation11 + $0x508] sm:$0xff] }
 0x521   :  { %v2911_v60 = vld [vmem:[#allocation8 + $0x12b8] sm:$0xff]  ;;  %v8954_v59 = vadd.f32 %v4066_v61, %v4026_v46  ;;  %4463 = vmatpush.msrb.mxu3 %v2783_v41 }
 0x522   :  { %4276 = vmatmul.f32.gmra.mxu1 %v6263_v34  ;;  %4314 = vmatmul.f32.gmra.mxu3 %v6264_v15  ;;  %v2835_v48 = vld [vmem:[#allocation8 + $0x1058] sm:$0xff] }
 0x523   :  { %v2703_v26 = vld [vmem:[#allocation8 + $0xc38] sm:$0xff]  ;;  %4545 = vmatpush.msrb.mxu2 %v2911_v60  ;;  %v8958_v50 = vpop.f32.mrf.mxu0  ;;  %4507 = vmatpush.msrb.mxu0 %v2835_v48 }
 0x524   :  { %v3987_v42 = vpop.f32.mrf.mxu3  ;;  %v2779_v62 = vld [vmem:[#allocation8 + $0xe98] sm:$0xff]  ;;  %4426 = vmatpush.msrb.mxu1 %v2703_v26  ;;  %4396 = vmatmul.f32.gmra.mxu2 %v8747_v52  ;;  %v4780_v26 = vld [vmem:[#allocation11 + $0x4e8] sm:$0xff] }
 0x525   :  { %v3988_v28 = vadd.f32 %v3987_v42, %v8936_v11  ;;  %v2831_v33 = vld [vmem:[#allocation8 + $0x1038] sm:$0xff]  ;;  %4464 = vmatpush.msrb.mxu3 %v2779_v62  ;;  %v4069_v11 = vpop.f32.mrf.mxu2  ;;  %v6267_v42 = vld [vmem:[#allocation3 + $0x1f0] sm:$0xff] }
 0x526   :  { %v2907_v45 = vld [vmem:[#allocation8 + $0x1298] sm:$0xff]  ;;  %4508 = vmatpush.msrb.mxu0 %v2831_v33  ;;  %v6268_v33 = vld [vmem:[#allocation3 + $0x1a8] sm:$0xff] }
 0x527   :  { %v6265_v53 = vld [vmem:[#allocation3 + $0x1a0] sm:$0xff]  ;;  %v4029_v63 = vadd.f32 %v8938_v36, %v3988_v28  ;;  %4361 = vmatmul.f32.gmra.mxu0 %v8755_v55  ;;  %4546 = vmatpush.msrb.mxu2 %v2907_v45  ;;  %v6266_v34 = vld [vmem:[#allocation3 + $0x158] sm:$0xff]  ;;  %v3950_v36 = vadd.f32 %v8947_v13, %v8893_v8  ;;  %v3955_v55 = vpop.f32.mrf.mxu1  ;;  %v4776_v28 = vld [vmem:[#allocation11 + $0x4c8] sm:$0xff] }
 0x528   :  { %v2699_v7 = vld [vmem:[#allocation8 + $0xc18] sm:$0xff] }
 0x529   :  { %v2775_v23 = vld [vmem:[#allocation8 + $0xe78] sm:$0xff]  ;;  %4427 = vmatpush.msrb.mxu1 %v2699_v7  ;;  %v8964_v47 = vadd.f32 %v4069_v11, %v4029_v63  ;;  %v3953_v7 = vadd.f32 %v8956_v17, %v8906_v44  ;;  %v4760_v17 = vld [vmem:[#allocation11 + $0x448] sm:$0xff] }
 0x52a   :  { %4279 = vmatmul.f32.gmra.mxu1 %v6265_v53  ;;  %v2827_v43 = vld [vmem:[#allocation8 + $0x1018] sm:$0xff]  ;;  %4317 = vmatmul.f32.gmra.mxu3 %v6266_v34 }
 0x52b   :  { %v2771_v46 = vld [vmem:[#allocation8 + $0xe58] sm:$0xff]  ;;  %4465 = vmatpush.msrb.mxu3 %v2775_v23  ;;  %4509 = vmatpush.msrb.mxu0 %v2827_v43  ;;  %v4037_v61 = vpop.f32.mrf.mxu0  ;;  %v4768_v43 = vld [vmem:[#allocation11 + $0x488] sm:$0xff] }
 0x52c   :  { %v2903_v57 = vld [vmem:[#allocation8 + $0x1278] sm:$0xff]  ;;  %v3990_v15 = vpop.f32.mrf.mxu3  ;;  %4399 = vmatmul.f32.gmra.mxu2 %v8760_v51  ;;  %v4772_v51 = vld [vmem:[#allocation11 + $0x4a8] sm:$0xff] }
 0x52d   :  { %v2899_v52 = vld [vmem:[#allocation8 + $0x1258] sm:$0xff]  ;;  %4547 = vmatpush.msrb.mxu2 %v2903_v57  ;;  %4466 = vmatpush.msrb.mxu3 %v2771_v46  ;;  %v3991_v60 = vadd.f32 %v3990_v15, %v3950_v36  ;;  %v4072_v45 = vpop.f32.mrf.mxu2  ;;  %v4764_v46 = vld [vmem:[#allocation11 + $0x468] sm:$0xff] }
 0x52e   :  { %v2767_v41 = vld [vmem:[#allocation8 + $0xe38] sm:$0xff]  ;;  %4867 = vmatpush.msra.mxu0 %v4784_v4  ;;  %v9713_v36 = vld [vmem:[#allocation39_spill] sm:$0xff] }
 0x52f   :  { %4548 = vmatpush.msrb.mxu2 %v2899_v52  ;;  %v2895_v48 = vld [vmem:[#allocation8 + $0x1238] sm:$0xff]  ;;  %v4032_v62 = vadd.f32 %v8949_v39, %v3991_v60  ;;  %4364 = vmatmul.f32.gmra.mxu0 %v8768_v58  ;;  %v3958_v39 = vpop.f32.mrf.mxu1 }
 0x530   :  { %4467 = vmatpush.msrb.mxu3 %v2767_v41  ;;  %v2763_v8 = vld [vmem:[#allocation8 + $0xe18] sm:$0xff]  ;;  %4868 = vmatpush.msra.mxu0 %v4780_v26 }
 0x531   :  { %v2891_v13 = vld [vmem:[#allocation8 + $0x1218] sm:$0xff]  ;;  %4549 = vmatpush.msrb.mxu2 %v2895_v48  ;;  %v8971_v53 = vadd.f32 %v4072_v45, %v4032_v62  ;;  %v6271_v62 = vld [vmem:[#allocation3 + $0x30] sm:$0xff] }
 0x532   :  { %4282 = vmatmul.f32.gmra.mxu1 %v6267_v42  ;;  %4320 = vmatmul.f32.gmra.mxu3 %v6268_v33  ;;  %v6269_v34 = vld [vmem:[#allocation3 + $0x240] sm:$0xff]  ;;  %v6270_v57 = vld [vmem:[#allocation3 + $0x1f8] sm:$0xff]  ;;  %v4756_v42 = vld [vmem:[#allocation11 + $0x428] sm:$0xff] }
 0x533   :  { %4468 = vmatpush.msrb.mxu3 %v2763_v8  ;;  %4550 = vmatpush.msrb.mxu2 %v2891_v13  ;;  %v4040_v63 = vpop.f32.mrf.mxu0  ;;  %v9714_v4 = vld [vmem:[#allocation29_spill] sm:$0xff]  ;;  %v9716_v8 = vld [vmem:[#allocation22_spill] sm:$0xff]  ;;  %v4752_v33 = vld [vmem:[#allocation11 + $0x408] sm:$0xff] }
 0x534   :  { %4869 = vmatpush.msra.mxu0 %v4776_v28  ;;  %v3993_v58 = vpop.f32.mrf.mxu3  ;;  %4402 = vmatmul.f32.gmra.mxu2 %v8773_v10  ;;  %v2995_v15 = vadd.f32 %v9714_v4, %v9713_v36  ;;  %v3956_v10 = vadd.f32 %v3955_v55, %v8914_v18  ;;  %v6272_v18 = vld [vmem:[#allocation3 + $0x248] sm:$0xff] }
 0x535   :  { %v3994_v23 = vadd.f32 %v3993_v58, %v3953_v7  ;;  %v4075_v44 = vpop.f32.mrf.mxu2  ;;  %v4748_v45 = vld [vmem:[#allocation11 + $0x3e8] sm:$0xff]  ;;  %v4783_v7 = vld [vmem:[#allocation11 + $0x500] sm:$0xff]  ;;  %v9717_v58 = vld [vmem:[#allocation37_spill] sm:$0xff] }
 0x536   :  { %4870 = vmatpush.msra.mxu0 %v4772_v51  ;;  %4827 = vmatpush.msra.mxu1 %v4783_v7  ;;  %v4744_v4 = vld [vmem:[#allocation11 + $0x3c8] sm:$0xff]  ;;  %v9726_v7 = vld [vmem:[#allocation25_spill] sm:$0xff] }
 0x537   :  { %v4035_v11 = vadd.f32 %v8958_v50, %v3994_v23  ;;  %4367 = vmatmul.f32.gmra.mxu0 %v8780_v54  ;;  %v4101_v41 = vpop.f32.mrf.mxu1  ;;  %v9715_v54 = vld [vmem:[#allocation34_spill] sm:$0xff] }
 0x538   :  { %4871 = vmatpush.msra.mxu0 %v4768_v43  ;;  %v3036_v50 = vadd.f32 %v9715_v54, %v2995_v15  ;;  %v6273_v15 = vld [vmem:[#allocation3 + $0x80] sm:$0xff] }
 0x539   :  { %v8978_v52 = vadd.f32 %v4075_v44, %v4035_v11  ;;  %v9718_v11 = vld [vmem:[#allocation27_spill] sm:$0xff] }
 0x53a   :  { %4285 = vmatmul.f32.gmra.mxu1 %v6269_v34  ;;  %4323 = vmatmul.f32.gmra.mxu3 %v6270_v57  ;;  %v3077_v13 = vadd.f32 %v9716_v8, %v3036_v50  ;;  %v9720_v44 = vld [vmem:[#allocation31_spill] sm:$0xff] }
 0x53b   :  { %4872 = vmatpush.msra.mxu0 %v4764_v46  ;;  %v8983_v48 = vpop.f32.mrf.mxu0  ;;  %v9719_v46 = vld [vmem:[#allocation24_spill] sm:$0xff] }
 0x53c   :  { %v3996_v60 = vpop.f32.mrf.mxu3  ;;  %4405 = vmatmul.f32.gmra.mxu2 %v8784_v30  ;;  %v3118_v23 = vadd.f32 %v9717_v58, %v3077_v13  ;;  %v3959_v30 = vadd.f32 %v3958_v39, %v8922_v20  ;;  %v2998_v57 = vadd.f32 %v9719_v46, %v9718_v11  ;;  %v4775_v20 = vld [vmem:[#allocation11 + $0x4c0] sm:$0xff]  ;;  %v9721_v39 = vld [vmem:[#allocation32_spill] sm:$0xff]  ;;  %v9727_v58 = vld [vmem:[#allocation33_spill] sm:$0xff] }
 0x53d   :  { %4873 = vmatpush.msra.mxu0 %v4760_v17  ;;  %v3997_v26 = vadd.f32 %v3996_v60, %v3956_v10  ;;  %v4078_v55 = vpop.f32.mrf.mxu2  ;;  %v9722_v60 = vld [vmem:[#allocation28_spill] sm:$0xff]  ;;  %v9724_v13 = vld [vmem:[#allocation26_spill] sm:$0xff] }
 0x53e   :  { %v3159_v17 = vadd.f32 %v9720_v44, %v3118_v23  ;;  %v3039_v10 = vadd.f32 %v9721_v39, %v2998_v57  ;;  %v4763_v57 = vld [vmem:[#allocation11 + $0x460] sm:$0xff] }
 0x53f   :  { %v4038_v28 = vadd.f32 %v4037_v61, %v3997_v26  ;;  %4510 = vmatmul.f32.vlgmr.msrb.gmra.mxu0 %v8791_v22  ;;  %v8993_v43 = vpop.f32.mrf.mxu1  ;;  %v4779_v22 = vld [vmem:[#allocation11 + $0x4e0] sm:$0xff]  ;;  %v4740_v26 = vld [vmem:[#allocation11 + $0x3a8] sm:$0xff] }
 0x540   :  { %4874 = vmatpush.msra.mxu0 %v4756_v42  ;;  %4828 = vmatpush.msra.mxu1 %v4779_v22  ;;  %v3200_v54 = vadd.f32 %v9722_v60, %v3159_v17  ;;  %v4771_v42 = vld [vmem:[#allocation11 + $0x4a0] sm:$0xff] }
 0x541   :  { %v8989_v51 = vadd.f32 %v4078_v55, %v4038_v28  ;;  %v9728_v44 = vld [vmem:[#allocation43_spill] sm:$0xff] }
 0x542   :  { %4428 = vmatmul.f32.vlgmr.msrb.gmra.mxu1 %v6271_v62  ;;  %4326 = vmatmul.f32.gmra.mxu3 %v6272_v18  ;;  %v9723_v62 = vld [vmem:[#allocation20_spill] sm:$0xff]  ;;  %v3241_v28 = vadd.f32 %v9724_v13, %v3200_v54 }
 0x543   :  { %4875 = vmatpush.msra.mxu0 %v4752_v33  ;;  %v8995_v34 = vpop.f32.mrf.mxu0  ;;  %4829 = vmatpush.msra.mxu1 %v4775_v20  ;;  %v3080_v8 = vadd.f32 %v9723_v62, %v3039_v10  ;;  %v6274_v33 = vld [vmem:[#allocation3 + $0x38] sm:$0xff]  ;;  %v4736_v18 = vld [vmem:[#allocation11 + $0x388] sm:$0xff] }
 0x544   :  { %v3999_v61 = vpop.f32.mrf.mxu3  ;;  %4408 = vmatmul.f32.gmra.mxu2 %v8795_v0  ;;  %v4732_v20 = vld [vmem:[#allocation11 + $0x368] sm:$0xff] }
 0x545   :  { %4876 = vmatpush.msra.mxu0 %v4748_v45  ;;  %v4000_v36 = vadd.f32 %v3999_v61, %v3959_v30  ;;  %v4081_v0 = vpop.f32.mrf.mxu2  ;;  %4830 = vmatpush.msra.mxu1 %v4771_v42  ;;  %v4767_v45 = vld [vmem:[#allocation11 + $0x480] sm:$0xff]  ;;  %v3121_v23 = vadd.f32 %v9727_v58, %v3080_v8  ;;  %v3282_v30 = vadd.f32 %v8404_v27, %v3241_v28  ;;  %v6275_v27 = vld [vmem:[#allocation3 + $0xd0] sm:$0xff] }
 0x546   :  { %v4102_v61 = vadd.f32 %v4101_v41, %v8931_v21  ;;  %v4759_v21 = vld [vmem:[#allocation11 + $0x440] sm:$0xff]  ;;  %v9732_v42 = vld [vmem:[#allocation40_spill] sm:$0xff] }
 0x547   :  { %v4041_v50 = vadd.f32 %v4040_v63, %v4000_v36  ;;  %4513 = vmatmul.f32.gmra.mxu0 %v8806_v29  ;;  %v9725_v63 = vld [vmem:[#allocation21_spill] sm:$0xff]  ;;  %v9013_v22 = vpop.f32.mrf.mxu1  ;;  %4831 = vmatpush.msra.mxu1 %v4767_v45  ;;  %v3162_v17 = vadd.f32 %v9728_v44, %v3121_v23  ;;  %v9729_v36 = vld [vmem:[#allocation52_spill] sm:$0xff]  ;;  %v9730_v41 = vld [vmem:[#allocation19_spill] sm:$0xff] }
 0x548   :  { %4877 = vmatpush.msra.mxu0 %v4744_v4  ;;  %v3001_v29 = vadd.f32 %v9726_v7, %v9725_v63  ;;  %v3323_v4 = vadd.f32 %v9729_v36, %v3282_v30  ;;  %v9731_v10 = vld [vmem:[#allocation23_spill] sm:$0xff]  ;;  %v9733_v8 = vld [vmem:[#allocation30_spill] sm:$0xff]  ;;  %v4781_v45 = vld [vmem:[#allocation11 + $0x4f0] sm:$0xff]  ;;  %v4105_v30 = vadd.f32 %v8993_v43, %v8943_v25 }
 0x549   :  { %v9006_v55 = vadd.f32 %v4081_v0, %v4041_v50  ;;  %4832 = vmatpush.msra.mxu1 %v4763_v57  ;;  %v3203_v60 = vadd.f32 %v9731_v10, %v3162_v17  ;;  %v4728_v50 = vld [vmem:[#allocation11 + $0x348] sm:$0xff]  ;;  %v4785_v0 = vld [vmem:[#allocation11 + $0x510] sm:$0xff]  ;;  %v4751_v63 = vld [vmem:[#allocation11 + $0x400] sm:$0xff] }
 0x54a   :  { %4431 = vmatmul.f32.gmra.mxu1 %v6273_v15  ;;  %4469 = vmatmul.f32.vlgmr.msrb.gmra.mxu3 %v6274_v33  ;;  %v3042_v39 = vadd.f32 %v9730_v41, %v3001_v29  ;;  %v6276_v28 = vld [vmem:[#allocation3 + $0x88] sm:$0xff]  ;;  %v9735_v58 = vld [vmem:[#allocation48_spill] sm:$0xff]  ;;  %v9736_v44 = vld [vmem:[#allocation45_spill] sm:$0xff] }
 0x54b   :  { %4878 = vmatpush.msra.mxu0 %v4740_v26  ;;  %v9015_v46 = vpop.f32.mrf.mxu0  ;;  %4833 = vmatpush.msra.mxu1 %v4759_v21  ;;  %v4755_v26 = vld [vmem:[#allocation11 + $0x420] sm:$0xff]  ;;  %v3244_v13 = vadd.f32 %v9733_v8, %v3203_v60  ;;  %v4724_v33 = vld [vmem:[#allocation11 + $0x328] sm:$0xff]  ;;  %v4773_v60 = vld [vmem:[#allocation11 + $0x4b0] sm:$0xff] }
 0x54c   :  { %v4142_v11 = vpop.f32.mrf.mxu3  ;;  %6100 = vmatmul.msk.f32.vlgmr.msrb.gmra.mxu2 %vm2209_vm14, %v8810_v6  ;;  %v3083_v62 = vadd.f32 %v9732_v42, %v3042_v39  ;;  %v9734_v7 = vld [vmem:[#allocation35_spill] sm:$0xff]  ;;  %v9737_v36 = vld [vmem:[#allocation58_spill] sm:$0xff]  ;;  %v6278_v8 = vld [vmem:[#allocation3 + $0xd8] sm:$0xff] }
 0x54d   :  { %4879 = vmatpush.msra.mxu0 %v4736_v18  ;;  %v4143_v15 = vadd.f32 %v4142_v11, %v4102_v61  ;;  %v4224_v6 = vpop.f32.mrf.mxu2  ;;  %4834 = vmatpush.msra.mxu1 %v4755_v26  ;;  %v3285_v23 = vadd.f32 %v9735_v58, %v3244_v13  ;;  %v6277_v25 = vld [vmem:[#allocation3 + $0x120] sm:$0xff] }
 0x54e   :  { %v9027_v18 = vadd.f32 %v4224_v6, %v8983_v48  ;;  %4907 = vmatpush.msra.mxu2 %v4785_v0  ;;  %v3124_v29 = vadd.f32 %v9734_v7, %v3083_v62  ;;  %v4747_v48 = vld [vmem:[#allocation11 + $0x3e0] sm:$0xff]  ;;  %v9739_v26 = vld [vmem:[#allocation49_spill] sm:$0xff]  ;;  %v4108_v0 = vadd.f32 %v9013_v22, %v8954_v59 }
 0x54f   :  { %v4576_v54 = vmax.f32 %v3323_v4, %v4143_v15  ;;  %4516 = vmatmul.f32.gmra.mxu0 %v8821_v3  ;;  %v4682_v3 = vld [vmem:[#allocation11 + $0x1e0] sm:$0xff]  ;;  %v9033_v61 = vpop.f32.mrf.mxu1  ;;  %4835 = vmatpush.msra.mxu1 %v4751_v63  ;;  %v3326_v4 = vadd.f32 %v9737_v36, %v3285_v23  ;;  %v4761_v23 = vld [vmem:[#allocation11 + $0x450] sm:$0xff] }
 0x550   :  { %4880 = vmatpush.msra.mxu0 %v4732_v20  ;;  %4908 = vmatpush.msra.mxu2 %v4781_v45  ;;  %v3165_v17 = vadd.f32 %v9736_v44, %v3124_v29  ;;  %v4678_v20 = vld [vmem:[#allocation11 + $0x1c0] sm:$0xff]  ;;  %v4765_v45 = vld [vmem:[#allocation11 + $0x470] sm:$0xff] }
 0x551   :  { %4836 = vmatpush.msra.mxu1 %v4747_v48  ;;  %v4743_v43 = vld [vmem:[#allocation11 + $0x3c0] sm:$0xff]  ;;  %v4757_v48 = vld [vmem:[#allocation11 + $0x430] sm:$0xff] }
 0x552   :  { %4434 = vmatmul.f32.gmra.mxu1 %v6275_v27  ;;  %4472 = vmatmul.f32.gmra.mxu3 %v6276_v28  ;;  %v4777_v27 = vld [vmem:[#allocation11 + $0x4d0] sm:$0xff]  ;;  %v9738_v21 = vld [vmem:[#allocation38_spill] sm:$0xff]  ;;  %v9740_v6 = vld [vmem:[#allocation51_spill] sm:$0xff] }
 0x553   :  { %4881 = vmatpush.msra.mxu0 %v4728_v50  ;;  %v9035_v57 = vpop.f32.mrf.mxu0  ;;  %v3206_v41 = vadd.f32 %v9738_v21, %v3165_v17  ;;  %4909 = vmatpush.msra.mxu2 %v4777_v27  ;;  %v4674_v10 = vld [vmem:[#allocation11 + $0x1a0] sm:$0xff]  ;;  %v4769_v28 = vld [vmem:[#allocation11 + $0x490] sm:$0xff] }
 0x554   :  { %v4145_v11 = vpop.f32.mrf.mxu3  ;;  %6101 = vmatmul.msk.f32.gmra.mxu2 %vm2209_vm14, %v8825_v9  ;;  %4837 = vmatpush.msra.mxu1 %v4743_v43  ;;  %v4739_v50 = vld [vmem:[#allocation11 + $0x3a0] sm:$0xff] }
 0x555   :  { %4882 = vmatpush.msra.mxu0 %v4724_v33  ;;  %v4146_v15 = vadd.f32 %v4145_v11, %v4105_v30  ;;  %v3247_v42 = vadd.f32 %v9739_v26, %v3206_v41  ;;  %v9046_v9 = vpop.f32.mrf.mxu2  ;;  %4910 = vmatpush.msra.mxu2 %v4773_v60  ;;  %v4670_v13 = vld [vmem:[#allocation11 + $0x180] sm:$0xff]  ;;  %v6279_v11 = vld [vmem:[#allocation3 + $0x170] sm:$0xff] }
 0x556   :  { %4838 = vmatpush.msra.mxu1 %v4739_v50  ;;  %v4666_v58 = vld [vmem:[#allocation11 + $0x160] sm:$0xff]  ;;  %v4745_v41 = vld [vmem:[#allocation11 + $0x3d0] sm:$0xff] }
 0x557   :  { %4990 = vmatpush.msrb.mxu0 %v4682_v3  ;;  %v4578_v39 = vmax.f32 %v3326_v4, %v4146_v15  ;;  %v3288_v33 = vadd.f32 %v9740_v6, %v3247_v42  ;;  %4911 = vmatpush.msra.mxu2 %v4769_v28  ;;  %v4731_v30 = vld [vmem:[#allocation11 + $0x360] sm:$0xff]  ;;  %v4753_v4 = vld [vmem:[#allocation11 + $0x410] sm:$0xff] }
 0x558   :  { %4519 = vmatmul.f32.gmra.mxu0 %v8837_v56  ;;  %v4735_v56 = vld [vmem:[#allocation11 + $0x380] sm:$0xff]  ;;  %v6282_v50 = vld [vmem:[#allocation3 + $0x178] sm:$0xff] }
 0x559   :  { %4991 = vmatpush.msrb.mxu0 %v4678_v20  ;;  %v9044_v62 = vmax.f32 %v4576_v54, %v4578_v39  ;;  %4839 = vmatpush.msra.mxu1 %v4735_v56  ;;  %v3329_v7 = vadd.f32 %v8481_v14, %v3288_v33  ;;  %v4662_v22 = vld [vmem:[#allocation11 + $0x140] sm:$0xff]  ;;  %v4729_v33 = vld [vmem:[#allocation11 + $0x350] sm:$0xff] }
 0x55a   :  { %4437 = vmatmul.f32.gmra.mxu1 %v6277_v25  ;;  %4475 = vmatmul.f32.gmra.mxu3 %v6278_v8  ;;  %v4727_v44 = vld [vmem:[#allocation11 + $0x340] sm:$0xff]  ;;  %v4737_v8 = vld [vmem:[#allocation11 + $0x390] sm:$0xff] }
 0x55b   :  { %4992 = vmatpush.msrb.mxu0 %v4674_v10  ;;  %v4113_v3 = vpop.f32.mrf.mxu1  ;;  %v9051_v63 = vpop.f32.mrf.mxu0  ;;  %4912 = vmatpush.msra.mxu2 %v4765_v45  ;;  %v6280_v14 = vld [vmem:[#allocation3 + $0x128] sm:$0xff]  ;;  %v6281_v39 = vld [vmem:[#allocation3 + $0x1c0] sm:$0xff]  ;;  %v4725_v45 = vld [vmem:[#allocation11 + $0x330] sm:$0xff] }
 0x55c   :  { %v4148_v54 = vpop.f32.mrf.mxu3  ;;  %6102 = vmatmul.msk.f32.gmra.mxu2 %vm2209_vm14, %v8842_v2  ;;  %4840 = vmatpush.msra.mxu1 %v4731_v30  ;;  %v4658_v36 = vld [vmem:[#allocation11 + $0x120] sm:$0xff]  ;;  %v4749_v2 = vld [vmem:[#allocation11 + $0x3f0] sm:$0xff] }
 0x55d   :  { %4993 = vmatpush.msrb.mxu0 %v4670_v13  ;;  %v4149_v29 = vadd.f32 %v4148_v54, %v4108_v0  ;;  %4913 = vmatpush.msra.mxu2 %v4761_v23  ;;  %v9057_v17 = vpop.f32.mrf.mxu2  ;;  %v4723_v15 = vld [vmem:[#allocation11 + $0x320] sm:$0xff]  ;;  %v6283_v0 = vld [vmem:[#allocation3 + $0x210] sm:$0xff] }
 0x55e   :  { %4841 = vmatpush.msra.mxu1 %v4727_v44  ;;  %v4654_v21 = vld [vmem:[#allocation11 + $0x100] sm:$0xff] }
 0x55f   :  { %v4580_v59 = vmax.f32 %v3329_v7, %v4149_v29  ;;  %4994 = vmatpush.msrb.mxu0 %v4666_v58  ;;  %4914 = vmatpush.msra.mxu2 %v4757_v48  ;;  %v4646_v42 = vld [vmem:[#allocation11 + $0xc0] sm:$0xff]  ;;  %v9078_v58 = vld [vmem:[#allocation9] sm:$0x3] }
 0x560   :  { %4522 = vmatmul.f32.gmra.mxu0 %v8854_v24  ;;  %v4111_v24 = vadd.f32 %v9033_v61, %v8964_v47  ;;  %4842 = vmatpush.msra.mxu1 %v4723_v15  ;;  %v4650_v47 = vld [vmem:[#allocation11 + $0xe0] sm:$0xff]  ;;  %v4741_v61 = vld [vmem:[#allocation11 + $0x3b0] sm:$0xff] }
 0x561   :  { %4995 = vmatpush.msrb.mxu0 %v4662_v22  ;;  %4915 = vmatpush.msra.mxu2 %v4753_v4  ;;  %v4642_v6 = vld [vmem:[#allocation11 + $0xa0] sm:$0xff]  ;;  %v6286_v4 = vld [vmem:[#allocation3 + $0x218] sm:$0xff] }
 0x562   :  { %4440 = vmatmul.f32.gmra.mxu1 %v6279_v11  ;;  %4478 = vmatmul.f32.gmra.mxu3 %v6280_v14  ;;  %v4634_v29 = vld [vmem:[#allocation11 + $0x60] sm:$0xff] }
 0x563   :  { %v4116_v20 = vpop.f32.mrf.mxu1  ;;  %4996 = vmatpush.msrb.mxu0 %v4658_v36  ;;  %4916 = vmatpush.msra.mxu2 %v4749_v2  ;;  %v6285_v22 = vld [vmem:[#allocation3 + $0x260] sm:$0xff]  ;;  %v9741_v48 = vld [vmem:[#allocation55_spill] sm:$0xff] }
 0x564   :  { %v4151_v27 = vpop.f32.mrf.mxu3  ;;  %v9061_v25 = vpop.f32.mrf.mxu0  ;;  %6103 = vmatmul.msk.f32.gmra.mxu2 %vm2209_vm14, %v8859_v32  ;;  %v4114_v32 = vadd.f32 %v4113_v3, %v8971_v53  ;;  %v4638_v53 = vld [vmem:[#allocation11 + $0x80] sm:$0xff] }
 0x565   :  { %v4152_v43 = vadd.f32 %v4151_v27, %v4111_v24  ;;  %4917 = vmatpush.msra.mxu2 %v4745_v41  ;;  %4997 = vmatpush.msrb.mxu0 %v4654_v21  ;;  %v9067_v26 = vpop.f32.mrf.mxu2  ;;  %v6284_v3 = vld [vmem:[#allocation3 + $0x1c8] sm:$0xff] }
 0x566   :  { %v4626_v14 = vld [vmem:[#allocation11 + $0x20] sm:$0xff] }
 0x567   :  { %v4582_v10 = vmax.f32 %v8510_v1, %v4152_v43  ;;  %4918 = vmatpush.msra.mxu2 %v4741_v61  ;;  %4998 = vmatpush.msrb.mxu0 %v4650_v47  ;;  %v4733_v1 = vld [vmem:[#allocation11 + $0x370] sm:$0xff]  ;;  %v4622_v2 = vld [vmem:[#allocation11] sm:$0xff] }
 0x568   :  { %4525 = vmatmul.f32.gmra.mxu0 %v8871_v35  ;;  %v9742_v41 = vld [vmem:[#allocation59_spill] sm:$0xff] }
 0x569   :  { %v4594_v60 = vmax.f32 %v4580_v59, %v4582_v10  ;;  %4919 = vmatpush.msra.mxu2 %v4737_v8  ;;  %4999 = vmatpush.msrb.mxu0 %v4646_v42  ;;  %v4602_v59 = vperm.slane %v9078_v58, 0  ;;  %v6287_v47 = vld [vmem:[#allocation3 + $0x268] sm:$0xff] }
 0x56a   :  { %4443 = vmatmul.f32.gmra.mxu1 %v6281_v39  ;;  %4481 = vmatmul.f32.gmra.mxu3 %v6282_v50 }
 0x56b   :  { %4920 = vmatpush.msra.mxu2 %v4733_v1  ;;  %5000 = vmatpush.msrb.mxu0 %v4642_v6  ;;  %v4606_v10 = vadd.f32 %v4602_v59, %v9044_v62 }
 0x56c   :  { %v4154_v28 = vpop.f32.mrf.mxu3  ;;  %v9070_v35 = vpop.f32.mrf.mxu0  ;;  %6104 = vmatmul.msk.f32.gmra.mxu2 %vm2209_vm14, %v8876_v31  ;;  %v4117_v31 = vadd.f32 %v4116_v20, %v8978_v52  ;;  %v4608_v52 = vadd.f32 %v4602_v59, %v4594_v60 }
 0x56d   :  { %v4155_v56 = vadd.f32 %v4154_v28, %v4114_v32  ;;  %4921 = vmatpush.msra.mxu2 %v4729_v33  ;;  %v9076_v7 = vpop.f32.mrf.mxu2  ;;  %5001 = vmatpush.msrb.mxu0 %v4638_v53  ;;  %v9743_v32 = vld [vmem:[#allocation56_spill] sm:$0xff] }
 0x56e   :  { %v9093_v27 = vmax.f32 %v4608_v52, 0.0  ;;  %v4700_v52 = vld [vmem:[#allocation11 + $0x270] sm:$0xff] }
 0x56f   :  { %v4119_v13 = vpop.f32.mrf.mxu1  ;;  %v4584_v54 = vmax.f32 %v8530_v49, %v4155_v56  ;;  %4922 = vmatpush.msra.mxu2 %v4725_v45  ;;  %5002 = vmatpush.msrb.mxu0 %v4634_v29  ;;  %v4720_v29 = vld [vmem:[#allocation11 + $0x310] sm:$0xff] }
 0x570   :  { %4528 = vmatmul.f32.gmra.mxu0 %v8884_v5  ;;  %v4630_v5 = vld [vmem:[#allocation11 + $0x40] sm:$0xff] }
 0x571   :  { %5003 = vmatpush.msrb.mxu0 %v4630_v5 }
 0x572   :  { %4446 = vmatmul.f32.gmra.mxu1 %v6283_v0  ;;  %4484 = vmatmul.f32.gmra.mxu3 %v6284_v3 }
 0x573   :  { %5004 = vmatpush.msrb.mxu0 %v4626_v14  ;;  %v4704_v14 = vld [vmem:[#allocation11 + $0x290] sm:$0xff] }
 0x574   :  { %v9081_v11 = vpop.f32.mrf.mxu0  ;;  %6105 = vmatmul.msk.f32.gmra.mxu2 %vm2209_vm14, %v8889_v40  ;;  %v4120_v40 = vadd.f32 %v4119_v13, %v8989_v51 }
 0x575   :  { %v4157_v30 = vpop.f32.mrf.mxu3  ;;  %5005 = vmatpush.msrb.mxu0 %v4622_v2 }
 0x576   :  { %v4158_v49 = vadd.f32 %v4157_v30, %v4117_v31  ;;  %v9088_v15 = vpop.f32.mrf.mxu2  ;;  %v4716_v31 = vld [vmem:[#allocation11 + $0x2f0] sm:$0xff] }
 0x577   :  { %v4122_v23 = vpop.f32.mrf.mxu1 }
 0x578   :  { %v4586_v44 = vmax.f32 %v9741_v48, %v4158_v49  ;;  %4531 = vmatmul.f32.gmra.mxu0 %v8897_v38  ;;  %v4123_v61 = vadd.f32 %v4122_v23, %v9006_v55  ;;  %v4231_v23 = vadd.f32 %v9057_v17, %v9015_v46  ;;  %v4708_v48 = vld [vmem:[#allocation11 + $0x2b0] sm:$0xff] }
 0x57a   :  { %4449 = vmatmul.f32.gmra.mxu1 %v6285_v22  ;;  %v4596_v36 = vmax.f32 %v4584_v54, %v4586_v44  ;;  %4487 = vmatmul.f32.gmra.mxu3 %v6286_v4  ;;  %v4696_v4 = vld [vmem:[#allocation11 + $0x250] sm:$0xff] }
 0x57c   :  { %v9090_v24 = vadd.f32 %v4602_v59, %v4596_v36  ;;  %v4347_v21 = vpop.f32.mrf.mxu0  ;;  %6106 = vmatmul.msk.f32.gmra.mxu2 %vm2209_vm14, %v8902_v16  ;;  %v9108_v16 = vmax.f32 %v4606_v10, 0.0  ;;  %v5211_v10 = vld [vmem:[#allocation11 + $0x820] sm:$0xff] }
 0x57d   :  { %v4160_v43 = vpop.f32.mrf.mxu3 }
 0x57e   :  { %v4161_v38 = vadd.f32 %v4160_v43, %v4120_v40  ;;  %v4718_v43 = vld [vmem:[#allocation11 + $0x300] sm:$0xff] }
 0x57f   :  { %v4265_v20 = vpop.f32.mrf.mxu1  ;;  %v9101_v51 = vpop.f32.mrf.mxu2  ;;  %5017 = vmatpush.msrb.mxu2 %v4718_v43  ;;  %v5187_v43 = vld [vmem:[#allocation11 + $0x760] sm:$0xff] }
 0x580   :  { %v4588_v39 = vmax.f32 %v9742_v41, %v4161_v38  ;;  %4883 = vmatmul.f32.vlgmr.msra.gmra.mxu0 %v9093_v27  ;;  %v4266_v55 = vadd.f32 %v4265_v20, %v9027_v18  ;;  %v4712_v18 = vld [vmem:[#allocation11 + $0x2d0] sm:$0xff]  ;;  %v4820_v38 = vld [vmem:[#allocation11 + $0x628] sm:$0xff]  ;;  %v4714_v41 = vld [vmem:[#allocation11 + $0x2e0] sm:$0xff] }
 0x581   :  { %5097 = vmatpush.msra.mxu0 %v4720_v29  ;;  %4894 = vmatpush.msrb.mxu1 %v4820_v38  ;;  %v4702_v29 = vld [vmem:[#allocation11 + $0x280] sm:$0xff]  ;;  %v4792_v38 = vld [vmem:[#allocation11 + $0x548] sm:$0xff] }
 0x582   :  { %4843 = vmatmul.f32.vlgmr.msra.gmra.mxu1 %v9093_v27  ;;  %4490 = vmatmul.f32.gmra.mxu3 %v6287_v47  ;;  %v4816_v47 = vld [vmem:[#allocation11 + $0x608] sm:$0xff] }
 0x583   :  { %5098 = vmatpush.msra.mxu0 %v4716_v31  ;;  %5018 = vmatpush.msrb.mxu2 %v4714_v41  ;;  %v4686_v41 = vld [vmem:[#allocation11 + $0x200] sm:$0xff] }
 0x584   :  { %v9106_v42 = vpop.f32.mrf.mxu0  ;;  %6107 = vmatmul.msk.f32.gmra.mxu2 %vm2209_vm14, %v8910_v12  ;;  %4895 = vmatpush.msrb.mxu1 %v4816_v47  ;;  %v4815_v47 = vld [vmem:[#allocation11 + $0x600] sm:$0xff] }
 0x585   :  { %v4163_v50 = vpop.f32.mrf.mxu3  ;;  %5099 = vmatpush.msra.mxu0 %v4712_v18 }
 0x586   :  { %v4164_v8 = vadd.f32 %v4163_v50, %v4123_v61  ;;  %v4710_v61 = vld [vmem:[#allocation11 + $0x2c0] sm:$0xff] }
 0x587   :  { %v9104_v60 = vpop.f32.mrf.mxu1  ;;  %v9114_v1 = vpop.f32.mrf.mxu2  ;;  %5100 = vmatpush.msra.mxu0 %v4708_v48  ;;  %v5207_v50 = vld [vmem:[#allocation11 + $0x800] sm:$0xff]  ;;  %5019 = vmatpush.msrb.mxu2 %v4710_v61  ;;  %v4788_v61 = vld [vmem:[#allocation11 + $0x528] sm:$0xff] }
 0x588   :  { %v4590_v13 = vmax.f32 %v9743_v32, %v4164_v8  ;;  %5006 = vmatmul.f32.vlgmr.msrb.gmra.mxu0 %v9108_v16  ;;  %v4812_v8 = vld [vmem:[#allocation11 + $0x5e8] sm:$0xff]  ;;  %v4706_v32 = vld [vmem:[#allocation11 + $0x2a0] sm:$0xff] }
 0x589   :  { %5101 = vmatpush.msra.mxu0 %v4704_v14  ;;  %4896 = vmatpush.msrb.mxu1 %v4812_v8  ;;  %v4694_v48 = vld [vmem:[#allocation11 + $0x240] sm:$0xff]  ;;  %v4796_v14 = vld [vmem:[#allocation11 + $0x568] sm:$0xff] }
 0x58a   :  { %v4598_v62 = vmax.f32 %v4588_v39, %v4590_v13  ;;  %v4688_v39 = vld [vmem:[#allocation11 + $0x210] sm:$0xff]  ;;  %v4237_v13 = vadd.f32 %v9076_v7, %v9051_v63  ;;  %5020 = vmatpush.msrb.mxu2 %v4706_v32  ;;  %v5199_v63 = vld [vmem:[#allocation11 + $0x7c0] sm:$0xff]  ;;  %v4804_v7 = vld [vmem:[#allocation11 + $0x5a8] sm:$0xff] }
 0x58b   :  { %5102 = vmatpush.msra.mxu0 %v4700_v52  ;;  %v4690_v52 = vld [vmem:[#allocation11 + $0x220] sm:$0xff]  ;;  %v4715_v8 = vld [vmem:[#allocation11 + $0x2e8] sm:$0xff] }
 0x58c   :  { %v9116_v28 = vadd.f32 %v4602_v59, %v4598_v62  ;;  %v4353_v33 = vpop.f32.mrf.mxu0  ;;  %4923 = vmatmul.f32.vlgmr.msra.gmra.mxu2 %v9093_v27 }
 0x58d   :  { %v4306_v6 = vpop.f32.mrf.mxu3  ;;  %5103 = vmatpush.msra.mxu0 %v4696_v4  ;;  %5021 = vmatpush.msrb.mxu2 %v4702_v29  ;;  %v4243_v29 = vadd.f32 %v9101_v51, %v9070_v35  ;;  %v4803_v35 = vld [vmem:[#allocation11 + $0x5a0] sm:$0xff] }
 0x58e   :  { %v4307_v0 = vadd.f32 %v4306_v6, %v4266_v55  ;;  %v5203_v55 = vld [vmem:[#allocation11 + $0x7e0] sm:$0xff] }
 0x58f   :  { %v4271_v56 = vpop.f32.mrf.mxu1  ;;  %v9122_v12 = vpop.f32.mrf.mxu2 }
 0x590   :  { %v9120_v45 = vadd.f32 %v4347_v21, %v4307_v0  ;;  %v4272_v49 = vadd.f32 %v4271_v56, %v4231_v23  ;;  %v4692_v21 = vld [vmem:[#allocation11 + $0x230] sm:$0xff]  ;;  %v4808_v0 = vld [vmem:[#allocation11 + $0x5c8] sm:$0xff]  ;;  %v4698_v23 = vld [vmem:[#allocation11 + $0x260] sm:$0xff] }
 0x591   :  { %5104 = vmatpush.msra.mxu0 %v4692_v21  ;;  %4897 = vmatpush.msrb.mxu1 %v4808_v0  ;;  %v5175_v0 = vld [vmem:[#allocation11 + $0x700] sm:$0xff] }
 0x592   :  { %5022 = vmatpush.msrb.mxu2 %v4698_v23 }
 0x593   :  { %5105 = vmatpush.msra.mxu0 %v4688_v39  ;;  %4898 = vmatpush.msrb.mxu1 %v4804_v7  ;;  %v4719_v39 = vld [vmem:[#allocation11 + $0x308] sm:$0xff] }
 0x594   :  { %v9128_v3 = vpop.f32.mrf.mxu0  ;;  %5023 = vmatpush.msrb.mxu2 %v4694_v48  ;;  %v5171_v48 = vld [vmem:[#allocation11 + $0x6e0] sm:$0xff] }
 0x595   :  { %v9126_v53 = vpop.f32.mrf.mxu3  ;;  %5254 = vmatpush.msrb.mxu0 %v5211_v10  ;;  %v5183_v10 = vld [vmem:[#allocation11 + $0x740] sm:$0xff] }
 0x596   :  { %5024 = vmatpush.msrb.mxu2 %v4690_v52  ;;  %v5167_v52 = vld [vmem:[#allocation11 + $0x6c0] sm:$0xff] }
 0x597   :  { %v9124_v54 = vpop.f32.mrf.mxu1  ;;  %v9132_v30 = vpop.f32.mrf.mxu2  ;;  %5255 = vmatpush.msrb.mxu0 %v5207_v50  ;;  %v4786_v50 = vld [vmem:[#allocation11 + $0x518] sm:$0xff] }
 0x598   :  { %5025 = vmatpush.msrb.mxu2 %v4686_v41  ;;  %v4795_v41 = vld [vmem:[#allocation11 + $0x560] sm:$0xff] }
 0x599   :  { %5256 = vmatpush.msrb.mxu0 %v5203_v55  ;;  %v4811_v55 = vld [vmem:[#allocation11 + $0x5e0] sm:$0xff] }
 0x59a   :  { %5057 = vmatpush.msra.mxu2 %v4719_v39  ;;  %v4246_v39 = vadd.f32 %v9114_v1, %v9081_v11  ;;  %v5155_v11 = vld [vmem:[#allocation11 + $0x660] sm:$0xff] }
 0x59b   :  { %5257 = vmatpush.msrb.mxu0 %v5199_v63  ;;  %v4807_v63 = vld [vmem:[#allocation11 + $0x5c0] sm:$0xff] }
 0x59c   :  { %v4359_v22 = vpop.f32.mrf.mxu0  ;;  %5058 = vmatpush.msra.mxu2 %v4715_v8  ;;  %v5159_v8 = vld [vmem:[#allocation11 + $0x680] sm:$0xff] }
 0x59d   :  { %v4312_v59 = vpop.f32.mrf.mxu3 }
 0x59e   :  { %v4313_v44 = vadd.f32 %v4312_v59, %v4272_v49  ;;  %v5195_v49 = vld [vmem:[#allocation11 + $0x7a0] sm:$0xff]  ;;  %v4800_v59 = vld [vmem:[#allocation11 + $0x588] sm:$0xff] }
 0x59f   :  { %v4277_v5 = vpop.f32.mrf.mxu1  ;;  %v4394_v2 = vpop.f32.mrf.mxu2  ;;  %5258 = vmatpush.msrb.mxu0 %v5195_v49  ;;  %4899 = vmatpush.msrb.mxu1 %v4800_v59  ;;  %v4778_v49 = vld [vmem:[#allocation11 + $0x4d8] sm:$0xff]  ;;  %v4707_v59 = vld [vmem:[#allocation11 + $0x2a8] sm:$0xff] }
 0x5a0   :  { %v4354_v36 = vadd.f32 %v4353_v33, %v4313_v44  ;;  %v4278_v56 = vadd.f32 %v4277_v5, %v4237_v13  ;;  %v5191_v44 = vld [vmem:[#allocation11 + $0x780] sm:$0xff] }
 0x5a1   :  { %5259 = vmatpush.msrb.mxu0 %v5191_v44  ;;  %4900 = vmatpush.msrb.mxu1 %v4796_v14  ;;  %v5179_v13 = vld [vmem:[#allocation11 + $0x720] sm:$0xff]  ;;  %v4774_v44 = vld [vmem:[#allocation11 + $0x4b8] sm:$0xff]  ;;  %v4703_v14 = vld [vmem:[#allocation11 + $0x288] sm:$0xff] }
 0x5a2   :  { %v9134_v40 = vadd.f32 %v4394_v2, %v4354_v36 }
 0x5a3   :  { %5260 = vmatpush.msrb.mxu0 %v5187_v43  ;;  %4901 = vmatpush.msrb.mxu1 %v4792_v38  ;;  %v4770_v43 = vld [vmem:[#allocation11 + $0x498] sm:$0xff]  ;;  %v5163_v38 = vld [vmem:[#allocation11 + $0x6a0] sm:$0xff] }
 0x5a4   :  { %v9140_v20 = vpop.f32.mrf.mxu0 }
 0x5a5   :  { %v9138_v17 = vpop.f32.mrf.mxu3  ;;  %5261 = vmatpush.msrb.mxu0 %v5183_v10  ;;  %4902 = vmatpush.msrb.mxu1 %v4788_v61  ;;  %v4766_v61 = vld [vmem:[#allocation11 + $0x478] sm:$0xff] }
 0x5a7   :  { %v9136_v46 = vpop.f32.mrf.mxu1  ;;  %v9144_v62 = vpop.f32.mrf.mxu2  ;;  %5262 = vmatpush.msrb.mxu0 %v5179_v13  ;;  %4947 = vmatpush.msra.mxu1 %v4786_v50  ;;  %v4695_v50 = vld [vmem:[#allocation11 + $0x248] sm:$0xff]  ;;  %v4791_v13 = vld [vmem:[#allocation11 + $0x540] sm:$0xff] }
 0x5a9   :  { %5263 = vmatpush.msrb.mxu0 %v5175_v0 }
 0x5ab   :  { %5264 = vmatpush.msrb.mxu0 %v5171_v48  ;;  %v5151_v48 = vld [vmem:[#allocation11 + $0x640] sm:$0xff] }
 0x5ac   :  { %v9148_v18 = vpop.f32.mrf.mxu0 }
 0x5ad   :  { %v4318_v33 = vpop.f32.mrf.mxu3  ;;  %5265 = vmatpush.msrb.mxu0 %v5167_v52 }
 0x5ae   :  { %v4319_v31 = vadd.f32 %v4318_v33, %v4278_v56  ;;  %v4782_v56 = vld [vmem:[#allocation11 + $0x4f8] sm:$0xff]  ;;  %v4711_v33 = vld [vmem:[#allocation11 + $0x2c8] sm:$0xff] }
 0x5af   :  { %v9146_v6 = vpop.f32.mrf.mxu1  ;;  %v4400_v36 = vpop.f32.mrf.mxu2  ;;  %4948 = vmatpush.msra.mxu1 %v4782_v56  ;;  %5059 = vmatpush.msra.mxu2 %v4711_v33  ;;  %v4762_v56 = vld [vmem:[#allocation11 + $0x458] sm:$0xff]  ;;  %v4691_v33 = vld [vmem:[#allocation11 + $0x228] sm:$0xff] }
 0x5b0   :  { %v4360_v5 = vadd.f32 %v4359_v22, %v4319_v31  ;;  %v4819_v22 = vld [vmem:[#allocation11 + $0x620] sm:$0xff]  ;;  %v4284_v7 = vadd.f32 %v9146_v6, %v4243_v29  ;;  %5266 = vmatpush.msrb.mxu0 %v5163_v38  ;;  %v4746_v38 = vld [vmem:[#allocation11 + $0x3d8] sm:$0xff] }
 0x5b1   :  { %4854 = vmatpush.msra.mxu3 %v4819_v22  ;;  %4949 = vmatpush.msra.mxu1 %v4778_v49  ;;  %v4799_v6 = vld [vmem:[#allocation11 + $0x580] sm:$0xff]  ;;  %v4699_v22 = vld [vmem:[#allocation11 + $0x268] sm:$0xff]  ;;  %v4758_v49 = vld [vmem:[#allocation11 + $0x438] sm:$0xff] }
 0x5b2   :  { %v9150_v4 = vadd.f32 %v4400_v36, %v4360_v5  ;;  %5060 = vmatpush.msra.mxu2 %v4707_v59  ;;  %5267 = vmatpush.msrb.mxu0 %v5159_v8  ;;  %v4787_v29 = vld [vmem:[#allocation11 + $0x520] sm:$0xff]  ;;  %v4687_v59 = vld [vmem:[#allocation11 + $0x208] sm:$0xff] }
 0x5b3   :  { %4855 = vmatpush.msra.mxu3 %v4815_v47  ;;  %4950 = vmatpush.msra.mxu1 %v4774_v44  ;;  %v4813_v44 = vld [vmem:[#allocation11 + $0x5f0] sm:$0xff] }
 0x5b4   :  { %v9156_v32 = vpop.f32.mrf.mxu0  ;;  %5061 = vmatpush.msra.mxu2 %v4703_v14  ;;  %5268 = vmatpush.msrb.mxu0 %v5155_v11  ;;  %v4750_v14 = vld [vmem:[#allocation11 + $0x3f8] sm:$0xff]  ;;  %v4793_v11 = vld [vmem:[#allocation11 + $0x550] sm:$0xff] }
 0x5b5   :  { %v9154_v21 = vpop.f32.mrf.mxu3  ;;  %4856 = vmatpush.msra.mxu3 %v4811_v55  ;;  %4951 = vmatpush.msra.mxu1 %v4770_v43 }
 0x5b6   :  { %5062 = vmatpush.msra.mxu2 %v4699_v22  ;;  %5269 = vmatpush.msrb.mxu0 %v5151_v48  ;;  %v4809_v22 = vld [vmem:[#allocation11 + $0x5d0] sm:$0xff] }
 0x5b7   :  { %v9152_v2 = vpop.f32.mrf.mxu1  ;;  %v9160_v31 = vpop.f32.mrf.mxu2  ;;  %4857 = vmatpush.msra.mxu3 %v4807_v63  ;;  %4952 = vmatpush.msra.mxu1 %v4766_v61  ;;  %v4801_v61 = vld [vmem:[#allocation11 + $0x590] sm:$0xff] }
 0x5b8   :  { %v4287_v55 = vadd.f32 %v9152_v2, %v4246_v39  ;;  %5063 = vmatpush.msra.mxu2 %v4695_v50  ;;  %v4228_v2 = vadd.f32 %v9046_v9, %v8995_v34 }
 0x5b9   :  { %4858 = vmatpush.msra.mxu3 %v4803_v35  ;;  %4953 = vmatpush.msra.mxu1 %v4762_v56  ;;  %v4817_v35 = vld [vmem:[#allocation11 + $0x610] sm:$0xff] }
 0x5ba   :  { %5064 = vmatpush.msra.mxu2 %v4691_v33  ;;  %v4269_v52 = vadd.f32 %v9104_v60, %v4228_v2  ;;  %v4805_v60 = vld [vmem:[#allocation11 + $0x5b0] sm:$0xff] }
 0x5bb   :  { %4859 = vmatpush.msra.mxu3 %v4799_v6  ;;  %4954 = vmatpush.msra.mxu1 %v4758_v49  ;;  %v4389_v6 = vadd.f32 %v9122_v12, %v9120_v45  ;;  %v4742_v45 = vld [vmem:[#allocation11 + $0x3b8] sm:$0xff] }
 0x5bc   :  { %v9168_v47 = vpop.f32.mrf.mxu0  ;;  %5065 = vmatpush.msra.mxu2 %v4687_v59  ;;  %v4310_v34 = vadd.f32 %v9126_v53, %v4269_v52  ;;  %v4738_v53 = vld [vmem:[#allocation11 + $0x398] sm:$0xff]  ;;  %v4234_v59 = vadd.f32 %v9067_v26, %v9035_v57 }
 0x5bd   :  { %v4324_v5 = vpop.f32.mrf.mxu3  ;;  %4860 = vmatpush.msra.mxu3 %v4795_v41 }
 0x5be   :  { %v4325_v51 = vadd.f32 %v4324_v5, %v4284_v7  ;;  %v4821_v7 = vld [vmem:[#allocation11 + $0x630] sm:$0xff]  ;;  %v4275_v2 = vadd.f32 %v9124_v54, %v4234_v59 }
 0x5bf   :  { %v9163_v23 = vpop.f32.mrf.mxu1  ;;  %v4406_v10 = vpop.f32.mrf.mxu2  ;;  %4861 = vmatpush.msra.mxu3 %v4791_v13  ;;  %v4797_v13 = vld [vmem:[#allocation11 + $0x570] sm:$0xff] }
 0x5c0   :  { %v4366_v36 = vadd.f32 %v9148_v18, %v4325_v51  ;;  %v4754_v51 = vld [vmem:[#allocation11 + $0x418] sm:$0xff]  ;;  %v4430_v9 = vadd.f32 %v9163_v23, %v4389_v6  ;;  %v9194_v6 = vperm.slane %v9078_v58, 1  ;;  %v5249_v58 = vld [vmem:[#allocation11 + $0x950] sm:$0xff] }
 0x5c1   :  { %4862 = vmatpush.msra.mxu3 %v4787_v29  ;;  %4955 = vmatpush.msra.mxu1 %v4754_v51  ;;  %v4316_v51 = vadd.f32 %v9138_v17, %v4275_v2 }
 0x5c2   :  { %v9170_v18 = vadd.f32 %v4406_v10, %v4366_v36  ;;  %v4351_v10 = vadd.f32 %v9106_v42, %v4310_v34  ;;  %v9744_v42 = vld [vmem:[#allocation61_spill] sm:$0xff] }
 0x5c3   :  { %4934 = vmatpush.msrb.mxu3 %v4821_v7  ;;  %4956 = vmatpush.msra.mxu1 %v4750_v14  ;;  %v9745_v14 = vld [vmem:[#allocation57_spill] sm:$0xff]  ;;  %v4357_v26 = vadd.f32 %v9128_v3, %v4316_v51 }
 0x5c4   :  { %v4392_v50 = vadd.f32 %v9132_v30, %v4351_v10  ;;  %v4726_v30 = vld [vmem:[#allocation11 + $0x338] sm:$0xff] }
 0x5c5   :  { %v4327_v1 = vpop.f32.mrf.mxu3  ;;  %4935 = vmatpush.msrb.mxu3 %v4817_v35  ;;  %4957 = vmatpush.msra.mxu1 %v4746_v38  ;;  %v4681_v3 = vld [vmem:[#allocation11 + $0x1d8] sm:$0xff] }
 0x5c6   :  { %v4328_v63 = vadd.f32 %v4327_v1, %v4287_v55  ;;  %v4734_v55 = vld [vmem:[#allocation11 + $0x378] sm:$0xff] }
 0x5c7   :  { %v4432_v0 = vpop.f32.mrf.mxu1  ;;  %v4409_v36 = vpop.f32.mrf.mxu2  ;;  %4936 = vmatpush.msrb.mxu3 %v4813_v44  ;;  %4958 = vmatpush.msra.mxu1 %v4742_v45  ;;  %v4730_v1 = vld [vmem:[#allocation11 + $0x358] sm:$0xff] }
 0x5c8   :  { %v4369_v5 = vadd.f32 %v9156_v32, %v4328_v63  ;;  %v4514_v32 = vpop.f32.mrf.mxu0  ;;  %v4433_v33 = vadd.f32 %v4432_v0, %v4392_v50  ;;  %v4673_v50 = vld [vmem:[#allocation11 + $0x198] sm:$0xff] }
 0x5c9   :  { %4937 = vmatpush.msrb.mxu3 %v4809_v22  ;;  %4959 = vmatpush.msra.mxu1 %v4738_v53  ;;  %v4398_v22 = vadd.f32 %v9144_v62, %v4357_v26  ;;  %v5245_v62 = vld [vmem:[#allocation11 + $0x930] sm:$0xff] }
 0x5ca   :  { %v9179_v43 = vadd.f32 %v4409_v36, %v4369_v5  ;;  %v5241_v53 = vld [vmem:[#allocation11 + $0x910] sm:$0xff] }
 0x5cb   :  { %4938 = vmatpush.msrb.mxu3 %v4805_v60  ;;  %4960 = vmatpush.msra.mxu1 %v4734_v55 }
 0x5cd   :  { %v4470_v41 = vpop.f32.mrf.mxu3  ;;  %4939 = vmatpush.msrb.mxu3 %v4801_v61  ;;  %4961 = vmatpush.msra.mxu1 %v4730_v1  ;;  %v4677_v61 = vld [vmem:[#allocation11 + $0x1b8] sm:$0xff] }
 0x5ce   :  { %v4471_v39 = vadd.f32 %v4470_v41, %v4430_v9  ;;  %v4669_v1 = vld [vmem:[#allocation11 + $0x178] sm:$0xff] }
 0x5cf   :  { %v4435_v12 = vpop.f32.mrf.mxu1  ;;  %v4552_v8 = vpop.f32.mrf.mxu2  ;;  %4940 = vmatpush.msrb.mxu3 %v4797_v13  ;;  %4962 = vmatpush.msra.mxu1 %v4726_v30  ;;  %v5225_v30 = vld [vmem:[#allocation11 + $0x890] sm:$0xff] }
 0x5d0   :  { %v4512_v23 = vadd.f32 %v9168_v47, %v4471_v39  ;;  %v4517_v49 = vpop.f32.mrf.mxu0  ;;  %v4789_v47 = vld [vmem:[#allocation11 + $0x530] sm:$0xff]  ;;  %v4436_v44 = vadd.f32 %v4435_v12, %v9134_v40  ;;  %v4685_v39 = vld [vmem:[#allocation11 + $0x1f8] sm:$0xff] }
 0x5d1   :  { %4941 = vmatpush.msrb.mxu3 %v4793_v11 }
 0x5d2   :  { %v4553_v56 = vadd.f32 %v4552_v8, %v4512_v23  ;;  %v4240_v23 = vadd.f32 %v9088_v15, %v9061_v25  ;;  %v5237_v8 = vld [vmem:[#allocation11 + $0x8f0] sm:$0xff] }
 0x5d3   :  { %4942 = vmatpush.msrb.mxu3 %v4789_v47 }
 0x5d4   :  { %v4577_v29 = vmax.f32 %v9744_v42, %v4553_v56  ;;  %v4281_v13 = vadd.f32 %v9136_v46, %v4240_v23  ;;  %v5233_v42 = vld [vmem:[#allocation11 + $0x8d0] sm:$0xff]  ;;  %v5467_v23 = vld [vmem:[#allocation11 + $0xae0] sm:$0xff] }
 0x5d5   :  { %v4473_v63 = vpop.f32.mrf.mxu3 }
 0x5d6   :  { %v4474_v7 = vadd.f32 %v4473_v63, %v4433_v33  ;;  %v9210_v33 = vmax.f32 %v9090_v24, 0.0  ;;  %v4665_v24 = vld [vmem:[#allocation11 + $0x158] sm:$0xff] }
 0x5d7   :  { %v4438_v0 = vpop.f32.mrf.mxu1  ;;  %v4555_v5 = vpop.f32.mrf.mxu2 }
 0x5d8   :  { %v4515_v48 = vadd.f32 %v4514_v32, %v4474_v7  ;;  %v4520_v9 = vpop.f32.mrf.mxu0  ;;  %v4439_v60 = vadd.f32 %v4438_v0, %v4398_v22  ;;  %v5229_v7 = vld [vmem:[#allocation11 + $0x8b0] sm:$0xff] }
 0x5d9   :  { %v5221_v0 = vld [vmem:[#allocation11 + $0x870] sm:$0xff] }
 0x5da   :  { %v4556_v35 = vadd.f32 %v4555_v5, %v4515_v48  ;;  %v4657_v48 = vld [vmem:[#allocation11 + $0x118] sm:$0xff]  ;;  %v4680_v22 = vld [vmem:[#allocation11 + $0x1d0] sm:$0xff] }
 0x5dc   :  { %v4579_v52 = vmax.f32 %v9745_v14, %v4556_v35  ;;  %v4684_v14 = vld [vmem:[#allocation11 + $0x1f0] sm:$0xff] }
 0x5dd   :  { %v4476_v36 = vpop.f32.mrf.mxu3 }
 0x5de   :  { %v4477_v34 = vadd.f32 %v4476_v36, %v4436_v44  ;;  %v4593_v57 = vmax.f32 %v4577_v29, %v4579_v52  ;;  %v4322_v29 = vadd.f32 %v9154_v21, %v4281_v13  ;;  %v4661_v21 = vld [vmem:[#allocation11 + $0x138] sm:$0xff] }
 0x5df   :  { %v4558_v38 = vpop.f32.mrf.mxu2  ;;  %v4441_v41 = vpop.f32.mrf.mxu1  ;;  %v4822_v44 = vld [vmem:[#allocation11 + $0x638] sm:$0xff] }
 0x5e0   :  { %v4607_v32 = vadd.f32 %v9194_v6, %v4593_v57  ;;  %v4518_v54 = vadd.f32 %v4517_v49, %v4477_v34  ;;  %v4523_v55 = vpop.f32.mrf.mxu0  ;;  %v4442_v25 = vadd.f32 %v4441_v41, %v9150_v4  ;;  %v4363_v4 = vadd.f32 %v9140_v20, %v4322_v29  ;;  %v4653_v20 = vld [vmem:[#allocation11 + $0xf8] sm:$0xff]  ;;  %v5217_v34 = vld [vmem:[#allocation11 + $0x850] sm:$0xff]  ;;  %v5475_v41 = vld [vmem:[#allocation11 + $0xb20] sm:$0xff] }
 0x5e1   :  { %v9746_v57 = vld [vmem:[#allocation65_spill] sm:$0xff]  ;;  %v5463_v29 = vld [vmem:[#allocation11 + $0xac0] sm:$0xff] }
 0x5e2   :  { %v9199_v17 = vmax.f32 %v4607_v32, 0.0  ;;  %v4559_v40 = vadd.f32 %v4558_v38, %v4518_v54  ;;  %v4404_v2 = vadd.f32 %v9160_v31, %v4363_v4  ;;  %v5479_v31 = vld [vmem:[#allocation11 + $0xb40] sm:$0xff]  ;;  %v4818_v32 = vld [vmem:[#allocation11 + $0x618] sm:$0xff] }
 0x5e3   :  { %v4649_v38 = vld [vmem:[#allocation11 + $0xd8] sm:$0xff] }
 0x5e4   :  { %v4581_v45 = vmax.f32 %v8750_v37, %v4559_v40  ;;  %6112 = vmatmul.msk.f32.vlgmr.msrb.gmra.mxu2 %vm4823_vm15, %v9199_v17  ;;  %6114 = vmatmul.msk.f32.vlgmr.msra.gmra.mxu0 %vm4823_vm15, %v9199_v17 }
 0x5e5   :  { %v4479_v12 = vpop.f32.mrf.mxu3  ;;  %5110 = vmatpush.msrb.mxu2 %v4685_v39  ;;  %5361 = vmatpush.msra.mxu0 %v5249_v58  ;;  %v4814_v39 = vld [vmem:[#allocation11 + $0x5f8] sm:$0xff]  ;;  %v4676_v58 = vld [vmem:[#allocation11 + $0x1b0] sm:$0xff] }
 0x5e6   :  { %v4480_v10 = vadd.f32 %v4479_v12, %v4439_v60  ;;  %v4645_v60 = vld [vmem:[#allocation11 + $0xb8] sm:$0xff]  ;;  %v5471_v12 = vld [vmem:[#allocation11 + $0xb00] sm:$0xff] }
 0x5e7   :  { %5111 = vmatpush.msrb.mxu2 %v4681_v3  ;;  %5362 = vmatpush.msra.mxu0 %v5245_v62  ;;  %v4561_v56 = vpop.f32.mrf.mxu2  ;;  %v4444_v46 = vpop.f32.mrf.mxu1  ;;  %v4810_v3 = vld [vmem:[#allocation11 + $0x5d8] sm:$0xff] }
 0x5e8   :  { %v4521_v37 = vadd.f32 %v4520_v9, %v4480_v10  ;;  %v4445_v52 = vadd.f32 %v4444_v46, %v4404_v2  ;;  %v4526_v36 = vpop.f32.mrf.mxu0  ;;  %v4672_v10 = vld [vmem:[#allocation11 + $0x190] sm:$0xff]  ;;  %v5459_v46 = vld [vmem:[#allocation11 + $0xaa0] sm:$0xff] }
 0x5e9   :  { %5112 = vmatpush.msrb.mxu2 %v4677_v61  ;;  %5363 = vmatpush.msra.mxu0 %v5241_v53  ;;  %v4641_v61 = vld [vmem:[#allocation11 + $0x98] sm:$0xff] }
 0x5ea   :  { %v4562_v11 = vadd.f32 %v4561_v56, %v4521_v37  ;;  %v4668_v56 = vld [vmem:[#allocation11 + $0x170] sm:$0xff] }
 0x5eb   :  { %5113 = vmatpush.msrb.mxu2 %v4673_v50  ;;  %5364 = vmatpush.msra.mxu0 %v5237_v8  ;;  %v4806_v50 = vld [vmem:[#allocation11 + $0x5b8] sm:$0xff]  ;;  %v9747_v8 = vld [vmem:[#allocation64_spill] sm:$0xff] }
 0x5ec   :  { %v4583_v15 = vmax.f32 %v8763_v19, %v4562_v11  ;;  %6113 = vmatmul.msk.f32.vlgmr.msra.gmra.mxu2 %vm4823_vm15, %v9199_v17  ;;  %5270 = vmatmul.f32.vlgmr.msrb.gmra.mxu0 %v9210_v33  ;;  %v4637_v11 = vld [vmem:[#allocation11 + $0x78] sm:$0xff] }
 0x5ed   :  { %v4482_v63 = vpop.f32.mrf.mxu3  ;;  %5114 = vmatpush.msrb.mxu2 %v4669_v1  ;;  %5365 = vmatpush.msra.mxu0 %v5233_v42 }
 0x5ee   :  { %v4483_v49 = vadd.f32 %v4482_v63, %v4442_v25  ;;  %v4595_v47 = vmax.f32 %v4581_v45, %v4583_v15  ;;  %v4802_v25 = vld [vmem:[#allocation11 + $0x598] sm:$0xff] }
 0x5ef   :  { %5115 = vmatpush.msrb.mxu2 %v4665_v24  ;;  %5366 = vmatpush.msra.mxu0 %v5229_v7  ;;  %v4564_v5 = vpop.f32.mrf.mxu2  ;;  %v4447_v40 = vpop.f32.mrf.mxu1  ;;  %v4633_v63 = vld [vmem:[#allocation11 + $0x58] sm:$0xff] }
 0x5f0   :  { %v4609_v19 = vadd.f32 %v9194_v6, %v4595_v47  ;;  %v4524_v59 = vadd.f32 %v4523_v55, %v4483_v49  ;;  %v4448_v37 = vadd.f32 %v4447_v40, %v9170_v18  ;;  %v4529_v1 = vpop.f32.mrf.mxu0  ;;  %v4664_v18 = vld [vmem:[#allocation11 + $0x150] sm:$0xff]  ;;  %v4798_v24 = vld [vmem:[#allocation11 + $0x578] sm:$0xff]  ;;  %v5443_v40 = vld [vmem:[#allocation11 + $0xa20] sm:$0xff] }
 0x5f1   :  { %5116 = vmatpush.msrb.mxu2 %v4661_v21  ;;  %5367 = vmatpush.msra.mxu0 %v5225_v30  ;;  %v4660_v47 = vld [vmem:[#allocation11 + $0x130] sm:$0xff]  ;;  %v4629_v21 = vld [vmem:[#allocation11 + $0x38] sm:$0xff] }
 0x5f2   :  { %v9221_v35 = vmax.f32 %v4609_v19, 0.0  ;;  %v4565_v51 = vadd.f32 %v4564_v5, %v4524_v59  ;;  %v5455_v19 = vld [vmem:[#allocation11 + $0xa80] sm:$0xff] }
 0x5f3   :  { %5117 = vmatpush.msrb.mxu2 %v4657_v48  ;;  %5368 = vmatpush.msra.mxu0 %v5221_v0  ;;  %v4656_v48 = vld [vmem:[#allocation11 + $0x110] sm:$0xff]  ;;  %v4625_v0 = vld [vmem:[#allocation11 + $0x18] sm:$0xff]  ;;  %v5451_v5 = vld [vmem:[#allocation11 + $0xa60] sm:$0xff] }
 0x5f4   :  { %v4585_v26 = vmax.f32 %v9746_v57, %v4565_v51  ;;  %6108 = vmatmul.msk.f32.vlgmr.msra.gmra.mxu3 %vm4823_vm15, %v9221_v35  ;;  %6109 = vmatmul.msk.f32.vlgmr.msrb.gmra.mxu1 %vm4823_vm15, %v9221_v35  ;;  %v4652_v57 = vld [vmem:[#allocation11 + $0xf0] sm:$0xff] }
 0x5f5   :  { %v4485_v9 = vpop.f32.mrf.mxu3  ;;  %4974 = vmatpush.msra.mxu3 %v4822_v44  ;;  %5070 = vmatpush.msrb.mxu1 %v4684_v14  ;;  %v9748_v44 = vld [vmem:[#allocation60_spill] sm:$0xff] }
 0x5f6   :  { %v4486_v54 = vadd.f32 %v4485_v9, %v4445_v52  ;;  %5118 = vmatpush.msrb.mxu2 %v4653_v20  ;;  %5369 = vmatpush.msra.mxu0 %v5217_v34  ;;  %v4790_v20 = vld [vmem:[#allocation11 + $0x538] sm:$0xff]  ;;  %v4683_v9 = vld [vmem:[#allocation11 + $0x1e8] sm:$0xff] }
 0x5f7   :  { %4975 = vmatpush.msra.mxu3 %v4818_v32  ;;  %5071 = vmatpush.msrb.mxu1 %v4680_v22  ;;  %v4567_v62 = vpop.f32.mrf.mxu2  ;;  %v4450_v49 = vpop.f32.mrf.mxu1  ;;  %v4648_v32 = vld [vmem:[#allocation11 + $0xd0] sm:$0xff] }
 0x5f8   :  { %5522 = vmatpush.msrb.mxu0 %v5479_v31  ;;  %5119 = vmatpush.msrb.mxu2 %v4649_v38  ;;  %v4527_v45 = vadd.f32 %v4526_v36, %v4486_v54  ;;  %v4451_v2 = vadd.f32 %v4450_v49, %v9179_v43  ;;  %v5248_v36 = vld [vmem:[#allocation11 + $0x948] sm:$0xff]  ;;  %v5447_v31 = vld [vmem:[#allocation11 + $0xa40] sm:$0xff]  ;;  %v9248_v49 = vmax.f32 %v9116_v28, 0.0 }
 0x5f9   :  { %4976 = vmatpush.msra.mxu3 %v4814_v39  ;;  %5072 = vmatpush.msrb.mxu1 %v4676_v58  ;;  %v5244_v43 = vld [vmem:[#allocation11 + $0x928] sm:$0xff]  ;;  %v4644_v39 = vld [vmem:[#allocation11 + $0xb0] sm:$0xff] }
 0x5fa   :  { %5523 = vmatpush.msrb.mxu0 %v5475_v41  ;;  %5120 = vmatpush.msrb.mxu2 %v4645_v60  ;;  %v4568_v53 = vadd.f32 %v4567_v62, %v4527_v45  ;;  %v5240_v54 = vld [vmem:[#allocation11 + $0x908] sm:$0xff] }
 0x5fb   :  { %4977 = vmatpush.msra.mxu3 %v4810_v3  ;;  %5073 = vmatpush.msrb.mxu1 %v4672_v10  ;;  %v4679_v38 = vld [vmem:[#allocation11 + $0x1c8] sm:$0xff]  ;;  %v9749_v3 = vld [vmem:[#allocation66_spill] sm:$0xff]  ;;  %v4640_v10 = vld [vmem:[#allocation11 + $0x90] sm:$0xff] }
 0x5fc   :  { %5524 = vmatpush.msrb.mxu0 %v5471_v12  ;;  %v4587_v13 = vmax.f32 %v9747_v8, %v4568_v53  ;;  %5121 = vmatpush.msrb.mxu2 %v4641_v61  ;;  %v5236_v60 = vld [vmem:[#allocation11 + $0x8e8] sm:$0xff]  ;;  %v5439_v12 = vld [vmem:[#allocation11 + $0xa00] sm:$0xff] }
 0x5fd   :  { %v4488_v55 = vpop.f32.mrf.mxu3  ;;  %6110 = vmatmul.msk.f32.vlgmr.msrb.gmra.mxu3 %vm4823_vm15, %v9221_v35  ;;  %4963 = vmatmul.f32.vlgmr.msra.gmra.mxu1 %v9093_v27  ;;  %v4794_v27 = vld [vmem:[#allocation11 + $0x558] sm:$0xff]  ;;  %v4675_v45 = vld [vmem:[#allocation11 + $0x1a8] sm:$0xff]  ;;  %v5435_v53 = vld [vmem:[#allocation11 + $0x9e0] sm:$0xff] }
 0x5fe   :  { %v4489_v42 = vadd.f32 %v4488_v55, %v4448_v37  ;;  %5525 = vmatpush.msrb.mxu0 %v5467_v23  ;;  %v4597_v15 = vmax.f32 %v4585_v26, %v4587_v13  ;;  %4978 = vmatpush.msra.mxu3 %v4806_v50  ;;  %v4532_v26 = vpop.f32.mrf.mxu0  ;;  %v5232_v61 = vld [vmem:[#allocation11 + $0x8c8] sm:$0xff]  ;;  %v4636_v37 = vld [vmem:[#allocation11 + $0x70] sm:$0xff]  ;;  %v5431_v13 = vld [vmem:[#allocation11 + $0x9c0] sm:$0xff] }
 0x5ff   :  { %5074 = vmatpush.msrb.mxu1 %v4668_v56  ;;  %5122 = vmatpush.msrb.mxu2 %v4637_v11  ;;  %v4570_v4 = vpop.f32.mrf.mxu2  ;;  %v5228_v50 = vld [vmem:[#allocation11 + $0x8a8] sm:$0xff]  ;;  %v4632_v56 = vld [vmem:[#allocation11 + $0x50] sm:$0xff] }
 0x600   :  { %v4611_v7 = vadd.f32 %v9194_v6, %v4597_v15  ;;  %5526 = vmatpush.msrb.mxu0 %v5463_v29  ;;  %4979 = vmatpush.msra.mxu3 %v4802_v25  ;;  %v4530_v30 = vadd.f32 %v4529_v1, %v4489_v42  ;;  %v4667_v8 = vld [vmem:[#allocation11 + $0x168] sm:$0xff]  ;;  %v5427_v42 = vld [vmem:[#allocation11 + $0x9a0] sm:$0xff]  ;;  %v4628_v29 = vld [vmem:[#allocation11 + $0x30] sm:$0xff] }
 0x601   :  { %5075 = vmatpush.msrb.mxu1 %v4664_v18  ;;  %5123 = vmatpush.msrb.mxu2 %v4633_v63  ;;  %v5224_v11 = vld [vmem:[#allocation11 + $0x888] sm:$0xff]  ;;  %v5423_v18 = vld [vmem:[#allocation11 + $0x980] sm:$0xff] }
 0x602   :  { %5527 = vmatpush.msrb.mxu0 %v5459_v46  ;;  %4980 = vmatpush.msra.mxu3 %v4798_v24  ;;  %v4571_v59 = vadd.f32 %v4570_v4, %v4530_v30  ;;  %v9235_v51 = vmax.f32 %v4611_v7, 0.0  ;;  %v4663_v1 = vld [vmem:[#allocation11 + $0x148] sm:$0xff]  ;;  %v5247_v24 = vld [vmem:[#allocation11 + $0x940] sm:$0xff] }
 0x603   :  { %5076 = vmatpush.msrb.mxu1 %v4660_v47  ;;  %5124 = vmatpush.msrb.mxu2 %v4629_v21  ;;  %v5220_v25 = vld [vmem:[#allocation11 + $0x868] sm:$0xff]  ;;  %v5419_v7 = vld [vmem:[#allocation11 + $0x960] sm:$0xff]  ;;  %v5214_v47 = vld [vmem:[#allocation11 + $0x838] sm:$0xff] }
 0x604   :  { %v4589_v14 = vmax.f32 %v9748_v44, %v4571_v59  ;;  %5528 = vmatpush.msrb.mxu0 %v5455_v19  ;;  %4981 = vmatpush.msra.mxu3 %v4794_v27  ;;  %v4659_v15 = vld [vmem:[#allocation11 + $0x128] sm:$0xff]  ;;  %v5517_v21 = vld [vmem:[#allocation11 + $0xc70] sm:$0xff]  ;;  %v5243_v4 = vld [vmem:[#allocation11 + $0x920] sm:$0xff] }
 0x605   :  { %v4491_v52 = vpop.f32.mrf.mxu3  ;;  %5077 = vmatpush.msrb.mxu1 %v4656_v48  ;;  %5125 = vmatpush.msrb.mxu2 %v4625_v0  ;;  %v5216_v63 = vld [vmem:[#allocation11 + $0x848] sm:$0xff]  ;;  %v5210_v19 = vld [vmem:[#allocation11 + $0x818] sm:$0xff]  ;;  %v5513_v27 = vld [vmem:[#allocation11 + $0xc50] sm:$0xff] }
 0x606   :  { %v4492_v34 = vadd.f32 %v4491_v52, %v4451_v2  ;;  %5126 = vmatmul.f32.vlgmr.msrb.gmra.mxu2 %v9108_v16  ;;  %5529 = vmatpush.msrb.mxu0 %v5451_v5  ;;  %v4655_v46 = vld [vmem:[#allocation11 + $0x108] sm:$0xff]  ;;  %v5239_v59 = vld [vmem:[#allocation11 + $0x900] sm:$0xff]  ;;  %v5206_v48 = vld [vmem:[#allocation11 + $0x7f8] sm:$0xff] }
 0x607   :  { %5321 = vmatpush.msra.mxu2 %v5248_v36  ;;  %4982 = vmatpush.msra.mxu3 %v4790_v20  ;;  %v4573_v41 = vpop.f32.mrf.mxu2  ;;  %v4651_v30 = vld [vmem:[#allocation11 + $0xe8] sm:$0xff]  ;;  %v5509_v0 = vld [vmem:[#allocation11 + $0xc30] sm:$0xff]  ;;  %v5235_v5 = vld [vmem:[#allocation11 + $0x8e0] sm:$0xff] }
 0x608   :  { %5078 = vmatpush.msrb.mxu1 %v4652_v57  ;;  %6118 = vmatmul.msk.f32.vlgmr.msra.gmra.mxu0 %vm4823_vm15, %v9235_v51  ;;  %v4533_v22 = vadd.f32 %v4532_v26, %v4492_v34  ;;  %v4647_v28 = vld [vmem:[#allocation11 + $0xc8] sm:$0xff]  ;;  %v5202_v44 = vld [vmem:[#allocation11 + $0x7d8] sm:$0xff]  ;;  %v5231_v36 = vld [vmem:[#allocation11 + $0x8c0] sm:$0xff] }
 0x609   :  { %6111 = vmatmul.msk.f32.vlgmr.msra.gmra.mxu3 %vm4823_vm15, %v9221_v35  ;;  %5322 = vmatpush.msra.mxu2 %v5244_v43  ;;  %v4671_v35 = vld [vmem:[#allocation11 + $0x188] sm:$0xff]  ;;  %v5198_v20 = vld [vmem:[#allocation11 + $0x7b8] sm:$0xff]  ;;  %v5501_v34 = vld [vmem:[#allocation11 + $0xbf0] sm:$0xff] }
 0x60a   :  { %5030 = vmatpush.msrb.mxu3 %v4683_v9  ;;  %5530 = vmatpush.msrb.mxu0 %v5447_v31  ;;  %v4574_v58 = vadd.f32 %v4573_v41, %v4533_v22  ;;  %v4643_v2 = vld [vmem:[#allocation11 + $0xa8] sm:$0xff]  ;;  %v5227_v43 = vld [vmem:[#allocation11 + $0x8a0] sm:$0xff]  ;;  %v5194_v26 = vld [vmem:[#allocation11 + $0x798] sm:$0xff] }
 0x60b   :  { %5079 = vmatpush.msrb.mxu1 %v4648_v32  ;;  %5323 = vmatpush.msra.mxu2 %v5240_v54  ;;  %v4639_v52 = vld [vmem:[#allocation11 + $0x88] sm:$0xff]  ;;  %v5497_v9 = vld [vmem:[#allocation11 + $0xbd0] sm:$0xff]  ;;  %v5223_v32 = vld [vmem:[#allocation11 + $0x880] sm:$0xff] }
 0x60c   :  { %5031 = vmatpush.msrb.mxu3 %v4679_v38  ;;  %5531 = vmatpush.msrb.mxu0 %v5443_v40  ;;  %v4591_v62 = vmax.f32 %v9749_v3, %v4574_v58  ;;  %v4635_v57 = vld [vmem:[#allocation11 + $0x68] sm:$0xff]  ;;  %v5190_v54 = vld [vmem:[#allocation11 + $0x778] sm:$0xff]  ;;  %v5493_v22 = vld [vmem:[#allocation11 + $0xbb0] sm:$0xff] }
 0x60d   :  { %5080 = vmatpush.msrb.mxu1 %v4644_v39  ;;  %5324 = vmatpush.msra.mxu2 %v5236_v60  ;;  %v4631_v31 = vld [vmem:[#allocation11 + $0x48] sm:$0xff]  ;;  %v5219_v40 = vld [vmem:[#allocation11 + $0x860] sm:$0xff]  ;;  %v5186_v41 = vld [vmem:[#allocation11 + $0x758] sm:$0xff] }
 0x60e   :  { %v4599_v23 = vmax.f32 %v4589_v14, %v4591_v62  ;;  %5032 = vmatpush.msrb.mxu3 %v4675_v45  ;;  %5532 = vmatpush.msrb.mxu0 %v5439_v12  ;;  %v5505_v14 = vld [vmem:[#allocation11 + $0xc10] sm:$0xff]  ;;  %v4627_v38 = vld [vmem:[#allocation11 + $0x28] sm:$0xff]  ;;  %v5215_v60 = vld [vmem:[#allocation11 + $0x840] sm:$0xff] }
 0x60f   :  { %5081 = vmatpush.msrb.mxu1 %v4640_v10  ;;  %5325 = vmatpush.msra.mxu2 %v5232_v61  ;;  %v5489_v39 = vld [vmem:[#allocation11 + $0xb90] sm:$0xff]  ;;  %v4623_v58 = vld [vmem:[#allocation11 + $0x8] sm:$0xff]  ;;  %v4721_v45 = vld [vmem:[#allocation11 + $0x318] sm:$0xff] }
 0x610   :  { %v9245_v55 = vadd.f32 %v9194_v6, %v4599_v23  ;;  %5033 = vmatpush.msrb.mxu3 %v4671_v35  ;;  %5533 = vmatpush.msrb.mxu0 %v5435_v53  ;;  %v4624_v6 = vld [vmem:[#allocation11 + $0x10] sm:$0xff]  ;;  %v5182_v3 = vld [vmem:[#allocation11 + $0x738] sm:$0xff] }
 0x611   :  { %5082 = vmatpush.msrb.mxu1 %v4636_v37  ;;  %5326 = vmatpush.msra.mxu2 %v5228_v50  ;;  %v5213_v12 = vld [vmem:[#allocation11 + $0x830] sm:$0xff]  ;;  %v4717_v10 = vld [vmem:[#allocation11 + $0x2f8] sm:$0xff] }
 0x612   :  { %5034 = vmatpush.msrb.mxu3 %v4667_v8  ;;  %5534 = vmatpush.msrb.mxu0 %v5431_v13  ;;  %v5485_v62 = vld [vmem:[#allocation11 + $0xb70] sm:$0xff]  ;;  %v9258_v61 = vmax.f32 %v9245_v55, 0.0  ;;  %v5178_v53 = vld [vmem:[#allocation11 + $0x718] sm:$0xff] }
 0x613   :  { %5083 = vmatpush.msrb.mxu1 %v4632_v56  ;;  %5327 = vmatpush.msra.mxu2 %v5224_v11  ;;  %v5209_v35 = vld [vmem:[#allocation11 + $0x810] sm:$0xff]  ;;  %v4713_v23 = vld [vmem:[#allocation11 + $0x2d8] sm:$0xff] }
 0x614   :  { %5035 = vmatpush.msrb.mxu3 %v4663_v1  ;;  %5535 = vmatpush.msrb.mxu0 %v5427_v42  ;;  %v5205_v37 = vld [vmem:[#allocation11 + $0x7f0] sm:$0xff]  ;;  %v4709_v50 = vld [vmem:[#allocation11 + $0x2b8] sm:$0xff] }
 0x615   :  { %5084 = vmatpush.msrb.mxu1 %v4628_v29  ;;  %5328 = vmatpush.msra.mxu2 %v5220_v25  ;;  %v5201_v8 = vld [vmem:[#allocation11 + $0x7d0] sm:$0xff]  ;;  %v5170_v13 = vld [vmem:[#allocation11 + $0x6d8] sm:$0xff] }
 0x616   :  { %5036 = vmatpush.msrb.mxu3 %v4659_v15  ;;  %5536 = vmatpush.msrb.mxu0 %v5423_v18  ;;  %v4705_v55 = vld [vmem:[#allocation11 + $0x298] sm:$0xff]  ;;  %v5197_v56 = vld [vmem:[#allocation11 + $0x7b0] sm:$0xff] }
 0x617   :  { %5085 = vmatpush.msrb.mxu1 %v4624_v6  ;;  %5329 = vmatpush.msra.mxu2 %v5216_v63  ;;  %v5166_v11 = vld [vmem:[#allocation11 + $0x6b8] sm:$0xff]  ;;  %v5193_v42 = vld [vmem:[#allocation11 + $0x790] sm:$0xff] }
 0x618   :  { %5037 = vmatpush.msrb.mxu3 %v4655_v46  ;;  %5086 = vmatmul.f32.vlgmr.msrb.gmra.mxu1 %v9108_v16  ;;  %v4701_v1 = vld [vmem:[#allocation11 + $0x278] sm:$0xff]  ;;  %v5189_v15 = vld [vmem:[#allocation11 + $0x770] sm:$0xff] }
 0x619   :  { %5281 = vmatpush.msra.mxu1 %v5247_v24  ;;  %5537 = vmatpush.msrb.mxu0 %v5419_v7  ;;  %v5162_v29 = vld [vmem:[#allocation11 + $0x698] sm:$0xff]  ;;  %v5185_v63 = vld [vmem:[#allocation11 + $0x750] sm:$0xff]  ;;  %v5516_v7 = vld [vmem:[#allocation11 + $0xc68] sm:$0xff] }
 0x61a   :  { %6117 = vmatmul.msk.f32.vlgmr.msra.gmra.mxu2 %vm4823_vm15, %v9235_v51  ;;  %5538 = vmatmul.f32.vlgmr.msrb.gmra.mxu0 %v9248_v49  ;;  %v4697_v25 = vld [vmem:[#allocation11 + $0x258] sm:$0xff] }
 0x61b   :  { %5374 = vmatpush.msrb.mxu2 %v5214_v47  ;;  %5629 = vmatpush.msra.mxu0 %v5517_v21  ;;  %v5158_v18 = vld [vmem:[#allocation11 + $0x678] sm:$0xff]  ;;  %v5181_v47 = vld [vmem:[#allocation11 + $0x730] sm:$0xff]  ;;  %v5212_v21 = vld [vmem:[#allocation11 + $0x828] sm:$0xff] }
 0x61c   :  { %5038 = vmatpush.msrb.mxu3 %v4651_v30  ;;  %5282 = vmatpush.msra.mxu1 %v5243_v4  ;;  %v4693_v6 = vld [vmem:[#allocation11 + $0x238] sm:$0xff]  ;;  %v5512_v30 = vld [vmem:[#allocation11 + $0xc48] sm:$0xff]  ;;  %v5177_v4 = vld [vmem:[#allocation11 + $0x710] sm:$0xff] }
 0x61d   :  { %5375 = vmatpush.msrb.mxu2 %v5210_v19  ;;  %5630 = vmatpush.msra.mxu0 %v5513_v27  ;;  %v5154_v46 = vld [vmem:[#allocation11 + $0x658] sm:$0xff]  ;;  %v5208_v19 = vld [vmem:[#allocation11 + $0x808] sm:$0xff] }
 0x61e   :  { %5039 = vmatpush.msrb.mxu3 %v4647_v28  ;;  %5283 = vmatpush.msra.mxu1 %v5239_v59  ;;  %v4689_v24 = vld [vmem:[#allocation11 + $0x218] sm:$0xff]  ;;  %v5508_v27 = vld [vmem:[#allocation11 + $0xc28] sm:$0xff]  ;;  %v5173_v28 = vld [vmem:[#allocation11 + $0x6f0] sm:$0xff] }
 0x61f   :  { %5376 = vmatpush.msrb.mxu2 %v5206_v48  ;;  %5631 = vmatpush.msra.mxu0 %v5509_v0  ;;  %v5204_v59 = vld [vmem:[#allocation11 + $0x7e8] sm:$0xff]  ;;  %v5169_v0 = vld [vmem:[#allocation11 + $0x6d0] sm:$0xff] }
 0x620   :  { %5040 = vmatpush.msrb.mxu3 %v4643_v2  ;;  %5284 = vmatpush.msra.mxu1 %v5235_v5  ;;  %v5504_v48 = vld [vmem:[#allocation11 + $0xc08] sm:$0xff] }
 0x621   :  { %5377 = vmatpush.msrb.mxu2 %v5202_v44  ;;  %5632 = vmatpush.msra.mxu0 %v5505_v14  ;;  %v5200_v2 = vld [vmem:[#allocation11 + $0x7c8] sm:$0xff]  ;;  %v5165_v44 = vld [vmem:[#allocation11 + $0x6b0] sm:$0xff] }
 0x622   :  { %5041 = vmatpush.msrb.mxu3 %v4639_v52  ;;  %5285 = vmatpush.msra.mxu1 %v5231_v36  ;;  %v5500_v5 = vld [vmem:[#allocation11 + $0xbe8] sm:$0xff]  ;;  %v5161_v52 = vld [vmem:[#allocation11 + $0x690] sm:$0xff] }
 0x623   :  { %5378 = vmatpush.msrb.mxu2 %v5198_v20  ;;  %5633 = vmatpush.msra.mxu0 %v5501_v34  ;;  %v5196_v14 = vld [vmem:[#allocation11 + $0x7a8] sm:$0xff]  ;;  %v5157_v34 = vld [vmem:[#allocation11 + $0x670] sm:$0xff] }
 0x624   :  { %5042 = vmatpush.msrb.mxu3 %v4635_v57  ;;  %5286 = vmatpush.msra.mxu1 %v5227_v43  ;;  %v5192_v36 = vld [vmem:[#allocation11 + $0x788] sm:$0xff] }
 0x625   :  { %5379 = vmatpush.msrb.mxu2 %v5194_v26  ;;  %5634 = vmatpush.msra.mxu0 %v5497_v9  ;;  %v5492_v20 = vld [vmem:[#allocation11 + $0xba8] sm:$0xff]  ;;  %v5153_v26 = vld [vmem:[#allocation11 + $0x650] sm:$0xff] }
 0x626   :  { %5043 = vmatpush.msrb.mxu3 %v4631_v31  ;;  %5287 = vmatpush.msra.mxu1 %v5223_v32  ;;  %v5188_v57 = vld [vmem:[#allocation11 + $0x768] sm:$0xff]  ;;  %v5515_v31 = vld [vmem:[#allocation11 + $0xc60] sm:$0xff] }
 0x627   :  { %5380 = vmatpush.msrb.mxu2 %v5190_v54  ;;  %5635 = vmatpush.msra.mxu0 %v5493_v22  ;;  %v5488_v43 = vld [vmem:[#allocation11 + $0xb88] sm:$0xff]  ;;  %v5482_v22 = vld [vmem:[#allocation11 + $0xb58] sm:$0xff] }
 0x628   :  { %5044 = vmatpush.msrb.mxu3 %v4627_v38  ;;  %5288 = vmatpush.msra.mxu1 %v5219_v40  ;;  %v5184_v9 = vld [vmem:[#allocation11 + $0x748] sm:$0xff]  ;;  %v5511_v38 = vld [vmem:[#allocation11 + $0xc40] sm:$0xff] }
 0x629   :  { %5381 = vmatpush.msrb.mxu2 %v5186_v41  ;;  %5636 = vmatpush.msra.mxu0 %v5489_v39  ;;  %v5484_v32 = vld [vmem:[#allocation11 + $0xb68] sm:$0xff]  ;;  %v5478_v41 = vld [vmem:[#allocation11 + $0xb38] sm:$0xff]  ;;  %v5507_v39 = vld [vmem:[#allocation11 + $0xc20] sm:$0xff] }
 0x62a   :  { %5045 = vmatpush.msrb.mxu3 %v4623_v58  ;;  %5289 = vmatpush.msra.mxu1 %v5215_v60  ;;  %v5180_v54 = vld [vmem:[#allocation11 + $0x728] sm:$0xff]  ;;  %v5474_v60 = vld [vmem:[#allocation11 + $0xb18] sm:$0xff] }
 0x62b   :  { %5046 = vmatmul.f32.vlgmr.msrb.gmra.mxu3 %v9108_v16  ;;  %6116 = vmatmul.msk.f32.vlgmr.msra.gmra.mxu1 %vm4823_vm15, %v9235_v51  ;;  %v5174_v16 = vld [vmem:[#allocation11 + $0x6f8] sm:$0xff]  ;;  %v5176_v40 = vld [vmem:[#allocation11 + $0x708] sm:$0xff] }
 0x62c   :  { %5137 = vmatpush.msra.mxu3 %v4721_v45  ;;  %5334 = vmatpush.msrb.mxu1 %v5213_v12  ;;  %v5172_v58 = vld [vmem:[#allocation11 + $0x6e8] sm:$0xff]  ;;  %v5503_v45 = vld [vmem:[#allocation11 + $0xc00] sm:$0xff] }
 0x62d   :  { %5382 = vmatpush.msrb.mxu2 %v5182_v3  ;;  %5637 = vmatpush.msra.mxu0 %v5485_v62  ;;  %v5168_v12 = vld [vmem:[#allocation11 + $0x6c8] sm:$0xff]  ;;  %v5470_v3 = vld [vmem:[#allocation11 + $0xaf8] sm:$0xff]  ;;  %v5499_v62 = vld [vmem:[#allocation11 + $0xbe0] sm:$0xff] }
 0x62e   :  { %6122 = vmatmul.msk.f32.vlgmr.msra.gmra.mxu0 %vm4823_vm15, %v9258_v61  ;;  %5138 = vmatpush.msra.mxu3 %v4717_v10  ;;  %v5164_v10 = vld [vmem:[#allocation11 + $0x6a8] sm:$0xff] }
 0x62f   :  { %5335 = vmatpush.msrb.mxu1 %v5209_v35  ;;  %5383 = vmatpush.msrb.mxu2 %v5178_v53  ;;  %v5466_v35 = vld [vmem:[#allocation11 + $0xad8] sm:$0xff]  ;;  %v5495_v53 = vld [vmem:[#allocation11 + $0xbc0] sm:$0xff] }
 0x630   :  { %5139 = vmatpush.msra.mxu3 %v4713_v23  ;;  %v5160_v23 = vld [vmem:[#allocation11 + $0x688] sm:$0xff] }
 0x631   :  { %5336 = vmatpush.msrb.mxu1 %v5205_v37  ;;  %5384 = vmatpush.msrb.mxu2 %v5174_v16  ;;  %v5462_v37 = vld [vmem:[#allocation11 + $0xab8] sm:$0xff]  ;;  %v5491_v16 = vld [vmem:[#allocation11 + $0xba0] sm:$0xff] }
 0x632   :  { %5140 = vmatpush.msra.mxu3 %v4709_v50  ;;  %v5156_v50 = vld [vmem:[#allocation11 + $0x668] sm:$0xff] }
 0x633   :  { %5337 = vmatpush.msrb.mxu1 %v5201_v8  ;;  %5385 = vmatpush.msrb.mxu2 %v5170_v13  ;;  %v5458_v8 = vld [vmem:[#allocation11 + $0xa98] sm:$0xff]  ;;  %v5487_v13 = vld [vmem:[#allocation11 + $0xb80] sm:$0xff] }
 0x634   :  { %5141 = vmatpush.msra.mxu3 %v4705_v55  ;;  %v5152_v55 = vld [vmem:[#allocation11 + $0x648] sm:$0xff] }
 0x635   :  { %5338 = vmatpush.msrb.mxu1 %v5197_v56  ;;  %5386 = vmatpush.msrb.mxu2 %v5166_v11  ;;  %v5454_v56 = vld [vmem:[#allocation11 + $0xa78] sm:$0xff]  ;;  %v5483_v11 = vld [vmem:[#allocation11 + $0xb60] sm:$0xff] }
 0x636   :  { %5142 = vmatpush.msra.mxu3 %v4701_v1  ;;  %v5250_v1 = vld [vmem:[#allocation11 + $0x958] sm:$0xff] }
 0x637   :  { %5339 = vmatpush.msrb.mxu1 %v5193_v42  ;;  %5387 = vmatpush.msrb.mxu2 %v5162_v29  ;;  %v5481_v42 = vld [vmem:[#allocation11 + $0xb50] sm:$0xff]  ;;  %v5450_v29 = vld [vmem:[#allocation11 + $0xa58] sm:$0xff] }
 0x638   :  { %5143 = vmatpush.msra.mxu3 %v4697_v25  ;;  %v5246_v25 = vld [vmem:[#allocation11 + $0x938] sm:$0xff] }
 0x639   :  { %5340 = vmatpush.msrb.mxu1 %v5189_v15  ;;  %5388 = vmatpush.msrb.mxu2 %v5158_v18  ;;  %v5477_v15 = vld [vmem:[#allocation11 + $0xb30] sm:$0xff]  ;;  %v5446_v18 = vld [vmem:[#allocation11 + $0xa38] sm:$0xff] }
 0x63a   :  { %5144 = vmatpush.msra.mxu3 %v4693_v6  ;;  %v5242_v6 = vld [vmem:[#allocation11 + $0x918] sm:$0xff] }
 0x63b   :  { %5341 = vmatpush.msrb.mxu1 %v5185_v63  ;;  %5389 = vmatpush.msrb.mxu2 %v5154_v46  ;;  %v5473_v63 = vld [vmem:[#allocation11 + $0xb10] sm:$0xff]  ;;  %v5442_v46 = vld [vmem:[#allocation11 + $0xa18] sm:$0xff] }
 0x63c   :  { %5390 = vmatmul.f32.vlgmr.msrb.gmra.mxu2 %v9210_v33  ;;  %5145 = vmatpush.msra.mxu3 %v4689_v24  ;;  %v5238_v24 = vld [vmem:[#allocation11 + $0x8f8] sm:$0xff] }
 0x63d   :  { %5589 = vmatpush.msra.mxu2 %v5516_v7  ;;  %5342 = vmatpush.msrb.mxu1 %v5181_v47  ;;  %v5469_v7 = vld [vmem:[#allocation11 + $0xaf0] sm:$0xff]  ;;  %v5234_v47 = vld [vmem:[#allocation11 + $0x8d8] sm:$0xff] }
 0x63e   :  { %6115 = vmatmul.msk.f32.vlgmr.msra.gmra.mxu3 %vm4823_vm15, %v9199_v17  ;;  %v5496_v17 = vld [vmem:[#allocation11 + $0xbc8] sm:$0xff] }
 0x63f   :  { %5294 = vmatpush.msrb.mxu3 %v5212_v21  ;;  %5590 = vmatpush.msra.mxu2 %v5512_v30  ;;  %v5465_v21 = vld [vmem:[#allocation11 + $0xad0] sm:$0xff]  ;;  %v5434_v30 = vld [vmem:[#allocation11 + $0x9d8] sm:$0xff] }
 0x640   :  { %5343 = vmatpush.msrb.mxu1 %v5177_v4  ;;  %v5230_v4 = vld [vmem:[#allocation11 + $0x8b8] sm:$0xff] }
 0x641   :  { %5295 = vmatpush.msrb.mxu3 %v5208_v19  ;;  %5591 = vmatpush.msra.mxu2 %v5508_v27  ;;  %v5461_v19 = vld [vmem:[#allocation11 + $0xab0] sm:$0xff]  ;;  %v5430_v27 = vld [vmem:[#allocation11 + $0x9b8] sm:$0xff] }
 0x642   :  { %5344 = vmatpush.msrb.mxu1 %v5173_v28  ;;  %v5226_v28 = vld [vmem:[#allocation11 + $0x898] sm:$0xff] }
 0x643   :  { %5296 = vmatpush.msrb.mxu3 %v5204_v59  ;;  %5592 = vmatpush.msra.mxu2 %v5504_v48  ;;  %v5457_v59 = vld [vmem:[#allocation11 + $0xa90] sm:$0xff]  ;;  %v5426_v48 = vld [vmem:[#allocation11 + $0x998] sm:$0xff] }
 0x644   :  { %5345 = vmatpush.msrb.mxu1 %v5169_v0  ;;  %v5222_v0 = vld [vmem:[#allocation11 + $0x878] sm:$0xff] }
 0x645   :  { %5297 = vmatpush.msrb.mxu3 %v5200_v2  ;;  %5593 = vmatpush.msra.mxu2 %v5500_v5  ;;  %v5453_v2 = vld [vmem:[#allocation11 + $0xa70] sm:$0xff]  ;;  %v5422_v5 = vld [vmem:[#allocation11 + $0x978] sm:$0xff] }
 0x646   :  { %5346 = vmatpush.msrb.mxu1 %v5165_v44  ;;  %v5218_v44 = vld [vmem:[#allocation11 + $0x858] sm:$0xff] }
 0x647   :  { %5298 = vmatpush.msrb.mxu3 %v5196_v14  ;;  %5594 = vmatpush.msra.mxu2 %v5496_v17  ;;  %v5449_v14 = vld [vmem:[#allocation11 + $0xa50] sm:$0xff]  ;;  %v5480_v17 = vld [vmem:[#allocation11 + $0xb48] sm:$0xff] }
 0x648   :  { %5347 = vmatpush.msrb.mxu1 %v5161_v52  ;;  %v5445_v52 = vld [vmem:[#allocation11 + $0xa30] sm:$0xff] }
 0x649   :  { %5299 = vmatpush.msrb.mxu3 %v5192_v36  ;;  %5595 = vmatpush.msra.mxu2 %v5492_v20  ;;  %v5476_v36 = vld [vmem:[#allocation11 + $0xb28] sm:$0xff]  ;;  %v5441_v20 = vld [vmem:[#allocation11 + $0xa10] sm:$0xff] }
 0x64a   :  { %5348 = vmatpush.msrb.mxu1 %v5157_v34  ;;  %v5472_v34 = vld [vmem:[#allocation11 + $0xb08] sm:$0xff] }
 0x64b   :  { %5300 = vmatpush.msrb.mxu3 %v5188_v57  ;;  %5596 = vmatpush.msra.mxu2 %v5488_v43  ;;  %v5437_v57 = vld [vmem:[#allocation11 + $0x9f0] sm:$0xff]  ;;  %v5468_v43 = vld [vmem:[#allocation11 + $0xae8] sm:$0xff] }
 0x64c   :  { %5349 = vmatpush.msrb.mxu1 %v5153_v26  ;;  %v5433_v26 = vld [vmem:[#allocation11 + $0x9d0] sm:$0xff] }
 0x64d   :  { %5301 = vmatpush.msrb.mxu3 %v5184_v9  ;;  %5350 = vmatmul.f32.vlgmr.msrb.gmra.mxu1 %v9210_v33  ;;  %v5464_v9 = vld [vmem:[#allocation11 + $0xac8] sm:$0xff] }
 0x64e   :  { %5549 = vmatpush.msra.mxu1 %v5515_v31  ;;  %5597 = vmatpush.msra.mxu2 %v5484_v32  ;;  %v5429_v31 = vld [vmem:[#allocation11 + $0x9b0] sm:$0xff]  ;;  %v5460_v32 = vld [vmem:[#allocation11 + $0xaa8] sm:$0xff] }
 0x64f   :  { %6121 = vmatmul.msk.f32.vlgmr.msra.gmra.mxu2 %vm4823_vm15, %v9258_v61  ;;  %5302 = vmatpush.msrb.mxu3 %v5180_v54  ;;  %v5425_v54 = vld [vmem:[#allocation11 + $0x990] sm:$0xff] }
 0x650   :  { %5642 = vmatpush.msrb.mxu2 %v5482_v22  ;;  %5550 = vmatpush.msra.mxu1 %v5511_v38  ;;  %v5421_v22 = vld [vmem:[#allocation11 + $0x970] sm:$0xff]  ;;  %v5452_v38 = vld [vmem:[#allocation11 + $0xa68] sm:$0xff] }
 0x651   :  { %5303 = vmatpush.msrb.mxu3 %v5176_v40  ;;  %v5448_v40 = vld [vmem:[#allocation11 + $0xa48] sm:$0xff] }
 0x652   :  { %5643 = vmatpush.msrb.mxu2 %v5478_v41  ;;  %5551 = vmatpush.msra.mxu1 %v5507_v39  ;;  %v5444_v41 = vld [vmem:[#allocation11 + $0xa28] sm:$0xff] }
 0x653   :  { %5304 = vmatpush.msrb.mxu3 %v5172_v58  ;;  %v5440_v39 = vld [vmem:[#allocation11 + $0xa08] sm:$0xff] }
 0x654   :  { %5644 = vmatpush.msrb.mxu2 %v5474_v60  ;;  %5552 = vmatpush.msra.mxu1 %v5503_v45  ;;  %v5436_v58 = vld [vmem:[#allocation11 + $0x9e8] sm:$0xff] }
 0x655   :  { %5305 = vmatpush.msrb.mxu3 %v5168_v12  ;;  %v5432_v60 = vld [vmem:[#allocation11 + $0x9c8] sm:$0xff] }
 0x656   :  { %5645 = vmatpush.msrb.mxu2 %v5470_v3  ;;  %5553 = vmatpush.msra.mxu1 %v5499_v62  ;;  %v5428_v45 = vld [vmem:[#allocation11 + $0x9a8] sm:$0xff]  ;;  %v5518_v62 = vld [vmem:[#allocation11 + $0xc78] sm:$0xff] }
 0x657   :  { %5306 = vmatpush.msrb.mxu3 %v5164_v10  ;;  %v5424_v12 = vld [vmem:[#allocation11 + $0x988] sm:$0xff]  ;;  %v5514_v10 = vld [vmem:[#allocation11 + $0xc58] sm:$0xff] }
 0x658   :  { %5646 = vmatpush.msrb.mxu2 %v5466_v35  ;;  %5554 = vmatpush.msra.mxu1 %v5495_v53  ;;  %v5420_v3 = vld [vmem:[#allocation11 + $0x968] sm:$0xff]  ;;  %v5510_v35 = vld [vmem:[#allocation11 + $0xc38] sm:$0xff] }
 0x659   :  { %5307 = vmatpush.msrb.mxu3 %v5160_v23  ;;  %v5506_v53 = vld [vmem:[#allocation11 + $0xc18] sm:$0xff] }
 0x65a   :  { %5647 = vmatpush.msrb.mxu2 %v5462_v37  ;;  %5555 = vmatpush.msra.mxu1 %v5491_v16  ;;  %v5502_v23 = vld [vmem:[#allocation11 + $0xbf8] sm:$0xff] }
 0x65b   :  { %5308 = vmatpush.msrb.mxu3 %v5156_v50  ;;  %v5498_v37 = vld [vmem:[#allocation11 + $0xbd8] sm:$0xff] }
 0x65c   :  { %5648 = vmatpush.msrb.mxu2 %v5458_v8  ;;  %5556 = vmatpush.msra.mxu1 %v5487_v13  ;;  %v5494_v16 = vld [vmem:[#allocation11 + $0xbb8] sm:$0xff]  ;;  %v5718_v13 = vld [vmem:[%s9514_s7 + $0x70] sm:$0xff] }
 0x65d   :  { %5309 = vmatpush.msrb.mxu3 %v5152_v55  ;;  %v5490_v50 = vld [vmem:[#allocation11 + $0xb98] sm:$0xff]  ;;  %v5717_v55 = vld [vmem:[%s9514_s7 + $0x68] sm:$0xff] }
 0x65e   :  { %5649 = vmatpush.msrb.mxu2 %v5454_v56  ;;  %5557 = vmatpush.msra.mxu1 %v5483_v11  ;;  %v5486_v8 = vld [vmem:[#allocation11 + $0xb78] sm:$0xff]  ;;  %v4844_v56 = vpop.f32.mrf.mxu1 }
 0x65f   :  { %5310 = vmatmul.f32.vlgmr.msrb.gmra.mxu3 %v9210_v33  ;;  %6120 = vmatmul.msk.f32.vlgmr.msra.gmra.mxu1 %vm4823_vm15, %v9258_v61  ;;  %v5438_v33 = vld [vmem:[#allocation11 + $0x9f8] sm:$0xff] }
 0x660   :  { %5401 = vmatpush.msra.mxu3 %v5250_v1  ;;  %5602 = vmatpush.msrb.mxu1 %v5481_v42  ;;  %v5716_v11 = vld [vmem:[%s9514_s7 + $0x60] sm:$0xff]  ;;  %v5715_v1 = vld [vmem:[%s9514_s7 + $0x58] sm:$0xff]  ;;  %v9296_v42 = vpop.f32.mrf.mxu0 }
 0x661   :  { %5650 = vmatpush.msrb.mxu2 %v5450_v29 }
 0x662   :  { %5402 = vmatpush.msra.mxu3 %v5246_v25  ;;  %5603 = vmatpush.msrb.mxu1 %v5477_v15  ;;  %v5713_v25 = vld [vmem:[%s9514_s7 + $0x48] sm:$0xff]  ;;  %v5712_v15 = vld [vmem:[%s9514_s7 + $0x40] sm:$0xff] }
 0x663   :  { %5651 = vmatpush.msrb.mxu2 %v5446_v18  ;;  %v5711_v18 = vld [vmem:[%s9514_s7 + $0x38] sm:$0xff] }
 0x664   :  { %5403 = vmatpush.msra.mxu3 %v5242_v6  ;;  %5604 = vmatpush.msrb.mxu1 %v5473_v63  ;;  %v5710_v6 = vld [vmem:[%s9514_s7 + $0x30] sm:$0xff]  ;;  %v5709_v63 = vld [vmem:[%s9514_s7 + $0x28] sm:$0xff] }
 0x665   :  { %5652 = vmatpush.msrb.mxu2 %v5442_v46 }
 0x666   :  { %5404 = vmatpush.msra.mxu3 %v5238_v24  ;;  %5605 = vmatpush.msrb.mxu1 %v5469_v7  ;;  %v5708_v7 = vld [vmem:[%s9514_s7 + $0x20] sm:$0xff] }
 0x667   :  { %5653 = vmatpush.msrb.mxu2 %v5438_v33  ;;  %v5707_v33 = vld [vmem:[%s9514_s7 + $0x18] sm:$0xff] }
 0x668   :  { %5405 = vmatpush.msra.mxu3 %v5234_v47  ;;  %5606 = vmatpush.msrb.mxu1 %v5465_v21  ;;  %v5007_v46 = vpop.f32.mrf.mxu0  ;;  %v5706_v21 = vld [vmem:[%s9514_s7 + $0x10] sm:$0xff] }
 0x669   :  { %5654 = vmatpush.msrb.mxu2 %v5434_v30 }
 0x66a   :  { %5406 = vmatpush.msra.mxu3 %v5230_v4  ;;  %5607 = vmatpush.msrb.mxu1 %v5461_v19  ;;  %v5705_v4 = vld [vmem:[%s9514_s7 + $0x8] sm:$0xff]  ;;  %v5704_v19 = vld [vmem:[%s9514_s7] sm:$0xff] }
 0x66b   :  { %5655 = vmatpush.msrb.mxu2 %v5430_v27  ;;  %v5751_v27 = vld [vmem:[%s9514_s7 + $0x178] sm:$0xff] }
 0x66c   :  { %5407 = vmatpush.msra.mxu3 %v5226_v28  ;;  %5608 = vmatpush.msrb.mxu1 %v5457_v59  ;;  %v5750_v28 = vld [vmem:[%s9514_s7 + $0x170] sm:$0xff]  ;;  %v5749_v59 = vld [vmem:[%s9514_s7 + $0x168] sm:$0xff] }
 0x66d   :  { %5656 = vmatpush.msrb.mxu2 %v5426_v48  ;;  %v5748_v48 = vld [vmem:[%s9514_s7 + $0x160] sm:$0xff] }
 0x66e   :  { %5408 = vmatpush.msra.mxu3 %v5222_v0  ;;  %5609 = vmatpush.msrb.mxu1 %v5453_v2  ;;  %v5747_v0 = vld [vmem:[%s9514_s7 + $0x158] sm:$0xff] }
 0x66f   :  { %5657 = vmatpush.msrb.mxu2 %v5422_v5 }
 0x670   :  { %5658 = vmatmul.f32.vlgmr.msrb.gmra.mxu2 %v9248_v49  ;;  %5409 = vmatpush.msra.mxu3 %v5218_v44  ;;  %v9323_v47 = vpop.f32.mrf.mxu0  ;;  %v5746_v44 = vld [vmem:[%s9514_s7 + $0x150] sm:$0xff] }
 0x671   :  { %5610 = vmatpush.msrb.mxu1 %v5449_v14  ;;  %6119 = vmatmul.msk.f32.vlgmr.msra.gmra.mxu3 %vm4823_vm15, %v9235_v51  ;;  %v5456_v51 = vld [vmem:[#allocation11 + $0xa88] sm:$0xff]  ;;  %v9298_v29 = vpop.f32.mrf.mxu1 }
 0x672   :  { %5562 = vmatpush.msrb.mxu3 %v5480_v17  ;;  %v9354_v17 = vpop.f32.mrf.mxu2 }
 0x673   :  { %5611 = vmatpush.msrb.mxu1 %v5445_v52 }
 0x674   :  { %5563 = vmatpush.msrb.mxu3 %v5476_v36  ;;  %v5745_v36 = vld [vmem:[%s9514_s7 + $0x148] sm:$0xff] }
 0x675   :  { %5612 = vmatpush.msrb.mxu1 %v5441_v20 }
 0x676   :  { %5564 = vmatpush.msrb.mxu3 %v5472_v34 }
 0x677   :  { %5613 = vmatpush.msrb.mxu1 %v5437_v57  ;;  %v4864_v14 = vpop.f32.mrf.mxu3  ;;  %v5744_v57 = vld [vmem:[%s9514_s7 + $0x140] sm:$0xff] }
 0x678   :  { %5565 = vmatpush.msrb.mxu3 %v5468_v43  ;;  %v5271_v2 = vpop.f32.mrf.mxu0  ;;  %v4865_v52 = vadd.f32 %v4864_v14, %v4844_v56  ;;  %v5729_v56 = vld [vmem:[%s9514_s7 + $0xc8] sm:$0xff] }
 0x679   :  { %5614 = vmatpush.msrb.mxu1 %v5433_v26  ;;  %v5743_v26 = vld [vmem:[%s9514_s7 + $0x138] sm:$0xff] }
 0x67a   :  { %5566 = vmatpush.msrb.mxu3 %v5464_v9  ;;  %v9315_v24 = vpop.f32.mrf.mxu1  ;;  %v5008_v43 = vadd.f32 %v5007_v46, %v4865_v52  ;;  %v5742_v9 = vld [vmem:[%s9514_s7 + $0x130] sm:$0xff]  ;;  %v5724_v46 = vld [vmem:[%s9514_s7 + $0xa0] sm:$0xff] }
 0x67b   :  { %5615 = vmatpush.msrb.mxu1 %v5429_v31  ;;  %v5760_v52 = vld [vmem:[%s9514_s7 + $0x1c0] sm:$0xff] }
 0x67c   :  { %5567 = vmatpush.msrb.mxu3 %v5460_v32  ;;  %v5741_v32 = vld [vmem:[%s9514_s7 + $0x128] sm:$0xff] }
 0x67d   :  { %5616 = vmatpush.msrb.mxu1 %v5425_v54  ;;  %v5027_v54 = vpop.f32.mrf.mxu2 }
 0x67e   :  { %5568 = vmatpush.msrb.mxu3 %v5456_v51  ;;  %v9375_v51 = vld [vmem:[#allocation12] sm:$0xf] }
 0x67f   :  { %5617 = vmatpush.msrb.mxu1 %v5421_v22  ;;  %v5028_v22 = vadd.f32 %v5027_v54, %v5008_v43 }
 0x680   :  { %5569 = vmatpush.msrb.mxu3 %v5452_v38  ;;  %5618 = vmatmul.f32.vlgmr.msrb.gmra.mxu1 %v9248_v49 }
 0x682   :  { %5570 = vmatpush.msrb.mxu3 %v5448_v40 }
 0x684   :  { %5571 = vmatpush.msrb.mxu3 %v5444_v41 }
 0x685   :  { %v9359_v20 = vpop.f32.mrf.mxu0 }
 0x686   :  { %5572 = vmatpush.msrb.mxu3 %v5440_v39 }
 0x688   :  { %5573 = vmatpush.msrb.mxu3 %v5436_v58  ;;  %v5688_v58 = vperm.slane %v9375_v51, 0 }
 0x68a   :  { %5574 = vmatpush.msrb.mxu3 %v5432_v60  ;;  %v5740_v60 = vld [vmem:[%s9514_s7 + $0x120] sm:$0xff] }
 0x68c   :  { %5575 = vmatpush.msrb.mxu3 %v5428_v45  ;;  %v5735_v45 = vld [vmem:[%s9514_s7 + $0xf8] sm:$0xff] }
 0x68d   :  { %5798 = vmatpush.msra.mxu1 %v5735_v45  ;;  %v5752_v45 = vld [vmem:[%s9514_s7 + $0x180] sm:$0xff] }
 0x68e   :  { %5576 = vmatpush.msrb.mxu3 %v5424_v12 }
 0x690   :  { %5577 = vmatpush.msrb.mxu3 %v5420_v3  ;;  %v5739_v3 = vld [vmem:[%s9514_s7 + $0x118] sm:$0xff] }
 0x691   :  { %5578 = vmatmul.f32.vlgmr.msrb.gmra.mxu3 %v9248_v49  ;;  %v5719_v49 = vld [vmem:[%s9514_s7 + $0x78] sm:$0xff] }
 0x692   :  { %5669 = vmatpush.msra.mxu3 %v5518_v62  ;;  %5778 = vmatpush.msrb.mxu0 %v5719_v49  ;;  %v5734_v62 = vld [vmem:[%s9514_s7 + $0xf0] sm:$0xff]  ;;  %v5731_v49 = vld [vmem:[%s9514_s7 + $0xd8] sm:$0xff] }
 0x693   :  { %5799 = vmatpush.msra.mxu1 %v5734_v62 }
 0x694   :  { %5670 = vmatpush.msra.mxu3 %v5514_v10  ;;  %5779 = vmatpush.msrb.mxu0 %v5718_v13  ;;  %v5730_v13 = vld [vmem:[%s9514_s7 + $0xd0] sm:$0xff] }
 0x695   :  { %v9328_v30 = vpop.f32.mrf.mxu1 }
 0x696   :  { %5671 = vmatpush.msra.mxu3 %v5510_v35  ;;  %5780 = vmatpush.msrb.mxu0 %v5717_v55  ;;  %v5738_v35 = vld [vmem:[%s9514_s7 + $0x110] sm:$0xff] }
 0x697   :  { %v5539_v38 = vpop.f32.mrf.mxu0  ;;  %v5766_v55 = vld [vmem:[%s9514_s7 + $0x1f0] sm:$0xf] }
 0x698   :  { %5672 = vmatpush.msra.mxu3 %v5506_v53  ;;  %5781 = vmatpush.msrb.mxu0 %v5716_v11  ;;  %v4944_v53 = vpop.f32.mrf.mxu3  ;;  %v5765_v11 = vld [vmem:[%s9514_s7 + $0x1e8] sm:$0xff] }
 0x699   :  { %6124 = vmatpush.msk.msra.mxu2 %vm983_vm1, %v5766_v55  ;;  %vm5858_vm1 = vcmask 80896  }
 0x69a   :  { %5673 = vmatpush.msra.mxu3 %v5502_v23  ;;  %5782 = vmatpush.msrb.mxu0 %v5715_v1  ;;  %v5733_v23 = vld [vmem:[%s9514_s7 + $0xe8] sm:$0xff]  ;;  %v5728_v1 = vld [vmem:[%s9514_s7 + $0xc0] sm:$0xff] }
 0x69b   :  { %5800 = vmatpush.msra.mxu1 %v5733_v23  ;;  %5840 = vmatpush.msra.mxu2 %v5765_v11 }
 0x69c   :  { %5674 = vmatpush.msra.mxu3 %v5498_v37 }
 0x69e   :  { %5675 = vmatpush.msra.mxu3 %v5494_v16  ;;  %v5737_v16 = vld [vmem:[%s9514_s7 + $0x108] sm:$0xff] }
 0x6a0   :  { %5676 = vmatpush.msra.mxu3 %v5490_v50  ;;  %v5732_v50 = vld [vmem:[%s9514_s7 + $0xe0] sm:$0xff] }
 0x6a1   :  { %5801 = vmatpush.msra.mxu1 %v5732_v50 }
 0x6a2   :  { %5677 = vmatpush.msra.mxu3 %v5486_v8  ;;  %v5736_v8 = vld [vmem:[%s9514_s7 + $0x100] sm:$0xff] }
 0x6a3   :  { %6123 = vmatmul.msk.f32.vlgmr.msra.gmra.mxu3 %vm4823_vm15, %v9258_v61  ;;  %v5714_v61 = vld [vmem:[%s9514_s7 + $0x50] sm:$0xff]  ;;  %5802 = vmatpush.msra.mxu1 %v5731_v49 }
 0x6a4   :  { %5783 = vmatpush.msrb.mxu0 %v5714_v61  ;;  %5818 = vmatpush.msrb.mxu3 %v5751_v27  ;;  %v9424_v61 = vpop.f32.mrf.mxu3  ;;  %v5722_v27 = vld [vmem:[%s9514_s7 + $0x90] sm:$0xff] }
 0x6a5   :  { %5803 = vmatpush.msra.mxu1 %v5730_v13 }
 0x6a6   :  { %5784 = vmatpush.msrb.mxu0 %v5713_v25  ;;  %5819 = vmatpush.msrb.mxu3 %v5750_v28  ;;  %v5727_v25 = vld [vmem:[%s9514_s7 + $0xb8] sm:$0xff]  ;;  %v5762_v28 = vld [vmem:[%s9514_s7 + $0x1d0] sm:$0xff] }
 0x6a7   :  { %5804 = vmatpush.msra.mxu1 %v5729_v56 }
 0x6a8   :  { %5785 = vmatpush.msrb.mxu0 %v5712_v15  ;;  %5820 = vmatpush.msrb.mxu3 %v5749_v59  ;;  %v5291_v5 = vpop.f32.mrf.mxu1  ;;  %v5726_v15 = vld [vmem:[%s9514_s7 + $0xb0] sm:$0xff] }
 0x6a9   :  { %v5292_v31 = vadd.f32 %v5291_v5, %v5271_v2  ;;  %5805 = vmatpush.msra.mxu1 %v5728_v1 }
 0x6aa   :  { %5786 = vmatpush.msrb.mxu0 %v5711_v18  ;;  %5821 = vmatpush.msrb.mxu3 %v5748_v48  ;;  %v5725_v18 = vld [vmem:[%s9514_s7 + $0xa8] sm:$0xff] }
 0x6ab   :  { %v5414_v41 = vadd.f32 %v5292_v31, %v5028_v22  ;;  %5806 = vmatpush.msra.mxu1 %v5727_v25  ;;  %v5721_v48 = vld [vmem:[%s9514_s7 + $0x88] sm:$0xff]  ;;  %v5639_v14 = vpop.f32.mrf.mxu0  ;;  %v5756_v22 = vld [vmem:[%s9514_s7 + $0x1a0] sm:$0xff]  ;;  %v5691_v25 = vperm.slane %v9375_v51, 3 }
 0x6ac   :  { %5787 = vmatpush.msrb.mxu0 %v5710_v6  ;;  %5822 = vmatpush.msrb.mxu3 %v5747_v0  ;;  %v5067_v6 = vpop.f32.mrf.mxu2  ;;  %v5720_v0 = vld [vmem:[%s9514_s7 + $0x80] sm:$0xff] }
 0x6ad   :  { %5807 = vmatpush.msra.mxu1 %v5726_v15 }
 0x6ae   :  { %5788 = vmatpush.msrb.mxu0 %v5709_v63  ;;  %5823 = vmatpush.msrb.mxu3 %v5746_v44  ;;  %v5047_v63 = vpop.f32.mrf.mxu3 }
 0x6af   :  { %5808 = vmatpush.msra.mxu1 %v5725_v18 }
 0x6b0   :  { %5789 = vmatpush.msrb.mxu0 %v5708_v7  ;;  %5824 = vmatpush.msrb.mxu3 %v5745_v36  ;;  %v5764_v7 = vld [vmem:[%s9514_s7 + $0x1e0] sm:$0xff]  ;;  %v5759_v36 = vld [vmem:[%s9514_s7 + $0x1b8] sm:$0xff] }
 0x6b1   :  { %5809 = vmatpush.msra.mxu1 %v5724_v46  ;;  %5841 = vmatpush.msra.mxu2 %v5764_v7 }
 0x6b2   :  { %5790 = vmatpush.msrb.mxu0 %v5707_v33  ;;  %5825 = vmatpush.msrb.mxu3 %v5744_v57  ;;  %v4945_v33 = vadd.f32 %v4944_v53, %v9354_v17  ;;  %v5690_v57 = vperm.slane %v9375_v51, 2 }
 0x6b4   :  { %5791 = vmatpush.msrb.mxu0 %v5706_v21  ;;  %5826 = vmatpush.msrb.mxu3 %v5743_v26  ;;  %v5723_v21 = vld [vmem:[%s9514_s7 + $0x98] sm:$0xff]  ;;  %v5127_v2 = vpop.f32.mrf.mxu2  ;;  %v5757_v26 = vld [vmem:[%s9514_s7 + $0x1a8] sm:$0xff] }
 0x6b5   :  { %5810 = vmatpush.msra.mxu1 %v5723_v21 }
 0x6b6   :  { %5792 = vmatpush.msrb.mxu0 %v5705_v4  ;;  %5827 = vmatpush.msrb.mxu3 %v5742_v9  ;;  %v5763_v4 = vld [vmem:[%s9514_s7 + $0x1d8] sm:$0xff] }
 0x6b7   :  { %5842 = vmatpush.msra.mxu2 %v5763_v4  ;;  %5811 = vmatpush.msra.mxu1 %v5722_v27 }
 0x6b8   :  { %5793 = vmatpush.msrb.mxu0 %v5704_v19  ;;  %5828 = vmatpush.msrb.mxu3 %v5741_v32  ;;  %v5088_v19 = vadd.f32 %v9328_v30, %v4945_v33  ;;  %v5761_v30 = vld [vmem:[%s9514_s7 + $0x1c8] sm:$0xff] }
 0x6b9   :  { %5843 = vmatpush.msra.mxu2 %v5762_v28  ;;  %5812 = vmatpush.msra.mxu1 %v5721_v48 }
 0x6ba   :  { %5829 = vmatpush.msrb.mxu3 %v5740_v60  ;;  %v5108_v5 = vadd.f32 %v9323_v47, %v5088_v19  ;;  %v5758_v47 = vld [vmem:[%s9514_s7 + $0x1b0] sm:$0xff]  ;;  %v4905_v60 = vadd.f32 %v9298_v29, %v9296_v42  ;;  %v4985_v42 = vadd.f32 %v9424_v61, %v9315_v24 }
 0x6bb   :  { %5844 = vmatpush.msra.mxu2 %v5761_v30  ;;  %5813 = vmatpush.msra.mxu1 %v5720_v0 }
 0x6bc   :  { %5830 = vmatpush.msrb.mxu3 %v5739_v3  ;;  %v5331_v31 = vpop.f32.mrf.mxu2  ;;  %v5128_v29 = vadd.f32 %v5127_v2, %v4985_v42 }
 0x6bd   :  { %5845 = vmatpush.msra.mxu2 %v5760_v52 }
 0x6be   :  { %5831 = vmatpush.msrb.mxu3 %v5738_v35 }
 0x6bf   :  { %5846 = vmatpush.msra.mxu2 %v5759_v36 }
 0x6c0   :  { %5832 = vmatpush.msrb.mxu3 %v5737_v16 }
 0x6c1   :  { %v5147_v44 = vpop.f32.mrf.mxu3  ;;  %5847 = vmatpush.msra.mxu2 %v5758_v47 }
 0x6c2   :  { %5833 = vmatpush.msrb.mxu3 %v5736_v8  ;;  %v5148_v13 = vadd.f32 %v5147_v44, %v5128_v29 }
 0x6c3   :  { %5848 = vmatpush.msra.mxu2 %v5757_v26 }
 0x6c5   :  { %5849 = vmatpush.msra.mxu2 %v5756_v22 }
 0x6ca   :  { %v9361_v34 = vpop.f32.mrf.mxu1 }
 0x6cb   :  { %v5372_v59 = vadd.f32 %v9359_v20, %v9361_v34 }
 0x6cd   :  { %v5416_v20 = vadd.f32 %v5372_v59, %v5108_v5 }
 0x6dc   :  { %v5559_v40 = vpop.f32.mrf.mxu1 }
 0x6dd   :  { %v5560_v39 = vadd.f32 %v5559_v40, %v5539_v38  ;;  %v5755_v38 = vld [vmem:[%s9514_s7 + $0x198] sm:$0xff]  ;;  %v5754_v40 = vld [vmem:[%s9514_s7 + $0x190] sm:$0xff] }
 0x6de   :  { %5850 = vmatpush.msra.mxu2 %v5755_v38 }
 0x6df   :  { %v5682_v12 = vadd.f32 %v5560_v39, %v5414_v41  ;;  %v5753_v41 = vld [vmem:[%s9514_s7 + $0x188] sm:$0xff]  ;;  %v5391_v39 = vpop.f32.mrf.mxu2 }
 0x6e0   :  { %5851 = vmatpush.msra.mxu2 %v5754_v40 }
 0x6e1   :  { %v5696_v10 = vadd.f32 %v5688_v58, %v5682_v12  ;;  %v5048_v12 = vadd.f32 %v5047_v63, %v4905_v60  ;;  %v6142_v63 = vld [vmem:[#allocation14] ss:$0 sm:$0xff] }
 0x6e2   :  { %v5311_v32 = vpop.f32.mrf.mxu3  ;;  %5852 = vmatpush.msra.mxu2 %v5753_v41 }
 0x6e3   :  { %v5700_v37 = vmax.f32 %v5696_v10, 0.0  ;;  %v5332_v3 = vadd.f32 %v5331_v31, %v5311_v32  ;;  %v5068_v62 = vadd.f32 %v5067_v6, %v5048_v12 }
 0x6e4   :  { %5853 = vmatpush.msra.mxu2 %v5752_v45 }
 0x6e5   :  { %5794 = vmatmul.f32.vlgmr.msrb.gmra.mxu0 %v5700_v37  ;;  %v5415_v53 = vadd.f32 %v5332_v3, %v5068_v62  ;;  %v5689_v37 = vperm.slane %v9375_v51, 1 }
 0x6e7   :  { %v5599_v10 = vpop.f32.mrf.mxu2 }
 0x6f3   :  { %v5659_v55 = vpop.f32.mrf.mxu2 }
 0x6f4   :  { %v5411_v58 = vpop.f32.mrf.mxu3 }
 0x6f5   :  { %v5412_v49 = vadd.f32 %v5411_v58, %v5391_v39 }
 0x6f7   :  { %v5417_v11 = vadd.f32 %v5412_v49, %v5148_v13 }
 0x6fd   :  { %v5619_v17 = vpop.f32.mrf.mxu1 }
 0x6fe   :  { %v5640_v34 = vadd.f32 %v5639_v14, %v5619_v17 }
 0x700   :  { %v5684_v43 = vadd.f32 %v5640_v34, %v5416_v20 }
 0x702   :  { %v5698_v9 = vadd.f32 %v5690_v57, %v5684_v43 }
 0x704   :  { %v5702_v54 = vmax.f32 %v5698_v9, 0.0 }
 0x706   :  { %5834 = vmatmul.f32.vlgmr.msrb.gmra.mxu3 %v5702_v54 }
 0x714   :  { %v5579_v35 = vpop.f32.mrf.mxu3 }
 0x715   :  { %v5600_v23 = vadd.f32 %v5599_v10, %v5579_v35 }
 0x717   :  { %v5683_v16 = vadd.f32 %v5600_v23, %v5415_v53 }
 0x719   :  { %v5697_v50 = vadd.f32 %v5689_v37, %v5683_v16 }
 0x71b   :  { %v5701_v8 = vmax.f32 %v5697_v50, 0.0 }
 0x71d   :  { %5814 = vmatmul.f32.vlgmr.msra.gmra.mxu1 %v5701_v8 }
 0x726   :  { %v5679_v56 = vpop.f32.mrf.mxu3 }
 0x727   :  { %v5680_v1 = vadd.f32 %v5679_v56, %v5659_v55 }
 0x729   :  { %v5685_v15 = vadd.f32 %v5680_v1, %v5417_v11 }
 0x72b   :  { %v5699_v18 = vadd.f32 %v5691_v25, %v5685_v15 }
 0x72d   :  { %v5703_v6 = vmax.f32 %v5699_v18, 0.0 }
 0x72f   :  { %6125 = vmatmul.msk.f32.vlgmr.msra.gmra.mxu2 %vm5771_vm0, %v5703_v6 }
 0x762   :  { %v5795_v46 = vpop.f32.mrf.mxu0 }
 0x763   :  { %v5796_v33 = vadd.f32 %v6142_v63, %v5795_v46 }
 0x789   :  { %v5835_v24 = vpop.f32.mrf.mxu3 }
 0x79a   :  { %v5815_v7 = vpop.f32.mrf.mxu1 }
 0x79b   :  { %v5816_v21 = vadd.f32 %v5815_v7, %v5796_v33 }
 0x79d   :  { %v5836_v61 = vadd.f32 %v5835_v24, %v5816_v21 }
 0x7b2   :  { %v5855_v4 = vpop.f32.mrf.mxu2 }
 0x7b3   :  { %v5856_v19 = vadd.f32 %v5855_v4, %v5836_v61 }
 0x7b5   :  { %v5859_v27 = vsel %vm5858_vm1, %v5856_v19, -inf }
 0x7b6   :  { %5860 = vmax.xlane.f32.xlu1 %v5859_v27 }
 0x829   :  { %v5861_v28 = vpop.xlane.xlu1 %5860 }
 0x82a   :  { %v5862_v51 = vsub.f32 %v5856_v19, %v5861_v28 }
 0x82c   :  { %v5863_v59 = vmul.f32 1.442695, %v5862_v51 }
 0x82e   :  { %6143 = vpow2.f32 %v5863_v59 }
 0x834   :  { %v6144_v48 = vpop.eup %6143 }
 0x835   :  { %v5865_v30 = vsel %vm5858_vm1, %v6144_v48, 0.0 }
 0x836   :  { %5866 = vadd.xlane.f32.xlu2 %v5865_v30 }
 0x8a9   :  { %v5867_v0 = vpop.xlane.xlu2 %5866 }
 0x8aa   :  { %6145 = vlog2.f32 %v5867_v0 }
 0x8b0   :  { %v6146_v2 = vpop.eup %6145 }
 0x8b1   :  { %v5869_v5 = vmul.f32 0.6931472, %v6146_v2 }
 0x8b3   :  { %v5870_v44 = vsub.f32 %v5862_v51, %v5869_v5 }
 0x8b5   :  { %5871 = vst.msk [vmem:[%s9516_s9] sm:$0xff] %vm5858_vm1, %v5870_v44 }
 0x8b6   :  { %5876 = vsyncpa [#allocation5], 1 }
 0x8b7   :  { %5877 = vsyncpa [#allocation7], 1 }
 0x8b8   :  { %5878 = vsyncpa [#allocation10], 1 }
 0x8b9   :  { %5879 = vsyncpa [#allocation13], 1 }

</bundles_post_ra>
